<compile_context>
chip_gen: v6e
topology: v6e:2x2x1
jax: 0.10.0
libtpu: 0.0.40
codegen_flags: <defaults>
</compile_context>

<pallas_src>
import functools

import jax
import jax.numpy as jnp
from jax.experimental import pallas as pl
from jax.experimental.pallas import tpu as pltpu


def _round_up(x, m):
    return (x + m - 1) // m * m


def _cdiv(a, b):
    return (a + b - 1) // b


def _tile(dim, tile_max, align):
    """Pick (tile, padded_dim): ~tile_max-sized tiles, align-multiple, minimal pad."""
    aligned = _round_up(dim, align)
    n = _cdiv(aligned, tile_max)
    tile = _round_up(_cdiv(aligned, n), align)
    return tile, n * tile


def _pad2(a, rows, cols):
    r, c = a.shape
    if r == rows and c == cols:
        return a
    return jnp.pad(a, ((0, rows - r), (0, cols - c)))


# ---------------------------------------------------------------------------
# Fused (X @ W) + bias [+ ReLU]:  bf16 operands -> f32 MXU accumulation.
# Grid = (M tiles, N tiles, K tiles); K is the last ("arbitrary") reduction.
# ---------------------------------------------------------------------------
def _mm_bias_kernel(x_ref, w_ref, b_ref, o_ref, acc_ref, *, relu):
    k = pl.program_id(2)

    @pl.when(k == 0)
    def _():
        acc_ref[...] = jnp.zeros_like(acc_ref)

    acc_ref[...] += jnp.dot(x_ref[...], w_ref[...],
                            preferred_element_type=jnp.float32)

    @pl.when(k == pl.num_programs(2) - 1)
    def _():
        y = acc_ref[...] + b_ref[...]          # epilogue math stays f32
        if relu:
            y = jnp.maximum(y, 0.0)
        o_ref[...] = y.astype(o_ref.dtype)


def fused_matmul_bias(x, w, bias, *, relu, out_dtype=jnp.bfloat16,
                      tm_max=256, tn_max=256, tk_max=1024):
    """out = maybe_relu(x @ w + bias); x:(M,K), w:(K,N), bias:(N,)."""
    M, K = x.shape
    Kw, N = w.shape
    assert K == Kw, (K, Kw)

    # Tile / padding choices (near-minimal padding, MXU/lane aligned).
    tm, Mp = _tile(M, tm_max, 16)          # bf16 sublane packing -> 16
    tk, Kp = _tile(K, tk_max, 128)
    Np = _round_up(N, 128)
    tn = tn_max if Np % tn_max == 0 else 128

    xb = _pad2(x.astype(jnp.bfloat16), Mp, Kp)
    wb = _pad2(w.astype(jnp.bfloat16), Kp, Np)
    bb = jnp.pad(bias.astype(jnp.float32), (0, Np - N)).reshape(1, Np)

    grid = (Mp // tm, Np // tn, Kp // tk)
    out = pl.pallas_call(
        functools.partial(_mm_bias_kernel, relu=relu),
        out_shape=jax.ShapeDtypeStruct((Mp, Np), out_dtype),
        grid_spec=pltpu.PrefetchScalarGridSpec(
            num_scalar_prefetch=0,
            grid=grid,
            in_specs=[
                pl.BlockSpec((tm, tk), lambda i, j, k: (i, k)),
                pl.BlockSpec((tk, tn), lambda i, j, k: (k, j)),
                pl.BlockSpec((1, tn), lambda i, j, k: (0, j)),
            ],
            out_specs=pl.BlockSpec((tm, tn), lambda i, j, k: (i, j)),
            scratch_shapes=[pltpu.VMEM((tm, tn), jnp.float32)],
        ),
        compiler_params=pltpu.CompilerParams(
            dimension_semantics=("parallel", "parallel", "arbitrary"),
            vmem_limit_bytes=32 * 1024 * 1024),
    )(xb, wb, bb)
    return out[:M, :N]


# ---------------------------------------------------------------------------
# statistic_pool: mean + unbiased std over the time axis (tiled over batch).
# ---------------------------------------------------------------------------
def _stat_pool_kernel(x_ref, mean_ref, std_ref):
    x = x_ref[...].astype(jnp.float32)                     # (1, T, C)
    t = x.shape[1]
    mean = jnp.mean(x, axis=1, keepdims=True)              # (1, 1, C)
    diff = x - mean
    var = jnp.sum(diff * diff, axis=1, keepdims=True) / (t - 1)  # torch.std (unbiased)
    mean_ref[...] = mean
    std_ref[...] = jnp.sqrt(var)


def statistic_pool(x):
    B, T, C = x.shape
    mean, std = pl.pallas_call(
        _stat_pool_kernel,
        out_shape=(jax.ShapeDtypeStruct((B, 1, C), jnp.float32),
                   jax.ShapeDtypeStruct((B, 1, C), jnp.float32)),
        grid=(B,),
        in_specs=[pl.BlockSpec((1, T, C), lambda b: (b, 0, 0))],
        out_specs=(pl.BlockSpec((1, 1, C), lambda b: (b, 0, 0)),
                   pl.BlockSpec((1, 1, C), lambda b: (b, 0, 0))),
        compiler_params=pltpu.CompilerParams(
            dimension_semantics=("parallel",)),
    )(x)
    return jnp.concatenate([mean.reshape(B, C), std.reshape(B, C)], axis=-1)


# ---------------------------------------------------------------------------
# Layer glue: im2col (plain JAX) + fused Pallas matmul.
# ---------------------------------------------------------------------------
def conv_layer(x, w_mat, bias, *, ksize, stride):
    # x: (B, T, Cin); w_mat: (ksize*Cin, Cout) with BN scale already folded in.
    B, T, Cin = x.shape
    Cout = w_mat.shape[1]
    Tout = (T - ksize) // stride + 1
    if ksize == 1 and stride == 1:
        patches = x.reshape(B * T, Cin)
    else:
        cols = [x[:, k: k + stride * Tout: stride, :] for k in range(ksize)]
        patches = jnp.concatenate(cols, axis=-1).reshape(B * Tout, ksize * Cin)
    y = fused_matmul_bias(patches, w_mat, bias, relu=True,
                          out_dtype=jnp.bfloat16)
    return y.reshape(B, Tout, Cout)


def linear(x, w_t, b, *, relu, out_dtype=jnp.bfloat16):
    # w_t is already (in, out) — pre-transposed once in fold_params.
    return fused_matmul_bias(x, w_t, b, relu=relu, out_dtype=out_dtype)


# ---------------------------------------------------------------------------
# Deterministic synthetic parameters (torch layout) + one-time folding.
# ---------------------------------------------------------------------------
def init_params(key, in_dim, n_labels):
    keys = iter(jax.random.split(key, 64))

    def conv_p(cin, cout, k):
        bound = 1.0 / (cin * k) ** 0.5
        w = jax.random.uniform(next(keys), (cout, cin, k), jnp.float32, -bound, bound)
        b = jax.random.uniform(next(keys), (cout,), jnp.float32, -bound, bound)
        return w, b

    def bn_p(c):
        gamma = jax.random.uniform(next(keys), (c,), jnp.float32, 0.9, 1.1)
        beta = jax.random.uniform(next(keys), (c,), jnp.float32, -0.1, 0.1)
        rmean = jax.random.uniform(next(keys), (c,), jnp.float32, -0.1, 0.1)
        rvar = jax.random.uniform(next(keys), (c,), jnp.float32, 0.5, 1.5)
        return gamma, beta, rmean, rvar

    def lin_p(cin, cout):
        bound = 1.0 / cin ** 0.5
        w = jax.random.uniform(next(keys), (cout, cin), jnp.float32, -bound, bound)
        b = jax.random.uniform(next(keys), (cout,), jnp.float32, -bound, bound)
        return w, b

    return {
        "conv0": conv_p(in_dim, 1000, 5), "bn0": bn_p(1000),
        "conv1": conv_p(1000, 1000, 7),   "bn1": bn_p(1000),
        "conv2": conv_p(1000, 1000, 1),   "bn2": bn_p(1000),
        "conv3": conv_p(1000, 1500, 1),   "bn3": bn_p(1500),
        "fc1": lin_p(3000, 1500),
        "fc2": lin_p(1500, 600),
        "fc3": lin_p(600, n_labels),
    }


def fold_params(p, eps=1e-5):
    """One-time host-side prep: fold BN into conv weights/bias, pre-transpose
    FC weights, and cast weights to bf16 (MXU operand dtype)."""
    def conv(w, b, gamma, beta, rmean, rvar):
        # w: torch layout (Cout, Cin, K) -> matmul layout (K*Cin, Cout).
        cout, cin, k = w.shape
        s = gamma / jnp.sqrt(rvar + eps)
        w_mat = jnp.transpose(w, (2, 1, 0)).reshape(k * cin, cout) * s[None, :]
        bias = (b - rmean) * s + beta
        return w_mat.astype(jnp.bfloat16), bias.astype(jnp.float32)

    def lin(w, b):
        # torch Linear W: (out, in) -> store (in, out) once.
        return jnp.transpose(w).astype(jnp.bfloat16), b.astype(jnp.float32)

    return {
        "conv0": conv(*p["conv0"], *p["bn0"]),
        "conv1": conv(*p["conv1"], *p["bn1"]),
        "conv2": conv(*p["conv2"], *p["bn2"]),
        "conv3": conv(*p["conv3"], *p["bn3"]),
        "fc1": lin(*p["fc1"]),
        "fc2": lin(*p["fc2"]),
        "fc3": lin(*p["fc3"]),
    }


def forward(p, x):
    # torch: x.squeeze(1).permute(0,2,1) -> (B, C, T).  Here we stay (B, T, C).
    x = jnp.squeeze(x, axis=1).astype(jnp.bfloat16)                 # (B, T, in_dim)
    x = conv_layer(x, *p["conv0"], ksize=5, stride=1)               # (B, T-4, 1000)
    x = conv_layer(x, *p["conv1"], ksize=7, stride=2)               # (B, T1, 1000)
    x = conv_layer(x, *p["conv2"], ksize=1, stride=1)               # (B, T1, 1000)
    x = conv_layer(x, *p["conv3"], ksize=1, stride=1)               # (B, T1, 1500)
    x = statistic_pool(x)                                           # (B, 3000) f32
    x = linear(x, *p["fc1"], relu=False)                            # (B, 1500)
    x = linear(x, *p["fc2"], relu=True)                             # (B, 600)
    x = linear(x, *p["fc3"], relu=False, out_dtype=jnp.float32)     # (B, n_labels)
    return x


if __name__ == "__main__":
    B, T, in_dim, n_labels = 2, 16, 16, 10
    key = jax.random.PRNGKey(0)
    k_x, k_p = jax.random.split(key)
    x = jax.random.normal(k_x, (B, 1, T, in_dim), jnp.float32)
    params = fold_params(init_params(k_p, in_dim, n_labels))

    out = jax.jit(forward)(params, x)
    out = jax.block_until_ready(out)
    assert out.shape == (B, n_labels), out.shape
    assert jnp.all(jnp.isfinite(out))
    print("KERNEL_OK")
</pallas_src>

<mosaic_0001>
module attributes {stable_mosaic.version = 11 : i64} {
  func.func @_mm_bias_kernel(%arg0: i32, %arg1: i32, %arg2: i32, %arg3: memref<32x128xbf16, #tpu.memory_space<vmem>>, %arg4: memref<128x256xbf16, #tpu.memory_space<vmem>>, %arg5: memref<1x256xf32, #tpu.memory_space<vmem>>, %arg6: memref<32x256xbf16, #tpu.memory_space<vmem>>, %arg7: memref<32x256xf32, #tpu.memory_space<vmem>>) attributes {dimension_semantics = [#tpu.dimension_semantics<parallel>, #tpu.dimension_semantics<parallel>, #tpu.dimension_semantics<arbitrary>], iteration_bounds = array<i64: 1, 4, 1>, scalar_prefetch = 0 : i64, scratch_operands = 1 : i64, tpu.core_type = #tpu.core_type<tc>, window_params = [{transform_indices = @transform_0, window_bounds = array<i64: 32, 128>}, {transform_indices = @transform_1, window_bounds = array<i64: 128, 256>}, {transform_indices = @transform_2, window_bounds = array<i64: 1, 256>}, {transform_indices = @transform_3, window_bounds = array<i64: 32, 256>}]} {
    %c0_i32 = arith.constant 0 : i32
    %0 = arith.cmpi eq, %arg2, %c0_i32 : i32
    %1 = arith.extui %0 : i1 to i32
    %c0_i32_0 = arith.constant 0 : i32
    %2 = arith.cmpi ne, %1, %c0_i32_0 : i32
    scf.if %2 {
      %cst_10 = arith.constant 0.000000e+00 : f32
      %12 = vector.broadcast %cst_10 : f32 to vector<32x256xf32>
      %c0_11 = arith.constant 0 : index
      %c0_12 = arith.constant 0 : index
      %13 = vector.load %arg7[%c0_11, %c0_12] : memref<32x256xf32, #tpu.memory_space<vmem>>, vector<32x256xf32>
      tpu.vector_store %arg7[%c0_11, %c0_12], %12 {strides = array<i32>} : memref<32x256xf32, #tpu.memory_space<vmem>>, vector<32x256xf32>,
    } else {
    }
    %c0 = arith.constant 0 : index
    %c0_1 = arith.constant 0 : index
    %3 = vector.load %arg7[%c0, %c0_1] : memref<32x256xf32, #tpu.memory_space<vmem>>, vector<32x256xf32>
    %c0_2 = arith.constant 0 : index
    %c0_3 = arith.constant 0 : index
    %4 = vector.load %arg3[%c0_2, %c0_3] : memref<32x128xbf16, #tpu.memory_space<vmem>>, vector<32x128xbf16>
    %c0_4 = arith.constant 0 : index
    %c0_5 = arith.constant 0 : index
    %5 = vector.load %arg4[%c0_4, %c0_5] : memref<128x256xbf16, #tpu.memory_space<vmem>>, vector<128x256xbf16>
    %cst = arith.constant dense<0.000000e+00> : vector<32x256xf32>
    %6 = tpu.matmul %4, %5, %cst {dimension_numbers = #tpu.dot_dimension_numbers<[1], [0], [0], [1], [0, 0, 1, 1], [], []>} : vector<32x128xbf16>, vector<128x256xbf16>, vector<32x256xf32> -> vector<32x256xf32>
    %7 = arith.addf %3, %6 : vector<32x256xf32>
    %c0_6 = arith.constant 0 : index
    %c0_7 = arith.constant 0 : index
    %8 = vector.load %arg7[%c0_6, %c0_7] : memref<32x256xf32, #tpu.memory_space<vmem>>, vector<32x256xf32>
    tpu.vector_store %arg7[%c0_6, %c0_7], %7 {strides = array<i32>} : memref<32x256xf32, #tpu.memory_space<vmem>>, vector<32x256xf32>,
    %c0_i32_8 = arith.constant 0 : i32
    %9 = arith.cmpi eq, %arg2, %c0_i32_8 : i32
    %10 = arith.extui %9 : i1 to i32
    %c0_i32_9 = arith.constant 0 : i32
    %11 = arith.cmpi ne, %10, %c0_i32_9 : i32
    scf.if %11 {
      %c0_10 = arith.constant 0 : index
      %c0_11 = arith.constant 0 : index
      %12 = vector.load %arg7[%c0_10, %c0_11] : memref<32x256xf32, #tpu.memory_space<vmem>>, vector<32x256xf32>
      %c0_12 = arith.constant 0 : index
      %c0_13 = arith.constant 0 : index
      %13 = vector.load %arg5[%c0_12, %c0_13] : memref<1x256xf32, #tpu.memory_space<vmem>>, vector<1x256xf32>
      %14 = vector.broadcast %13 : vector<1x256xf32> to vector<32x256xf32>
      %15 = arith.addf %12, %14 : vector<32x256xf32>
      %cst_14 = arith.constant 0.000000e+00 : f32
      %16 = vector.broadcast %cst_14 : f32 to vector<32x256xf32>
      %17 = arith.maximumf %15, %16 : vector<32x256xf32>
      %18 = arith.truncf %17 : vector<32x256xf32> to vector<32x256xbf16>
      %c0_15 = arith.constant 0 : index
      %c0_16 = arith.constant 0 : index
      %19 = vector.load %arg6[%c0_15, %c0_16] : memref<32x256xbf16, #tpu.memory_space<vmem>>, vector<32x256xbf16>
      tpu.vector_store %arg6[%c0_15, %c0_16], %18 {strides = array<i32>} : memref<32x256xbf16, #tpu.memory_space<vmem>>, vector<32x256xbf16>,
    } else {
    }
    return
  }
  func.func @transform_0(%arg0: i32, %arg1: i32, %arg2: i32) -> (i32, i32) {
    %c0_i32 = arith.constant 0 : i32
    return %arg0, %arg2 : i32, i32
  }
  func.func @transform_1(%arg0: i32, %arg1: i32, %arg2: i32) -> (i32, i32) {
    %c0_i32 = arith.constant 0 : i32
    return %arg2, %arg1 : i32, i32
  }
  func.func @transform_2(%arg0: i32, %arg1: i32, %arg2: i32) -> (i32, i32) {
    %c0_i32 = arith.constant 0 : i32
    %c0_i32_0 = arith.constant 0 : i32
    return %c0_i32, %arg1 : i32, i32
  }
  func.func @transform_3(%arg0: i32, %arg1: i32, %arg2: i32) -> (i32, i32) {
    %c0_i32 = arith.constant 0 : i32
    return %arg0, %arg1 : i32, i32
  }
}

module attributes {stable_mosaic.version = 11 : i64} {
  func.func @_mm_bias_kernel(%arg0: i32, %arg1: i32, %arg2: i32, %arg3: memref<16x1024xbf16, #tpu.memory_space<vmem>>, %arg4: memref<1024x256xbf16, #tpu.memory_space<vmem>>, %arg5: memref<1x256xf32, #tpu.memory_space<vmem>>, %arg6: memref<16x256xbf16, #tpu.memory_space<vmem>>, %arg7: memref<16x256xf32, #tpu.memory_space<vmem>>) attributes {dimension_semantics = [#tpu.dimension_semantics<parallel>, #tpu.dimension_semantics<parallel>, #tpu.dimension_semantics<arbitrary>], iteration_bounds = array<i64: 1, 4, 7>, scalar_prefetch = 0 : i64, scratch_operands = 1 : i64, tpu.core_type = #tpu.core_type<tc>, window_params = [{transform_indices = @transform_0, window_bounds = array<i64: 16, 1024>}, {transform_indices = @transform_1, window_bounds = array<i64: 1024, 256>}, {transform_indices = @transform_2, window_bounds = array<i64: 1, 256>}, {transform_indices = @transform_3, window_bounds = array<i64: 16, 256>}]} {
    %c0_i32 = arith.constant 0 : i32
    %0 = arith.cmpi eq, %arg2, %c0_i32 : i32
    %1 = arith.extui %0 : i1 to i32
    %c0_i32_0 = arith.constant 0 : i32
    %2 = arith.cmpi ne, %1, %c0_i32_0 : i32
    scf.if %2 {
      %cst_9 = arith.constant 0.000000e+00 : f32
      %12 = vector.broadcast %cst_9 : f32 to vector<16x256xf32>
      %c0_10 = arith.constant 0 : index
      %c0_11 = arith.constant 0 : index
      %13 = vector.load %arg7[%c0_10, %c0_11] : memref<16x256xf32, #tpu.memory_space<vmem>>, vector<16x256xf32>
      tpu.vector_store %arg7[%c0_10, %c0_11], %12 {strides = array<i32>} : memref<16x256xf32, #tpu.memory_space<vmem>>, vector<16x256xf32>,
    } else {
    }
    %c0 = arith.constant 0 : index
    %c0_1 = arith.constant 0 : index
    %3 = vector.load %arg7[%c0, %c0_1] : memref<16x256xf32, #tpu.memory_space<vmem>>, vector<16x256xf32>
    %c0_2 = arith.constant 0 : index
    %c0_3 = arith.constant 0 : index
    %4 = vector.load %arg3[%c0_2, %c0_3] : memref<16x1024xbf16, #tpu.memory_space<vmem>>, vector<16x1024xbf16>
    %c0_4 = arith.constant 0 : index
    %c0_5 = arith.constant 0 : index
    %5 = vector.load %arg4[%c0_4, %c0_5] : memref<1024x256xbf16, #tpu.memory_space<vmem>>, vector<1024x256xbf16>
    %cst = arith.constant dense<0.000000e+00> : vector<16x256xf32>
    %6 = tpu.matmul %4, %5, %cst {dimension_numbers = #tpu.dot_dimension_numbers<[1], [0], [0], [1], [0, 0, 1, 1], [], []>} : vector<16x1024xbf16>, vector<1024x256xbf16>, vector<16x256xf32> -> vector<16x256xf32>
    %7 = arith.addf %3, %6 : vector<16x256xf32>
    %c0_6 = arith.constant 0 : index
    %c0_7 = arith.constant 0 : index
    %8 = vector.load %arg7[%c0_6, %c0_7] : memref<16x256xf32, #tpu.memory_space<vmem>>, vector<16x256xf32>
    tpu.vector_store %arg7[%c0_6, %c0_7], %7 {strides = array<i32>} : memref<16x256xf32, #tpu.memory_space<vmem>>, vector<16x256xf32>,
    %c6_i32 = arith.constant 6 : i32
    %9 = arith.cmpi eq, %arg2, %c6_i32 : i32
    %10 = arith.extui %9 : i1 to i32
    %c0_i32_8 = arith.constant 0 : i32
    %11 = arith.cmpi ne, %10, %c0_i32_8 : i32
    scf.if %11 {
      %c0_9 = arith.constant 0 : index
      %c0_10 = arith.constant 0 : index
      %12 = vector.load %arg7[%c0_9, %c0_10] : memref<16x256xf32, #tpu.memory_space<vmem>>, vector<16x256xf32>
      %c0_11 = arith.constant 0 : index
      %c0_12 = arith.constant 0 : index
      %13 = vector.load %arg5[%c0_11, %c0_12] : memref<1x256xf32, #tpu.memory_space<vmem>>, vector<1x256xf32>
      %14 = vector.broadcast %13 : vector<1x256xf32> to vector<16x256xf32>
      %15 = arith.addf %12, %14 : vector<16x256xf32>
      %cst_13 = arith.constant 0.000000e+00 : f32
      %16 = vector.broadcast %cst_13 : f32 to vector<16x256xf32>
      %17 = arith.maximumf %15, %16 : vector<16x256xf32>
      %18 = arith.truncf %17 : vector<16x256xf32> to vector<16x256xbf16>
      %c0_14 = arith.constant 0 : index
      %c0_15 = arith.constant 0 : index
      %19 = vector.load %arg6[%c0_14, %c0_15] : memref<16x256xbf16, #tpu.memory_space<vmem>>, vector<16x256xbf16>
      tpu.vector_store %arg6[%c0_14, %c0_15], %18 {strides = array<i32>} : memref<16x256xbf16, #tpu.memory_space<vmem>>, vector<16x256xbf16>,
    } else {
    }
    return
  }
  func.func @transform_0(%arg0: i32, %arg1: i32, %arg2: i32) -> (i32, i32) {
    %c0_i32 = arith.constant 0 : i32
    return %arg0, %arg2 : i32, i32
  }
  func.func @transform_1(%arg0: i32, %arg1: i32, %arg2: i32) -> (i32, i32) {
    %c0_i32 = arith.constant 0 : i32
    return %arg2, %arg1 : i32, i32
  }
  func.func @transform_2(%arg0: i32, %arg1: i32, %arg2: i32) -> (i32, i32) {
    %c0_i32 = arith.constant 0 : i32
    %c0_i32_0 = arith.constant 0 : i32
    return %c0_i32, %arg1 : i32, i32
  }
  func.func @transform_3(%arg0: i32, %arg1: i32, %arg2: i32) -> (i32, i32) {
    %c0_i32 = arith.constant 0 : i32
    return %arg0, %arg1 : i32, i32
  }
}

module attributes {stable_mosaic.version = 11 : i64} {
  func.func @_mm_bias_kernel(%arg0: i32, %arg1: i32, %arg2: i32, %arg3: memref<16x1024xbf16, #tpu.memory_space<vmem>>, %arg4: memref<1024x256xbf16, #tpu.memory_space<vmem>>, %arg5: memref<1x256xf32, #tpu.memory_space<vmem>>, %arg6: memref<16x256xbf16, #tpu.memory_space<vmem>>, %arg7: memref<16x256xf32, #tpu.memory_space<vmem>>) attributes {dimension_semantics = [#tpu.dimension_semantics<parallel>, #tpu.dimension_semantics<parallel>, #tpu.dimension_semantics<arbitrary>], iteration_bounds = array<i64: 1, 4, 1>, scalar_prefetch = 0 : i64, scratch_operands = 1 : i64, tpu.core_type = #tpu.core_type<tc>, window_params = [{transform_indices = @transform_0, window_bounds = array<i64: 16, 1024>}, {transform_indices = @transform_1, window_bounds = array<i64: 1024, 256>}, {transform_indices = @transform_2, window_bounds = array<i64: 1, 256>}, {transform_indices = @transform_3, window_bounds = array<i64: 16, 256>}]} {
    %c0_i32 = arith.constant 0 : i32
    %0 = arith.cmpi eq, %arg2, %c0_i32 : i32
    %1 = arith.extui %0 : i1 to i32
    %c0_i32_0 = arith.constant 0 : i32
    %2 = arith.cmpi ne, %1, %c0_i32_0 : i32
    scf.if %2 {
      %cst_10 = arith.constant 0.000000e+00 : f32
      %12 = vector.broadcast %cst_10 : f32 to vector<16x256xf32>
      %c0_11 = arith.constant 0 : index
      %c0_12 = arith.constant 0 : index
      %13 = vector.load %arg7[%c0_11, %c0_12] : memref<16x256xf32, #tpu.memory_space<vmem>>, vector<16x256xf32>
      tpu.vector_store %arg7[%c0_11, %c0_12], %12 {strides = array<i32>} : memref<16x256xf32, #tpu.memory_space<vmem>>, vector<16x256xf32>,
    } else {
    }
    %c0 = arith.constant 0 : index
    %c0_1 = arith.constant 0 : index
    %3 = vector.load %arg7[%c0, %c0_1] : memref<16x256xf32, #tpu.memory_space<vmem>>, vector<16x256xf32>
    %c0_2 = arith.constant 0 : index
    %c0_3 = arith.constant 0 : index
    %4 = vector.load %arg3[%c0_2, %c0_3] : memref<16x1024xbf16, #tpu.memory_space<vmem>>, vector<16x1024xbf16>
    %c0_4 = arith.constant 0 : index
    %c0_5 = arith.constant 0 : index
    %5 = vector.load %arg4[%c0_4, %c0_5] : memref<1024x256xbf16, #tpu.memory_space<vmem>>, vector<1024x256xbf16>
    %cst = arith.constant dense<0.000000e+00> : vector<16x256xf32>
    %6 = tpu.matmul %4, %5, %cst {dimension_numbers = #tpu.dot_dimension_numbers<[1], [0], [0], [1], [0, 0, 1, 1], [], []>} : vector<16x1024xbf16>, vector<1024x256xbf16>, vector<16x256xf32> -> vector<16x256xf32>
    %7 = arith.addf %3, %6 : vector<16x256xf32>
    %c0_6 = arith.constant 0 : index
    %c0_7 = arith.constant 0 : index
    %8 = vector.load %arg7[%c0_6, %c0_7] : memref<16x256xf32, #tpu.memory_space<vmem>>, vector<16x256xf32>
    tpu.vector_store %arg7[%c0_6, %c0_7], %7 {strides = array<i32>} : memref<16x256xf32, #tpu.memory_space<vmem>>, vector<16x256xf32>,
    %c0_i32_8 = arith.constant 0 : i32
    %9 = arith.cmpi eq, %arg2, %c0_i32_8 : i32
    %10 = arith.extui %9 : i1 to i32
    %c0_i32_9 = arith.constant 0 : i32
    %11 = arith.cmpi ne, %10, %c0_i32_9 : i32
    scf.if %11 {
      %c0_10 = arith.constant 0 : index
      %c0_11 = arith.constant 0 : index
      %12 = vector.load %arg7[%c0_10, %c0_11] : memref<16x256xf32, #tpu.memory_space<vmem>>, vector<16x256xf32>
      %c0_12 = arith.constant 0 : index
      %c0_13 = arith.constant 0 : index
      %13 = vector.load %arg5[%c0_12, %c0_13] : memref<1x256xf32, #tpu.memory_space<vmem>>, vector<1x256xf32>
      %14 = vector.broadcast %13 : vector<1x256xf32> to vector<16x256xf32>
      %15 = arith.addf %12, %14 : vector<16x256xf32>
      %cst_14 = arith.constant 0.000000e+00 : f32
      %16 = vector.broadcast %cst_14 : f32 to vector<16x256xf32>
      %17 = arith.maximumf %15, %16 : vector<16x256xf32>
      %18 = arith.truncf %17 : vector<16x256xf32> to vector<16x256xbf16>
      %c0_15 = arith.constant 0 : index
      %c0_16 = arith.constant 0 : index
      %19 = vector.load %arg6[%c0_15, %c0_16] : memref<16x256xbf16, #tpu.memory_space<vmem>>, vector<16x256xbf16>
      tpu.vector_store %arg6[%c0_15, %c0_16], %18 {strides = array<i32>} : memref<16x256xbf16, #tpu.memory_space<vmem>>, vector<16x256xbf16>,
    } else {
    }
    return
  }
  func.func @transform_0(%arg0: i32, %arg1: i32, %arg2: i32) -> (i32, i32) {
    %c0_i32 = arith.constant 0 : i32
    return %arg0, %arg2 : i32, i32
  }
  func.func @transform_1(%arg0: i32, %arg1: i32, %arg2: i32) -> (i32, i32) {
    %c0_i32 = arith.constant 0 : i32
    return %arg2, %arg1 : i32, i32
  }
  func.func @transform_2(%arg0: i32, %arg1: i32, %arg2: i32) -> (i32, i32) {
    %c0_i32 = arith.constant 0 : i32
    %c0_i32_0 = arith.constant 0 : i32
    return %c0_i32, %arg1 : i32, i32
  }
  func.func @transform_3(%arg0: i32, %arg1: i32, %arg2: i32) -> (i32, i32) {
    %c0_i32 = arith.constant 0 : i32
    return %arg0, %arg1 : i32, i32
  }
}

module attributes {stable_mosaic.version = 11 : i64} {
  func.func @_mm_bias_kernel(%arg0: i32, %arg1: i32, %arg2: i32, %arg3: memref<16x1024xbf16, #tpu.memory_space<vmem>>, %arg4: memref<1024x256xbf16, #tpu.memory_space<vmem>>, %arg5: memref<1x256xf32, #tpu.memory_space<vmem>>, %arg6: memref<16x256xbf16, #tpu.memory_space<vmem>>, %arg7: memref<16x256xf32, #tpu.memory_space<vmem>>) attributes {dimension_semantics = [#tpu.dimension_semantics<parallel>, #tpu.dimension_semantics<parallel>, #tpu.dimension_semantics<arbitrary>], iteration_bounds = array<i64: 1, 6, 1>, scalar_prefetch = 0 : i64, scratch_operands = 1 : i64, tpu.core_type = #tpu.core_type<tc>, window_params = [{transform_indices = @transform_0, window_bounds = array<i64: 16, 1024>}, {transform_indices = @transform_1, window_bounds = array<i64: 1024, 256>}, {transform_indices = @transform_2, window_bounds = array<i64: 1, 256>}, {transform_indices = @transform_3, window_bounds = array<i64: 16, 256>}]} {
    %c0_i32 = arith.constant 0 : i32
    %0 = arith.cmpi eq, %arg2, %c0_i32 : i32
    %1 = arith.extui %0 : i1 to i32
    %c0_i32_0 = arith.constant 0 : i32
    %2 = arith.cmpi ne, %1, %c0_i32_0 : i32
    scf.if %2 {
      %cst_10 = arith.constant 0.000000e+00 : f32
      %12 = vector.broadcast %cst_10 : f32 to vector<16x256xf32>
      %c0_11 = arith.constant 0 : index
      %c0_12 = arith.constant 0 : index
      %13 = vector.load %arg7[%c0_11, %c0_12] : memref<16x256xf32, #tpu.memory_space<vmem>>, vector<16x256xf32>
      tpu.vector_store %arg7[%c0_11, %c0_12], %12 {strides = array<i32>} : memref<16x256xf32, #tpu.memory_space<vmem>>, vector<16x256xf32>,
    } else {
    }
    %c0 = arith.constant 0 : index
    %c0_1 = arith.constant 0 : index
    %3 = vector.load %arg7[%c0, %c0_1] : memref<16x256xf32, #tpu.memory_space<vmem>>, vector<16x256xf32>
    %c0_2 = arith.constant 0 : index
    %c0_3 = arith.constant 0 : index
    %4 = vector.load %arg3[%c0_2, %c0_3] : memref<16x1024xbf16, #tpu.memory_space<vmem>>, vector<16x1024xbf16>
    %c0_4 = arith.constant 0 : index
    %c0_5 = arith.constant 0 : index
    %5 = vector.load %arg4[%c0_4, %c0_5] : memref<1024x256xbf16, #tpu.memory_space<vmem>>, vector<1024x256xbf16>
    %cst = arith.constant dense<0.000000e+00> : vector<16x256xf32>
    %6 = tpu.matmul %4, %5, %cst {dimension_numbers = #tpu.dot_dimension_numbers<[1], [0], [0], [1], [0, 0, 1, 1], [], []>} : vector<16x1024xbf16>, vector<1024x256xbf16>, vector<16x256xf32> -> vector<16x256xf32>
    %7 = arith.addf %3, %6 : vector<16x256xf32>
    %c0_6 = arith.constant 0 : index
    %c0_7 = arith.constant 0 : index
    %8 = vector.load %arg7[%c0_6, %c0_7] : memref<16x256xf32, #tpu.memory_space<vmem>>, vector<16x256xf32>
    tpu.vector_store %arg7[%c0_6, %c0_7], %7 {strides = array<i32>} : memref<16x256xf32, #tpu.memory_space<vmem>>, vector<16x256xf32>,
    %c0_i32_8 = arith.constant 0 : i32
    %9 = arith.cmpi eq, %arg2, %c0_i32_8 : i32
    %10 = arith.extui %9 : i1 to i32
    %c0_i32_9 = arith.constant 0 : i32
    %11 = arith.cmpi ne, %10, %c0_i32_9 : i32
    scf.if %11 {
      %c0_10 = arith.constant 0 : index
      %c0_11 = arith.constant 0 : index
      %12 = vector.load %arg7[%c0_10, %c0_11] : memref<16x256xf32, #tpu.memory_space<vmem>>, vector<16x256xf32>
      %c0_12 = arith.constant 0 : index
      %c0_13 = arith.constant 0 : index
      %13 = vector.load %arg5[%c0_12, %c0_13] : memref<1x256xf32, #tpu.memory_space<vmem>>, vector<1x256xf32>
      %14 = vector.broadcast %13 : vector<1x256xf32> to vector<16x256xf32>
      %15 = arith.addf %12, %14 : vector<16x256xf32>
      %cst_14 = arith.constant 0.000000e+00 : f32
      %16 = vector.broadcast %cst_14 : f32 to vector<16x256xf32>
      %17 = arith.maximumf %15, %16 : vector<16x256xf32>
      %18 = arith.truncf %17 : vector<16x256xf32> to vector<16x256xbf16>
      %c0_15 = arith.constant 0 : index
      %c0_16 = arith.constant 0 : index
      %19 = vector.load %arg6[%c0_15, %c0_16] : memref<16x256xbf16, #tpu.memory_space<vmem>>, vector<16x256xbf16>
      tpu.vector_store %arg6[%c0_15, %c0_16], %18 {strides = array<i32>} : memref<16x256xbf16, #tpu.memory_space<vmem>>, vector<16x256xbf16>,
    } else {
    }
    return
  }
  func.func @transform_0(%arg0: i32, %arg1: i32, %arg2: i32) -> (i32, i32) {
    %c0_i32 = arith.constant 0 : i32
    return %arg0, %arg2 : i32, i32
  }
  func.func @transform_1(%arg0: i32, %arg1: i32, %arg2: i32) -> (i32, i32) {
    %c0_i32 = arith.constant 0 : i32
    return %arg2, %arg1 : i32, i32
  }
  func.func @transform_2(%arg0: i32, %arg1: i32, %arg2: i32) -> (i32, i32) {
    %c0_i32 = arith.constant 0 : i32
    %c0_i32_0 = arith.constant 0 : i32
    return %c0_i32, %arg1 : i32, i32
  }
  func.func @transform_3(%arg0: i32, %arg1: i32, %arg2: i32) -> (i32, i32) {
    %c0_i32 = arith.constant 0 : i32
    return %arg0, %arg1 : i32, i32
  }
}

module attributes {stable_mosaic.version = 11 : i64} {
  func.func @_stat_pool_kernel(%arg0: i32, %arg1: memref<1x3x1500xbf16, #tpu.memory_space<vmem>>, %arg2: memref<1x1x1500xf32, #tpu.memory_space<vmem>>, %arg3: memref<1x1x1500xf32, #tpu.memory_space<vmem>>) attributes {dimension_semantics = [#tpu.dimension_semantics<parallel>], iteration_bounds = array<i64: 2>, scalar_prefetch = 0 : i64, scratch_operands = 0 : i64, tpu.core_type = #tpu.core_type<tc>, window_params = [{transform_indices = @transform_0, window_bounds = array<i64: 1, 3, 1500>}, {transform_indices = @transform_1, window_bounds = array<i64: 1, 1, 1500>}, {transform_indices = @transform_2, window_bounds = array<i64: 1, 1, 1500>}]} {
    %c0 = arith.constant 0 : index
    %c0_0 = arith.constant 0 : index
    %c0_1 = arith.constant 0 : index
    %0 = vector.load %arg1[%c0, %c0_0, %c0_1] : memref<1x3x1500xbf16, #tpu.memory_space<vmem>>, vector<1x3x1500xbf16>
    %1 = arith.extf %0 : vector<1x3x1500xbf16> to vector<1x3x1500xf32>
    %cst = arith.constant dense<0.000000e+00> : vector<1x1500xf32>
    %2 = vector.multi_reduction <add>, %1, %cst [1] : vector<1x3x1500xf32> to vector<1x1500xf32>
    %3 = vector.shape_cast %2 : vector<1x1500xf32> to vector<1x1x1500xf32>
    %cst_2 = arith.constant 3.000000e+00 : f32
    %4 = vector.broadcast %cst_2 : f32 to vector<1x1x1500xf32>
    %5 = arith.divf %3, %4 : vector<1x1x1500xf32>
    %6 = vector.broadcast %5 : vector<1x1x1500xf32> to vector<1x3x1500xf32>
    %7 = arith.subf %1, %6 : vector<1x3x1500xf32>
    %8 = arith.mulf %7, %7 : vector<1x3x1500xf32>
    %cst_3 = arith.constant dense<0.000000e+00> : vector<1x1500xf32>
    %9 = vector.multi_reduction <add>, %8, %cst_3 [1] : vector<1x3x1500xf32> to vector<1x1500xf32>
    %10 = vector.shape_cast %9 : vector<1x1500xf32> to vector<1x1x1500xf32>
    %cst_4 = arith.constant 2.000000e+00 : f32
    %11 = vector.broadcast %cst_4 : f32 to vector<1x1x1500xf32>
    %12 = arith.divf %10, %11 : vector<1x1x1500xf32>
    %c0_5 = arith.constant 0 : index
    %c0_6 = arith.constant 0 : index
    %c0_7 = arith.constant 0 : index
    %13 = vector.load %arg2[%c0_5, %c0_6, %c0_7] : memref<1x1x1500xf32, #tpu.memory_space<vmem>>, vector<1x1x1500xf32>
    tpu.vector_store %arg2[%c0_5, %c0_6, %c0_7], %5 {strides = array<i32>} : memref<1x1x1500xf32, #tpu.memory_space<vmem>>, vector<1x1x1500xf32>,
    %14 = math.sqrt %12 : vector<1x1x1500xf32>
    %c0_8 = arith.constant 0 : index
    %c0_9 = arith.constant 0 : index
    %c0_10 = arith.constant 0 : index
    %15 = vector.load %arg3[%c0_8, %c0_9, %c0_10] : memref<1x1x1500xf32, #tpu.memory_space<vmem>>, vector<1x1x1500xf32>
    tpu.vector_store %arg3[%c0_8, %c0_9, %c0_10], %14 {strides = array<i32>} : memref<1x1x1500xf32, #tpu.memory_space<vmem>>, vector<1x1x1500xf32>,
    return
  }
  func.func @transform_0(%arg0: i32) -> (i32, i32, i32) {
    %c0_i32 = arith.constant 0 : i32
    %c0_i32_0 = arith.constant 0 : i32
    %c0_i32_1 = arith.constant 0 : i32
    return %arg0, %c0_i32, %c0_i32_0 : i32, i32, i32
  }
  func.func @transform_1(%arg0: i32) -> (i32, i32, i32) {
    %c0_i32 = arith.constant 0 : i32
    %c0_i32_0 = arith.constant 0 : i32
    %c0_i32_1 = arith.constant 0 : i32
    return %arg0, %c0_i32, %c0_i32_0 : i32, i32, i32
  }
  func.func @transform_2(%arg0: i32) -> (i32, i32, i32) {
    %c0_i32 = arith.constant 0 : i32
    %c0_i32_0 = arith.constant 0 : i32
    %c0_i32_1 = arith.constant 0 : i32
    return %arg0, %c0_i32, %c0_i32_0 : i32, i32, i32
  }
}

module attributes {stable_mosaic.version = 11 : i64} {
  func.func @_mm_bias_kernel(%arg0: i32, %arg1: i32, %arg2: i32, %arg3: memref<16x1024xbf16, #tpu.memory_space<vmem>>, %arg4: memref<1024x256xbf16, #tpu.memory_space<vmem>>, %arg5: memref<1x256xf32, #tpu.memory_space<vmem>>, %arg6: memref<16x256xbf16, #tpu.memory_space<vmem>>, %arg7: memref<16x256xf32, #tpu.memory_space<vmem>>) attributes {dimension_semantics = [#tpu.dimension_semantics<parallel>, #tpu.dimension_semantics<parallel>, #tpu.dimension_semantics<arbitrary>], iteration_bounds = array<i64: 1, 6, 3>, scalar_prefetch = 0 : i64, scratch_operands = 1 : i64, tpu.core_type = #tpu.core_type<tc>, window_params = [{transform_indices = @transform_0, window_bounds = array<i64: 16, 1024>}, {transform_indices = @transform_1, window_bounds = array<i64: 1024, 256>}, {transform_indices = @transform_2, window_bounds = array<i64: 1, 256>}, {transform_indices = @transform_3, window_bounds = array<i64: 16, 256>}]} {
    %c0_i32 = arith.constant 0 : i32
    %0 = arith.cmpi eq, %arg2, %c0_i32 : i32
    %1 = arith.extui %0 : i1 to i32
    %c0_i32_0 = arith.constant 0 : i32
    %2 = arith.cmpi ne, %1, %c0_i32_0 : i32
    scf.if %2 {
      %cst_9 = arith.constant 0.000000e+00 : f32
      %12 = vector.broadcast %cst_9 : f32 to vector<16x256xf32>
      %c0_10 = arith.constant 0 : index
      %c0_11 = arith.constant 0 : index
      %13 = vector.load %arg7[%c0_10, %c0_11] : memref<16x256xf32, #tpu.memory_space<vmem>>, vector<16x256xf32>
      tpu.vector_store %arg7[%c0_10, %c0_11], %12 {strides = array<i32>} : memref<16x256xf32, #tpu.memory_space<vmem>>, vector<16x256xf32>,
    } else {
    }
    %c0 = arith.constant 0 : index
    %c0_1 = arith.constant 0 : index
    %3 = vector.load %arg7[%c0, %c0_1] : memref<16x256xf32, #tpu.memory_space<vmem>>, vector<16x256xf32>
    %c0_2 = arith.constant 0 : index
    %c0_3 = arith.constant 0 : index
    %4 = vector.load %arg3[%c0_2, %c0_3] : memref<16x1024xbf16, #tpu.memory_space<vmem>>, vector<16x1024xbf16>
    %c0_4 = arith.constant 0 : index
    %c0_5 = arith.constant 0 : index
    %5 = vector.load %arg4[%c0_4, %c0_5] : memref<1024x256xbf16, #tpu.memory_space<vmem>>, vector<1024x256xbf16>
    %cst = arith.constant dense<0.000000e+00> : vector<16x256xf32>
    %6 = tpu.matmul %4, %5, %cst {dimension_numbers = #tpu.dot_dimension_numbers<[1], [0], [0], [1], [0, 0, 1, 1], [], []>} : vector<16x1024xbf16>, vector<1024x256xbf16>, vector<16x256xf32> -> vector<16x256xf32>
    %7 = arith.addf %3, %6 : vector<16x256xf32>
    %c0_6 = arith.constant 0 : index
    %c0_7 = arith.constant 0 : index
    %8 = vector.load %arg7[%c0_6, %c0_7] : memref<16x256xf32, #tpu.memory_space<vmem>>, vector<16x256xf32>
    tpu.vector_store %arg7[%c0_6, %c0_7], %7 {strides = array<i32>} : memref<16x256xf32, #tpu.memory_space<vmem>>, vector<16x256xf32>,
    %c2_i32 = arith.constant 2 : i32
    %9 = arith.cmpi eq, %arg2, %c2_i32 : i32
    %10 = arith.extui %9 : i1 to i32
    %c0_i32_8 = arith.constant 0 : i32
    %11 = arith.cmpi ne, %10, %c0_i32_8 : i32
    scf.if %11 {
      %c0_9 = arith.constant 0 : index
      %c0_10 = arith.constant 0 : index
      %12 = vector.load %arg7[%c0_9, %c0_10] : memref<16x256xf32, #tpu.memory_space<vmem>>, vector<16x256xf32>
      %c0_11 = arith.constant 0 : index
      %c0_12 = arith.constant 0 : index
      %13 = vector.load %arg5[%c0_11, %c0_12] : memref<1x256xf32, #tpu.memory_space<vmem>>, vector<1x256xf32>
      %14 = vector.broadcast %13 : vector<1x256xf32> to vector<16x256xf32>
      %15 = arith.addf %12, %14 : vector<16x256xf32>
      %16 = arith.truncf %15 : vector<16x256xf32> to vector<16x256xbf16>
      %c0_13 = arith.constant 0 : index
      %c0_14 = arith.constant 0 : index
      %17 = vector.load %arg6[%c0_13, %c0_14] : memref<16x256xbf16, #tpu.memory_space<vmem>>, vector<16x256xbf16>
      tpu.vector_store %arg6[%c0_13, %c0_14], %16 {strides = array<i32>} : memref<16x256xbf16, #tpu.memory_space<vmem>>, vector<16x256xbf16>,
    } else {
    }
    return
  }
  func.func @transform_0(%arg0: i32, %arg1: i32, %arg2: i32) -> (i32, i32) {
    %c0_i32 = arith.constant 0 : i32
    return %arg0, %arg2 : i32, i32
  }
  func.func @transform_1(%arg0: i32, %arg1: i32, %arg2: i32) -> (i32, i32) {
    %c0_i32 = arith.constant 0 : i32
    return %arg2, %arg1 : i32, i32
  }
  func.func @transform_2(%arg0: i32, %arg1: i32, %arg2: i32) -> (i32, i32) {
    %c0_i32 = arith.constant 0 : i32
    %c0_i32_0 = arith.constant 0 : i32
    return %c0_i32, %arg1 : i32, i32
  }
  func.func @transform_3(%arg0: i32, %arg1: i32, %arg2: i32) -> (i32, i32) {
    %c0_i32 = arith.constant 0 : i32
    return %arg0, %arg1 : i32, i32
  }
}

module attributes {stable_mosaic.version = 11 : i64} {
  func.func @_mm_bias_kernel(%arg0: i32, %arg1: i32, %arg2: i32, %arg3: memref<16x768xbf16, #tpu.memory_space<vmem>>, %arg4: memref<768x128xbf16, #tpu.memory_space<vmem>>, %arg5: memref<1x128xf32, #tpu.memory_space<vmem>>, %arg6: memref<16x128xbf16, #tpu.memory_space<vmem>>, %arg7: memref<16x128xf32, #tpu.memory_space<vmem>>) attributes {dimension_semantics = [#tpu.dimension_semantics<parallel>, #tpu.dimension_semantics<parallel>, #tpu.dimension_semantics<arbitrary>], iteration_bounds = array<i64: 1, 5, 2>, scalar_prefetch = 0 : i64, scratch_operands = 1 : i64, tpu.core_type = #tpu.core_type<tc>, window_params = [{transform_indices = @transform_0, window_bounds = array<i64: 16, 768>}, {transform_indices = @transform_1, window_bounds = array<i64: 768, 128>}, {transform_indices = @transform_2, window_bounds = array<i64: 1, 128>}, {transform_indices = @transform_3, window_bounds = array<i64: 16, 128>}]} {
    %c0_i32 = arith.constant 0 : i32
    %0 = arith.cmpi eq, %arg2, %c0_i32 : i32
    %1 = arith.extui %0 : i1 to i32
    %c0_i32_0 = arith.constant 0 : i32
    %2 = arith.cmpi ne, %1, %c0_i32_0 : i32
    scf.if %2 {
      %cst_9 = arith.constant 0.000000e+00 : f32
      %12 = vector.broadcast %cst_9 : f32 to vector<16x128xf32>
      %c0_10 = arith.constant 0 : index
      %c0_11 = arith.constant 0 : index
      %13 = vector.load %arg7[%c0_10, %c0_11] : memref<16x128xf32, #tpu.memory_space<vmem>>, vector<16x128xf32>
      tpu.vector_store %arg7[%c0_10, %c0_11], %12 {strides = array<i32>} : memref<16x128xf32, #tpu.memory_space<vmem>>, vector<16x128xf32>,
    } else {
    }
    %c0 = arith.constant 0 : index
    %c0_1 = arith.constant 0 : index
    %3 = vector.load %arg7[%c0, %c0_1] : memref<16x128xf32, #tpu.memory_space<vmem>>, vector<16x128xf32>
    %c0_2 = arith.constant 0 : index
    %c0_3 = arith.constant 0 : index
    %4 = vector.load %arg3[%c0_2, %c0_3] : memref<16x768xbf16, #tpu.memory_space<vmem>>, vector<16x768xbf16>
    %c0_4 = arith.constant 0 : index
    %c0_5 = arith.constant 0 : index
    %5 = vector.load %arg4[%c0_4, %c0_5] : memref<768x128xbf16, #tpu.memory_space<vmem>>, vector<768x128xbf16>
    %cst = arith.constant dense<0.000000e+00> : vector<16x128xf32>
    %6 = tpu.matmul %4, %5, %cst {dimension_numbers = #tpu.dot_dimension_numbers<[1], [0], [0], [1], [0, 0, 1, 1], [], []>} : vector<16x768xbf16>, vector<768x128xbf16>, vector<16x128xf32> -> vector<16x128xf32>
    %7 = arith.addf %3, %6 : vector<16x128xf32>
    %c0_6 = arith.constant 0 : index
    %c0_7 = arith.constant 0 : index
    %8 = vector.load %arg7[%c0_6, %c0_7] : memref<16x128xf32, #tpu.memory_space<vmem>>, vector<16x128xf32>
    tpu.vector_store %arg7[%c0_6, %c0_7], %7 {strides = array<i32>} : memref<16x128xf32, #tpu.memory_space<vmem>>, vector<16x128xf32>,
    %c1_i32 = arith.constant 1 : i32
    %9 = arith.cmpi eq, %arg2, %c1_i32 : i32
    %10 = arith.extui %9 : i1 to i32
    %c0_i32_8 = arith.constant 0 : i32
    %11 = arith.cmpi ne, %10, %c0_i32_8 : i32
    scf.if %11 {
      %c0_9 = arith.constant 0 : index
      %c0_10 = arith.constant 0 : index
      %12 = vector.load %arg7[%c0_9, %c0_10] : memref<16x128xf32, #tpu.memory_space<vmem>>, vector<16x128xf32>
      %c0_11 = arith.constant 0 : index
      %c0_12 = arith.constant 0 : index
      %13 = vector.load %arg5[%c0_11, %c0_12] : memref<1x128xf32, #tpu.memory_space<vmem>>, vector<1x128xf32>
      %14 = vector.broadcast %13 : vector<1x128xf32> to vector<16x128xf32>
      %15 = arith.addf %12, %14 : vector<16x128xf32>
      %cst_13 = arith.constant 0.000000e+00 : f32
      %16 = vector.broadcast %cst_13 : f32 to vector<16x128xf32>
      %17 = arith.maximumf %15, %16 : vector<16x128xf32>
      %18 = arith.truncf %17 : vector<16x128xf32> to vector<16x128xbf16>
      %c0_14 = arith.constant 0 : index
      %c0_15 = arith.constant 0 : index
      %19 = vector.load %arg6[%c0_14, %c0_15] : memref<16x128xbf16, #tpu.memory_space<vmem>>, vector<16x128xbf16>
      tpu.vector_store %arg6[%c0_14, %c0_15], %18 {strides = array<i32>} : memref<16x128xbf16, #tpu.memory_space<vmem>>, vector<16x128xbf16>,
    } else {
    }
    return
  }
  func.func @transform_0(%arg0: i32, %arg1: i32, %arg2: i32) -> (i32, i32) {
    %c0_i32 = arith.constant 0 : i32
    return %arg0, %arg2 : i32, i32
  }
  func.func @transform_1(%arg0: i32, %arg1: i32, %arg2: i32) -> (i32, i32) {
    %c0_i32 = arith.constant 0 : i32
    return %arg2, %arg1 : i32, i32
  }
  func.func @transform_2(%arg0: i32, %arg1: i32, %arg2: i32) -> (i32, i32) {
    %c0_i32 = arith.constant 0 : i32
    %c0_i32_0 = arith.constant 0 : i32
    return %c0_i32, %arg1 : i32, i32
  }
  func.func @transform_3(%arg0: i32, %arg1: i32, %arg2: i32) -> (i32, i32) {
    %c0_i32 = arith.constant 0 : i32
    return %arg0, %arg1 : i32, i32
  }
}

module attributes {stable_mosaic.version = 11 : i64} {
  func.func @_mm_bias_kernel(%arg0: i32, %arg1: i32, %arg2: i32, %arg3: memref<16x640xbf16, #tpu.memory_space<vmem>>, %arg4: memref<640x128xbf16, #tpu.memory_space<vmem>>, %arg5: memref<1x128xf32, #tpu.memory_space<vmem>>, %arg6: memref<16x128xf32, #tpu.memory_space<vmem>>, %arg7: memref<16x128xf32, #tpu.memory_space<vmem>>) attributes {dimension_semantics = [#tpu.dimension_semantics<parallel>, #tpu.dimension_semantics<parallel>, #tpu.dimension_semantics<arbitrary>], iteration_bounds = array<i64: 1, 1, 1>, scalar_prefetch = 0 : i64, scratch_operands = 1 : i64, tpu.core_type = #tpu.core_type<tc>, window_params = [{transform_indices = @transform_0, window_bounds = array<i64: 16, 640>}, {transform_indices = @transform_1, window_bounds = array<i64: 640, 128>}, {transform_indices = @transform_2, window_bounds = array<i64: 1, 128>}, {transform_indices = @transform_3, window_bounds = array<i64: 16, 128>}]} {
    %c0_i32 = arith.constant 0 : i32
    %0 = arith.cmpi eq, %arg2, %c0_i32 : i32
    %1 = arith.extui %0 : i1 to i32
    %c0_i32_0 = arith.constant 0 : i32
    %2 = arith.cmpi ne, %1, %c0_i32_0 : i32
    scf.if %2 {
      %cst_10 = arith.constant 0.000000e+00 : f32
      %12 = vector.broadcast %cst_10 : f32 to vector<16x128xf32>
      %c0_11 = arith.constant 0 : index
      %c0_12 = arith.constant 0 : index
      %13 = vector.load %arg7[%c0_11, %c0_12] : memref<16x128xf32, #tpu.memory_space<vmem>>, vector<16x128xf32>
      tpu.vector_store %arg7[%c0_11, %c0_12], %12 {strides = array<i32>} : memref<16x128xf32, #tpu.memory_space<vmem>>, vector<16x128xf32>,
    } else {
    }
    %c0 = arith.constant 0 : index
    %c0_1 = arith.constant 0 : index
    %3 = vector.load %arg7[%c0, %c0_1] : memref<16x128xf32, #tpu.memory_space<vmem>>, vector<16x128xf32>
    %c0_2 = arith.constant 0 : index
    %c0_3 = arith.constant 0 : index
    %4 = vector.load %arg3[%c0_2, %c0_3] : memref<16x640xbf16, #tpu.memory_space<vmem>>, vector<16x640xbf16>
    %c0_4 = arith.constant 0 : index
    %c0_5 = arith.constant 0 : index
    %5 = vector.load %arg4[%c0_4, %c0_5] : memref<640x128xbf16, #tpu.memory_space<vmem>>, vector<640x128xbf16>
    %cst = arith.constant dense<0.000000e+00> : vector<16x128xf32>
    %6 = tpu.matmul %4, %5, %cst {dimension_numbers = #tpu.dot_dimension_numbers<[1], [0], [0], [1], [0, 0, 1, 1], [], []>} : vector<16x640xbf16>, vector<640x128xbf16>, vector<16x128xf32> -> vector<16x128xf32>
    %7 = arith.addf %3, %6 : vector<16x128xf32>
    %c0_6 = arith.constant 0 : index
    %c0_7 = arith.constant 0 : index
    %8 = vector.load %arg7[%c0_6, %c0_7] : memref<16x128xf32, #tpu.memory_space<vmem>>, vector<16x128xf32>
    tpu.vector_store %arg7[%c0_6, %c0_7], %7 {strides = array<i32>} : memref<16x128xf32, #tpu.memory_space<vmem>>, vector<16x128xf32>,
    %c0_i32_8 = arith.constant 0 : i32
    %9 = arith.cmpi eq, %arg2, %c0_i32_8 : i32
    %10 = arith.extui %9 : i1 to i32
    %c0_i32_9 = arith.constant 0 : i32
    %11 = arith.cmpi ne, %10, %c0_i32_9 : i32
    scf.if %11 {
      %c0_10 = arith.constant 0 : index
      %c0_11 = arith.constant 0 : index
      %12 = vector.load %arg7[%c0_10, %c0_11] : memref<16x128xf32, #tpu.memory_space<vmem>>, vector<16x128xf32>
      %c0_12 = arith.constant 0 : index
      %c0_13 = arith.constant 0 : index
      %13 = vector.load %arg5[%c0_12, %c0_13] : memref<1x128xf32, #tpu.memory_space<vmem>>, vector<1x128xf32>
      %14 = vector.broadcast %13 : vector<1x128xf32> to vector<16x128xf32>
      %15 = arith.addf %12, %14 : vector<16x128xf32>
      %c0_14 = arith.constant 0 : index
      %c0_15 = arith.constant 0 : index
      %16 = vector.load %arg6[%c0_14, %c0_15] : memref<16x128xf32, #tpu.memory_space<vmem>>, vector<16x128xf32>
      tpu.vector_store %arg6[%c0_14, %c0_15], %15 {strides = array<i32>} : memref<16x128xf32, #tpu.memory_space<vmem>>, vector<16x128xf32>,
    } else {
    }
    return
  }
  func.func @transform_0(%arg0: i32, %arg1: i32, %arg2: i32) -> (i32, i32) {
    %c0_i32 = arith.constant 0 : i32
    return %arg0, %arg2 : i32, i32
  }
  func.func @transform_1(%arg0: i32, %arg1: i32, %arg2: i32) -> (i32, i32) {
    %c0_i32 = arith.constant 0 : i32
    return %arg2, %arg1 : i32, i32
  }
  func.func @transform_2(%arg0: i32, %arg1: i32, %arg2: i32) -> (i32, i32) {
    %c0_i32 = arith.constant 0 : i32
    %c0_i32_0 = arith.constant 0 : i32
    return %c0_i32, %arg1 : i32, i32
  }
  func.func @transform_3(%arg0: i32, %arg1: i32, %arg2: i32) -> (i32, i32) {
    %c0_i32 = arith.constant 0 : i32
    return %arg0, %arg1 : i32, i32
  }
}

</mosaic_0001>

<bundles_post_ra>
// kernel: forward.8
= control target key start
LH: loop header
LB: loop body
LE: loop exit
PB: predicated region body
PF: predicated region fallthrough
CT: control target
= control target key end

     0   :  { %s960_s12 = smov 0   ;;  %s962_s13 = smov 0   ;;  %s1082_s0 = inlined_call_operand.vmem [shape: bf16[32,128], index: 0, kind: input, shape index: {}]   ;;  %s1083_s1 = inlined_call_operand.vmem [shape: bf16[128,1024], index: 1, kind: input, shape index: {}]   ;;  %s1084_s2 = inlined_call_operand.vmem [shape: f32[1,1024], index: 2, kind: input, shape index: {}]   ;;  %s1085_s3 = inlined_call_operand.vmem [shape: bf16[32,1024], index: 3, kind: output, shape index: {}]  }
   0x1   :  { %s964_s14 = smov 0   ;;  %s966_s15 = smov 0  }
   0x2   :  { %s968_s16 = smov 0  }
   0x3 LB: > { %s28_s17 = sadd.s32 1, %s933_s15  ;;  %s771_s18 = sadd.s32 4294967295, %s937_s16   ;;  %s937_s16 = sphi %s968_s16, %s13_s16   ;;  %s933_s15 = sphi %s966_s15, %s1090_s15   ;;  %s929_s14 = sphi %s964_s14, %s1089_s14   ;;  %s925_s13 = sphi %s962_s13, %s1088_s13   ;;  %s921_s12 = sphi %s960_s12, %s1087_s12  }
   0x4   : > { %p30_p0 = scmp.ge.s32.totalorder %s28_s17, 4  ;;  %p76_p1 = scmp.ne.s32.totalorder %s925_s13, %s921_s12 }
   0x5   : > { %p77_p2 = scmp.eq.s32.totalorder %s937_s16, 0  ;;  %p134_p4 = scmp.eq.s32.totalorder %s771_s18, 3 }
   0x6   : > { %s1092_s17 = smov (%p30_p0, %s28_s17), 0  ;;  %s69_s20 = sadd.s32 1, %s925_s13 }
   0x7   : > { %p78_p3 = por %p77_p2, %p76_p1  ;;  %s65_s19 = ssub.s32 %s933_s15, %s1092_s17 }
   0x8   : > { %p67_p5 = scmp.eq.s32.totalorder %s65_s19, 0  ;;  %p995_p6 = por %p134_p4, %p76_p1 }
   0x9   : > { %p775_p7 = scmp.ge.s32.totalorder %s937_s16, 4 }
   0xa   : > { %s1000_s22 = scalar_select %p67_p5, %s925_s13, %s69_s20  }
   0xb   : > { %168 = sbr.rel (%p775_p7) target bundleno = 36 (0x24), region = 20 }
  0x10   : > { %171 = sbr.rel (!%p78_p3) target bundleno = 36 (0x24), region = 24  ;;  %s173_s23 = sand.u32 (%p78_p3), 1, %s925_s13  }
  0x11   : > { %s810_s24 = sshll.u32 (%p78_p3), %s933_s15, 3  ;;  %s776_s25 = sshll.u32 (%p78_p3), %s173_s23, 7 }
  0x12   : > { %s1008_s28 = scalar_lea.vmem (%p78_p3), %s1083_s1, %s810_s24  ;;  %s175_s29 = scalar_lea.vmem (%p78_p3), [#allocation3], %s776_s25 }
  0x13   : > { %v240_v0 = vld [vmem:[%s1008_s28] sm:$0xff] (%p78_p3) }
  0x14   : > { %v242_v1 = vld [vmem:[%s1008_s28 + $0x20] sm:$0xff] (%p78_p3)  ;;  %241 = vst [vmem:[%s175_s29] sm:$0xff] (%p78_p3), %v240_v0 }
  0x15   : > { %v244_v2 = vld [vmem:[%s1008_s28 + $0x40] sm:$0xff]  ;;  %243 = vst [vmem:[%s175_s29 + $0x8] sm:$0xff] %v242_v1 }
  0x16   : > { %245 = vst [vmem:[%s175_s29 + $0x10] sm:$0xff] %v244_v2  ;;  %v246_v3 = vld [vmem:[%s1008_s28 + $0x60] sm:$0xff] }
  0x17   : > { %v248_v4 = vld [vmem:[%s1008_s28 + $0x80] sm:$0xff]  ;;  %247 = vst [vmem:[%s175_s29 + $0x18] sm:$0xff] %v246_v3 }
  0x18   : > { %v250_v5 = vld [vmem:[%s1008_s28 + $0xa0] sm:$0xff]  ;;  %249 = vst [vmem:[%s175_s29 + $0x20] sm:$0xff] %v248_v4 }
  0x19   : > { %251 = vst [vmem:[%s175_s29 + $0x28] sm:$0xff] %v250_v5  ;;  %v252_v6 = vld [vmem:[%s1008_s28 + $0xc0] sm:$0xff] }
  0x1a   : > { %v254_v7 = vld [vmem:[%s1008_s28 + $0xe0] sm:$0xff]  ;;  %253 = vst [vmem:[%s175_s29 + $0x30] sm:$0xff] %v252_v6 }
  0x1b   : > { %v256_v8 = vld [vmem:[%s1008_s28 + $0x100] sm:$0xff]  ;;  %255 = vst [vmem:[%s175_s29 + $0x38] sm:$0xff] %v254_v7 }
  0x1c   : > { %257 = vst [vmem:[%s175_s29 + $0x40] sm:$0xff] %v256_v8  ;;  %v258_v9 = vld [vmem:[%s1008_s28 + $0x120] sm:$0xff] }
  0x1d   : > { %v260_v10 = vld [vmem:[%s1008_s28 + $0x140] sm:$0xff]  ;;  %259 = vst [vmem:[%s175_s29 + $0x48] sm:$0xff] %v258_v9 }
  0x1e   : > { %v262_v11 = vld [vmem:[%s1008_s28 + $0x160] sm:$0xff]  ;;  %261 = vst [vmem:[%s175_s29 + $0x50] sm:$0xff] %v260_v10 }
  0x1f   : > { %263 = vst [vmem:[%s175_s29 + $0x58] sm:$0xff] %v262_v11  ;;  %v264_v12 = vld [vmem:[%s1008_s28 + $0x180] sm:$0xff] }
  0x20   : > { %v266_v13 = vld [vmem:[%s1008_s28 + $0x1a0] sm:$0xff]  ;;  %265 = vst [vmem:[%s175_s29 + $0x60] sm:$0xff] %v264_v12 }
  0x21   : > { %v268_v14 = vld [vmem:[%s1008_s28 + $0x1c0] sm:$0xff]  ;;  %267 = vst [vmem:[%s175_s29 + $0x68] sm:$0xff] %v266_v13 }
  0x22   : > { %269 = vst [vmem:[%s175_s29 + $0x70] sm:$0xff] %v268_v14  ;;  %v270_v15 = vld [vmem:[%s1008_s28 + $0x1e0] sm:$0xff] }
  0x23   : > { %271 = vst [vmem:[%s175_s29 + $0x78] sm:$0xff] %v270_v15 }
  0x24 PF: > { %p779_p8 = scmp.ge.s32.totalorder %s937_s16, 1  ;;  %p284_p9 = scmp.lt.s32.totalorder %s937_s16, 5 }
  0x26   : > { %p285_p10 = pnand %p779_p8, %p284_p9 }
  0x27   : > { %s291_s30 = sand.u32 (!%p285_p10), 1, %s921_s12   ;;  %s782_s10 = sshll.u32 (!%p285_p10), %s929_s14, 1 }
  0x28   : > { %288 = sbr.rel (%p285_p10) target bundleno = 293 (0x125), region = 66  ;;  %s780_s4 = sshll.u32 (!%p285_p10), %s291_s30, 7 }
  0x29   : > { %s1031_s5 = scalar_lea.vmem (!%p285_p10), [#allocation3], %s780_s4  ;;  %p337_p11 = scmp.lt.s32.totalorder (!%p285_p10), %s782_s10, 7 }
  0x2a   : > { %s781_s20 = sshll.u32 (!%p285_p10), %s291_s30, 5 }
  0x2b   : > { %s324_s23 = scalar_lea.vmem (!%p285_p10), [#allocation4], %s781_s20 }
  0x2d   : > { %v939_v16 = vmov 0   ;;  %v873_v17 = vld [vmem:[%s1031_s5 + $0x74] ss:$8 sps:$4 sm:$0xff]   ;;  %v875_v18 = vld [vmem:[%s1031_s5 + $0x70] ss:$8 sps:$4 sm:$0xff]   ;;  %v897_v33 = vld [vmem:[%s1082_s0] sm:$0xff]   ;;  %v558_v35 = vlaneseq }
  0x2e   : > { %508 = vmatprep.mubr.bf16.mxu0 %v939_v16  ;;  %518 = vmatprep.mubr.bf16.mxu1 %v939_v16  ;;  %v876_v19 = vld [vmem:[%s1031_s5 + $0x64] ss:$8 sps:$4 sm:$0xff]   ;;  %v878_v20 = vld [vmem:[%s1031_s5 + $0x60] ss:$8 sps:$4 sm:$0xff]   ;;  %v879_v21 = vld [vmem:[%s1031_s5 + $0x54] ss:$8 sps:$4 sm:$0xff]  }
  0x2f   : > { %476 = vmatprep.subr.bf16.mxu0 %v873_v17  ;;  %816 = vmatprep.subr.bf16.mxu1 %v873_v17  ;;  %v881_v22 = vld [vmem:[%s1031_s5 + $0x50] ss:$8 sps:$4 sm:$0xff]   ;;  %v882_v23 = vld [vmem:[%s1031_s5 + $0x44] ss:$8 sps:$4 sm:$0xff]   ;;  %v884_v24 = vld [vmem:[%s1031_s5 + $0x40] ss:$8 sps:$4 sm:$0xff]  }
  0x30   : > { %477 = vmatpush1.bf16.msra.mxu0 %v875_v18  ;;  %824 = vmatpush1.bf16.msra.mxu1 %v875_v18  ;;  %v885_v25 = vld [vmem:[%s1031_s5 + $0x34] ss:$8 sps:$4 sm:$0xff]   ;;  %v887_v26 = vld [vmem:[%s1031_s5 + $0x30] ss:$8 sps:$4 sm:$0xff]   ;;  %v888_v27 = vld [vmem:[%s1031_s5 + $0x24] ss:$8 sps:$4 sm:$0xff]  }
  0x31   : > { %478 = vmatprep.subr.bf16.mxu0 %v876_v19  ;;  %817 = vmatprep.subr.bf16.mxu1 %v876_v19  ;;  %v890_v28 = vld [vmem:[%s1031_s5 + $0x20] ss:$8 sps:$4 sm:$0xff]   ;;  %v891_v29 = vld [vmem:[%s1031_s5 + $0x14] ss:$8 sps:$4 sm:$0xff]   ;;  %v893_v30 = vld [vmem:[%s1031_s5 + $0x10] ss:$8 sps:$4 sm:$0xff]  }
  0x32   : > { %v894_v31 = vld [vmem:[%s1031_s5 + $0x4] ss:$8 sps:$4 sm:$0xff]   ;;  %v896_v32 = vld [vmem:[%s1031_s5] ss:$8 sps:$4 sm:$0xff]   ;;  %s1094_s10 = smov (!%p337_p11, %s782_s10), 7  ;;  %v559_v36 = vshrl.u32 %v558_v35, 7 }
  0x33   : > { %v898_v34 = vld [vmem:[%s1082_s0 + $0x8] sm:$0xff]   ;;  %s339_s19 = scalar_lea.vmem %s1084_s2, %s1094_s10  ;;  %s815_s12 = sshll.u32 (%p995_p6), %s929_s14, 3 }
  0x34   : > { %479 = vmatpush1.bf16.msra.mxu0 %v878_v20  ;;  %825 = vmatpush1.bf16.msra.mxu1 %v878_v20  ;;  %v560_v37 = vsub.s32 0, %v559_v36  ;;  %v556_v38 = vld [vmem:[%s339_s19] sm:$0x3]  ;;  %v564_v39 = vsub.s32 1, %v559_v36  ;;  %s624_s26 = scalar_lea.vmem (%p995_p6), %s1085_s3, %s815_s12 }
  0x35   : > { %480 = vmatprep.subr.bf16.mxu0 %v879_v21  ;;  %818 = vmatprep.subr.bf16.mxu1 %v879_v21 }
  0x36   : > { %v561_v40 = vrot.slane %v556_v38, %v560_v37  ;;  %v565_v41 = vrot.slane %v556_v38, %v564_v39 }
  0x38   : > { %481 = vmatpush1.bf16.msra.mxu0 %v881_v22  ;;  %826 = vmatpush1.bf16.msra.mxu1 %v881_v22 }
  0x39   : > { %482 = vmatprep.subr.bf16.mxu0 %v882_v23  ;;  %819 = vmatprep.subr.bf16.mxu1 %v882_v23 }
  0x3c   : > { %483 = vmatpush1.bf16.msra.mxu0 %v884_v24  ;;  %827 = vmatpush1.bf16.msra.mxu1 %v884_v24 }
  0x3d   : > { %484 = vmatprep.subr.bf16.mxu0 %v885_v25  ;;  %820 = vmatprep.subr.bf16.mxu1 %v885_v25 }
  0x40   : > { %485 = vmatpush1.bf16.msra.mxu0 %v887_v26  ;;  %828 = vmatpush1.bf16.msra.mxu1 %v887_v26 }
  0x41   : > { %486 = vmatprep.subr.bf16.mxu0 %v888_v27  ;;  %821 = vmatprep.subr.bf16.mxu1 %v888_v27 }
  0x44   : > { %487 = vmatpush1.bf16.msra.mxu0 %v890_v28  ;;  %829 = vmatpush1.bf16.msra.mxu1 %v890_v28 }
  0x45   : > { %488 = vmatprep.subr.bf16.mxu0 %v891_v29  ;;  %822 = vmatprep.subr.bf16.mxu1 %v891_v29 }
  0x48   : > { %489 = vmatpush1.bf16.msra.mxu0 %v893_v30  ;;  %830 = vmatpush1.bf16.msra.mxu1 %v893_v30 }
  0x49   : > { %490 = vmatprep.subr.bf16.mxu0 %v894_v31  ;;  %823 = vmatprep.subr.bf16.mxu1 %v894_v31 }
  0x4c   : > { %491 = vmatpush1.bf16.msra.mxu0 %v896_v32  ;;  %831 = vmatpush1.bf16.msra.mxu1 %v896_v32 }
  0x4f   : > { %509 = vmatmul.mubr.bf16.vlgmr.msra.gmra.mxu0 %v897_v33  ;;  %519 = vmatmul.mubr.bf16.vlgmr.msra.gmra.mxu1 %v898_v34 }
 0x10f   : > { %v510_v42 = vpop.f32.mrf.mxu0  ;;  %v520_v43 = vpop.f32.mrf.mxu1 }
 0x110   : > { %v568_v44 = vadd.f32 %v561_v40, %v510_v42  ;;  %v572_v45 = vadd.f32 %v561_v40, %v520_v43 }
 0x111   : > { %v512_v46 = vpop.f32.mrf.mxu0  ;;  %v522_v47 = vpop.f32.mrf.mxu1 }
 0x112   : > { %v569_v48 = vadd.f32 %v565_v41, %v512_v46  ;;  %v573_v49 = vadd.f32 %v565_v41, %v522_v47  ;;  %v576_v52 = vmax.f32 %v568_v44, 0.0  ;;  %v580_v53 = vmax.f32 %v572_v45, 0.0 }
 0x113   : > { %v514_v50 = vpop.f32.mrf.mxu0  ;;  %v524_v51 = vpop.f32.mrf.mxu1 }
 0x114   : > { %v577_v54 = vmax.f32 %v569_v48, 0.0  ;;  %v581_v55 = vmax.f32 %v573_v49, 0.0  ;;  %v570_v56 = vadd.f32 %v561_v40, %v514_v50  ;;  %v574_v57 = vadd.f32 %v561_v40, %v524_v51 }
 0x115   : > { %v516_v58 = vpop.f32.mrf.mxu0  ;;  %v526_v59 = vpop.f32.mrf.mxu1 }
 0x116   : > { %v811_v60 = vpack.c.bf16 %v577_v54, %v576_v52  ;;  %v813_v61 = vpack.c.bf16 %v581_v55, %v580_v53  ;;  %v571_v62 = vadd.f32 %v565_v41, %v516_v58  ;;  %v575_v63 = vadd.f32 %v565_v41, %v526_v59 }
 0x117   : > { %v578_v0 = vmax.f32 %v570_v56, 0.0  ;;  %v582_v1 = vmax.f32 %v574_v57, 0.0 }
 0x118   : > { %608 = vst [vmem:[%s324_s23] sm:$0xff] %v811_v60  ;;  %610 = vst [vmem:[%s324_s23 + $0x10] sm:$0xff] %v813_v61  ;;  %v579_v2 = vmax.f32 %v571_v62, 0.0  ;;  %v583_v3 = vmax.f32 %v575_v63, 0.0  ;;  %618 = sbr.rel (!%p995_p6) target bundleno = 293 (0x125), region = 82 }
 0x11a   : > { %v812_v4 = vpack.c.bf16 %v579_v2, %v578_v0  ;;  %v814_v5 = vpack.c.bf16 %v583_v3, %v582_v1 }
 0x11c   : > { %609 = vst [vmem:[%s324_s23 + $0x8] sm:$0xff] %v812_v4  ;;  %611 = vst [vmem:[%s324_s23 + $0x18] sm:$0xff] %v814_v5 }
 0x11f   : > { %v659_v6 = vld [vmem:[%s324_s23] sm:$0xff]  ;;  %v663_v8 = vld [vmem:[%s324_s23 + $0x10] sm:$0xff] }
 0x120   : > { %660 = vst [vmem:[%s624_s26] sm:$0xff] %v659_v6  ;;  %664 = vst [vmem:[%s624_s26 + $0x40] sm:$0xff] %v663_v8 }
 0x123   : > { %v661_v7 = vld [vmem:[%s324_s23 + $0x8] sm:$0xff]  ;;  %v665_v9 = vld [vmem:[%s324_s23 + $0x18] sm:$0xff] }
 0x124   : > { %662 = vst [vmem:[%s624_s26 + $0x20] sm:$0xff] %v661_v7  ;;  %666 = vst [vmem:[%s624_s26 + $0x60] sm:$0xff] %v665_v9 }
 0x125 PF: > { %s13_s16 = sadd.s32 1, %s937_s16   ;;  %s1087_s12 = smov %s925_s13 }
 0x126   : > { %p10_p12 = scmp.ge.s32.totalorder %s13_s16, 6   ;;  %s1088_s13 = smov %s1000_s22 }
 0x127   : > { %s1089_s14 = smov %s933_s15  ;;  %s1090_s15 = smov %s1092_s17 }
 0x128   :  { %12 = sbr.rel (!%p10_p12) target bundleno = 3 (0x3), region = 157 }

// kernel: forward.9
= control target key start
LH: loop header
LB: loop body
LE: loop exit
PB: predicated region body
PF: predicated region fallthrough
CT: control target
= control target key end

     0   :  { %s3177_s0 = inlined_call_operand.vmem [shape: bf16[16,7168], index: 0, kind: input, shape index: {}]   ;;  %s3178_s1 = inlined_call_operand.vmem [shape: bf16[7168,1024], index: 1, kind: input, shape index: {}]   ;;  %s3179_s2 = inlined_call_operand.vmem [shape: f32[1,1024], index: 2, kind: input, shape index: {}]   ;;  %s3180_s3 = inlined_call_operand.vmem [shape: bf16[16,1024], index: 3, kind: output, shape index: {}]  }
   0x1   :  { %3182 = sst [smem:[#allocation7_spill]] %s3177_s0 }
   0x2   :  { %3183 = sst [smem:[#allocation8_spill]] %s3178_s1 }
   0x3   :  { %s2583_s12 = smov 0   ;;  %s2585_s13 = smov 0  }
   0x4   :  { %s2587_s14 = smov 0   ;;  %s2589_s15 = smov 0  }
   0x5   :  { %s2591_s16 = smov 0   ;;  %s2593_s17 = smov 0  }
   0x6   :  { %s2595_s18 = smov 0   ;;  %s2597_s19 = smov 0  }
   0x7   :  { %s2599_s20 = smov 0   ;;  %s2601_s21 = smov 0  }
   0x8   :  { %s2603_s22 = smov 0  }
   0x9 LB: > { %s2026_s23 = sadd.s32 4294967295, %s2560_s22   ;;  %s25_s24 = sadd.s32 1, %s2552_s20  ;;  %s2560_s22 = sphi %s2603_s22, %s13_s22   ;;  %s2556_s21 = sphi %s2601_s21, %s3200_s21   ;;  %s2552_s20 = sphi %s2599_s20, %s3199_s20   ;;  %s2548_s19 = sphi %s2597_s19, %s3198_s19   ;;  %s2544_s18 = sphi %s2595_s18, %s3197_s18   ;;  %s2540_s17 = sphi %s2593_s17, %s3196_s17   ;;  %s2536_s16 = sphi %s2591_s16, %s3195_s16   ;;  %s2532_s15 = sphi %s2589_s15, %s3194_s15   ;;  %s2528_s14 = sphi %s2587_s14, %s3193_s14   ;;  %s2524_s13 = sphi %s2585_s13, %s3192_s13   ;;  %s2520_s12 = sphi %s2583_s12, %s3191_s12  }
   0xa   : > { %p26_p0 = scmp.ge.s32.totalorder %s25_s24, 7  ;;  %s28_s25 = sadd.s32 1, %s2556_s21 }
   0xb   : > { %s41_s26 = sadd.s32 1, %s2540_s17  ;;  %p48_p1 = scmp.ne.s32.totalorder %s2540_s17, %s2536_s16 }
   0xc   : > { %s3202_s24 = smov (%p26_p0, %s25_s24), 0  ;;  %s3204_s25 = smov (!%p26_p0, %s28_s25), %s2556_s21 }
   0xd   : > { %s37_s27 = ssub.s32 %s2552_s20, %s3202_s24  ;;  %p49_p2 = scmp.eq.s32.totalorder %s2560_s22, 0 }
   0xe   : > { %p30_p3 = scmp.ge.s32.totalorder %s3204_s25, 4  ;;  %p39_p4 = scmp.eq.s32.totalorder %s37_s27, 0 }
   0xf   : > { %p2650_p5 = por %p49_p2, %p48_p1  ;;  %s69_s29 = sadd.s32 1, %s2532_s15 }
  0x10   : > { %s3206_s25 = smov (%p30_p3, %s3204_s25), 0  ;;  %p76_p6 = scmp.ne.s32.totalorder %s2532_s15, %s2528_s14 }
  0x11   : > { %3185 = sst [smem:[#allocation6_spill]] %s3206_s25  ;;  %s65_s4 = ssub.s32 %s2556_s21, %s3206_s25 }
  0x12   : > { %s2658_s30 = scalar_select %p39_p4, %s2540_s17, %s41_s26  }
  0x13   : > { %s66_s5 = sor.u32 %s65_s4, %s37_s27  ;;  %p121_p7 = scmp.eq.s32.totalorder %s65_s4, 0 }
  0x14   : > { %p67_p8 = scmp.eq.s32.totalorder %s66_s5, 0  ;;  %p2664_p9 = por %p76_p6, %p49_p2 }
  0x15   : > { %s123_s7 = sadd.s32 1, %s2524_s13  ;;  %p133_p10 = scmp.ne.s32.totalorder %s2524_s13, %s2520_s12 }
  0x16   : > { %s2672_s8 = scalar_select %p67_p8, %s2532_s15, %s69_s29  }
  0x17   : > { %s2675_s9 = scalar_select %p121_p7, %s2524_s13, %s123_s7  }
  0x18   : > { %p134_p11 = scmp.eq.s32.totalorder %s2026_s23, 27  ;;  %p2029_p13 = scmp.ge.s32.totalorder %s2560_s22, 28 }
  0x1a   : > { %p2677_p12 = por %p134_p11, %p133_p10  ;;  %156 = sbr.rel (%p2029_p13) target bundleno = 183 (0xb7), region = 16 }
  0x1f   : > { %159 = sbr.rel (!%p2650_p5) target bundleno = 45 (0x2d), region = 20  ;;  %s161_s11 = sand.u32 (%p2650_p5), 1, %s2540_s17  }
  0x20   : > { %s2188_s26 = sshll.u32 (%p2650_p5), %s2552_s20, 5  ;;  %s2030_s27 = sshll.u32 (%p2650_p5), %s161_s11, 6 }
  0x21   : > { %s3188_s0 = sld [smem:[#allocation7_spill]] (%p2650_p5)  ;;  %s163_s23 = scalar_lea.vmem (%p2650_p5), [#allocation3], %s2030_s27 }
  0x27   : > { %s169_s5 = scalar_lea.vmem %s3188_s0, %s2188_s26 }
  0x28   : > { %v182_v0 = vld [vmem:[%s169_s5] sm:$0xff]  ;;  %v184_v1 = vld [vmem:[%s169_s5 + $0x8] sm:$0xff]  ;;  %v186_v2 = vld [vmem:[%s169_s5 + $0x10] sm:$0xff] }
  0x29   : > { %183 = vst [vmem:[%s163_s23] sm:$0xff] %v182_v0  ;;  %185 = vst [vmem:[%s163_s23 + $0x8] sm:$0xff] %v184_v1  ;;  %v188_v3 = vld [vmem:[%s169_s5 + $0x18] sm:$0xff]  ;;  %v190_v4 = vld [vmem:[%s169_s5 + $0xe0] sm:$0xff] }
  0x2a   : > { %187 = vst [vmem:[%s163_s23 + $0x10] sm:$0xff] %v186_v2  ;;  %v192_v5 = vld [vmem:[%s169_s5 + $0xe8] sm:$0xff]  ;;  %189 = vst [vmem:[%s163_s23 + $0x18] sm:$0xff] %v188_v3  ;;  %v194_v6 = vld [vmem:[%s169_s5 + $0xf0] sm:$0xff] }
  0x2b   : > { %191 = vst [vmem:[%s163_s23 + $0x20] sm:$0xff] %v190_v4  ;;  %193 = vst [vmem:[%s163_s23 + $0x28] sm:$0xff] %v192_v5  ;;  %v196_v7 = vld [vmem:[%s169_s5 + $0xf8] sm:$0xff] }
  0x2c   : > { %195 = vst [vmem:[%s163_s23 + $0x30] sm:$0xff] %v194_v6  ;;  %197 = vst [vmem:[%s163_s23 + $0x38] sm:$0xff] %v196_v7 }
  0x2d PF: > { %203 = sbr.rel (!%p2664_p9) target bundleno = 183 (0xb7), region = 43  ;;  %s205_s28 = sand.u32 (%p2664_p9), 1, %s2532_s15  }
  0x2e   : > { %s2035_s7 = sshll.u32 (%p2664_p9), %s2556_s21, 1  ;;  %s2033_s11 = sshll.u32 (%p2664_p9), %s205_s28, 10 }
  0x2f   : > { %s2189_s26 = sshll.u32 (%p2664_p9), %s2552_s20, 10  ;;  %s3189_s1 = sld [smem:[#allocation8_spill]] (%p2664_p9) }
  0x30   : > { %s211_s27 = sadd.s32 (%p2664_p9), %s2189_s26, %s2035_s7  ;;  %s2702_s6 = scalar_lea.vmem (%p2664_p9), [#allocation4], %s2033_s11 }
  0x31   : > { %s2037_s29 = sshll.u32 (%p2664_p9), %s211_s27, 2 }
  0x35   : > { %s2697_s25 = scalar_lea.vmem %s3189_s1, %s2037_s29 }
  0x36   : > { %v496_v8 = vld [vmem:[%s2697_s25] sm:$0xff] }
  0x37   : > { %v498_v9 = vld [vmem:[%s2697_s25 + $0x20] sm:$0xff]  ;;  %497 = vst [vmem:[%s2702_s6] sm:$0xff] %v496_v8 }
  0x38   : > { %v500_v10 = vld [vmem:[%s2697_s25 + $0x40] sm:$0xff]  ;;  %499 = vst [vmem:[%s2702_s6 + $0x8] sm:$0xff] %v498_v9 }
  0x39   : > { %501 = vst [vmem:[%s2702_s6 + $0x10] sm:$0xff] %v500_v10  ;;  %v502_v11 = vld [vmem:[%s2697_s25 + $0x60] sm:$0xff] }
  0x3a   : > { %v504_v12 = vld [vmem:[%s2697_s25 + $0x80] sm:$0xff]  ;;  %503 = vst [vmem:[%s2702_s6 + $0x18] sm:$0xff] %v502_v11 }
  0x3b   : > { %v506_v13 = vld [vmem:[%s2697_s25 + $0xa0] sm:$0xff]  ;;  %505 = vst [vmem:[%s2702_s6 + $0x20] sm:$0xff] %v504_v12 }
  0x3c   : > { %507 = vst [vmem:[%s2702_s6 + $0x28] sm:$0xff] %v506_v13  ;;  %v508_v14 = vld [vmem:[%s2697_s25 + $0xc0] sm:$0xff] }
  0x3d   : > { %v510_v15 = vld [vmem:[%s2697_s25 + $0xe0] sm:$0xff]  ;;  %509 = vst [vmem:[%s2702_s6 + $0x30] sm:$0xff] %v508_v14 }
  0x3e   : > { %v512_v16 = vld [vmem:[%s2697_s25 + $0x100] sm:$0xff]  ;;  %511 = vst [vmem:[%s2702_s6 + $0x38] sm:$0xff] %v510_v15 }
  0x3f   : > { %513 = vst [vmem:[%s2702_s6 + $0x40] sm:$0xff] %v512_v16  ;;  %v514_v17 = vld [vmem:[%s2697_s25 + $0x120] sm:$0xff] }
  0x40   : > { %v516_v18 = vld [vmem:[%s2697_s25 + $0x140] sm:$0xff]  ;;  %515 = vst [vmem:[%s2702_s6 + $0x48] sm:$0xff] %v514_v17 }
  0x41   : > { %v518_v19 = vld [vmem:[%s2697_s25 + $0x160] sm:$0xff]  ;;  %517 = vst [vmem:[%s2702_s6 + $0x50] sm:$0xff] %v516_v18 }
  0x42   : > { %519 = vst [vmem:[%s2702_s6 + $0x58] sm:$0xff] %v518_v19  ;;  %v520_v20 = vld [vmem:[%s2697_s25 + $0x180] sm:$0xff] }
  0x43   : > { %v522_v21 = vld [vmem:[%s2697_s25 + $0x1a0] sm:$0xff]  ;;  %521 = vst [vmem:[%s2702_s6 + $0x60] sm:$0xff] %v520_v20 }
  0x44   : > { %v524_v22 = vld [vmem:[%s2697_s25 + $0x1c0] sm:$0xff]  ;;  %523 = vst [vmem:[%s2702_s6 + $0x68] sm:$0xff] %v522_v21 }
  0x45   : > { %525 = vst [vmem:[%s2702_s6 + $0x70] sm:$0xff] %v524_v22  ;;  %v526_v23 = vld [vmem:[%s2697_s25 + $0x1e0] sm:$0xff] }
  0x46   : > { %v528_v24 = vld [vmem:[%s2697_s25 + $0x200] sm:$0xff]  ;;  %527 = vst [vmem:[%s2702_s6 + $0x78] sm:$0xff] %v526_v23 }
  0x47   : > { %v530_v25 = vld [vmem:[%s2697_s25 + $0x220] sm:$0xff]  ;;  %529 = vst [vmem:[%s2702_s6 + $0x80] sm:$0xff] %v528_v24 }
  0x48   : > { %531 = vst [vmem:[%s2702_s6 + $0x88] sm:$0xff] %v530_v25  ;;  %v532_v26 = vld [vmem:[%s2697_s25 + $0x240] sm:$0xff] }
  0x49   : > { %v534_v27 = vld [vmem:[%s2697_s25 + $0x260] sm:$0xff]  ;;  %533 = vst [vmem:[%s2702_s6 + $0x90] sm:$0xff] %v532_v26 }
  0x4a   : > { %v536_v28 = vld [vmem:[%s2697_s25 + $0x280] sm:$0xff]  ;;  %535 = vst [vmem:[%s2702_s6 + $0x98] sm:$0xff] %v534_v27 }
  0x4b   : > { %537 = vst [vmem:[%s2702_s6 + $0xa0] sm:$0xff] %v536_v28  ;;  %v538_v29 = vld [vmem:[%s2697_s25 + $0x2a0] sm:$0xff] }
  0x4c   : > { %v540_v30 = vld [vmem:[%s2697_s25 + $0x2c0] sm:$0xff]  ;;  %539 = vst [vmem:[%s2702_s6 + $0xa8] sm:$0xff] %v538_v29 }
  0x4d   : > { %v542_v31 = vld [vmem:[%s2697_s25 + $0x2e0] sm:$0xff]  ;;  %541 = vst [vmem:[%s2702_s6 + $0xb0] sm:$0xff] %v540_v30 }
  0x4e   : > { %543 = vst [vmem:[%s2702_s6 + $0xb8] sm:$0xff] %v542_v31  ;;  %v544_v32 = vld [vmem:[%s2697_s25 + $0x300] sm:$0xff] }
  0x4f   : > { %v546_v33 = vld [vmem:[%s2697_s25 + $0x320] sm:$0xff]  ;;  %545 = vst [vmem:[%s2702_s6 + $0xc0] sm:$0xff] %v544_v32 }
  0x50   : > { %v548_v34 = vld [vmem:[%s2697_s25 + $0x340] sm:$0xff]  ;;  %547 = vst [vmem:[%s2702_s6 + $0xc8] sm:$0xff] %v546_v33 }
  0x51   : > { %549 = vst [vmem:[%s2702_s6 + $0xd0] sm:$0xff] %v548_v34  ;;  %v550_v35 = vld [vmem:[%s2697_s25 + $0x360] sm:$0xff] }
  0x52   : > { %v552_v36 = vld [vmem:[%s2697_s25 + $0x380] sm:$0xff]  ;;  %551 = vst [vmem:[%s2702_s6 + $0xd8] sm:$0xff] %v550_v35 }
  0x53   : > { %v554_v37 = vld [vmem:[%s2697_s25 + $0x3a0] sm:$0xff]  ;;  %553 = vst [vmem:[%s2702_s6 + $0xe0] sm:$0xff] %v552_v36 }
  0x54   : > { %555 = vst [vmem:[%s2702_s6 + $0xe8] sm:$0xff] %v554_v37  ;;  %v556_v38 = vld [vmem:[%s2697_s25 + $0x3c0] sm:$0xff] }
  0x55   : > { %v558_v39 = vld [vmem:[%s2697_s25 + $0x3e0] sm:$0xff]  ;;  %557 = vst [vmem:[%s2702_s6 + $0xf0] sm:$0xff] %v556_v38 }
  0x56   : > { %v560_v40 = vld [vmem:[%s2697_s25 + $0x400] sm:$0xff]  ;;  %559 = vst [vmem:[%s2702_s6 + $0xf8] sm:$0xff] %v558_v39 }
  0x57   : > { %561 = vst [vmem:[%s2702_s6 + $0x100] sm:$0xff] %v560_v40  ;;  %v562_v41 = vld [vmem:[%s2697_s25 + $0x420] sm:$0xff] }
  0x58   : > { %v564_v42 = vld [vmem:[%s2697_s25 + $0x440] sm:$0xff]  ;;  %563 = vst [vmem:[%s2702_s6 + $0x108] sm:$0xff] %v562_v41 }
  0x59   : > { %v566_v43 = vld [vmem:[%s2697_s25 + $0x460] sm:$0xff]  ;;  %565 = vst [vmem:[%s2702_s6 + $0x110] sm:$0xff] %v564_v42 }
  0x5a   : > { %567 = vst [vmem:[%s2702_s6 + $0x118] sm:$0xff] %v566_v43  ;;  %v568_v44 = vld [vmem:[%s2697_s25 + $0x480] sm:$0xff] }
  0x5b   : > { %v570_v45 = vld [vmem:[%s2697_s25 + $0x4a0] sm:$0xff]  ;;  %569 = vst [vmem:[%s2702_s6 + $0x120] sm:$0xff] %v568_v44 }
  0x5c   : > { %v572_v46 = vld [vmem:[%s2697_s25 + $0x4c0] sm:$0xff]  ;;  %571 = vst [vmem:[%s2702_s6 + $0x128] sm:$0xff] %v570_v45 }
  0x5d   : > { %573 = vst [vmem:[%s2702_s6 + $0x130] sm:$0xff] %v572_v46  ;;  %v574_v47 = vld [vmem:[%s2697_s25 + $0x4e0] sm:$0xff] }
  0x5e   : > { %v576_v48 = vld [vmem:[%s2697_s25 + $0x500] sm:$0xff]  ;;  %575 = vst [vmem:[%s2702_s6 + $0x138] sm:$0xff] %v574_v47 }
  0x5f   : > { %v578_v49 = vld [vmem:[%s2697_s25 + $0x520] sm:$0xff]  ;;  %577 = vst [vmem:[%s2702_s6 + $0x140] sm:$0xff] %v576_v48 }
  0x60   : > { %579 = vst [vmem:[%s2702_s6 + $0x148] sm:$0xff] %v578_v49  ;;  %v580_v50 = vld [vmem:[%s2697_s25 + $0x540] sm:$0xff] }
  0x61   : > { %v582_v51 = vld [vmem:[%s2697_s25 + $0x560] sm:$0xff]  ;;  %581 = vst [vmem:[%s2702_s6 + $0x150] sm:$0xff] %v580_v50 }
  0x62   : > { %v584_v52 = vld [vmem:[%s2697_s25 + $0x580] sm:$0xff]  ;;  %583 = vst [vmem:[%s2702_s6 + $0x158] sm:$0xff] %v582_v51 }
  0x63   : > { %585 = vst [vmem:[%s2702_s6 + $0x160] sm:$0xff] %v584_v52  ;;  %v586_v53 = vld [vmem:[%s2697_s25 + $0x5a0] sm:$0xff] }
  0x64   : > { %v588_v54 = vld [vmem:[%s2697_s25 + $0x5c0] sm:$0xff]  ;;  %587 = vst [vmem:[%s2702_s6 + $0x168] sm:$0xff] %v586_v53 }
  0x65   : > { %v590_v55 = vld [vmem:[%s2697_s25 + $0x5e0] sm:$0xff]  ;;  %589 = vst [vmem:[%s2702_s6 + $0x170] sm:$0xff] %v588_v54 }
  0x66   : > { %591 = vst [vmem:[%s2702_s6 + $0x178] sm:$0xff] %v590_v55  ;;  %v592_v56 = vld [vmem:[%s2697_s25 + $0x600] sm:$0xff] }
  0x67   : > { %v594_v57 = vld [vmem:[%s2697_s25 + $0x620] sm:$0xff]  ;;  %593 = vst [vmem:[%s2702_s6 + $0x180] sm:$0xff] %v592_v56 }
  0x68   : > { %v596_v58 = vld [vmem:[%s2697_s25 + $0x640] sm:$0xff]  ;;  %595 = vst [vmem:[%s2702_s6 + $0x188] sm:$0xff] %v594_v57 }
  0x69   : > { %597 = vst [vmem:[%s2702_s6 + $0x190] sm:$0xff] %v596_v58  ;;  %v598_v59 = vld [vmem:[%s2697_s25 + $0x660] sm:$0xff] }
  0x6a   : > { %v600_v60 = vld [vmem:[%s2697_s25 + $0x680] sm:$0xff]  ;;  %599 = vst [vmem:[%s2702_s6 + $0x198] sm:$0xff] %v598_v59 }
  0x6b   : > { %v602_v61 = vld [vmem:[%s2697_s25 + $0x6a0] sm:$0xff]  ;;  %601 = vst [vmem:[%s2702_s6 + $0x1a0] sm:$0xff] %v600_v60 }
  0x6c   : > { %603 = vst [vmem:[%s2702_s6 + $0x1a8] sm:$0xff] %v602_v61  ;;  %v604_v62 = vld [vmem:[%s2697_s25 + $0x6c0] sm:$0xff] }
  0x6d   : > { %v606_v63 = vld [vmem:[%s2697_s25 + $0x6e0] sm:$0xff]  ;;  %605 = vst [vmem:[%s2702_s6 + $0x1b0] sm:$0xff] %v604_v62 }
  0x6e   : > { %v608_v0 = vld [vmem:[%s2697_s25 + $0x700] sm:$0xff]  ;;  %607 = vst [vmem:[%s2702_s6 + $0x1b8] sm:$0xff] %v606_v63 }
  0x6f   : > { %609 = vst [vmem:[%s2702_s6 + $0x1c0] sm:$0xff] %v608_v0  ;;  %v610_v1 = vld [vmem:[%s2697_s25 + $0x720] sm:$0xff] }
  0x70   : > { %v612_v2 = vld [vmem:[%s2697_s25 + $0x740] sm:$0xff]  ;;  %611 = vst [vmem:[%s2702_s6 + $0x1c8] sm:$0xff] %v610_v1 }
  0x71   : > { %v614_v3 = vld [vmem:[%s2697_s25 + $0x760] sm:$0xff]  ;;  %613 = vst [vmem:[%s2702_s6 + $0x1d0] sm:$0xff] %v612_v2 }
  0x72   : > { %615 = vst [vmem:[%s2702_s6 + $0x1d8] sm:$0xff] %v614_v3  ;;  %v616_v4 = vld [vmem:[%s2697_s25 + $0x780] sm:$0xff] }
  0x73   : > { %v618_v5 = vld [vmem:[%s2697_s25 + $0x7a0] sm:$0xff]  ;;  %617 = vst [vmem:[%s2702_s6 + $0x1e0] sm:$0xff] %v616_v4 }
  0x74   : > { %v620_v6 = vld [vmem:[%s2697_s25 + $0x7c0] sm:$0xff]  ;;  %619 = vst [vmem:[%s2702_s6 + $0x1e8] sm:$0xff] %v618_v5 }
  0x75   : > { %621 = vst [vmem:[%s2702_s6 + $0x1f0] sm:$0xff] %v620_v6  ;;  %v622_v7 = vld [vmem:[%s2697_s25 + $0x7e0] sm:$0xff] }
  0x76   : > { %v624_v8 = vld [vmem:[%s2697_s25 + $0x800] sm:$0xff]  ;;  %623 = vst [vmem:[%s2702_s6 + $0x1f8] sm:$0xff] %v622_v7 }
  0x77   : > { %v626_v9 = vld [vmem:[%s2697_s25 + $0x820] sm:$0xff]  ;;  %625 = vst [vmem:[%s2702_s6 + $0x200] sm:$0xff] %v624_v8 }
  0x78   : > { %627 = vst [vmem:[%s2702_s6 + $0x208] sm:$0xff] %v626_v9  ;;  %v628_v10 = vld [vmem:[%s2697_s25 + $0x840] sm:$0xff] }
  0x79   : > { %v630_v11 = vld [vmem:[%s2697_s25 + $0x860] sm:$0xff]  ;;  %629 = vst [vmem:[%s2702_s6 + $0x210] sm:$0xff] %v628_v10 }
  0x7a   : > { %v632_v12 = vld [vmem:[%s2697_s25 + $0x880] sm:$0xff]  ;;  %631 = vst [vmem:[%s2702_s6 + $0x218] sm:$0xff] %v630_v11 }
  0x7b   : > { %633 = vst [vmem:[%s2702_s6 + $0x220] sm:$0xff] %v632_v12  ;;  %v634_v13 = vld [vmem:[%s2697_s25 + $0x8a0] sm:$0xff] }
  0x7c   : > { %v636_v14 = vld [vmem:[%s2697_s25 + $0x8c0] sm:$0xff]  ;;  %635 = vst [vmem:[%s2702_s6 + $0x228] sm:$0xff] %v634_v13 }
  0x7d   : > { %v638_v15 = vld [vmem:[%s2697_s25 + $0x8e0] sm:$0xff]  ;;  %637 = vst [vmem:[%s2702_s6 + $0x230] sm:$0xff] %v636_v14 }
  0x7e   : > { %639 = vst [vmem:[%s2702_s6 + $0x238] sm:$0xff] %v638_v15  ;;  %v640_v16 = vld [vmem:[%s2697_s25 + $0x900] sm:$0xff] }
  0x7f   : > { %v642_v17 = vld [vmem:[%s2697_s25 + $0x920] sm:$0xff]  ;;  %641 = vst [vmem:[%s2702_s6 + $0x240] sm:$0xff] %v640_v16 }
  0x80   : > { %v644_v18 = vld [vmem:[%s2697_s25 + $0x940] sm:$0xff]  ;;  %643 = vst [vmem:[%s2702_s6 + $0x248] sm:$0xff] %v642_v17 }
  0x81   : > { %645 = vst [vmem:[%s2702_s6 + $0x250] sm:$0xff] %v644_v18  ;;  %v646_v19 = vld [vmem:[%s2697_s25 + $0x960] sm:$0xff] }
  0x82   : > { %v648_v20 = vld [vmem:[%s2697_s25 + $0x980] sm:$0xff]  ;;  %647 = vst [vmem:[%s2702_s6 + $0x258] sm:$0xff] %v646_v19 }
  0x83   : > { %v650_v21 = vld [vmem:[%s2697_s25 + $0x9a0] sm:$0xff]  ;;  %649 = vst [vmem:[%s2702_s6 + $0x260] sm:$0xff] %v648_v20 }
  0x84   : > { %651 = vst [vmem:[%s2702_s6 + $0x268] sm:$0xff] %v650_v21  ;;  %v652_v22 = vld [vmem:[%s2697_s25 + $0x9c0] sm:$0xff] }
  0x85   : > { %v654_v23 = vld [vmem:[%s2697_s25 + $0x9e0] sm:$0xff]  ;;  %653 = vst [vmem:[%s2702_s6 + $0x270] sm:$0xff] %v652_v22 }
  0x86   : > { %v656_v24 = vld [vmem:[%s2697_s25 + $0xa00] sm:$0xff]  ;;  %655 = vst [vmem:[%s2702_s6 + $0x278] sm:$0xff] %v654_v23 }
  0x87   : > { %657 = vst [vmem:[%s2702_s6 + $0x280] sm:$0xff] %v656_v24  ;;  %v658_v25 = vld [vmem:[%s2697_s25 + $0xa20] sm:$0xff] }
  0x88   : > { %v660_v26 = vld [vmem:[%s2697_s25 + $0xa40] sm:$0xff]  ;;  %659 = vst [vmem:[%s2702_s6 + $0x288] sm:$0xff] %v658_v25 }
  0x89   : > { %v662_v27 = vld [vmem:[%s2697_s25 + $0xa60] sm:$0xff]  ;;  %661 = vst [vmem:[%s2702_s6 + $0x290] sm:$0xff] %v660_v26 }
  0x8a   : > { %663 = vst [vmem:[%s2702_s6 + $0x298] sm:$0xff] %v662_v27  ;;  %v664_v28 = vld [vmem:[%s2697_s25 + $0xa80] sm:$0xff] }
  0x8b   : > { %v666_v29 = vld [vmem:[%s2697_s25 + $0xaa0] sm:$0xff]  ;;  %665 = vst [vmem:[%s2702_s6 + $0x2a0] sm:$0xff] %v664_v28 }
  0x8c   : > { %v668_v30 = vld [vmem:[%s2697_s25 + $0xac0] sm:$0xff]  ;;  %667 = vst [vmem:[%s2702_s6 + $0x2a8] sm:$0xff] %v666_v29 }
  0x8d   : > { %669 = vst [vmem:[%s2702_s6 + $0x2b0] sm:$0xff] %v668_v30  ;;  %v670_v31 = vld [vmem:[%s2697_s25 + $0xae0] sm:$0xff] }
  0x8e   : > { %v672_v32 = vld [vmem:[%s2697_s25 + $0xb00] sm:$0xff]  ;;  %671 = vst [vmem:[%s2702_s6 + $0x2b8] sm:$0xff] %v670_v31 }
  0x8f   : > { %v674_v33 = vld [vmem:[%s2697_s25 + $0xb20] sm:$0xff]  ;;  %673 = vst [vmem:[%s2702_s6 + $0x2c0] sm:$0xff] %v672_v32 }
  0x90   : > { %675 = vst [vmem:[%s2702_s6 + $0x2c8] sm:$0xff] %v674_v33  ;;  %v676_v34 = vld [vmem:[%s2697_s25 + $0xb40] sm:$0xff] }
  0x91   : > { %v678_v35 = vld [vmem:[%s2697_s25 + $0xb60] sm:$0xff]  ;;  %677 = vst [vmem:[%s2702_s6 + $0x2d0] sm:$0xff] %v676_v34 }
  0x92   : > { %v680_v36 = vld [vmem:[%s2697_s25 + $0xb80] sm:$0xff]  ;;  %679 = vst [vmem:[%s2702_s6 + $0x2d8] sm:$0xff] %v678_v35 }
  0x93   : > { %681 = vst [vmem:[%s2702_s6 + $0x2e0] sm:$0xff] %v680_v36  ;;  %v682_v37 = vld [vmem:[%s2697_s25 + $0xba0] sm:$0xff] }
  0x94   : > { %v684_v38 = vld [vmem:[%s2697_s25 + $0xbc0] sm:$0xff]  ;;  %683 = vst [vmem:[%s2702_s6 + $0x2e8] sm:$0xff] %v682_v37 }
  0x95   : > { %v686_v39 = vld [vmem:[%s2697_s25 + $0xbe0] sm:$0xff]  ;;  %685 = vst [vmem:[%s2702_s6 + $0x2f0] sm:$0xff] %v684_v38 }
  0x96   : > { %687 = vst [vmem:[%s2702_s6 + $0x2f8] sm:$0xff] %v686_v39  ;;  %v688_v40 = vld [vmem:[%s2697_s25 + $0xc00] sm:$0xff] }
  0x97   : > { %v690_v41 = vld [vmem:[%s2697_s25 + $0xc20] sm:$0xff]  ;;  %689 = vst [vmem:[%s2702_s6 + $0x300] sm:$0xff] %v688_v40 }
  0x98   : > { %v692_v42 = vld [vmem:[%s2697_s25 + $0xc40] sm:$0xff]  ;;  %691 = vst [vmem:[%s2702_s6 + $0x308] sm:$0xff] %v690_v41 }
  0x99   : > { %693 = vst [vmem:[%s2702_s6 + $0x310] sm:$0xff] %v692_v42  ;;  %v694_v43 = vld [vmem:[%s2697_s25 + $0xc60] sm:$0xff] }
  0x9a   : > { %v696_v44 = vld [vmem:[%s2697_s25 + $0xc80] sm:$0xff]  ;;  %695 = vst [vmem:[%s2702_s6 + $0x318] sm:$0xff] %v694_v43 }
  0x9b   : > { %v698_v45 = vld [vmem:[%s2697_s25 + $0xca0] sm:$0xff]  ;;  %697 = vst [vmem:[%s2702_s6 + $0x320] sm:$0xff] %v696_v44 }
  0x9c   : > { %699 = vst [vmem:[%s2702_s6 + $0x328] sm:$0xff] %v698_v45  ;;  %v700_v46 = vld [vmem:[%s2697_s25 + $0xcc0] sm:$0xff] }
  0x9d   : > { %v702_v47 = vld [vmem:[%s2697_s25 + $0xce0] sm:$0xff]  ;;  %701 = vst [vmem:[%s2702_s6 + $0x330] sm:$0xff] %v700_v46 }
  0x9e   : > { %v704_v48 = vld [vmem:[%s2697_s25 + $0xd00] sm:$0xff]  ;;  %703 = vst [vmem:[%s2702_s6 + $0x338] sm:$0xff] %v702_v47 }
  0x9f   : > { %705 = vst [vmem:[%s2702_s6 + $0x340] sm:$0xff] %v704_v48  ;;  %v706_v49 = vld [vmem:[%s2697_s25 + $0xd20] sm:$0xff] }
  0xa0   : > { %v708_v50 = vld [vmem:[%s2697_s25 + $0xd40] sm:$0xff]  ;;  %707 = vst [vmem:[%s2702_s6 + $0x348] sm:$0xff] %v706_v49 }
  0xa1   : > { %v710_v51 = vld [vmem:[%s2697_s25 + $0xd60] sm:$0xff]  ;;  %709 = vst [vmem:[%s2702_s6 + $0x350] sm:$0xff] %v708_v50 }
  0xa2   : > { %711 = vst [vmem:[%s2702_s6 + $0x358] sm:$0xff] %v710_v51  ;;  %v712_v52 = vld [vmem:[%s2697_s25 + $0xd80] sm:$0xff] }
  0xa3   : > { %v714_v53 = vld [vmem:[%s2697_s25 + $0xda0] sm:$0xff]  ;;  %713 = vst [vmem:[%s2702_s6 + $0x360] sm:$0xff] %v712_v52 }
  0xa4   : > { %v716_v54 = vld [vmem:[%s2697_s25 + $0xdc0] sm:$0xff]  ;;  %715 = vst [vmem:[%s2702_s6 + $0x368] sm:$0xff] %v714_v53 }
  0xa5   : > { %717 = vst [vmem:[%s2702_s6 + $0x370] sm:$0xff] %v716_v54  ;;  %v718_v55 = vld [vmem:[%s2697_s25 + $0xde0] sm:$0xff] }
  0xa6   : > { %v720_v56 = vld [vmem:[%s2697_s25 + $0xe00] sm:$0xff]  ;;  %719 = vst [vmem:[%s2702_s6 + $0x378] sm:$0xff] %v718_v55 }
  0xa7   : > { %v722_v57 = vld [vmem:[%s2697_s25 + $0xe20] sm:$0xff]  ;;  %721 = vst [vmem:[%s2702_s6 + $0x380] sm:$0xff] %v720_v56 }
  0xa8   : > { %723 = vst [vmem:[%s2702_s6 + $0x388] sm:$0xff] %v722_v57  ;;  %v724_v58 = vld [vmem:[%s2697_s25 + $0xe40] sm:$0xff] }
  0xa9   : > { %v726_v59 = vld [vmem:[%s2697_s25 + $0xe60] sm:$0xff]  ;;  %725 = vst [vmem:[%s2702_s6 + $0x390] sm:$0xff] %v724_v58 }
  0xaa   : > { %v728_v60 = vld [vmem:[%s2697_s25 + $0xe80] sm:$0xff]  ;;  %727 = vst [vmem:[%s2702_s6 + $0x398] sm:$0xff] %v726_v59 }
  0xab   : > { %729 = vst [vmem:[%s2702_s6 + $0x3a0] sm:$0xff] %v728_v60  ;;  %v730_v61 = vld [vmem:[%s2697_s25 + $0xea0] sm:$0xff] }
  0xac   : > { %v732_v62 = vld [vmem:[%s2697_s25 + $0xec0] sm:$0xff]  ;;  %731 = vst [vmem:[%s2702_s6 + $0x3a8] sm:$0xff] %v730_v61 }
  0xad   : > { %v734_v63 = vld [vmem:[%s2697_s25 + $0xee0] sm:$0xff]  ;;  %733 = vst [vmem:[%s2702_s6 + $0x3b0] sm:$0xff] %v732_v62 }
  0xae   : > { %735 = vst [vmem:[%s2702_s6 + $0x3b8] sm:$0xff] %v734_v63  ;;  %v736_v0 = vld [vmem:[%s2697_s25 + $0xf00] sm:$0xff] }
  0xaf   : > { %v738_v1 = vld [vmem:[%s2697_s25 + $0xf20] sm:$0xff]  ;;  %737 = vst [vmem:[%s2702_s6 + $0x3c0] sm:$0xff] %v736_v0 }
  0xb0   : > { %v740_v2 = vld [vmem:[%s2697_s25 + $0xf40] sm:$0xff]  ;;  %739 = vst [vmem:[%s2702_s6 + $0x3c8] sm:$0xff] %v738_v1 }
  0xb1   : > { %741 = vst [vmem:[%s2702_s6 + $0x3d0] sm:$0xff] %v740_v2  ;;  %v742_v3 = vld [vmem:[%s2697_s25 + $0xf60] sm:$0xff] }
  0xb2   : > { %v744_v4 = vld [vmem:[%s2697_s25 + $0xf80] sm:$0xff]  ;;  %743 = vst [vmem:[%s2702_s6 + $0x3d8] sm:$0xff] %v742_v3 }
  0xb3   : > { %v746_v5 = vld [vmem:[%s2697_s25 + $0xfa0] sm:$0xff]  ;;  %745 = vst [vmem:[%s2702_s6 + $0x3e0] sm:$0xff] %v744_v4 }
  0xb4   : > { %747 = vst [vmem:[%s2702_s6 + $0x3e8] sm:$0xff] %v746_v5  ;;  %v748_v6 = vld [vmem:[%s2697_s25 + $0xfc0] sm:$0xff] }
  0xb5   : > { %v750_v7 = vld [vmem:[%s2697_s25 + $0xfe0] sm:$0xff]  ;;  %749 = vst [vmem:[%s2702_s6 + $0x3f0] sm:$0xff] %v748_v6 }
  0xb6   : > { %751 = vst [vmem:[%s2702_s6 + $0x3f8] sm:$0xff] %v750_v7 }
  0xb7 PF: > { %p2038_p0 = scmp.ge.s32.totalorder %s2560_s22, 1  ;;  %p764_p1 = scmp.lt.s32.totalorder %s2560_s22, 29 }
  0xb9   : > { %p765_p2 = pnand %p2038_p0, %p764_p1 }
  0xba   : > { %s771_s0 = sand.u32 (!%p765_p2), 1, %s2536_s16   ;;  %s778_s5 = sand.u32 (!%p765_p2), 1, %s2528_s14  }
  0xbb   : > { %768 = sbr.rel (%p765_p2) target bundleno = 560 (0x230), region = 85  ;;  %s2039_s23 = sshll.u32 (!%p765_p2), %s771_s0, 6 }
  0xbc   : > { %s2040_s28 = sshll.u32 (!%p765_p2), %s778_s5, 10  ;;  %s805_s7 = sand.u32 (!%p765_p2), 1, %s2520_s12  }
  0xbd   : > { %s2042_s25 = sshll.u32 (!%p765_p2), %s2548_s19, 1  ;;  %s2041_s11 = sshll.u32 (!%p765_p2), %s805_s7, 4 }
  0xbe   : > { %p813_p3 = scmp.lt.s32.totalorder (!%p765_p2), %s2042_s25, 7  ;;  %s2969_s4 = scalar_lea.vmem (!%p765_p2), [#allocation3], %s2039_s23 }
  0xbf   : > { %s2971_s6 = scalar_lea.vmem (!%p765_p2), [#allocation4], %s2040_s28  ;;  %s2973_s1 = scalar_lea.vmem (!%p765_p2), [#allocation5], %s2041_s11 }
  0xc0   : > { %s3208_s25 = smov (!%p813_p3, %s2042_s25), 7  ;;  %p2043_p4 = scmp.ne.s32.totalorder %s2544_s18, 0 }
  0xc1   : > { %s815_s29 = scalar_lea.vmem %s3179_s2, %s3208_s25 }
  0xc2   : > { %822 = sbr.rel (%p2043_p4) target bundleno = 202 (0xca), region = 97 }
  0xc7   : > { %v2562_v8 = vmov 0.0  }
  0xc8   : > { %823 = vst [vmem:[#allocation2 + $0x10] sm:$0xff] %v2562_v8  ;;  %824 = vst [vmem:[#allocation2] sm:$0xff] %v2562_v8 }
  0xc9   : > { %825 = vst [vmem:[#allocation2 + $0x18] sm:$0xff] %v2562_v8  ;;  %826 = vst [vmem:[#allocation2 + $0x8] sm:$0xff] %v2562_v8 }
  0xca PF: > { %v2282_v9 = vld [vmem:[%s2971_s6 + $0x74] ss:$8 sps:$4 sm:$0xff]   ;;  %v2286_v11 = vld [vmem:[%s2971_s6 + $0x70] ss:$8 sps:$4 sm:$0xff]   ;;  %v2288_v13 = vld [vmem:[%s2971_s6 + $0x64] ss:$8 sps:$4 sm:$0xff]  }
  0xcb   : > { %v2284_v10 = vld [vmem:[%s2971_s6 + $0x174] ss:$8 sps:$4 sm:$0xff]   ;;  %1647 = vmatprep.subr.bf16.mxu0 %v2282_v9  ;;  %v2287_v12 = vld [vmem:[%s2971_s6 + $0x170] ss:$8 sps:$4 sm:$0xff]   ;;  %v2290_v14 = vld [vmem:[%s2971_s6 + $0x164] ss:$8 sps:$4 sm:$0xff]  }
  0xcc   : > { %1690 = vmatprep.subr.bf16.mxu1 %v2284_v10  ;;  %1648 = vmatpush1.bf16.msra.mxu0 %v2286_v11  ;;  %v2292_v15 = vld [vmem:[%s2971_s6 + $0x60] ss:$8 sps:$4 sm:$0xff]   ;;  %v2294_v17 = vld [vmem:[%s2971_s6 + $0x54] ss:$8 sps:$4 sm:$0xff]   ;;  %v2298_v19 = vld [vmem:[%s2971_s6 + $0x50] ss:$8 sps:$4 sm:$0xff]  }
  0xcd   : > { %1691 = vmatpush1.bf16.msra.mxu1 %v2287_v12  ;;  %1649 = vmatprep.subr.bf16.mxu0 %v2288_v13  ;;  %v2293_v16 = vld [vmem:[%s2971_s6 + $0x160] ss:$8 sps:$4 sm:$0xff]   ;;  %v2296_v18 = vld [vmem:[%s2971_s6 + $0x154] ss:$8 sps:$4 sm:$0xff]   ;;  %v2299_v20 = vld [vmem:[%s2971_s6 + $0x150] ss:$8 sps:$4 sm:$0xff]  }
  0xce   : > { %1692 = vmatprep.subr.bf16.mxu1 %v2290_v14  ;;  %v2300_v21 = vld [vmem:[%s2971_s6 + $0x44] ss:$8 sps:$4 sm:$0xff]   ;;  %v2304_v23 = vld [vmem:[%s2971_s6 + $0x40] ss:$8 sps:$4 sm:$0xff]   ;;  %v2306_v25 = vld [vmem:[%s2971_s6 + $0x34] ss:$8 sps:$4 sm:$0xff]  }
  0xcf   : > { %v2302_v22 = vld [vmem:[%s2971_s6 + $0x144] ss:$8 sps:$4 sm:$0xff]   ;;  %v2305_v24 = vld [vmem:[%s2971_s6 + $0x140] ss:$8 sps:$4 sm:$0xff]   ;;  %v2308_v26 = vld [vmem:[%s2971_s6 + $0x134] ss:$8 sps:$4 sm:$0xff]  }
  0xd0   : > { %1650 = vmatpush1.bf16.msra.mxu0 %v2292_v15  ;;  %v2310_v27 = vld [vmem:[%s2971_s6 + $0x30] ss:$8 sps:$4 sm:$0xff]   ;;  %v2312_v29 = vld [vmem:[%s2971_s6 + $0x24] ss:$8 sps:$4 sm:$0xff]   ;;  %v2316_v31 = vld [vmem:[%s2971_s6 + $0x20] ss:$8 sps:$4 sm:$0xff]  }
  0xd1   : > { %1693 = vmatpush1.bf16.msra.mxu1 %v2293_v16  ;;  %1651 = vmatprep.subr.bf16.mxu0 %v2294_v17  ;;  %v2311_v28 = vld [vmem:[%s2971_s6 + $0x130] ss:$8 sps:$4 sm:$0xff]   ;;  %v2314_v30 = vld [vmem:[%s2971_s6 + $0x124] ss:$8 sps:$4 sm:$0xff]   ;;  %v2317_v32 = vld [vmem:[%s2971_s6 + $0x120] ss:$8 sps:$4 sm:$0xff]  }
  0xd2   : > { %1694 = vmatprep.subr.bf16.mxu1 %v2296_v18  ;;  %v2318_v33 = vld [vmem:[%s2971_s6 + $0x14] ss:$8 sps:$4 sm:$0xff]   ;;  %v2322_v35 = vld [vmem:[%s2971_s6 + $0x10] ss:$8 sps:$4 sm:$0xff]   ;;  %v2324_v37 = vld [vmem:[%s2971_s6 + $0x4] ss:$8 sps:$4 sm:$0xff]  }
  0xd3   : > { %v2320_v34 = vld [vmem:[%s2971_s6 + $0x114] ss:$8 sps:$4 sm:$0xff]   ;;  %v2323_v36 = vld [vmem:[%s2971_s6 + $0x110] ss:$8 sps:$4 sm:$0xff]   ;;  %v2326_v38 = vld [vmem:[%s2971_s6 + $0x104] ss:$8 sps:$4 sm:$0xff]  }
  0xd4   : > { %1652 = vmatpush1.bf16.msra.mxu0 %v2298_v19  ;;  %v2328_v39 = vld [vmem:[%s2971_s6] ss:$8 sps:$4 sm:$0xff]   ;;  %v2330_v41 = vld [vmem:[%s2971_s6 + $0xf4] ss:$8 sps:$4 sm:$0xff]   ;;  %v2334_v43 = vld [vmem:[%s2971_s6 + $0xf0] ss:$8 sps:$4 sm:$0xff]  }
  0xd5   : > { %1695 = vmatpush1.bf16.msra.mxu1 %v2299_v20  ;;  %1653 = vmatprep.subr.bf16.mxu0 %v2300_v21  ;;  %v2329_v40 = vld [vmem:[%s2971_s6 + $0x100] ss:$8 sps:$4 sm:$0xff]   ;;  %v2332_v42 = vld [vmem:[%s2971_s6 + $0x1f4] ss:$8 sps:$4 sm:$0xff]   ;;  %v2335_v44 = vld [vmem:[%s2971_s6 + $0x1f0] ss:$8 sps:$4 sm:$0xff]  }
  0xd6   : > { %1696 = vmatprep.subr.bf16.mxu1 %v2302_v22  ;;  %v2336_v45 = vld [vmem:[%s2971_s6 + $0xe4] ss:$8 sps:$4 sm:$0xff]   ;;  %v2340_v47 = vld [vmem:[%s2971_s6 + $0xe0] ss:$8 sps:$4 sm:$0xff]   ;;  %v2342_v49 = vld [vmem:[%s2971_s6 + $0xd4] ss:$8 sps:$4 sm:$0xff]  }
  0xd7   : > { %v2338_v46 = vld [vmem:[%s2971_s6 + $0x1e4] ss:$8 sps:$4 sm:$0xff]   ;;  %v2341_v48 = vld [vmem:[%s2971_s6 + $0x1e0] ss:$8 sps:$4 sm:$0xff]   ;;  %v2344_v50 = vld [vmem:[%s2971_s6 + $0x1d4] ss:$8 sps:$4 sm:$0xff]  }
  0xd8   : > { %1654 = vmatpush1.bf16.msra.mxu0 %v2304_v23  ;;  %v2346_v51 = vld [vmem:[%s2971_s6 + $0xd0] ss:$8 sps:$4 sm:$0xff]   ;;  %v2348_v53 = vld [vmem:[%s2971_s6 + $0xc4] ss:$8 sps:$4 sm:$0xff]   ;;  %v2352_v55 = vld [vmem:[%s2971_s6 + $0xc0] ss:$8 sps:$4 sm:$0xff]  }
  0xd9   : > { %1697 = vmatpush1.bf16.msra.mxu1 %v2305_v24  ;;  %1655 = vmatprep.subr.bf16.mxu0 %v2306_v25  ;;  %v2347_v52 = vld [vmem:[%s2971_s6 + $0x1d0] ss:$8 sps:$4 sm:$0xff]   ;;  %v2350_v54 = vld [vmem:[%s2971_s6 + $0x1c4] ss:$8 sps:$4 sm:$0xff]   ;;  %v2353_v56 = vld [vmem:[%s2971_s6 + $0x1c0] ss:$8 sps:$4 sm:$0xff]  }
  0xda   : > { %1698 = vmatprep.subr.bf16.mxu1 %v2308_v26  ;;  %v831_v57 = vld [vmem:[%s2969_s4] sm:$0xff]  ;;  %v832_v59 = vld [vmem:[%s2969_s4 + $0x8] sm:$0xff]  ;;  %v2354_v61 = vld [vmem:[%s2971_s6 + $0xb4] ss:$8 sps:$4 sm:$0xff]   ;;  %p2180_p5 = scmp.ne.s32.totalorder %s2544_s18, 6 }
  0xdb   : > { %v835_v58 = vld [vmem:[%s2969_s4 + $0x20] sm:$0xff]  ;;  %v836_v60 = vld [vmem:[%s2969_s4 + $0x28] sm:$0xff]  ;;  %v2356_v63 = vld [vmem:[%s2971_s6 + $0x1b4] ss:$8 sps:$4 sm:$0xff]  }
  0xdc   : > { %1656 = vmatpush1.bf16.msra.mxu0 %v2310_v27  ;;  %v2045_v62 = vcombine.high %v831_v57, %v835_v58  ;;  %v2047_v0 = vcombine.high %v832_v59, %v836_v60  ;;  %v2358_v1 = vld [vmem:[%s2971_s6 + $0xb0] ss:$8 sps:$4 sm:$0xff]   ;;  %v2360_v3 = vld [vmem:[%s2971_s6 + $0xa4] ss:$8 sps:$4 sm:$0xff]   ;;  %v2364_v5 = vld [vmem:[%s2971_s6 + $0xa0] ss:$8 sps:$4 sm:$0xff]   ;;  %v2044_v17 = vcombine.low %v831_v57, %v835_v58  ;;  %v2046_v18 = vcombine.low %v832_v59, %v836_v60 }
  0xdd   : > { %1699 = vmatpush1.bf16.msra.mxu1 %v2311_v28  ;;  %1657 = vmatprep.subr.bf16.mxu0 %v2312_v29  ;;  %v2359_v2 = vld [vmem:[%s2971_s6 + $0x1b0] ss:$8 sps:$4 sm:$0xff]   ;;  %v2362_v4 = vld [vmem:[%s2971_s6 + $0x1a4] ss:$8 sps:$4 sm:$0xff]   ;;  %v2365_v6 = vld [vmem:[%s2971_s6 + $0x1a0] ss:$8 sps:$4 sm:$0xff]  }
  0xde   : > { %1700 = vmatprep.subr.bf16.mxu1 %v2314_v30  ;;  %1679 = vmatprep.mubr.bf16.mxu0 %v2045_v62  ;;  %v2366_v7 = vld [vmem:[%s2971_s6 + $0x94] ss:$8 sps:$4 sm:$0xff]   ;;  %v2370_v9 = vld [vmem:[%s2971_s6 + $0x90] ss:$8 sps:$4 sm:$0xff]   ;;  %v2372_v11 = vld [vmem:[%s2971_s6 + $0x84] ss:$8 sps:$4 sm:$0xff]  }
  0xdf   : > { %1722 = vmatprep.mubr.bf16.mxu1 %v2047_v0  ;;  %v2368_v8 = vld [vmem:[%s2971_s6 + $0x194] ss:$8 sps:$4 sm:$0xff]   ;;  %v2371_v10 = vld [vmem:[%s2971_s6 + $0x190] ss:$8 sps:$4 sm:$0xff]   ;;  %v2374_v12 = vld [vmem:[%s2971_s6 + $0x184] ss:$8 sps:$4 sm:$0xff]  }
  0xe0   : > { %1658 = vmatpush1.bf16.msra.mxu0 %v2316_v31  ;;  %v2376_v13 = vld [vmem:[%s2971_s6 + $0x80] ss:$8 sps:$4 sm:$0xff]   ;;  %v2380_v15 = vld [vmem:[%s2971_s6 + $0x274] ss:$8 sps:$4 sm:$0xff]   ;;  %v2378_v19 = vld [vmem:[%s2971_s6 + $0x270] ss:$8 sps:$4 sm:$0xff]  }
  0xe1   : > { %1701 = vmatpush1.bf16.msra.mxu1 %v2317_v32  ;;  %1659 = vmatprep.subr.bf16.mxu0 %v2318_v33  ;;  %v2377_v14 = vld [vmem:[%s2971_s6 + $0x180] ss:$8 sps:$4 sm:$0xff]   ;;  %v2383_v16 = vld [vmem:[%s2971_s6 + $0x374] ss:$8 sps:$4 sm:$0xff]   ;;  %v2381_v20 = vld [vmem:[%s2971_s6 + $0x370] ss:$8 sps:$4 sm:$0xff]  }
  0xe2   : > { %1702 = vmatprep.subr.bf16.mxu1 %v2320_v34  ;;  %v2386_v21 = vld [vmem:[%s2971_s6 + $0x264] ss:$8 sps:$4 sm:$0xff]   ;;  %v2384_v23 = vld [vmem:[%s2971_s6 + $0x260] ss:$8 sps:$4 sm:$0xff]   ;;  %v2392_v25 = vld [vmem:[%s2971_s6 + $0x254] ss:$8 sps:$4 sm:$0xff]  }
  0xe3   : > { %v2389_v22 = vld [vmem:[%s2971_s6 + $0x364] ss:$8 sps:$4 sm:$0xff]   ;;  %v2387_v24 = vld [vmem:[%s2971_s6 + $0x360] ss:$8 sps:$4 sm:$0xff]   ;;  %v2395_v26 = vld [vmem:[%s2971_s6 + $0x354] ss:$8 sps:$4 sm:$0xff]  }
  0xe4   : > { %1660 = vmatpush1.bf16.msra.mxu0 %v2322_v35  ;;  %v2390_v27 = vld [vmem:[%s2971_s6 + $0x250] ss:$8 sps:$4 sm:$0xff]   ;;  %v2398_v29 = vld [vmem:[%s2971_s6 + $0x244] ss:$8 sps:$4 sm:$0xff]   ;;  %v2396_v31 = vld [vmem:[%s2971_s6 + $0x240] ss:$8 sps:$4 sm:$0xff]  }
  0xe5   : > { %1703 = vmatpush1.bf16.msra.mxu1 %v2323_v36  ;;  %1661 = vmatprep.subr.bf16.mxu0 %v2324_v37  ;;  %v2393_v28 = vld [vmem:[%s2971_s6 + $0x350] ss:$8 sps:$4 sm:$0xff]   ;;  %v2401_v30 = vld [vmem:[%s2971_s6 + $0x344] ss:$8 sps:$4 sm:$0xff]   ;;  %v2399_v32 = vld [vmem:[%s2971_s6 + $0x340] ss:$8 sps:$4 sm:$0xff]  }
  0xe6   : > { %1704 = vmatprep.subr.bf16.mxu1 %v2326_v38  ;;  %v2404_v33 = vld [vmem:[%s2971_s6 + $0x234] ss:$8 sps:$4 sm:$0xff]   ;;  %v2402_v35 = vld [vmem:[%s2971_s6 + $0x230] ss:$8 sps:$4 sm:$0xff]   ;;  %v2410_v37 = vld [vmem:[%s2971_s6 + $0x224] ss:$8 sps:$4 sm:$0xff]  }
  0xe7   : > { %v2407_v34 = vld [vmem:[%s2971_s6 + $0x334] ss:$8 sps:$4 sm:$0xff]   ;;  %v2405_v36 = vld [vmem:[%s2971_s6 + $0x330] ss:$8 sps:$4 sm:$0xff]   ;;  %v2413_v38 = vld [vmem:[%s2971_s6 + $0x324] ss:$8 sps:$4 sm:$0xff]  }
  0xe8   : > { %1662 = vmatpush1.bf16.msra.mxu0 %v2328_v39  ;;  %v2408_v39 = vld [vmem:[%s2971_s6 + $0x220] ss:$8 sps:$4 sm:$0xff]   ;;  %v2426_v57 = vld [vmem:[%s2971_s6 + $0x2f0] ss:$8 sps:$4 sm:$0xff]   ;;  %v2434_v59 = vld [vmem:[%s2971_s6 + $0x2e4] ss:$8 sps:$4 sm:$0xff]  }
  0xe9   : > { %1705 = vmatpush1.bf16.msra.mxu1 %v2329_v40  ;;  %1663 = vmatprep.subr.bf16.mxu0 %v2330_v41  ;;  %v2411_v40 = vld [vmem:[%s2971_s6 + $0x320] ss:$8 sps:$4 sm:$0xff]   ;;  %v2416_v41 = vld [vmem:[%s2971_s6 + $0x214] ss:$8 sps:$4 sm:$0xff]   ;;  %v2429_v58 = vld [vmem:[%s2971_s6 + $0x3f0] ss:$8 sps:$4 sm:$0xff]  }
  0xea   : > { %1706 = vmatprep.subr.bf16.mxu1 %v2332_v42  ;;  %v2419_v42 = vld [vmem:[%s2971_s6 + $0x314] ss:$8 sps:$4 sm:$0xff]   ;;  %v2437_v60 = vld [vmem:[%s2971_s6 + $0x3e4] ss:$8 sps:$4 sm:$0xff]   ;;  %v2435_v62 = vld [vmem:[%s2971_s6 + $0x3e0] ss:$8 sps:$4 sm:$0xff]  }
  0xeb   : > { %v2443_v0 = vld [vmem:[%s2971_s6 + $0x3d4] ss:$8 sps:$4 sm:$0xff]  }
  0xec   : > { %1664 = vmatpush2.bf16.msra.mxu0 %v2334_v43  ;;  %v3071_v43 = vld [vmem:[%s2969_s4 + $0x10] sm:$0xff] }
  0xed   : > { %1707 = vmatpush2.bf16.msra.mxu1 %v2335_v44  ;;  %1665 = vmatprep.subr.bf16.mxu0 %v2336_v45  ;;  %v3074_v44 = vld [vmem:[%s2969_s4 + $0x30] sm:$0xff]  ;;  %v3077_v45 = vld [vmem:[%s2969_s4 + $0x18] sm:$0xff] }
  0xee   : > { %1708 = vmatprep.subr.bf16.mxu1 %v2338_v46  ;;  %v3080_v46 = vld [vmem:[%s2969_s4 + $0x38] sm:$0xff] }
  0xf0   : > { %1666 = vmatpush2.bf16.msra.mxu0 %v2340_v47  ;;  %v2414_v47 = vld [vmem:[%s2971_s6 + $0x210] ss:$8 sps:$4 sm:$0xff]  }
  0xf1   : > { %1709 = vmatpush2.bf16.msra.mxu1 %v2341_v48  ;;  %1667 = vmatprep.subr.bf16.mxu0 %v2342_v49  ;;  %v2417_v48 = vld [vmem:[%s2971_s6 + $0x310] ss:$8 sps:$4 sm:$0xff]   ;;  %v2049_v49 = vcombine.high %v3071_v43, %v3074_v44 }
  0xf2   : > { %1710 = vmatprep.subr.bf16.mxu1 %v2344_v50  ;;  %v2422_v50 = vld [vmem:[%s2971_s6 + $0x204] ss:$8 sps:$4 sm:$0xff]  }
  0xf4   : > { %1668 = vmatpush2.bf16.msra.mxu0 %v2346_v51  ;;  %v2425_v51 = vld [vmem:[%s2971_s6 + $0x304] ss:$8 sps:$4 sm:$0xff]  }
  0xf5   : > { %1711 = vmatpush2.bf16.msra.mxu1 %v2347_v52  ;;  %1669 = vmatprep.subr.bf16.mxu0 %v2348_v53  ;;  %v2051_v52 = vcombine.high %v3077_v45, %v3080_v46  ;;  %v2420_v53 = vld [vmem:[%s2971_s6 + $0x200] ss:$8 sps:$4 sm:$0xff]  }
  0xf6   : > { %1712 = vmatprep.subr.bf16.mxu1 %v2350_v54  ;;  %v2423_v54 = vld [vmem:[%s2971_s6 + $0x300] ss:$8 sps:$4 sm:$0xff]  }
  0xf8   : > { %1670 = vmatpush2.bf16.msra.mxu0 %v2352_v55  ;;  %v2428_v55 = vld [vmem:[%s2971_s6 + $0x2f4] ss:$8 sps:$4 sm:$0xff]  }
  0xf9   : > { %1713 = vmatpush2.bf16.msra.mxu1 %v2353_v56  ;;  %1671 = vmatprep.subr.bf16.mxu0 %v2354_v61  ;;  %v2431_v56 = vld [vmem:[%s2971_s6 + $0x3f4] ss:$8 sps:$4 sm:$0xff]   ;;  %v2432_v61 = vld [vmem:[%s2971_s6 + $0x2e0] ss:$8 sps:$4 sm:$0xff]  }
  0xfa   : > { %1714 = vmatprep.subr.bf16.mxu1 %v2356_v63  ;;  %v2440_v63 = vld [vmem:[%s2971_s6 + $0x2d4] ss:$8 sps:$4 sm:$0xff]  }
  0xfc   : > { %1672 = vmatpush2.bf16.msra.mxu0 %v2358_v1  ;;  %v2438_v1 = vld [vmem:[%s2971_s6 + $0x2d0] ss:$8 sps:$4 sm:$0xff]  }
  0xfd   : > { %1715 = vmatpush2.bf16.msra.mxu1 %v2359_v2  ;;  %1673 = vmatprep.subr.bf16.mxu0 %v2360_v3  ;;  %v2441_v2 = vld [vmem:[%s2971_s6 + $0x3d0] ss:$8 sps:$4 sm:$0xff]   ;;  %v2446_v3 = vld [vmem:[%s2971_s6 + $0x2c4] ss:$8 sps:$4 sm:$0xff]  }
  0xfe   : > { %1716 = vmatprep.subr.bf16.mxu1 %v2362_v4  ;;  %v2449_v4 = vld [vmem:[%s2971_s6 + $0x3c4] ss:$8 sps:$4 sm:$0xff]  }
 0x100   : > { %1674 = vmatpush2.bf16.msra.mxu0 %v2364_v5  ;;  %v2444_v5 = vld [vmem:[%s2971_s6 + $0x2c0] ss:$8 sps:$4 sm:$0xff]  }
 0x101   : > { %1717 = vmatpush2.bf16.msra.mxu1 %v2365_v6  ;;  %1675 = vmatprep.subr.bf16.mxu0 %v2366_v7  ;;  %v2447_v6 = vld [vmem:[%s2971_s6 + $0x3c0] ss:$8 sps:$4 sm:$0xff]   ;;  %v2452_v7 = vld [vmem:[%s2971_s6 + $0x2b4] ss:$8 sps:$4 sm:$0xff]  }
 0x102   : > { %1718 = vmatprep.subr.bf16.mxu1 %v2368_v8  ;;  %v2455_v8 = vld [vmem:[%s2971_s6 + $0x3b4] ss:$8 sps:$4 sm:$0xff]  }
 0x104   : > { %1676 = vmatpush2.bf16.msra.mxu0 %v2370_v9  ;;  %v2450_v9 = vld [vmem:[%s2971_s6 + $0x2b0] ss:$8 sps:$4 sm:$0xff]  }
 0x105   : > { %1719 = vmatpush2.bf16.msra.mxu1 %v2371_v10  ;;  %1677 = vmatprep.subr.bf16.mxu0 %v2372_v11  ;;  %v2453_v10 = vld [vmem:[%s2971_s6 + $0x3b0] ss:$8 sps:$4 sm:$0xff]   ;;  %v2458_v11 = vld [vmem:[%s2971_s6 + $0x2a4] ss:$8 sps:$4 sm:$0xff]  }
 0x106   : > { %1720 = vmatprep.subr.bf16.mxu1 %v2374_v12  ;;  %v2461_v12 = vld [vmem:[%s2971_s6 + $0x3a4] ss:$8 sps:$4 sm:$0xff]  }
 0x108   : > { %1678 = vmatpush2.bf16.msra.mxu0 %v2376_v13  ;;  %v2456_v13 = vld [vmem:[%s2971_s6 + $0x2a0] ss:$8 sps:$4 sm:$0xff]  }
 0x109   : > { %1721 = vmatpush2.bf16.msra.mxu1 %v2377_v14  ;;  %1733 = vmatprep.subr.bf16.mxu0 %v2380_v15  ;;  %v2459_v14 = vld [vmem:[%s2971_s6 + $0x3a0] ss:$8 sps:$4 sm:$0xff]   ;;  %v2464_v15 = vld [vmem:[%s2971_s6 + $0x294] ss:$8 sps:$4 sm:$0xff]  }
 0x10a   : > { %1776 = vmatprep.subr.bf16.mxu1 %v2383_v16  ;;  %v2467_v16 = vld [vmem:[%s2971_s6 + $0x394] ss:$8 sps:$4 sm:$0xff]  }
 0x10b   : > { %1680 = vmatmul.mubr.bf16.vlgmr.msra.gmra.mxu0 %v2044_v17  ;;  %v2462_v17 = vld [vmem:[%s2971_s6 + $0x290] ss:$8 sps:$4 sm:$0xff]  }
 0x10c   : > { %1723 = vmatmul.mubr.bf16.vlgmr.msra.gmra.mxu1 %v2046_v18  ;;  %1734 = vmatpush1.bf16.msra.mxu0 %v2378_v19  ;;  %v2465_v18 = vld [vmem:[%s2971_s6 + $0x390] ss:$8 sps:$4 sm:$0xff]   ;;  %v2470_v19 = vld [vmem:[%s2971_s6 + $0x284] ss:$8 sps:$4 sm:$0xff]  }
 0x10d   : > { %1777 = vmatpush1.bf16.msra.mxu1 %v2381_v20  ;;  %1735 = vmatprep.subr.bf16.mxu0 %v2386_v21  ;;  %v2473_v20 = vld [vmem:[%s2971_s6 + $0x384] ss:$8 sps:$4 sm:$0xff]   ;;  %v2468_v21 = vld [vmem:[%s2971_s6 + $0x280] ss:$8 sps:$4 sm:$0xff]  }
 0x10e   : > { %1778 = vmatprep.subr.bf16.mxu1 %v2389_v22  ;;  %1765 = vmatprep.mubr.bf16.mxu0 %v2049_v49  ;;  %v2471_v22 = vld [vmem:[%s2971_s6 + $0x380] ss:$8 sps:$4 sm:$0xff]  }
 0x10f   : > { %1808 = vmatprep.mubr.bf16.mxu1 %v2051_v52 }
 0x110   : > { %1736 = vmatpush1.bf16.msra.mxu0 %v2384_v23  ;;  %v2048_v23 = vcombine.low %v3071_v43, %v3074_v44  ;;  %v828_v44 = vld [vmem:[#allocation2] sm:$0xff] }
 0x111   : > { %1779 = vmatpush1.bf16.msra.mxu1 %v2387_v24  ;;  %1737 = vmatprep.subr.bf16.mxu0 %v2392_v25  ;;  %v2050_v24 = vcombine.low %v3077_v45, %v3080_v46 }
 0x112   : > { %1780 = vmatprep.subr.bf16.mxu1 %v2395_v26 }
 0x114   : > { %1738 = vmatpush1.bf16.msra.mxu0 %v2390_v27 }
 0x115   : > { %1781 = vmatpush1.bf16.msra.mxu1 %v2393_v28  ;;  %1739 = vmatprep.subr.bf16.mxu0 %v2398_v29 }
 0x116   : > { %1782 = vmatprep.subr.bf16.mxu1 %v2401_v30 }
 0x118   : > { %1740 = vmatpush1.bf16.msra.mxu0 %v2396_v31 }
 0x119   : > { %1783 = vmatpush1.bf16.msra.mxu1 %v2399_v32  ;;  %1741 = vmatprep.subr.bf16.mxu0 %v2404_v33 }
 0x11a   : > { %1784 = vmatprep.subr.bf16.mxu1 %v2407_v34 }
 0x11c   : > { %1742 = vmatpush1.bf16.msra.mxu0 %v2402_v35 }
 0x11d   : > { %1785 = vmatpush1.bf16.msra.mxu1 %v2405_v36  ;;  %1743 = vmatprep.subr.bf16.mxu0 %v2410_v37 }
 0x11e   : > { %1786 = vmatprep.subr.bf16.mxu1 %v2413_v38  ;;  %v827_v38 = vld [vmem:[#allocation2 + $0x10] sm:$0xff] }
 0x120   : > { %1744 = vmatpush1.bf16.msra.mxu0 %v2408_v39 }
 0x121   : > { %1787 = vmatpush1.bf16.msra.mxu1 %v2411_v40  ;;  %1745 = vmatprep.subr.bf16.mxu0 %v2416_v41 }
 0x122   : > { %1788 = vmatprep.subr.bf16.mxu1 %v2419_v42 }
 0x124   : > { %1746 = vmatpush1.bf16.msra.mxu0 %v2414_v47 }
 0x125   : > { %1789 = vmatpush1.bf16.msra.mxu1 %v2417_v48  ;;  %1747 = vmatprep.subr.bf16.mxu0 %v2422_v50 }
 0x126   : > { %1790 = vmatprep.subr.bf16.mxu1 %v2425_v51  ;;  %v829_v51 = vld [vmem:[#allocation2 + $0x18] sm:$0xff] }
 0x128   : > { %1748 = vmatpush1.bf16.msra.mxu0 %v2420_v53 }
 0x129   : > { %1791 = vmatpush1.bf16.msra.mxu1 %v2423_v54  ;;  %1749 = vmatprep.subr.bf16.mxu0 %v2428_v55 }
 0x12a   : > { %1792 = vmatprep.subr.bf16.mxu1 %v2431_v56  ;;  %v830_v56 = vld [vmem:[#allocation2 + $0x8] sm:$0xff] }
 0x12c   : > { %1750 = vmatpush2.bf16.msra.mxu0 %v2426_v57 }
 0x12d   : > { %1793 = vmatpush2.bf16.msra.mxu1 %v2429_v58  ;;  %1751 = vmatprep.subr.bf16.mxu0 %v2434_v59 }
 0x12e   : > { %1794 = vmatprep.subr.bf16.mxu1 %v2437_v60 }
 0x130   : > { %1752 = vmatpush2.bf16.msra.mxu0 %v2432_v61 }
 0x131   : > { %1795 = vmatpush2.bf16.msra.mxu1 %v2435_v62  ;;  %1753 = vmatprep.subr.bf16.mxu0 %v2440_v63 }
 0x132   : > { %1796 = vmatprep.subr.bf16.mxu1 %v2443_v0 }
 0x134   : > { %1754 = vmatpush2.bf16.msra.mxu0 %v2438_v1 }
 0x135   : > { %1797 = vmatpush2.bf16.msra.mxu1 %v2441_v2  ;;  %1755 = vmatprep.subr.bf16.mxu0 %v2446_v3 }
 0x136   : > { %1798 = vmatprep.subr.bf16.mxu1 %v2449_v4 }
 0x138   : > { %1756 = vmatpush2.bf16.msra.mxu0 %v2444_v5 }
 0x139   : > { %1799 = vmatpush2.bf16.msra.mxu1 %v2447_v6  ;;  %1757 = vmatprep.subr.bf16.mxu0 %v2452_v7 }
 0x13a   : > { %1800 = vmatprep.subr.bf16.mxu1 %v2455_v8 }
 0x13c   : > { %1758 = vmatpush2.bf16.msra.mxu0 %v2450_v9 }
 0x13d   : > { %1801 = vmatpush2.bf16.msra.mxu1 %v2453_v10  ;;  %1759 = vmatprep.subr.bf16.mxu0 %v2458_v11 }
 0x13e   : > { %1802 = vmatprep.subr.bf16.mxu1 %v2461_v12 }
 0x140   : > { %1760 = vmatpush2.bf16.msra.mxu0 %v2456_v13 }
 0x141   : > { %1803 = vmatpush2.bf16.msra.mxu1 %v2459_v14  ;;  %1761 = vmatprep.subr.bf16.mxu0 %v2464_v15 }
 0x142   : > { %1804 = vmatprep.subr.bf16.mxu1 %v2467_v16 }
 0x144   : > { %1762 = vmatpush2.bf16.msra.mxu0 %v2462_v17 }
 0x145   : > { %1805 = vmatpush2.bf16.msra.mxu1 %v2465_v18  ;;  %1763 = vmatprep.subr.bf16.mxu0 %v2470_v19 }
 0x146   : > { %1806 = vmatprep.subr.bf16.mxu1 %v2473_v20 }
 0x148   : > { %1764 = vmatpush2.bf16.msra.mxu0 %v2468_v21 }
 0x149   : > { %1807 = vmatpush2.bf16.msra.mxu1 %v2471_v22 }
 0x14b   : > { %1766 = vmatmul.mubr.bf16.vlgmr.msra.gmra.mxu0 %v2048_v23 }
 0x14c   : > { %1809 = vmatmul.mubr.bf16.vlgmr.msra.gmra.mxu1 %v2050_v24 }
 0x1cb   : > { %v1681_v25 = vpop.f32.mrf.mxu0 }
 0x1cc   : > { %v1724_v26 = vpop.f32.mrf.mxu1 }
 0x1cd   : > { %v1683_v27 = vpop.f32.mrf.mxu0  ;;  %v1725_v33 = vadd.f32 %v1724_v26, %v1681_v25 }
 0x1ce   : > { %v1726_v28 = vpop.f32.mrf.mxu1 }
 0x1cf   : > { %v1685_v29 = vpop.f32.mrf.mxu0  ;;  %v1727_v36 = vadd.f32 %v1726_v28, %v1683_v27 }
 0x1d0   : > { %v1728_v30 = vpop.f32.mrf.mxu1 }
 0x1d1   : > { %v1687_v31 = vpop.f32.mrf.mxu0  ;;  %v1729_v41 = vadd.f32 %v1728_v30, %v1685_v29 }
 0x1d2   : > { %v1730_v32 = vpop.f32.mrf.mxu1 }
 0x1d3   : > { %v1731_v47 = vadd.f32 %v1730_v32, %v1687_v31 }
 0x20b   : > { %v1767_v34 = vpop.f32.mrf.mxu0 }
 0x20c   : > { %v1810_v35 = vpop.f32.mrf.mxu1  ;;  %v1768_v37 = vadd.f32 %v1767_v34, %v1725_v33 }
 0x20d   : > { %v1769_v39 = vpop.f32.mrf.mxu0 }
 0x20e   : > { %v1812_v40 = vpop.f32.mrf.mxu1  ;;  %v1811_v42 = vadd.f32 %v1810_v35, %v1768_v37  ;;  %v1770_v43 = vadd.f32 %v1769_v39, %v1727_v36 }
 0x20f   : > { %v1771_v45 = vpop.f32.mrf.mxu0 }
 0x210   : > { %v1814_v46 = vpop.f32.mrf.mxu1  ;;  %v1819_v48 = vadd.f32 %v1811_v42, %v827_v38  ;;  %v1813_v49 = vadd.f32 %v1812_v40, %v1770_v43  ;;  %v1772_v50 = vadd.f32 %v1771_v45, %v1729_v41 }
 0x211   : > { %v1773_v52 = vpop.f32.mrf.mxu0 }
 0x212   : > { %1823 = vst [vmem:[#allocation2 + $0x10] sm:$0xff] %v1819_v48  ;;  %v1820_v53 = vadd.f32 %v1813_v49, %v828_v44  ;;  %v1815_v54 = vadd.f32 %v1814_v46, %v1772_v50  ;;  %v1774_v55 = vadd.f32 %v1773_v52, %v1731_v47  ;;  %v1816_v57 = vpop.f32.mrf.mxu1 }
 0x214   : > { %1824 = vst [vmem:[#allocation2] sm:$0xff] %v1820_v53  ;;  %v1821_v58 = vadd.f32 %v1815_v54, %v829_v51  ;;  %v1817_v59 = vadd.f32 %v1816_v57, %v1774_v55  ;;  %1830 = sbr.rel (%p2180_p5) target bundleno = 552 (0x228), region = 101 }
 0x216   : > { %1825 = vst [vmem:[#allocation2 + $0x18] sm:$0xff] %v1821_v58  ;;  %v1822_v60 = vadd.f32 %v1817_v59, %v830_v56 }
 0x218   : > { %1826 = vst [vmem:[#allocation2 + $0x8] sm:$0xff] %v1822_v60 }
 0x219   : > { %v1837_v61 = vlaneseq  ;;  %v1835_v63 = vld [vmem:[%s815_s29] sm:$0x3]  ;;  %v1831_v0 = vld [vmem:[#allocation2 + $0x10] sm:$0xff] }
 0x21b   : > { %v1838_v62 = vshrl.u32 %v1837_v61, 7  ;;  %v1832_v3 = vld [vmem:[#allocation2] sm:$0xff] }
 0x21d   : > { %v1839_v1 = vsub.s32 0, %v1838_v62  ;;  %v1843_v2 = vsub.s32 1, %v1838_v62  ;;  %v1833_v4 = vld [vmem:[#allocation2 + $0x18] sm:$0xff] }
 0x21f   : > { %v1834_v5 = vld [vmem:[#allocation2 + $0x8] sm:$0xff]  ;;  %v1840_v6 = vrot.slane %v1835_v63, %v1839_v1  ;;  %v1844_v7 = vrot.slane %v1835_v63, %v1843_v2 }
 0x221   : > { %v1847_v8 = vadd.f32 %v1840_v6, %v1831_v0  ;;  %v1848_v9 = vadd.f32 %v1844_v7, %v1832_v3  ;;  %v1849_v10 = vadd.f32 %v1840_v6, %v1833_v4  ;;  %v1850_v11 = vadd.f32 %v1844_v7, %v1834_v5 }
 0x223   : > { %v1851_v12 = vmax.f32 %v1847_v8, 0.0  ;;  %v1852_v13 = vmax.f32 %v1848_v9, 0.0  ;;  %v1853_v14 = vmax.f32 %v1849_v10, 0.0  ;;  %v1854_v15 = vmax.f32 %v1850_v11, 0.0 }
 0x225   : > { %v2190_v16 = vpack.c.bf16 %v1852_v13, %v1851_v12  ;;  %v2191_v17 = vpack.c.bf16 %v1854_v15, %v1853_v14 }
 0x227   : > { %1867 = vst [vmem:[%s2973_s1] sm:$0xff] %v2190_v16  ;;  %1868 = vst [vmem:[%s2973_s1 + $0x8] sm:$0xff] %v2191_v17 }
 0x228 PF: > { %1875 = sbr.rel (!%p2677_p12) target bundleno = 560 (0x230), region = 105  ;;  %s2192_s16 = sshll.u32 (%p2677_p12), %s2548_s19, 3 }
 0x229   : > { %s1881_s5 = scalar_lea.vmem (%p2677_p12), %s3180_s3, %s2192_s16 }
 0x22e   : > { %v1912_v18 = vld [vmem:[%s2973_s1] sm:$0xff]  ;;  %v1914_v19 = vld [vmem:[%s2973_s1 + $0x8] sm:$0xff] }
 0x22f   : > { %1913 = vst [vmem:[%s1881_s5] sm:$0xff] %v1912_v18  ;;  %1915 = vst [vmem:[%s1881_s5 + $0x20] sm:$0xff] %v1914_v19 }
 0x230 PF: > { %s13_s22 = sadd.s32 1, %s2560_s22   ;;  %s3190_s1 = sld [smem:[#allocation6_spill]] }
 0x231   : > { %p10_p6 = scmp.ge.s32.totalorder %s13_s22, 30   ;;  %s3191_s12 = smov %s2524_s13 }
 0x232   : > { %s3192_s13 = smov %s2675_s9  ;;  %s3193_s14 = smov %s2532_s15 }
 0x233   : > { %s3194_s15 = smov %s2672_s8  ;;  %s3195_s16 = smov %s2540_s17 }
 0x234   : > { %s3196_s17 = smov %s2658_s30  ;;  %s3197_s18 = smov %s2552_s20 }
 0x235   : > { %s3198_s19 = smov %s2556_s21  ;;  %s3199_s20 = smov %s3202_s24 }
 0x236   : > { %s3200_s21 = smov %s3190_s1  ;;  %12 = sbr.rel (!%p10_p6) target bundleno = 9 (0x9), region = 185 }

// kernel: forward.10
= control target key start
LH: loop header
LB: loop body
LE: loop exit
PB: predicated region body
PF: predicated region fallthrough
CT: control target
= control target key end

     0   :  { %s2453_s12 = smov 0   ;;  %s2455_s13 = smov 0   ;;  %s2985_s0 = inlined_call_operand.vmem [shape: bf16[16,1024], index: 0, kind: input, shape index: {}]   ;;  %s2986_s1 = inlined_call_operand.vmem [shape: bf16[1024,1024], index: 1, kind: input, shape index: {}]   ;;  %s2987_s2 = inlined_call_operand.vmem [shape: f32[1,1024], index: 2, kind: input, shape index: {}]   ;;  %s2988_s3 = inlined_call_operand.vmem [shape: bf16[16,1024], index: 3, kind: output, shape index: {}]  }
   0x1   :  { %s2457_s14 = smov 0   ;;  %s2459_s15 = smov 0  }
   0x2   :  { %s2461_s16 = smov 0  }
   0x3 LB: > { %s28_s17 = sadd.s32 1, %s2427_s15  ;;  %s2002_s18 = sadd.s32 4294967295, %s2431_s16   ;;  %s2431_s16 = sphi %s2461_s16, %s13_s16   ;;  %s2427_s15 = sphi %s2459_s15, %s2993_s15   ;;  %s2423_s14 = sphi %s2457_s14, %s2992_s14   ;;  %s2419_s13 = sphi %s2455_s13, %s2991_s13   ;;  %s2415_s12 = sphi %s2453_s12, %s2990_s12  }
   0x4   : > { %p30_p0 = scmp.ge.s32.totalorder %s28_s17, 4  ;;  %p76_p1 = scmp.ne.s32.totalorder %s2419_s13, %s2415_s12 }
   0x5   : > { %p77_p2 = scmp.eq.s32.totalorder %s2431_s16, 0  ;;  %p134_p4 = scmp.eq.s32.totalorder %s2002_s18, 3 }
   0x6   : > { %s2995_s17 = smov (%p30_p0, %s28_s17), 0  ;;  %s69_s20 = sadd.s32 1, %s2419_s13 }
   0x7   : > { %p78_p3 = por %p77_p2, %p76_p1  ;;  %s65_s19 = ssub.s32 %s2427_s15, %s2995_s17 }
   0x8   : > { %p67_p5 = scmp.eq.s32.totalorder %s65_s19, 0  ;;  %p2488_p6 = por %p134_p4, %p76_p1 }
   0x9   : > { %p2006_p7 = scmp.ge.s32.totalorder %s2431_s16, 4 }
   0xa   : > { %s2493_s22 = scalar_select %p67_p5, %s2419_s13, %s69_s20  }
   0xb   : > { %171 = sbr.rel (%p2006_p7) target bundleno = 148 (0x94), region = 20 }
  0x10   : > { %174 = sbr.rel (!%p78_p3) target bundleno = 148 (0x94), region = 24  ;;  %s176_s23 = sand.u32 (%p78_p3), 1, %s2419_s13  }
  0x11   : > { %s2157_s24 = sshll.u32 (%p78_p3), %s2427_s15, 3  ;;  %s2007_s25 = sshll.u32 (%p78_p3), %s176_s23, 10 }
  0x12   : > { %s2501_s28 = scalar_lea.vmem (%p78_p3), %s2986_s1, %s2157_s24  ;;  %s2506_s29 = scalar_lea.vmem (%p78_p3), [#allocation3], %s2007_s25 }
  0x13   : > { %v467_v0 = vld [vmem:[%s2501_s28] sm:$0xff] (%p78_p3) }
  0x14   : > { %v469_v1 = vld [vmem:[%s2501_s28 + $0x20] sm:$0xff] (%p78_p3)  ;;  %468 = vst [vmem:[%s2506_s29] sm:$0xff] (%p78_p3), %v467_v0 }
  0x15   : > { %v471_v2 = vld [vmem:[%s2501_s28 + $0x40] sm:$0xff]  ;;  %470 = vst [vmem:[%s2506_s29 + $0x8] sm:$0xff] %v469_v1 }
  0x16   : > { %472 = vst [vmem:[%s2506_s29 + $0x10] sm:$0xff] %v471_v2  ;;  %v473_v3 = vld [vmem:[%s2501_s28 + $0x60] sm:$0xff] }
  0x17   : > { %v475_v4 = vld [vmem:[%s2501_s28 + $0x80] sm:$0xff]  ;;  %474 = vst [vmem:[%s2506_s29 + $0x18] sm:$0xff] %v473_v3 }
  0x18   : > { %v477_v5 = vld [vmem:[%s2501_s28 + $0xa0] sm:$0xff]  ;;  %476 = vst [vmem:[%s2506_s29 + $0x20] sm:$0xff] %v475_v4 }
  0x19   : > { %478 = vst [vmem:[%s2506_s29 + $0x28] sm:$0xff] %v477_v5  ;;  %v479_v6 = vld [vmem:[%s2501_s28 + $0xc0] sm:$0xff] }
  0x1a   : > { %v481_v7 = vld [vmem:[%s2501_s28 + $0xe0] sm:$0xff]  ;;  %480 = vst [vmem:[%s2506_s29 + $0x30] sm:$0xff] %v479_v6 }
  0x1b   : > { %v483_v8 = vld [vmem:[%s2501_s28 + $0x100] sm:$0xff]  ;;  %482 = vst [vmem:[%s2506_s29 + $0x38] sm:$0xff] %v481_v7 }
  0x1c   : > { %484 = vst [vmem:[%s2506_s29 + $0x40] sm:$0xff] %v483_v8  ;;  %v485_v9 = vld [vmem:[%s2501_s28 + $0x120] sm:$0xff] }
  0x1d   : > { %v487_v10 = vld [vmem:[%s2501_s28 + $0x140] sm:$0xff]  ;;  %486 = vst [vmem:[%s2506_s29 + $0x48] sm:$0xff] %v485_v9 }
  0x1e   : > { %v489_v11 = vld [vmem:[%s2501_s28 + $0x160] sm:$0xff]  ;;  %488 = vst [vmem:[%s2506_s29 + $0x50] sm:$0xff] %v487_v10 }
  0x1f   : > { %490 = vst [vmem:[%s2506_s29 + $0x58] sm:$0xff] %v489_v11  ;;  %v491_v12 = vld [vmem:[%s2501_s28 + $0x180] sm:$0xff] }
  0x20   : > { %v493_v13 = vld [vmem:[%s2501_s28 + $0x1a0] sm:$0xff]  ;;  %492 = vst [vmem:[%s2506_s29 + $0x60] sm:$0xff] %v491_v12 }
  0x21   : > { %v495_v14 = vld [vmem:[%s2501_s28 + $0x1c0] sm:$0xff]  ;;  %494 = vst [vmem:[%s2506_s29 + $0x68] sm:$0xff] %v493_v13 }
  0x22   : > { %496 = vst [vmem:[%s2506_s29 + $0x70] sm:$0xff] %v495_v14  ;;  %v497_v15 = vld [vmem:[%s2501_s28 + $0x1e0] sm:$0xff] }
  0x23   : > { %v499_v16 = vld [vmem:[%s2501_s28 + $0x200] sm:$0xff]  ;;  %498 = vst [vmem:[%s2506_s29 + $0x78] sm:$0xff] %v497_v15 }
  0x24   : > { %v501_v17 = vld [vmem:[%s2501_s28 + $0x220] sm:$0xff]  ;;  %500 = vst [vmem:[%s2506_s29 + $0x80] sm:$0xff] %v499_v16 }
  0x25   : > { %502 = vst [vmem:[%s2506_s29 + $0x88] sm:$0xff] %v501_v17  ;;  %v503_v18 = vld [vmem:[%s2501_s28 + $0x240] sm:$0xff] }
  0x26   : > { %v505_v19 = vld [vmem:[%s2501_s28 + $0x260] sm:$0xff]  ;;  %504 = vst [vmem:[%s2506_s29 + $0x90] sm:$0xff] %v503_v18 }
  0x27   : > { %v507_v20 = vld [vmem:[%s2501_s28 + $0x280] sm:$0xff]  ;;  %506 = vst [vmem:[%s2506_s29 + $0x98] sm:$0xff] %v505_v19 }
  0x28   : > { %508 = vst [vmem:[%s2506_s29 + $0xa0] sm:$0xff] %v507_v20  ;;  %v509_v21 = vld [vmem:[%s2501_s28 + $0x2a0] sm:$0xff] }
  0x29   : > { %v511_v22 = vld [vmem:[%s2501_s28 + $0x2c0] sm:$0xff]  ;;  %510 = vst [vmem:[%s2506_s29 + $0xa8] sm:$0xff] %v509_v21 }
  0x2a   : > { %v513_v23 = vld [vmem:[%s2501_s28 + $0x2e0] sm:$0xff]  ;;  %512 = vst [vmem:[%s2506_s29 + $0xb0] sm:$0xff] %v511_v22 }
  0x2b   : > { %514 = vst [vmem:[%s2506_s29 + $0xb8] sm:$0xff] %v513_v23  ;;  %v515_v24 = vld [vmem:[%s2501_s28 + $0x300] sm:$0xff] }
  0x2c   : > { %v517_v25 = vld [vmem:[%s2501_s28 + $0x320] sm:$0xff]  ;;  %516 = vst [vmem:[%s2506_s29 + $0xc0] sm:$0xff] %v515_v24 }
  0x2d   : > { %v519_v26 = vld [vmem:[%s2501_s28 + $0x340] sm:$0xff]  ;;  %518 = vst [vmem:[%s2506_s29 + $0xc8] sm:$0xff] %v517_v25 }
  0x2e   : > { %520 = vst [vmem:[%s2506_s29 + $0xd0] sm:$0xff] %v519_v26  ;;  %v521_v27 = vld [vmem:[%s2501_s28 + $0x360] sm:$0xff] }
  0x2f   : > { %v523_v28 = vld [vmem:[%s2501_s28 + $0x380] sm:$0xff]  ;;  %522 = vst [vmem:[%s2506_s29 + $0xd8] sm:$0xff] %v521_v27 }
  0x30   : > { %v525_v29 = vld [vmem:[%s2501_s28 + $0x3a0] sm:$0xff]  ;;  %524 = vst [vmem:[%s2506_s29 + $0xe0] sm:$0xff] %v523_v28 }
  0x31   : > { %526 = vst [vmem:[%s2506_s29 + $0xe8] sm:$0xff] %v525_v29  ;;  %v527_v30 = vld [vmem:[%s2501_s28 + $0x3c0] sm:$0xff] }
  0x32   : > { %v529_v31 = vld [vmem:[%s2501_s28 + $0x3e0] sm:$0xff]  ;;  %528 = vst [vmem:[%s2506_s29 + $0xf0] sm:$0xff] %v527_v30 }
  0x33   : > { %v531_v32 = vld [vmem:[%s2501_s28 + $0x400] sm:$0xff]  ;;  %530 = vst [vmem:[%s2506_s29 + $0xf8] sm:$0xff] %v529_v31 }
  0x34   : > { %532 = vst [vmem:[%s2506_s29 + $0x100] sm:$0xff] %v531_v32  ;;  %v533_v33 = vld [vmem:[%s2501_s28 + $0x420] sm:$0xff] }
  0x35   : > { %v535_v34 = vld [vmem:[%s2501_s28 + $0x440] sm:$0xff]  ;;  %534 = vst [vmem:[%s2506_s29 + $0x108] sm:$0xff] %v533_v33 }
  0x36   : > { %v537_v35 = vld [vmem:[%s2501_s28 + $0x460] sm:$0xff]  ;;  %536 = vst [vmem:[%s2506_s29 + $0x110] sm:$0xff] %v535_v34 }
  0x37   : > { %538 = vst [vmem:[%s2506_s29 + $0x118] sm:$0xff] %v537_v35  ;;  %v539_v36 = vld [vmem:[%s2501_s28 + $0x480] sm:$0xff] }
  0x38   : > { %v541_v37 = vld [vmem:[%s2501_s28 + $0x4a0] sm:$0xff]  ;;  %540 = vst [vmem:[%s2506_s29 + $0x120] sm:$0xff] %v539_v36 }
  0x39   : > { %v543_v38 = vld [vmem:[%s2501_s28 + $0x4c0] sm:$0xff]  ;;  %542 = vst [vmem:[%s2506_s29 + $0x128] sm:$0xff] %v541_v37 }
  0x3a   : > { %544 = vst [vmem:[%s2506_s29 + $0x130] sm:$0xff] %v543_v38  ;;  %v545_v39 = vld [vmem:[%s2501_s28 + $0x4e0] sm:$0xff] }
  0x3b   : > { %v547_v40 = vld [vmem:[%s2501_s28 + $0x500] sm:$0xff]  ;;  %546 = vst [vmem:[%s2506_s29 + $0x138] sm:$0xff] %v545_v39 }
  0x3c   : > { %v549_v41 = vld [vmem:[%s2501_s28 + $0x520] sm:$0xff]  ;;  %548 = vst [vmem:[%s2506_s29 + $0x140] sm:$0xff] %v547_v40 }
  0x3d   : > { %550 = vst [vmem:[%s2506_s29 + $0x148] sm:$0xff] %v549_v41  ;;  %v551_v42 = vld [vmem:[%s2501_s28 + $0x540] sm:$0xff] }
  0x3e   : > { %v553_v43 = vld [vmem:[%s2501_s28 + $0x560] sm:$0xff]  ;;  %552 = vst [vmem:[%s2506_s29 + $0x150] sm:$0xff] %v551_v42 }
  0x3f   : > { %v555_v44 = vld [vmem:[%s2501_s28 + $0x580] sm:$0xff]  ;;  %554 = vst [vmem:[%s2506_s29 + $0x158] sm:$0xff] %v553_v43 }
  0x40   : > { %556 = vst [vmem:[%s2506_s29 + $0x160] sm:$0xff] %v555_v44  ;;  %v557_v45 = vld [vmem:[%s2501_s28 + $0x5a0] sm:$0xff] }
  0x41   : > { %v559_v46 = vld [vmem:[%s2501_s28 + $0x5c0] sm:$0xff]  ;;  %558 = vst [vmem:[%s2506_s29 + $0x168] sm:$0xff] %v557_v45 }
  0x42   : > { %v561_v47 = vld [vmem:[%s2501_s28 + $0x5e0] sm:$0xff]  ;;  %560 = vst [vmem:[%s2506_s29 + $0x170] sm:$0xff] %v559_v46 }
  0x43   : > { %562 = vst [vmem:[%s2506_s29 + $0x178] sm:$0xff] %v561_v47  ;;  %v563_v48 = vld [vmem:[%s2501_s28 + $0x600] sm:$0xff] }
  0x44   : > { %v565_v49 = vld [vmem:[%s2501_s28 + $0x620] sm:$0xff]  ;;  %564 = vst [vmem:[%s2506_s29 + $0x180] sm:$0xff] %v563_v48 }
  0x45   : > { %v567_v50 = vld [vmem:[%s2501_s28 + $0x640] sm:$0xff]  ;;  %566 = vst [vmem:[%s2506_s29 + $0x188] sm:$0xff] %v565_v49 }
  0x46   : > { %568 = vst [vmem:[%s2506_s29 + $0x190] sm:$0xff] %v567_v50  ;;  %v569_v51 = vld [vmem:[%s2501_s28 + $0x660] sm:$0xff] }
  0x47   : > { %v571_v52 = vld [vmem:[%s2501_s28 + $0x680] sm:$0xff]  ;;  %570 = vst [vmem:[%s2506_s29 + $0x198] sm:$0xff] %v569_v51 }
  0x48   : > { %v573_v53 = vld [vmem:[%s2501_s28 + $0x6a0] sm:$0xff]  ;;  %572 = vst [vmem:[%s2506_s29 + $0x1a0] sm:$0xff] %v571_v52 }
  0x49   : > { %574 = vst [vmem:[%s2506_s29 + $0x1a8] sm:$0xff] %v573_v53  ;;  %v575_v54 = vld [vmem:[%s2501_s28 + $0x6c0] sm:$0xff] }
  0x4a   : > { %v577_v55 = vld [vmem:[%s2501_s28 + $0x6e0] sm:$0xff]  ;;  %576 = vst [vmem:[%s2506_s29 + $0x1b0] sm:$0xff] %v575_v54 }
  0x4b   : > { %v579_v56 = vld [vmem:[%s2501_s28 + $0x700] sm:$0xff]  ;;  %578 = vst [vmem:[%s2506_s29 + $0x1b8] sm:$0xff] %v577_v55 }
  0x4c   : > { %580 = vst [vmem:[%s2506_s29 + $0x1c0] sm:$0xff] %v579_v56  ;;  %v581_v57 = vld [vmem:[%s2501_s28 + $0x720] sm:$0xff] }
  0x4d   : > { %v583_v58 = vld [vmem:[%s2501_s28 + $0x740] sm:$0xff]  ;;  %582 = vst [vmem:[%s2506_s29 + $0x1c8] sm:$0xff] %v581_v57 }
  0x4e   : > { %v585_v59 = vld [vmem:[%s2501_s28 + $0x760] sm:$0xff]  ;;  %584 = vst [vmem:[%s2506_s29 + $0x1d0] sm:$0xff] %v583_v58 }
  0x4f   : > { %586 = vst [vmem:[%s2506_s29 + $0x1d8] sm:$0xff] %v585_v59  ;;  %v587_v60 = vld [vmem:[%s2501_s28 + $0x780] sm:$0xff] }
  0x50   : > { %v589_v61 = vld [vmem:[%s2501_s28 + $0x7a0] sm:$0xff]  ;;  %588 = vst [vmem:[%s2506_s29 + $0x1e0] sm:$0xff] %v587_v60 }
  0x51   : > { %v591_v62 = vld [vmem:[%s2501_s28 + $0x7c0] sm:$0xff]  ;;  %590 = vst [vmem:[%s2506_s29 + $0x1e8] sm:$0xff] %v589_v61 }
  0x52   : > { %592 = vst [vmem:[%s2506_s29 + $0x1f0] sm:$0xff] %v591_v62  ;;  %v593_v63 = vld [vmem:[%s2501_s28 + $0x7e0] sm:$0xff] }
  0x53   : > { %v595_v0 = vld [vmem:[%s2501_s28 + $0x800] sm:$0xff]  ;;  %594 = vst [vmem:[%s2506_s29 + $0x1f8] sm:$0xff] %v593_v63 }
  0x54   : > { %v597_v1 = vld [vmem:[%s2501_s28 + $0x820] sm:$0xff]  ;;  %596 = vst [vmem:[%s2506_s29 + $0x200] sm:$0xff] %v595_v0 }
  0x55   : > { %598 = vst [vmem:[%s2506_s29 + $0x208] sm:$0xff] %v597_v1  ;;  %v599_v2 = vld [vmem:[%s2501_s28 + $0x840] sm:$0xff] }
  0x56   : > { %v601_v3 = vld [vmem:[%s2501_s28 + $0x860] sm:$0xff]  ;;  %600 = vst [vmem:[%s2506_s29 + $0x210] sm:$0xff] %v599_v2 }
  0x57   : > { %v603_v4 = vld [vmem:[%s2501_s28 + $0x880] sm:$0xff]  ;;  %602 = vst [vmem:[%s2506_s29 + $0x218] sm:$0xff] %v601_v3 }
  0x58   : > { %604 = vst [vmem:[%s2506_s29 + $0x220] sm:$0xff] %v603_v4  ;;  %v605_v5 = vld [vmem:[%s2501_s28 + $0x8a0] sm:$0xff] }
  0x59   : > { %v607_v6 = vld [vmem:[%s2501_s28 + $0x8c0] sm:$0xff]  ;;  %606 = vst [vmem:[%s2506_s29 + $0x228] sm:$0xff] %v605_v5 }
  0x5a   : > { %v609_v7 = vld [vmem:[%s2501_s28 + $0x8e0] sm:$0xff]  ;;  %608 = vst [vmem:[%s2506_s29 + $0x230] sm:$0xff] %v607_v6 }
  0x5b   : > { %610 = vst [vmem:[%s2506_s29 + $0x238] sm:$0xff] %v609_v7  ;;  %v611_v8 = vld [vmem:[%s2501_s28 + $0x900] sm:$0xff] }
  0x5c   : > { %v613_v9 = vld [vmem:[%s2501_s28 + $0x920] sm:$0xff]  ;;  %612 = vst [vmem:[%s2506_s29 + $0x240] sm:$0xff] %v611_v8 }
  0x5d   : > { %v615_v10 = vld [vmem:[%s2501_s28 + $0x940] sm:$0xff]  ;;  %614 = vst [vmem:[%s2506_s29 + $0x248] sm:$0xff] %v613_v9 }
  0x5e   : > { %616 = vst [vmem:[%s2506_s29 + $0x250] sm:$0xff] %v615_v10  ;;  %v617_v11 = vld [vmem:[%s2501_s28 + $0x960] sm:$0xff] }
  0x5f   : > { %v619_v12 = vld [vmem:[%s2501_s28 + $0x980] sm:$0xff]  ;;  %618 = vst [vmem:[%s2506_s29 + $0x258] sm:$0xff] %v617_v11 }
  0x60   : > { %v621_v13 = vld [vmem:[%s2501_s28 + $0x9a0] sm:$0xff]  ;;  %620 = vst [vmem:[%s2506_s29 + $0x260] sm:$0xff] %v619_v12 }
  0x61   : > { %622 = vst [vmem:[%s2506_s29 + $0x268] sm:$0xff] %v621_v13  ;;  %v623_v14 = vld [vmem:[%s2501_s28 + $0x9c0] sm:$0xff] }
  0x62   : > { %v625_v15 = vld [vmem:[%s2501_s28 + $0x9e0] sm:$0xff]  ;;  %624 = vst [vmem:[%s2506_s29 + $0x270] sm:$0xff] %v623_v14 }
  0x63   : > { %v627_v16 = vld [vmem:[%s2501_s28 + $0xa00] sm:$0xff]  ;;  %626 = vst [vmem:[%s2506_s29 + $0x278] sm:$0xff] %v625_v15 }
  0x64   : > { %628 = vst [vmem:[%s2506_s29 + $0x280] sm:$0xff] %v627_v16  ;;  %v629_v17 = vld [vmem:[%s2501_s28 + $0xa20] sm:$0xff] }
  0x65   : > { %v631_v18 = vld [vmem:[%s2501_s28 + $0xa40] sm:$0xff]  ;;  %630 = vst [vmem:[%s2506_s29 + $0x288] sm:$0xff] %v629_v17 }
  0x66   : > { %v633_v19 = vld [vmem:[%s2501_s28 + $0xa60] sm:$0xff]  ;;  %632 = vst [vmem:[%s2506_s29 + $0x290] sm:$0xff] %v631_v18 }
  0x67   : > { %634 = vst [vmem:[%s2506_s29 + $0x298] sm:$0xff] %v633_v19  ;;  %v635_v20 = vld [vmem:[%s2501_s28 + $0xa80] sm:$0xff] }
  0x68   : > { %v637_v21 = vld [vmem:[%s2501_s28 + $0xaa0] sm:$0xff]  ;;  %636 = vst [vmem:[%s2506_s29 + $0x2a0] sm:$0xff] %v635_v20 }
  0x69   : > { %v639_v22 = vld [vmem:[%s2501_s28 + $0xac0] sm:$0xff]  ;;  %638 = vst [vmem:[%s2506_s29 + $0x2a8] sm:$0xff] %v637_v21 }
  0x6a   : > { %640 = vst [vmem:[%s2506_s29 + $0x2b0] sm:$0xff] %v639_v22  ;;  %v641_v23 = vld [vmem:[%s2501_s28 + $0xae0] sm:$0xff] }
  0x6b   : > { %v643_v24 = vld [vmem:[%s2501_s28 + $0xb00] sm:$0xff]  ;;  %642 = vst [vmem:[%s2506_s29 + $0x2b8] sm:$0xff] %v641_v23 }
  0x6c   : > { %v645_v25 = vld [vmem:[%s2501_s28 + $0xb20] sm:$0xff]  ;;  %644 = vst [vmem:[%s2506_s29 + $0x2c0] sm:$0xff] %v643_v24 }
  0x6d   : > { %646 = vst [vmem:[%s2506_s29 + $0x2c8] sm:$0xff] %v645_v25  ;;  %v647_v26 = vld [vmem:[%s2501_s28 + $0xb40] sm:$0xff] }
  0x6e   : > { %v649_v27 = vld [vmem:[%s2501_s28 + $0xb60] sm:$0xff]  ;;  %648 = vst [vmem:[%s2506_s29 + $0x2d0] sm:$0xff] %v647_v26 }
  0x6f   : > { %v651_v28 = vld [vmem:[%s2501_s28 + $0xb80] sm:$0xff]  ;;  %650 = vst [vmem:[%s2506_s29 + $0x2d8] sm:$0xff] %v649_v27 }
  0x70   : > { %652 = vst [vmem:[%s2506_s29 + $0x2e0] sm:$0xff] %v651_v28  ;;  %v653_v29 = vld [vmem:[%s2501_s28 + $0xba0] sm:$0xff] }
  0x71   : > { %v655_v30 = vld [vmem:[%s2501_s28 + $0xbc0] sm:$0xff]  ;;  %654 = vst [vmem:[%s2506_s29 + $0x2e8] sm:$0xff] %v653_v29 }
  0x72   : > { %v657_v31 = vld [vmem:[%s2501_s28 + $0xbe0] sm:$0xff]  ;;  %656 = vst [vmem:[%s2506_s29 + $0x2f0] sm:$0xff] %v655_v30 }
  0x73   : > { %658 = vst [vmem:[%s2506_s29 + $0x2f8] sm:$0xff] %v657_v31  ;;  %v659_v32 = vld [vmem:[%s2501_s28 + $0xc00] sm:$0xff] }
  0x74   : > { %v661_v33 = vld [vmem:[%s2501_s28 + $0xc20] sm:$0xff]  ;;  %660 = vst [vmem:[%s2506_s29 + $0x300] sm:$0xff] %v659_v32 }
  0x75   : > { %v663_v34 = vld [vmem:[%s2501_s28 + $0xc40] sm:$0xff]  ;;  %662 = vst [vmem:[%s2506_s29 + $0x308] sm:$0xff] %v661_v33 }
  0x76   : > { %664 = vst [vmem:[%s2506_s29 + $0x310] sm:$0xff] %v663_v34  ;;  %v665_v35 = vld [vmem:[%s2501_s28 + $0xc60] sm:$0xff] }
  0x77   : > { %v667_v36 = vld [vmem:[%s2501_s28 + $0xc80] sm:$0xff]  ;;  %666 = vst [vmem:[%s2506_s29 + $0x318] sm:$0xff] %v665_v35 }
  0x78   : > { %v669_v37 = vld [vmem:[%s2501_s28 + $0xca0] sm:$0xff]  ;;  %668 = vst [vmem:[%s2506_s29 + $0x320] sm:$0xff] %v667_v36 }
  0x79   : > { %670 = vst [vmem:[%s2506_s29 + $0x328] sm:$0xff] %v669_v37  ;;  %v671_v38 = vld [vmem:[%s2501_s28 + $0xcc0] sm:$0xff] }
  0x7a   : > { %v673_v39 = vld [vmem:[%s2501_s28 + $0xce0] sm:$0xff]  ;;  %672 = vst [vmem:[%s2506_s29 + $0x330] sm:$0xff] %v671_v38 }
  0x7b   : > { %v675_v40 = vld [vmem:[%s2501_s28 + $0xd00] sm:$0xff]  ;;  %674 = vst [vmem:[%s2506_s29 + $0x338] sm:$0xff] %v673_v39 }
  0x7c   : > { %676 = vst [vmem:[%s2506_s29 + $0x340] sm:$0xff] %v675_v40  ;;  %v677_v41 = vld [vmem:[%s2501_s28 + $0xd20] sm:$0xff] }
  0x7d   : > { %v679_v42 = vld [vmem:[%s2501_s28 + $0xd40] sm:$0xff]  ;;  %678 = vst [vmem:[%s2506_s29 + $0x348] sm:$0xff] %v677_v41 }
  0x7e   : > { %v681_v43 = vld [vmem:[%s2501_s28 + $0xd60] sm:$0xff]  ;;  %680 = vst [vmem:[%s2506_s29 + $0x350] sm:$0xff] %v679_v42 }
  0x7f   : > { %682 = vst [vmem:[%s2506_s29 + $0x358] sm:$0xff] %v681_v43  ;;  %v683_v44 = vld [vmem:[%s2501_s28 + $0xd80] sm:$0xff] }
  0x80   : > { %v685_v45 = vld [vmem:[%s2501_s28 + $0xda0] sm:$0xff]  ;;  %684 = vst [vmem:[%s2506_s29 + $0x360] sm:$0xff] %v683_v44 }
  0x81   : > { %v687_v46 = vld [vmem:[%s2501_s28 + $0xdc0] sm:$0xff]  ;;  %686 = vst [vmem:[%s2506_s29 + $0x368] sm:$0xff] %v685_v45 }
  0x82   : > { %688 = vst [vmem:[%s2506_s29 + $0x370] sm:$0xff] %v687_v46  ;;  %v689_v47 = vld [vmem:[%s2501_s28 + $0xde0] sm:$0xff] }
  0x83   : > { %v691_v48 = vld [vmem:[%s2501_s28 + $0xe00] sm:$0xff]  ;;  %690 = vst [vmem:[%s2506_s29 + $0x378] sm:$0xff] %v689_v47 }
  0x84   : > { %v693_v49 = vld [vmem:[%s2501_s28 + $0xe20] sm:$0xff]  ;;  %692 = vst [vmem:[%s2506_s29 + $0x380] sm:$0xff] %v691_v48 }
  0x85   : > { %694 = vst [vmem:[%s2506_s29 + $0x388] sm:$0xff] %v693_v49  ;;  %v695_v50 = vld [vmem:[%s2501_s28 + $0xe40] sm:$0xff] }
  0x86   : > { %v697_v51 = vld [vmem:[%s2501_s28 + $0xe60] sm:$0xff]  ;;  %696 = vst [vmem:[%s2506_s29 + $0x390] sm:$0xff] %v695_v50 }
  0x87   : > { %v699_v52 = vld [vmem:[%s2501_s28 + $0xe80] sm:$0xff]  ;;  %698 = vst [vmem:[%s2506_s29 + $0x398] sm:$0xff] %v697_v51 }
  0x88   : > { %700 = vst [vmem:[%s2506_s29 + $0x3a0] sm:$0xff] %v699_v52  ;;  %v701_v53 = vld [vmem:[%s2501_s28 + $0xea0] sm:$0xff] }
  0x89   : > { %v703_v54 = vld [vmem:[%s2501_s28 + $0xec0] sm:$0xff]  ;;  %702 = vst [vmem:[%s2506_s29 + $0x3a8] sm:$0xff] %v701_v53 }
  0x8a   : > { %v705_v55 = vld [vmem:[%s2501_s28 + $0xee0] sm:$0xff]  ;;  %704 = vst [vmem:[%s2506_s29 + $0x3b0] sm:$0xff] %v703_v54 }
  0x8b   : > { %706 = vst [vmem:[%s2506_s29 + $0x3b8] sm:$0xff] %v705_v55  ;;  %v707_v56 = vld [vmem:[%s2501_s28 + $0xf00] sm:$0xff] }
  0x8c   : > { %v709_v57 = vld [vmem:[%s2501_s28 + $0xf20] sm:$0xff]  ;;  %708 = vst [vmem:[%s2506_s29 + $0x3c0] sm:$0xff] %v707_v56 }
  0x8d   : > { %v711_v58 = vld [vmem:[%s2501_s28 + $0xf40] sm:$0xff]  ;;  %710 = vst [vmem:[%s2506_s29 + $0x3c8] sm:$0xff] %v709_v57 }
  0x8e   : > { %712 = vst [vmem:[%s2506_s29 + $0x3d0] sm:$0xff] %v711_v58  ;;  %v713_v59 = vld [vmem:[%s2501_s28 + $0xf60] sm:$0xff] }
  0x8f   : > { %v715_v60 = vld [vmem:[%s2501_s28 + $0xf80] sm:$0xff]  ;;  %714 = vst [vmem:[%s2506_s29 + $0x3d8] sm:$0xff] %v713_v59 }
  0x90   : > { %v717_v61 = vld [vmem:[%s2501_s28 + $0xfa0] sm:$0xff]  ;;  %716 = vst [vmem:[%s2506_s29 + $0x3e0] sm:$0xff] %v715_v60 }
  0x91   : > { %718 = vst [vmem:[%s2506_s29 + $0x3e8] sm:$0xff] %v717_v61  ;;  %v719_v62 = vld [vmem:[%s2501_s28 + $0xfc0] sm:$0xff] }
  0x92   : > { %v721_v63 = vld [vmem:[%s2501_s28 + $0xfe0] sm:$0xff]  ;;  %720 = vst [vmem:[%s2506_s29 + $0x3f0] sm:$0xff] %v719_v62 }
  0x93   : > { %722 = vst [vmem:[%s2506_s29 + $0x3f8] sm:$0xff] %v721_v63 }
  0x94 PF: > { %p2010_p8 = scmp.ge.s32.totalorder %s2431_s16, 1  ;;  %p735_p9 = scmp.lt.s32.totalorder %s2431_s16, 5 }
  0x96   : > { %p736_p10 = pnand %p2010_p8, %p735_p9 }
  0x97   : > { %s742_s30 = sand.u32 (!%p736_p10), 1, %s2415_s12   ;;  %s2013_s4 = sshll.u32 (!%p736_p10), %s2423_s14, 1 }
  0x98   : > { %739 = sbr.rel (%p736_p10) target bundleno = 505 (0x1f9), region = 66  ;;  %s2011_s10 = sshll.u32 (!%p736_p10), %s742_s30, 10 }
  0x99   : > { %s2794_s19 = scalar_lea.vmem (!%p736_p10), [#allocation3], %s2011_s10  ;;  %p793_p11 = scmp.lt.s32.totalorder (!%p736_p10), %s2013_s4, 7 }
  0x9a   : > { %s2012_s8 = sshll.u32 (!%p736_p10), %s742_s30, 4 }
  0x9b   : > { %s777_s9 = scalar_lea.vmem (!%p736_p10), [#allocation4], %s2012_s8 }
  0x9d   : > { %v2767_v0 = vld [vmem:[%s2985_s0] sm:$0xff]  ;;  %v2777_v2 = vld [vmem:[%s2985_s0 + $0x8] sm:$0xff]  ;;  %v2201_v8 = vld [vmem:[%s2794_s19 + $0x74] ss:$8 sps:$4 sm:$0xff]   ;;  %s2997_s4 = smov (!%p793_p11, %s2013_s4), 7  ;;  %s2160_s12 = sshll.u32 (%p2488_p6), %s2423_s14, 3 }
  0x9e   : > { %v2772_v1 = vld [vmem:[%s2985_s0 + $0x20] sm:$0xff]  ;;  %v2788_v5 = vld [vmem:[%s2985_s0 + $0x28] sm:$0xff]  ;;  %v2203_v9 = vld [vmem:[%s2794_s19 + $0x174] ss:$8 sps:$4 sm:$0xff]   ;;  %1627 = vmatprep.subr.bf16.mxu0 %v2201_v8  ;;  %s795_s7 = scalar_lea.vmem %s2987_s2, %s2997_s4  ;;  %s1860_s11 = scalar_lea.vmem (%p2488_p6), %s2988_s3, %s2160_s12 }
  0x9f   : > { %v2014_v3 = vcombine.low %v2767_v0, %v2772_v1  ;;  %v2015_v4 = vcombine.high %v2767_v0, %v2772_v1  ;;  %v2016_v6 = vcombine.low %v2777_v2, %v2788_v5  ;;  %v2017_v7 = vcombine.high %v2777_v2, %v2788_v5  ;;  %v2205_v10 = vld [vmem:[%s2794_s19 + $0x70] ss:$8 sps:$4 sm:$0xff]   ;;  %1670 = vmatprep.subr.bf16.mxu1 %v2203_v9  ;;  %v2207_v12 = vld [vmem:[%s2794_s19 + $0x64] ss:$8 sps:$4 sm:$0xff]   ;;  %v2211_v14 = vld [vmem:[%s2794_s19 + $0x60] ss:$8 sps:$4 sm:$0xff]  }
  0xa0   : > { %v2206_v11 = vld [vmem:[%s2794_s19 + $0x170] ss:$8 sps:$4 sm:$0xff]   ;;  %1628 = vmatpush1.bf16.msra.mxu0 %v2205_v10  ;;  %v2209_v13 = vld [vmem:[%s2794_s19 + $0x164] ss:$8 sps:$4 sm:$0xff]   ;;  %v2212_v15 = vld [vmem:[%s2794_s19 + $0x160] ss:$8 sps:$4 sm:$0xff]  }
  0xa1   : > { %1659 = vmatprep.mubr.bf16.mxu0 %v2015_v4  ;;  %1702 = vmatprep.mubr.bf16.mxu1 %v2017_v7  ;;  %v2213_v16 = vld [vmem:[%s2794_s19 + $0x54] ss:$8 sps:$4 sm:$0xff]   ;;  %v2217_v18 = vld [vmem:[%s2794_s19 + $0x50] ss:$8 sps:$4 sm:$0xff]   ;;  %v2219_v20 = vld [vmem:[%s2794_s19 + $0x44] ss:$8 sps:$4 sm:$0xff]  }
  0xa2   : > { %1671 = vmatpush1.bf16.msra.mxu1 %v2206_v11  ;;  %1629 = vmatprep.subr.bf16.mxu0 %v2207_v12  ;;  %v2215_v17 = vld [vmem:[%s2794_s19 + $0x154] ss:$8 sps:$4 sm:$0xff]   ;;  %v2218_v19 = vld [vmem:[%s2794_s19 + $0x150] ss:$8 sps:$4 sm:$0xff]   ;;  %v2221_v21 = vld [vmem:[%s2794_s19 + $0x144] ss:$8 sps:$4 sm:$0xff]  }
  0xa3   : > { %1672 = vmatprep.subr.bf16.mxu1 %v2209_v13  ;;  %v2223_v22 = vld [vmem:[%s2794_s19 + $0x40] ss:$8 sps:$4 sm:$0xff]   ;;  %v2225_v24 = vld [vmem:[%s2794_s19 + $0x34] ss:$8 sps:$4 sm:$0xff]   ;;  %v2229_v26 = vld [vmem:[%s2794_s19 + $0x30] ss:$8 sps:$4 sm:$0xff]  }
  0xa4   : > { %1630 = vmatpush1.bf16.msra.mxu0 %v2211_v14  ;;  %v2224_v23 = vld [vmem:[%s2794_s19 + $0x140] ss:$8 sps:$4 sm:$0xff]   ;;  %v2227_v25 = vld [vmem:[%s2794_s19 + $0x134] ss:$8 sps:$4 sm:$0xff]   ;;  %v2230_v27 = vld [vmem:[%s2794_s19 + $0x130] ss:$8 sps:$4 sm:$0xff]  }
  0xa5   : > { %1631 = vmatprep.subr.bf16.mxu0 %v2213_v16  ;;  %v2231_v28 = vld [vmem:[%s2794_s19 + $0x24] ss:$8 sps:$4 sm:$0xff]   ;;  %v2235_v30 = vld [vmem:[%s2794_s19 + $0x20] ss:$8 sps:$4 sm:$0xff]   ;;  %v2237_v32 = vld [vmem:[%s2794_s19 + $0x14] ss:$8 sps:$4 sm:$0xff]  }
  0xa6   : > { %1673 = vmatpush1.bf16.msra.mxu1 %v2212_v15  ;;  %v2233_v29 = vld [vmem:[%s2794_s19 + $0x124] ss:$8 sps:$4 sm:$0xff]   ;;  %v2236_v31 = vld [vmem:[%s2794_s19 + $0x120] ss:$8 sps:$4 sm:$0xff]   ;;  %v2239_v33 = vld [vmem:[%s2794_s19 + $0x114] ss:$8 sps:$4 sm:$0xff]  }
  0xa7   : > { %1674 = vmatprep.subr.bf16.mxu1 %v2215_v17  ;;  %v2241_v34 = vld [vmem:[%s2794_s19 + $0x10] ss:$8 sps:$4 sm:$0xff]   ;;  %v2243_v36 = vld [vmem:[%s2794_s19 + $0x4] ss:$8 sps:$4 sm:$0xff]   ;;  %v2247_v38 = vld [vmem:[%s2794_s19] ss:$8 sps:$4 sm:$0xff]  }
  0xa8   : > { %1632 = vmatpush1.bf16.msra.mxu0 %v2217_v18  ;;  %v2242_v35 = vld [vmem:[%s2794_s19 + $0x110] ss:$8 sps:$4 sm:$0xff]   ;;  %v2245_v37 = vld [vmem:[%s2794_s19 + $0x104] ss:$8 sps:$4 sm:$0xff]   ;;  %v2248_v39 = vld [vmem:[%s2794_s19 + $0x100] ss:$8 sps:$4 sm:$0xff]  }
  0xa9   : > { %1633 = vmatprep.subr.bf16.mxu0 %v2219_v20  ;;  %v2249_v40 = vld [vmem:[%s2794_s19 + $0xf4] ss:$8 sps:$4 sm:$0xff]   ;;  %v2253_v42 = vld [vmem:[%s2794_s19 + $0xf0] ss:$8 sps:$4 sm:$0xff]   ;;  %v2255_v44 = vld [vmem:[%s2794_s19 + $0xe4] ss:$8 sps:$4 sm:$0xff]  }
  0xaa   : > { %1675 = vmatpush1.bf16.msra.mxu1 %v2218_v19  ;;  %v2251_v41 = vld [vmem:[%s2794_s19 + $0x1f4] ss:$8 sps:$4 sm:$0xff]   ;;  %v2254_v43 = vld [vmem:[%s2794_s19 + $0x1f0] ss:$8 sps:$4 sm:$0xff]   ;;  %v2257_v45 = vld [vmem:[%s2794_s19 + $0x1e4] ss:$8 sps:$4 sm:$0xff]  }
  0xab   : > { %1676 = vmatprep.subr.bf16.mxu1 %v2221_v21  ;;  %v2259_v46 = vld [vmem:[%s2794_s19 + $0xe0] ss:$8 sps:$4 sm:$0xff]   ;;  %v2261_v48 = vld [vmem:[%s2794_s19 + $0xd4] ss:$8 sps:$4 sm:$0xff]   ;;  %v2265_v50 = vld [vmem:[%s2794_s19 + $0xd0] ss:$8 sps:$4 sm:$0xff]  }
  0xac   : > { %1634 = vmatpush1.bf16.msra.mxu0 %v2223_v22  ;;  %v2260_v47 = vld [vmem:[%s2794_s19 + $0x1e0] ss:$8 sps:$4 sm:$0xff]   ;;  %v2263_v49 = vld [vmem:[%s2794_s19 + $0x1d4] ss:$8 sps:$4 sm:$0xff]   ;;  %v2266_v51 = vld [vmem:[%s2794_s19 + $0x1d0] ss:$8 sps:$4 sm:$0xff]  }
  0xad   : > { %1635 = vmatprep.subr.bf16.mxu0 %v2225_v24  ;;  %v2267_v52 = vld [vmem:[%s2794_s19 + $0xc4] ss:$8 sps:$4 sm:$0xff]   ;;  %v2271_v54 = vld [vmem:[%s2794_s19 + $0xc0] ss:$8 sps:$4 sm:$0xff]   ;;  %v2273_v56 = vld [vmem:[%s2794_s19 + $0xb4] ss:$8 sps:$4 sm:$0xff]  }
  0xae   : > { %1677 = vmatpush1.bf16.msra.mxu1 %v2224_v23  ;;  %v2269_v53 = vld [vmem:[%s2794_s19 + $0x1c4] ss:$8 sps:$4 sm:$0xff]   ;;  %v2272_v55 = vld [vmem:[%s2794_s19 + $0x1c0] ss:$8 sps:$4 sm:$0xff]   ;;  %v2275_v57 = vld [vmem:[%s2794_s19 + $0x1b4] ss:$8 sps:$4 sm:$0xff]  }
  0xaf   : > { %1678 = vmatprep.subr.bf16.mxu1 %v2227_v25  ;;  %v2277_v58 = vld [vmem:[%s2794_s19 + $0xb0] ss:$8 sps:$4 sm:$0xff]   ;;  %v2279_v60 = vld [vmem:[%s2794_s19 + $0xa4] ss:$8 sps:$4 sm:$0xff]   ;;  %v2283_v62 = vld [vmem:[%s2794_s19 + $0xa0] ss:$8 sps:$4 sm:$0xff]  }
  0xb0   : > { %1636 = vmatpush1.bf16.msra.mxu0 %v2229_v26  ;;  %v2278_v59 = vld [vmem:[%s2794_s19 + $0x1b0] ss:$8 sps:$4 sm:$0xff]   ;;  %v2281_v61 = vld [vmem:[%s2794_s19 + $0x1a4] ss:$8 sps:$4 sm:$0xff]   ;;  %v2284_v63 = vld [vmem:[%s2794_s19 + $0x1a0] ss:$8 sps:$4 sm:$0xff]  }
  0xb1   : > { %1637 = vmatprep.subr.bf16.mxu0 %v2231_v28  ;;  %v2285_v4 = vld [vmem:[%s2794_s19 + $0x94] ss:$8 sps:$4 sm:$0xff]   ;;  %v2289_v8 = vld [vmem:[%s2794_s19 + $0x90] ss:$8 sps:$4 sm:$0xff]   ;;  %v2291_v10 = vld [vmem:[%s2794_s19 + $0x84] ss:$8 sps:$4 sm:$0xff]  }
  0xb2   : > { %1679 = vmatpush1.bf16.msra.mxu1 %v2230_v27  ;;  %v2287_v7 = vld [vmem:[%s2794_s19 + $0x194] ss:$8 sps:$4 sm:$0xff]   ;;  %v2290_v9 = vld [vmem:[%s2794_s19 + $0x190] ss:$8 sps:$4 sm:$0xff]   ;;  %v2293_v11 = vld [vmem:[%s2794_s19 + $0x184] ss:$8 sps:$4 sm:$0xff]  }
  0xb3   : > { %1680 = vmatprep.subr.bf16.mxu1 %v2233_v29  ;;  %v2295_v12 = vld [vmem:[%s2794_s19 + $0x80] ss:$8 sps:$4 sm:$0xff]   ;;  %v2299_v14 = vld [vmem:[%s2794_s19 + $0x274] ss:$8 sps:$4 sm:$0xff]   ;;  %v2297_v18 = vld [vmem:[%s2794_s19 + $0x270] ss:$8 sps:$4 sm:$0xff]  }
  0xb4   : > { %1638 = vmatpush1.bf16.msra.mxu0 %v2235_v30  ;;  %v2296_v13 = vld [vmem:[%s2794_s19 + $0x180] ss:$8 sps:$4 sm:$0xff]   ;;  %v2302_v15 = vld [vmem:[%s2794_s19 + $0x374] ss:$8 sps:$4 sm:$0xff]   ;;  %v2300_v19 = vld [vmem:[%s2794_s19 + $0x370] ss:$8 sps:$4 sm:$0xff]  }
  0xb5   : > { %1639 = vmatprep.subr.bf16.mxu0 %v2237_v32  ;;  %v2865_v16 = vld [vmem:[%s2985_s0 + $0x10] sm:$0xff]  ;;  %v2305_v20 = vld [vmem:[%s2794_s19 + $0x264] ss:$8 sps:$4 sm:$0xff]   ;;  %v2303_v23 = vld [vmem:[%s2794_s19 + $0x260] ss:$8 sps:$4 sm:$0xff]  }
  0xb6   : > { %1681 = vmatpush1.bf16.msra.mxu1 %v2236_v31  ;;  %v2870_v17 = vld [vmem:[%s2985_s0 + $0x30] sm:$0xff]  ;;  %v2308_v21 = vld [vmem:[%s2794_s19 + $0x364] ss:$8 sps:$4 sm:$0xff]   ;;  %v2306_v24 = vld [vmem:[%s2794_s19 + $0x360] ss:$8 sps:$4 sm:$0xff]  }
  0xb7   : > { %1682 = vmatprep.subr.bf16.mxu1 %v2239_v33  ;;  %v2019_v22 = vcombine.high %v2865_v16, %v2870_v17  ;;  %v2311_v25 = vld [vmem:[%s2794_s19 + $0x254] ss:$8 sps:$4 sm:$0xff]   ;;  %v2309_v0 = vld [vmem:[%s2794_s19 + $0x250] ss:$8 sps:$4 sm:$0xff]   ;;  %v2317_v2 = vld [vmem:[%s2794_s19 + $0x244] ss:$8 sps:$4 sm:$0xff]  }
  0xb8   : > { %1640 = vmatpush1.bf16.msra.mxu0 %v2241_v34  ;;  %v2314_v26 = vld [vmem:[%s2794_s19 + $0x354] ss:$8 sps:$4 sm:$0xff]   ;;  %v2312_v1 = vld [vmem:[%s2794_s19 + $0x350] ss:$8 sps:$4 sm:$0xff]   ;;  %v2315_v5 = vld [vmem:[%s2794_s19 + $0x240] ss:$8 sps:$4 sm:$0xff]  }
  0xb9   : > { %1641 = vmatprep.subr.bf16.mxu0 %v2243_v36  ;;  %v2323_v27 = vld [vmem:[%s2794_s19 + $0x234] ss:$8 sps:$4 sm:$0xff]   ;;  %v2321_v29 = vld [vmem:[%s2794_s19 + $0x230] ss:$8 sps:$4 sm:$0xff]   ;;  %v2329_v31 = vld [vmem:[%s2794_s19 + $0x224] ss:$8 sps:$4 sm:$0xff]  }
  0xba   : > { %1683 = vmatpush1.bf16.msra.mxu1 %v2242_v35  ;;  %v2326_v28 = vld [vmem:[%s2794_s19 + $0x334] ss:$8 sps:$4 sm:$0xff]   ;;  %v2324_v30 = vld [vmem:[%s2794_s19 + $0x330] ss:$8 sps:$4 sm:$0xff]   ;;  %v2332_v32 = vld [vmem:[%s2794_s19 + $0x324] ss:$8 sps:$4 sm:$0xff]  }
  0xbb   : > { %1684 = vmatprep.subr.bf16.mxu1 %v2245_v37  ;;  %v2327_v33 = vld [vmem:[%s2794_s19 + $0x220] ss:$8 sps:$4 sm:$0xff]   ;;  %v2904_v34 = vld [vmem:[%s2985_s0 + $0x18] sm:$0xff] }
  0xbc   : > { %1642 = vmatpush1.bf16.msra.mxu0 %v2247_v38  ;;  %v2330_v35 = vld [vmem:[%s2794_s19 + $0x320] ss:$8 sps:$4 sm:$0xff]   ;;  %v2335_v36 = vld [vmem:[%s2794_s19 + $0x214] ss:$8 sps:$4 sm:$0xff]  }
  0xbd   : > { %1643 = vmatprep.subr.bf16.mxu0 %v2249_v40  ;;  %v2338_v37 = vld [vmem:[%s2794_s19 + $0x314] ss:$8 sps:$4 sm:$0xff]   ;;  %v2333_v40 = vld [vmem:[%s2794_s19 + $0x210] ss:$8 sps:$4 sm:$0xff]  }
  0xbe   : > { %1685 = vmatpush1.bf16.msra.mxu1 %v2248_v39  ;;  %v2912_v38 = vld [vmem:[%s2985_s0 + $0x38] sm:$0xff] }
  0xbf   : > { %1686 = vmatprep.subr.bf16.mxu1 %v2251_v41  ;;  %v2021_v39 = vcombine.high %v2904_v34, %v2912_v38  ;;  %v2336_v41 = vld [vmem:[%s2794_s19 + $0x310] ss:$8 sps:$4 sm:$0xff]  }
  0xc0   : > { %1644 = vmatpush2.bf16.msra.mxu0 %v2253_v42  ;;  %v2341_v42 = vld [vmem:[%s2794_s19 + $0x204] ss:$8 sps:$4 sm:$0xff]  }
  0xc1   : > { %1645 = vmatprep.subr.bf16.mxu0 %v2255_v44  ;;  %v2339_v44 = vld [vmem:[%s2794_s19 + $0x200] ss:$8 sps:$4 sm:$0xff]  }
  0xc2   : > { %1687 = vmatpush2.bf16.msra.mxu1 %v2254_v43  ;;  %v2344_v43 = vld [vmem:[%s2794_s19 + $0x304] ss:$8 sps:$4 sm:$0xff]  }
  0xc3   : > { %1688 = vmatprep.subr.bf16.mxu1 %v2257_v45  ;;  %v2342_v45 = vld [vmem:[%s2794_s19 + $0x300] ss:$8 sps:$4 sm:$0xff]  }
  0xc4   : > { %1646 = vmatpush2.bf16.msra.mxu0 %v2259_v46  ;;  %v2347_v46 = vld [vmem:[%s2794_s19 + $0x2f4] ss:$8 sps:$4 sm:$0xff]  }
  0xc5   : > { %1647 = vmatprep.subr.bf16.mxu0 %v2261_v48  ;;  %v2345_v48 = vld [vmem:[%s2794_s19 + $0x2f0] ss:$8 sps:$4 sm:$0xff]  }
  0xc6   : > { %1689 = vmatpush2.bf16.msra.mxu1 %v2260_v47  ;;  %v2350_v47 = vld [vmem:[%s2794_s19 + $0x3f4] ss:$8 sps:$4 sm:$0xff]  }
  0xc7   : > { %1690 = vmatprep.subr.bf16.mxu1 %v2263_v49  ;;  %v2348_v49 = vld [vmem:[%s2794_s19 + $0x3f0] ss:$8 sps:$4 sm:$0xff]  }
  0xc8   : > { %1648 = vmatpush2.bf16.msra.mxu0 %v2265_v50  ;;  %v2353_v50 = vld [vmem:[%s2794_s19 + $0x2e4] ss:$8 sps:$4 sm:$0xff]  }
  0xc9   : > { %1649 = vmatprep.subr.bf16.mxu0 %v2267_v52  ;;  %v2351_v52 = vld [vmem:[%s2794_s19 + $0x2e0] ss:$8 sps:$4 sm:$0xff]  }
  0xca   : > { %1691 = vmatpush2.bf16.msra.mxu1 %v2266_v51  ;;  %v2356_v51 = vld [vmem:[%s2794_s19 + $0x3e4] ss:$8 sps:$4 sm:$0xff]  }
  0xcb   : > { %1692 = vmatprep.subr.bf16.mxu1 %v2269_v53  ;;  %v2354_v53 = vld [vmem:[%s2794_s19 + $0x3e0] ss:$8 sps:$4 sm:$0xff]  }
  0xcc   : > { %1650 = vmatpush2.bf16.msra.mxu0 %v2271_v54  ;;  %v2359_v54 = vld [vmem:[%s2794_s19 + $0x2d4] ss:$8 sps:$4 sm:$0xff]  }
  0xcd   : > { %1651 = vmatprep.subr.bf16.mxu0 %v2273_v56  ;;  %v2357_v56 = vld [vmem:[%s2794_s19 + $0x2d0] ss:$8 sps:$4 sm:$0xff]  }
  0xce   : > { %1693 = vmatpush2.bf16.msra.mxu1 %v2272_v55  ;;  %v2362_v55 = vld [vmem:[%s2794_s19 + $0x3d4] ss:$8 sps:$4 sm:$0xff]  }
  0xcf   : > { %1694 = vmatprep.subr.bf16.mxu1 %v2275_v57  ;;  %v2360_v57 = vld [vmem:[%s2794_s19 + $0x3d0] ss:$8 sps:$4 sm:$0xff]  }
  0xd0   : > { %1652 = vmatpush2.bf16.msra.mxu0 %v2277_v58  ;;  %v2365_v58 = vld [vmem:[%s2794_s19 + $0x2c4] ss:$8 sps:$4 sm:$0xff]  }
  0xd1   : > { %1653 = vmatprep.subr.bf16.mxu0 %v2279_v60  ;;  %v2363_v60 = vld [vmem:[%s2794_s19 + $0x2c0] ss:$8 sps:$4 sm:$0xff]  }
  0xd2   : > { %1695 = vmatpush2.bf16.msra.mxu1 %v2278_v59  ;;  %v2368_v59 = vld [vmem:[%s2794_s19 + $0x3c4] ss:$8 sps:$4 sm:$0xff]  }
  0xd3   : > { %1696 = vmatprep.subr.bf16.mxu1 %v2281_v61  ;;  %v2366_v61 = vld [vmem:[%s2794_s19 + $0x3c0] ss:$8 sps:$4 sm:$0xff]  }
  0xd4   : > { %1654 = vmatpush2.bf16.msra.mxu0 %v2283_v62  ;;  %v2371_v62 = vld [vmem:[%s2794_s19 + $0x2b4] ss:$8 sps:$4 sm:$0xff]  }
  0xd5   : > { %1655 = vmatprep.subr.bf16.mxu0 %v2285_v4  ;;  %v2369_v4 = vld [vmem:[%s2794_s19 + $0x2b0] ss:$8 sps:$4 sm:$0xff]  }
  0xd6   : > { %1697 = vmatpush2.bf16.msra.mxu1 %v2284_v63  ;;  %v2374_v63 = vld [vmem:[%s2794_s19 + $0x3b4] ss:$8 sps:$4 sm:$0xff]  }
  0xd7   : > { %1698 = vmatprep.subr.bf16.mxu1 %v2287_v7  ;;  %v2372_v7 = vld [vmem:[%s2794_s19 + $0x3b0] ss:$8 sps:$4 sm:$0xff]  }
  0xd8   : > { %1656 = vmatpush2.bf16.msra.mxu0 %v2289_v8  ;;  %v2377_v8 = vld [vmem:[%s2794_s19 + $0x2a4] ss:$8 sps:$4 sm:$0xff]  }
  0xd9   : > { %1657 = vmatprep.subr.bf16.mxu0 %v2291_v10  ;;  %v2375_v10 = vld [vmem:[%s2794_s19 + $0x2a0] ss:$8 sps:$4 sm:$0xff]  }
  0xda   : > { %1699 = vmatpush2.bf16.msra.mxu1 %v2290_v9  ;;  %v2380_v9 = vld [vmem:[%s2794_s19 + $0x3a4] ss:$8 sps:$4 sm:$0xff]  }
  0xdb   : > { %1700 = vmatprep.subr.bf16.mxu1 %v2293_v11  ;;  %v2378_v11 = vld [vmem:[%s2794_s19 + $0x3a0] ss:$8 sps:$4 sm:$0xff]  }
  0xdc   : > { %1658 = vmatpush2.bf16.msra.mxu0 %v2295_v12  ;;  %v2383_v12 = vld [vmem:[%s2794_s19 + $0x294] ss:$8 sps:$4 sm:$0xff]  }
  0xdd   : > { %1713 = vmatprep.subr.bf16.mxu0 %v2299_v14  ;;  %v2381_v14 = vld [vmem:[%s2794_s19 + $0x290] ss:$8 sps:$4 sm:$0xff]  }
  0xde   : > { %1701 = vmatpush2.bf16.msra.mxu1 %v2296_v13  ;;  %v2386_v13 = vld [vmem:[%s2794_s19 + $0x394] ss:$8 sps:$4 sm:$0xff]  }
  0xdf   : > { %1756 = vmatprep.subr.bf16.mxu1 %v2302_v15  ;;  %1660 = vmatmul.mubr.bf16.vlgmr.msra.gmra.mxu0 %v2014_v3  ;;  %v2320_v3 = vld [vmem:[%s2794_s19 + $0x344] ss:$8 sps:$4 sm:$0xff]   ;;  %v2384_v15 = vld [vmem:[%s2794_s19 + $0x390] ss:$8 sps:$4 sm:$0xff]  }
  0xe0   : > { %1714 = vmatpush1.bf16.msra.mxu0 %v2297_v18  ;;  %1745 = vmatprep.mubr.bf16.mxu0 %v2019_v22  ;;  %v2389_v18 = vld [vmem:[%s2794_s19 + $0x284] ss:$8 sps:$4 sm:$0xff]   ;;  %v2018_v22 = vcombine.low %v2865_v16, %v2870_v17 }
  0xe1   : > { %1703 = vmatmul.mubr.bf16.vlgmr.msra.gmra.mxu1 %v2016_v6  ;;  %1715 = vmatprep.subr.bf16.mxu0 %v2305_v20  ;;  %v2318_v6 = vld [vmem:[%s2794_s19 + $0x340] ss:$8 sps:$4 sm:$0xff]  }
  0xe2   : > { %1757 = vmatpush1.bf16.msra.mxu1 %v2300_v19  ;;  %1788 = vmatprep.mubr.bf16.mxu1 %v2021_v39  ;;  %v2392_v19 = vld [vmem:[%s2794_s19 + $0x384] ss:$8 sps:$4 sm:$0xff]   ;;  %v2387_v20 = vld [vmem:[%s2794_s19 + $0x280] ss:$8 sps:$4 sm:$0xff]  }
  0xe3   : > { %1758 = vmatprep.subr.bf16.mxu1 %v2308_v21  ;;  %v2390_v21 = vld [vmem:[%s2794_s19 + $0x380] ss:$8 sps:$4 sm:$0xff]  }
  0xe4   : > { %1716 = vmatpush1.bf16.msra.mxu0 %v2303_v23  ;;  %v2020_v23 = vcombine.low %v2904_v34, %v2912_v38 }
  0xe5   : > { %1717 = vmatprep.subr.bf16.mxu0 %v2311_v25 }
  0xe6   : > { %1759 = vmatpush1.bf16.msra.mxu1 %v2306_v24 }
  0xe7   : > { %1760 = vmatprep.subr.bf16.mxu1 %v2314_v26  ;;  %v1816_v26 = vlaneseq }
  0xe8   : > { %1718 = vmatpush1.bf16.msra.mxu0 %v2309_v0 }
  0xe9   : > { %1719 = vmatprep.subr.bf16.mxu0 %v2317_v2  ;;  %v1817_v2 = vshrl.u32 %v1816_v26, 7 }
  0xea   : > { %1761 = vmatpush1.bf16.msra.mxu1 %v2312_v1 }
  0xeb   : > { %1762 = vmatprep.subr.bf16.mxu1 %v2320_v3  ;;  %v1818_v16 = vsub.s32 0, %v1817_v2 }
  0xec   : > { %1720 = vmatpush1.bf16.msra.mxu0 %v2315_v5 }
  0xed   : > { %1721 = vmatprep.subr.bf16.mxu0 %v2323_v27  ;;  %v1814_v27 = vld [vmem:[%s795_s7] sm:$0x3] }
  0xee   : > { %1763 = vmatpush1.bf16.msra.mxu1 %v2318_v6  ;;  %v1819_v34 = vrot.slane %v1814_v27, %v1818_v16 }
  0xef   : > { %1764 = vmatprep.subr.bf16.mxu1 %v2326_v28 }
  0xf0   : > { %1722 = vmatpush1.bf16.msra.mxu0 %v2321_v29  ;;  %v1822_v29 = vsub.s32 1, %v1817_v2 }
  0xf1   : > { %1723 = vmatprep.subr.bf16.mxu0 %v2329_v31 }
  0xf2   : > { %1765 = vmatpush1.bf16.msra.mxu1 %v2324_v30 }
  0xf3   : > { %1766 = vmatprep.subr.bf16.mxu1 %v2332_v32 }
  0xf4   : > { %1724 = vmatpush1.bf16.msra.mxu0 %v2327_v33 }
  0xf5   : > { %1725 = vmatprep.subr.bf16.mxu0 %v2335_v36 }
  0xf6   : > { %1767 = vmatpush1.bf16.msra.mxu1 %v2330_v35 }
  0xf7   : > { %1768 = vmatprep.subr.bf16.mxu1 %v2338_v37 }
  0xf8   : > { %1726 = vmatpush1.bf16.msra.mxu0 %v2333_v40  ;;  %v1823_v40 = vrot.slane %v1814_v27, %v1822_v29 }
  0xf9   : > { %1727 = vmatprep.subr.bf16.mxu0 %v2341_v42 }
  0xfa   : > { %1769 = vmatpush1.bf16.msra.mxu1 %v2336_v41 }
  0xfb   : > { %1770 = vmatprep.subr.bf16.mxu1 %v2344_v43 }
  0xfc   : > { %1728 = vmatpush1.bf16.msra.mxu0 %v2339_v44 }
  0xfd   : > { %1729 = vmatprep.subr.bf16.mxu0 %v2347_v46 }
  0xfe   : > { %1771 = vmatpush1.bf16.msra.mxu1 %v2342_v45 }
  0xff   : > { %1772 = vmatprep.subr.bf16.mxu1 %v2350_v47 }
 0x100   : > { %1730 = vmatpush2.bf16.msra.mxu0 %v2345_v48 }
 0x101   : > { %1731 = vmatprep.subr.bf16.mxu0 %v2353_v50 }
 0x102   : > { %1773 = vmatpush2.bf16.msra.mxu1 %v2348_v49 }
 0x103   : > { %1774 = vmatprep.subr.bf16.mxu1 %v2356_v51 }
 0x104   : > { %1732 = vmatpush2.bf16.msra.mxu0 %v2351_v52 }
 0x105   : > { %1733 = vmatprep.subr.bf16.mxu0 %v2359_v54 }
 0x106   : > { %1775 = vmatpush2.bf16.msra.mxu1 %v2354_v53 }
 0x107   : > { %1776 = vmatprep.subr.bf16.mxu1 %v2362_v55 }
 0x108   : > { %1734 = vmatpush2.bf16.msra.mxu0 %v2357_v56 }
 0x109   : > { %1735 = vmatprep.subr.bf16.mxu0 %v2365_v58 }
 0x10a   : > { %1777 = vmatpush2.bf16.msra.mxu1 %v2360_v57 }
 0x10b   : > { %1778 = vmatprep.subr.bf16.mxu1 %v2368_v59 }
 0x10c   : > { %1736 = vmatpush2.bf16.msra.mxu0 %v2363_v60 }
 0x10d   : > { %1737 = vmatprep.subr.bf16.mxu0 %v2371_v62 }
 0x10e   : > { %1779 = vmatpush2.bf16.msra.mxu1 %v2366_v61 }
 0x10f   : > { %1780 = vmatprep.subr.bf16.mxu1 %v2374_v63 }
 0x110   : > { %1738 = vmatpush2.bf16.msra.mxu0 %v2369_v4 }
 0x111   : > { %1739 = vmatprep.subr.bf16.mxu0 %v2377_v8 }
 0x112   : > { %1781 = vmatpush2.bf16.msra.mxu1 %v2372_v7 }
 0x113   : > { %1782 = vmatprep.subr.bf16.mxu1 %v2380_v9 }
 0x114   : > { %1740 = vmatpush2.bf16.msra.mxu0 %v2375_v10 }
 0x115   : > { %1741 = vmatprep.subr.bf16.mxu0 %v2383_v12 }
 0x116   : > { %1783 = vmatpush2.bf16.msra.mxu1 %v2378_v11 }
 0x117   : > { %1784 = vmatprep.subr.bf16.mxu1 %v2386_v13 }
 0x118   : > { %1742 = vmatpush2.bf16.msra.mxu0 %v2381_v14 }
 0x119   : > { %1743 = vmatprep.subr.bf16.mxu0 %v2389_v18 }
 0x11a   : > { %1785 = vmatpush2.bf16.msra.mxu1 %v2384_v15 }
 0x11b   : > { %1786 = vmatprep.subr.bf16.mxu1 %v2392_v19 }
 0x11c   : > { %1744 = vmatpush2.bf16.msra.mxu0 %v2387_v20 }
 0x11e   : > { %1787 = vmatpush2.bf16.msra.mxu1 %v2390_v21 }
 0x11f   : > { %1746 = vmatmul.mubr.bf16.vlgmr.msra.gmra.mxu0 %v2018_v22 }
 0x121   : > { %1789 = vmatmul.mubr.bf16.vlgmr.msra.gmra.mxu1 %v2020_v23 }
 0x19f   : > { %v1661_v24 = vpop.f32.mrf.mxu0 }
 0x1a1   : > { %v1704_v25 = vpop.f32.mrf.mxu1  ;;  %v1663_v0 = vpop.f32.mrf.mxu0 }
 0x1a2   : > { %v1705_v28 = vadd.f32 %v1704_v25, %v1661_v24 }
 0x1a3   : > { %v1706_v1 = vpop.f32.mrf.mxu1  ;;  %v1665_v3 = vpop.f32.mrf.mxu0 }
 0x1a4   : > { %v1707_v32 = vadd.f32 %v1706_v1, %v1663_v0 }
 0x1a5   : > { %v1708_v5 = vpop.f32.mrf.mxu1  ;;  %v1667_v17 = vpop.f32.mrf.mxu0 }
 0x1a6   : > { %v1709_v37 = vadd.f32 %v1708_v5, %v1665_v3 }
 0x1a7   : > { %v1710_v6 = vpop.f32.mrf.mxu1 }
 0x1a8   : > { %v1711_v43 = vadd.f32 %v1710_v6, %v1667_v17 }
 0x1df   : > { %v1747_v30 = vpop.f32.mrf.mxu0 }
 0x1e0   : > { %v1748_v33 = vadd.f32 %v1747_v30, %v1705_v28 }
 0x1e1   : > { %v1790_v31 = vpop.f32.mrf.mxu1  ;;  %v1749_v35 = vpop.f32.mrf.mxu0 }
 0x1e2   : > { %v1791_v38 = vadd.f32 %v1790_v31, %v1748_v33  ;;  %v1750_v39 = vadd.f32 %v1749_v35, %v1707_v32 }
 0x1e3   : > { %v1792_v36 = vpop.f32.mrf.mxu1  ;;  %v1751_v41 = vpop.f32.mrf.mxu0 }
 0x1e4   : > { %v1826_v44 = vadd.f32 %v1819_v34, %v1791_v38  ;;  %v1793_v45 = vadd.f32 %v1792_v36, %v1750_v39  ;;  %v1752_v46 = vadd.f32 %v1751_v41, %v1709_v37 }
 0x1e5   : > { %v1794_v42 = vpop.f32.mrf.mxu1  ;;  %v1753_v47 = vpop.f32.mrf.mxu0 }
 0x1e6   : > { %v1827_v48 = vadd.f32 %v1823_v40, %v1793_v45  ;;  %v1795_v49 = vadd.f32 %v1794_v42, %v1752_v46  ;;  %v1754_v50 = vadd.f32 %v1753_v47, %v1711_v43  ;;  %v1830_v52 = vmax.f32 %v1826_v44, 0.0 }
 0x1e7   : > { %v1796_v51 = vpop.f32.mrf.mxu1 }
 0x1e8   : > { %v1831_v53 = vmax.f32 %v1827_v48, 0.0  ;;  %v1828_v54 = vadd.f32 %v1819_v34, %v1795_v49  ;;  %v1797_v55 = vadd.f32 %v1796_v51, %v1754_v50 }
 0x1ea   : > { %v2158_v56 = vpack.c.bf16 %v1831_v53, %v1830_v52  ;;  %v1829_v57 = vadd.f32 %v1823_v40, %v1797_v55  ;;  %v1832_v58 = vmax.f32 %v1828_v54, 0.0 }
 0x1ec   : > { %1846 = vst [vmem:[%s777_s9] sm:$0xff] %v2158_v56  ;;  %v1833_v59 = vmax.f32 %v1829_v57, 0.0  ;;  %1854 = sbr.rel (!%p2488_p6) target bundleno = 505 (0x1f9), region = 82 }
 0x1ee   : > { %v2159_v60 = vpack.c.bf16 %v1833_v59, %v1832_v58 }
 0x1f0   : > { %1847 = vst [vmem:[%s777_s9 + $0x8] sm:$0xff] %v2159_v60 }
 0x1f3   : > { %v1891_v61 = vld [vmem:[%s777_s9] sm:$0xff] }
 0x1f4   : > { %1892 = vst [vmem:[%s1860_s11] sm:$0xff] %v1891_v61 }
 0x1f7   : > { %v1893_v62 = vld [vmem:[%s777_s9 + $0x8] sm:$0xff] }
 0x1f8   : > { %1894 = vst [vmem:[%s1860_s11 + $0x20] sm:$0xff] %v1893_v62 }
 0x1f9 PF: > { %s13_s16 = sadd.s32 1, %s2431_s16   ;;  %s2990_s12 = smov %s2419_s13 }
 0x1fa   : > { %p10_p12 = scmp.ge.s32.totalorder %s13_s16, 6   ;;  %s2991_s13 = smov %s2493_s22 }
 0x1fb   : > { %s2992_s14 = smov %s2427_s15  ;;  %s2993_s15 = smov %s2995_s17 }
 0x1fc   :  { %12 = sbr.rel (!%p10_p12) target bundleno = 3 (0x3), region = 157 }

// kernel: forward.12
= control target key start
LH: loop header
LB: loop body
LE: loop exit
PB: predicated region body
PF: predicated region fallthrough
CT: control target
= control target key end

     0   :  { %s829_s9 = smov 0   ;;  %s1115_s0 = inlined_call_operand.vmem [shape: bf16[2,3,1500], index: 0, kind: input, shape index: {}]   ;;  %s1116_s1 = inlined_call_operand.vmem [shape: f32[2,1,1500], index: 1, kind: output, shape index: {0}]   ;;  %s1117_s2 = inlined_call_operand.vmem [shape: f32[2,1,1500], index: 2, kind: output, shape index: {1}]  }
   0x1 LB: > { %s762_s10 = sadd.s32 4294967295, %s811_s9   ;;  %p766_p0 = scmp.ge.s32.totalorder %s811_s9, 1  ;;  %s811_s9 = sphi %s829_s9, %s13_s9  }
   0x2   : > { %p115_p1 = scmp.lt.s32.totalorder %s811_s9, 3 }
   0x4   : > { %p116_p2 = pnand %p766_p0, %p115_p1 }
   0x5   : > { %p140_p3 = scmp.lt.s32.totalorder (!%p116_p2), %s762_s10, 1 }
   0x6   : > { %119 = sbr.rel (%p116_p2) target bundleno = 114 (0x72), region = 24 }
   0xb   : > { %s1128_s10 = smov (!%p140_p3, %s762_s10), 1  ;;  %vm180_vm0 = vcmask 1042432   ;;  %v433_v9 = vlaneseq  ;;  %vm258_vm1 = vcmask 747520  }
   0xc   : > { %s770_s11 = smul.u32 24, %s1128_s10 }
   0xd   : > { %vm925_vm2 = vcmp.lt.s32.totalorder %v433_v9, 476  ;;  %s771_s15 = smul.u32 12, %s1128_s10 }
   0xe   : > { %s144_s14 = scalar_lea.vmem %s1115_s0, %s770_s11 }
   0xf   : > { %v153_v0 = vld [vmem:[%s144_s14] sm:$0xff]  ;;  %v154_v1 = vld [vmem:[%s144_s14 + $0x8] sm:$0xff]  ;;  %v155_v2 = vld [vmem:[%s144_s14 + $0x10] sm:$0xff]  ;;  %s148_s18 = scalar_lea.vmem %s1116_s1, %s771_s15  ;;  %s152_s21 = scalar_lea.vmem %s1117_s2, %s771_s15 }
  0x10   : > { %v843_v3 = vunpack.c.l.bf16 %v153_v0  ;;  %v845_v4 = vunpack.c.h.bf16 %v153_v0  ;;  %v847_v5 = vunpack.c.l.bf16 %v154_v1  ;;  %v849_v6 = vunpack.c.h.bf16 %v154_v1 }
  0x11   : > { %v851_v7 = vunpack.c.l.bf16 %v155_v2  ;;  %v853_v8 = vunpack.c.h.bf16 %v155_v2 }
  0x12   : > { %v168_v10 = vcombine.high %v843_v3, %v843_v3  ;;  %v169_v11 = vcombine.high %v845_v4, %v845_v4  ;;  %v170_v12 = vcombine.high %v847_v5, %v847_v5  ;;  %v171_v13 = vcombine.high %v849_v6, %v849_v6 }
  0x13   : > { %v172_v14 = vcombine.high %v851_v7, %v851_v7  ;;  %v173_v15 = vcombine.high %v853_v8, %v853_v8  ;;  %v181_v16 = vsel %vm180_vm0, %v843_v3, 0.0  ;;  %v195_v17 = vsel %vm180_vm0, %v845_v4, 0.0 }
  0x14   : > { %v182_v18 = vrot.slane %v181_v16, 4  ;;  %v188_v19 = vsel %vm180_vm0, %v168_v10, 0.0  ;;  %v196_v20 = vrot.slane %v195_v17, 4  ;;  %v202_v21 = vsel %vm180_vm0, %v169_v11, 0.0 }
  0x15   : > { %v189_v22 = vrot.slane %v188_v19, 4  ;;  %v203_v23 = vrot.slane %v202_v21, 4  ;;  %v209_v24 = vsel %vm180_vm0, %v847_v5, 0.0  ;;  %v216_v25 = vsel %vm180_vm0, %v170_v12, 0.0 }
  0x16   : > { %v183_v26 = vadd.f32 %v182_v18, %v181_v16  ;;  %v197_v27 = vadd.f32 %v196_v20, %v195_v17  ;;  %v210_v28 = vrot.slane %v209_v24, 4  ;;  %v217_v29 = vrot.slane %v216_v25, 4 }
  0x17   : > { %v190_v30 = vadd.f32 %v189_v22, %v188_v19  ;;  %v204_v31 = vadd.f32 %v203_v23, %v202_v21  ;;  %v223_v32 = vsel %vm180_vm0, %v849_v6, 0.0  ;;  %v230_v33 = vsel %vm180_vm0, %v171_v13, 0.0 }
  0x18   : > { %v184_v34 = vrot.slane %v183_v26, 2  ;;  %v198_v35 = vrot.slane %v197_v27, 2  ;;  %v211_v36 = vadd.f32 %v210_v28, %v209_v24  ;;  %v218_v37 = vadd.f32 %v217_v29, %v216_v25 }
  0x19   : > { %v191_v38 = vrot.slane %v190_v30, 2  ;;  %v205_v39 = vrot.slane %v204_v31, 2  ;;  %v224_v40 = vrot.slane %v223_v32, 4  ;;  %v231_v41 = vrot.slane %v230_v33, 4 }
  0x1a   : > { %v185_v42 = vadd.f32 %v184_v34, %v183_v26  ;;  %v199_v43 = vadd.f32 %v198_v35, %v197_v27  ;;  %v212_v44 = vrot.slane %v211_v36, 2  ;;  %v219_v45 = vrot.slane %v218_v37, 2 }
  0x1b   : > { %v192_v46 = vadd.f32 %v191_v38, %v190_v30  ;;  %v206_v47 = vadd.f32 %v205_v39, %v204_v31  ;;  %v225_v48 = vadd.f32 %v224_v40, %v223_v32  ;;  %v232_v49 = vadd.f32 %v231_v41, %v230_v33 }
  0x1c   : > { %v186_v50 = vrot.slane %v185_v42, 1  ;;  %v200_v51 = vrot.slane %v199_v43, 1  ;;  %v213_v52 = vadd.f32 %v212_v44, %v211_v36  ;;  %v220_v53 = vadd.f32 %v219_v45, %v218_v37 }
  0x1d   : > { %v193_v54 = vrot.slane %v192_v46, 1  ;;  %v207_v55 = vrot.slane %v206_v47, 1  ;;  %v226_v56 = vrot.slane %v225_v48, 2  ;;  %v233_v57 = vrot.slane %v232_v49, 2 }
  0x1e   : > { %v187_v58 = vadd.f32 %v186_v50, %v185_v42  ;;  %v201_v59 = vadd.f32 %v200_v51, %v199_v43  ;;  %v214_v60 = vrot.slane %v213_v52, 1  ;;  %v221_v61 = vrot.slane %v220_v53, 1 }
  0x1f   : > { %v194_v62 = vadd.f32 %v193_v54, %v192_v46  ;;  %v208_v63 = vadd.f32 %v207_v55, %v206_v47  ;;  %v227_v0 = vadd.f32 %v226_v56, %v225_v48  ;;  %v234_v1 = vadd.f32 %v233_v57, %v232_v49 }
  0x20   : > { %v215_v2 = vadd.f32 %v214_v60, %v213_v52  ;;  %v222_v10 = vadd.f32 %v221_v61, %v220_v53  ;;  %v237_v11 = vsel %vm180_vm0, %v851_v7, 0.0  ;;  %v244_v12 = vsel %vm180_vm0, %v172_v14, 0.0 }
  0x21   : > { %v228_v13 = vrot.slane %v227_v0, 1  ;;  %v235_v16 = vrot.slane %v234_v1, 1  ;;  %v238_v17 = vrot.slane %v237_v11, 4  ;;  %v245_v18 = vrot.slane %v244_v12, 4 }
  0x22   : > { %v251_v19 = vsel %vm180_vm0, %v853_v8, 0.0  ;;  %v259_v20 = vsel %vm258_vm1, %v173_v15, 0.0  ;;  %v267_v21 = vmul.f32 0.33333334, %v187_v58  ;;  %v268_v22 = vmul.f32 0.33333334, %v194_v62 }
  0x23   : > { %v229_v23 = vadd.f32 %v228_v13, %v227_v0  ;;  %v236_v24 = vadd.f32 %v235_v16, %v234_v1  ;;  %v239_v25 = vadd.f32 %v238_v17, %v237_v11  ;;  %v246_v26 = vadd.f32 %v245_v18, %v244_v12 }
  0x24   : > { %v252_v27 = vrot.slane %v251_v19, 4  ;;  %v260_v28 = vrot.slane %v259_v20, 4  ;;  %v269_v29 = vmul.f32 0.33333334, %v201_v59  ;;  %v270_v30 = vmul.f32 0.33333334, %v208_v63 }
  0x25   : > { %v240_v14 = vrot.slane %v239_v25, 2  ;;  %v247_v31 = vrot.slane %v246_v26, 2  ;;  %v271_v32 = vmul.f32 0.33333334, %v215_v2  ;;  %v272_v33 = vmul.f32 0.33333334, %v222_v10 }
  0x26   : > { %v253_v34 = vadd.f32 %v252_v27, %v251_v19  ;;  %v261_v35 = vadd.f32 %v260_v28, %v259_v20  ;;  %v273_v36 = vmul.f32 0.33333334, %v229_v23  ;;  %v274_v37 = vmul.f32 0.33333334, %v236_v24 }
  0x27   : > { %v241_v38 = vadd.f32 %v240_v14, %v239_v25  ;;  %v248_v15 = vadd.f32 %v247_v31, %v246_v26  ;;  %v885_v39 = vcombine.low %v267_v21, %v268_v22  ;;  %v887_v40 = vcombine.low %v269_v29, %v270_v30 }
  0x28   : > { %v254_v41 = vrot.slane %v253_v34, 2  ;;  %v262_v42 = vrot.slane %v261_v35, 2  ;;  %v889_v43 = vcombine.low %v271_v32, %v272_v33  ;;  %v891_v44 = vcombine.low %v273_v36, %v274_v37 }
  0x29   : > { %v242_v45 = vrot.slane %v241_v38, 1  ;;  %v249_v46 = vrot.slane %v248_v15, 1  ;;  %v303_v47 = vsub.f32 %v843_v3, %v885_v39  ;;  %v304_v48 = vsub.f32 %v845_v4, %v887_v40 }
  0x2a   : > { %v255_v49 = vadd.f32 %v254_v41, %v253_v34  ;;  %v263_v50 = vadd.f32 %v262_v42, %v261_v35  ;;  %v305_v51 = vsub.f32 %v847_v5, %v889_v43  ;;  %v306_v52 = vsub.f32 %v849_v6, %v891_v44 }
  0x2b   : > { %v243_v53 = vadd.f32 %v242_v45, %v241_v38  ;;  %v250_v54 = vadd.f32 %v249_v46, %v248_v15  ;;  %v309_v55 = vmul.f32 %v303_v47, %v303_v47  ;;  %v310_v56 = vmul.f32 %v304_v48, %v304_v48 }
  0x2c   : > { %v256_v57 = vrot.slane %v255_v49, 1  ;;  %v264_v58 = vrot.slane %v263_v50, 1  ;;  %v311_v59 = vmul.f32 %v305_v51, %v305_v51  ;;  %v813_v60 = vmov 1966171168  }
  0x2d   : > { %v431_v3 = vunpack.c.l.s4 %v813_v60  ;;  %v275_v61 = vmul.f32 0.33333334, %v243_v53  ;;  %v276_v62 = vmul.f32 0.33333334, %v250_v54  ;;  %v321_v4 = vcombine.high %v309_v55, %v309_v55 }
  0x2e   : > { %v322_v63 = vcombine.high %v310_v56, %v310_v56  ;;  %v257_v0 = vadd.f32 %v256_v57, %v255_v49  ;;  %v265_v1 = vadd.f32 %v264_v58, %v263_v50  ;;  %v312_v2 = vmul.f32 %v306_v52, %v306_v52 }
  0x2f   : > { %v323_v5 = vcombine.high %v311_v59, %v311_v59  ;;  %v901_v10 = vcombine.low %v275_v61, %v276_v62  ;;  %v333_v6 = vsel %vm180_vm0, %v309_v55, 0.0  ;;  %v340_v11 = vsel %vm180_vm0, %v321_v4, 0.0 }
  0x30   : > { %v347_v12 = vsel %vm180_vm0, %v310_v56, 0.0  ;;  %v277_v13 = vmul.f32 0.33333334, %v257_v0  ;;  %v278_v16 = vmul.f32 0.33333334, %v265_v1  ;;  %v334_v17 = vrot.slane %v333_v6, 4 }
  0x31   : > { %v341_v18 = vrot.slane %v340_v11, 4  ;;  %v307_v19 = vsub.f32 %v851_v7, %v901_v10  ;;  %v348_v20 = vrot.slane %v347_v12, 4  ;;  %v354_v21 = vsel %vm180_vm0, %v322_v63, 0.0 }
  0x32   : > { %v361_v22 = vsel %vm180_vm0, %v311_v59, 0.0  ;;  %v910_v23 = vcombine.low %v277_v13, %v278_v16  ;;  %v335_v24 = vadd.f32 %v334_v17, %v333_v6  ;;  %v355_v26 = vrot.slane %v354_v21, 4 }
  0x33   : > { %v342_v25 = vadd.f32 %v341_v18, %v340_v11  ;;  %v349_v27 = vadd.f32 %v348_v20, %v347_v12  ;;  %v362_v28 = vrot.slane %v361_v22, 4  ;;  %v368_v29 = vsel %vm180_vm0, %v323_v5, 0.0 }
  0x34   : > { %v308_v30 = vsub.f32 %v853_v8, %v910_v23  ;;  %v313_v14 = vmul.f32 %v307_v19, %v307_v19  ;;  %v336_v31 = vrot.slane %v335_v24, 2  ;;  %v356_v7 = vadd.f32 %v355_v26, %v354_v21 }
  0x35   : > { %v363_v32 = vadd.f32 %v362_v28, %v361_v22  ;;  %v369_v33 = vrot.slane %v368_v29, 4  ;;  %v434_v34 = vshrl.u32 %v433_v9, 7  ;;  %v324_v36 = vcombine.high %v312_v2, %v312_v2 }
  0x36   : > { %v314_v35 = vmul.f32 %v308_v30, %v308_v30  ;;  %v343_v37 = vrot.slane %v342_v25, 2  ;;  %v432_v38 = vunpack.c.0.s8 %v431_v3  ;;  %v337_v15 = vadd.f32 %v336_v31, %v335_v24 }
  0x37   : > { %v350_v41 = vrot.slane %v349_v27, 2  ;;  %v370_v42 = vadd.f32 %v369_v33, %v368_v29  ;;  %v375_v45 = vsel %vm180_vm0, %v312_v2, 0.0  ;;  %v325_v46 = vcombine.high %v313_v14, %v313_v14 }
  0x38   : > { %v357_v47 = vrot.slane %v356_v7, 2  ;;  %v364_v48 = vrot.slane %v363_v32, 2  ;;  %v376_v49 = vrot.slane %v375_v45, 4  ;;  %v326_v50 = vcombine.high %v314_v35, %v314_v35 }
  0x39   : > { %v371_v8 = vrot.slane %v370_v42, 2  ;;  %v382_v51 = vsel %vm180_vm0, %v324_v36, 0.0  ;;  %v918_v52 = vsub.s32 %v432_v38, %v434_v34  ;;  %v338_v53 = vrot.slane %v337_v15, 1 }
  0x3a   : > { %v344_v54 = vadd.f32 %v343_v37, %v342_v25  ;;  %v351_v55 = vadd.f32 %v350_v41, %v349_v27  ;;  %v377_v56 = vadd.f32 %v376_v49, %v375_v45  ;;  %v358_v57 = vadd.f32 %v357_v47, %v356_v7 }
  0x3b   : > { %v383_v58 = vrot.slane %v382_v51, 4  ;;  %v389_v59 = vsel %vm180_vm0, %v313_v14, 0.0  ;;  %v396_v60 = vsel %vm180_vm0, %v325_v46, 0.0  ;;  %v365_v3 = vadd.f32 %v364_v48, %v363_v32 }
  0x3c   : > { %v372_v61 = vadd.f32 %v371_v8, %v370_v42  ;;  %v378_v62 = vrot.slane %v377_v56, 2  ;;  %v390_v4 = vrot.slane %v389_v59, 4  ;;  %v397_v0 = vrot.slane %v396_v60, 4 }
  0x3d   : > { %v384_v63 = vadd.f32 %v383_v58, %v382_v51  ;;  %v403_v1 = vsel %vm180_vm0, %v314_v35, 0.0  ;;  %v410_v2 = vsel %vm258_vm1, %v326_v50, 0.0  ;;  %v345_v5 = vrot.slane %v344_v54, 1 }
  0x3e   : > { %v352_v6 = vrot.slane %v351_v55, 1  ;;  %v391_v11 = vadd.f32 %v390_v4, %v389_v59  ;;  %v404_v12 = vrot.slane %v403_v1, 4  ;;  %v379_v13 = vadd.f32 %v378_v62, %v377_v56 }
  0x3f   : > { %v385_v16 = vrot.slane %v384_v63, 2  ;;  %v398_v17 = vadd.f32 %v397_v0, %v396_v60  ;;  %v411_v18 = vrot.slane %v410_v2, 4  ;;  %v359_v19 = vrot.slane %v358_v57, 1 }
  0x40   : > { %v366_v20 = vrot.slane %v365_v3, 1  ;;  %v392_v21 = vrot.slane %v391_v11, 2  ;;  %v405_v22 = vadd.f32 %v404_v12, %v403_v1  ;;  %v339_v24 = vadd.f32 %v338_v53, %v337_v15 }
  0x41   : > { %v373_v25 = vrot.slane %v372_v61, 1  ;;  %v399_v26 = vrot.slane %v398_v17, 2  ;;  %v412_v27 = vadd.f32 %v411_v18, %v410_v2  ;;  %v346_v28 = vadd.f32 %v345_v5, %v344_v54 }
  0x42   : > { %v386_v29 = vadd.f32 %v385_v16, %v384_v63  ;;  %v406_v30 = vrot.slane %v405_v22, 2  ;;  %v353_v14 = vadd.f32 %v352_v6, %v351_v55  ;;  %v380_v31 = vrot.slane %v379_v13, 1 }
  0x43   : > { %v393_v7 = vadd.f32 %v392_v21, %v391_v11  ;;  %v413_v32 = vrot.slane %v412_v27, 2  ;;  %v360_v33 = vadd.f32 %v359_v19, %v358_v57  ;;  %v367_v34 = vadd.f32 %v366_v20, %v365_v3 }
  0x44   : > { %v400_v35 = vadd.f32 %v399_v26, %v398_v17  ;;  %v407_v36 = vadd.f32 %v406_v30, %v405_v22  ;;  %v374_v38 = vadd.f32 %v373_v25, %v372_v61  ;;  %v929_v41 = vmul.f32 0.5, %v339_v24 }
  0x45   : > { %v414_v15 = vadd.f32 %v413_v32, %v412_v27  ;;  %v436_v42 = vrot.slane %v885_v39, %v918_v52  ;;  %v387_v45 = vrot.slane %v386_v29, 1  ;;  %v933_v46 = vmul.f32 0.5, %v346_v28 }
  0x46   : > { %v443_v47 = vrot.slane %v887_v40, %v918_v52  ;;  %v450_v48 = vrot.slane %v889_v43, %v918_v52  ;;  %v381_v9 = vadd.f32 %v380_v31, %v379_v13  ;;  %v394_v8 = vrot.slane %v393_v7, 1 }
  0x47   : > { %v939_v49 = vmul.f32 0.5, %v353_v14  ;;  %v457_v50 = vrot.slane %v891_v44, %v918_v52  ;;  %v401_v51 = vrot.slane %v400_v35, 1  ;;  %v408_v39 = vrot.slane %v407_v36, 1 }
  0x48   : > { %v458_v53 = vcombine.low %v436_v42, %v443_v47  ;;  %v481_v54 = vrot.slane %v901_v10, %v918_v52  ;;  %v415_v55 = vrot.slane %v414_v15, 1  ;;  %v946_v40 = vmul.f32 0.5, %v360_v33 }
  0x49   : > { %v459_v56 = vcombine.low %v450_v48, %v457_v50  ;;  %v488_v43 = vrot.slane %v910_v23, %v918_v52  ;;  %v388_v57 = vadd.f32 %v387_v45, %v386_v29  ;;  %v950_v58 = vmul.f32 0.5, %v367_v34 }
  0x4a   : > { %v466_v44 = vrot.slane %v458_v53, %v918_v52  ;;  %781 = vrsqrt.f32 %v929_v41  ;;  %v395_v59 = vadd.f32 %v394_v8, %v393_v7  ;;  %v954_v60 = vmul.f32 0.5, %v374_v38 }
  0x4b   : > { %v473_v3 = vrot.slane %v459_v56, %v918_v52  ;;  %v489_v10 = vcombine.low %v481_v54, %v488_v43  ;;  %v402_v61 = vadd.f32 %v401_v51, %v400_v35  ;;  %v409_v23 = vadd.f32 %v408_v39, %v407_v36 }
  0x4c   : > { %v962_v62 = vmul.f32 0.5, %v381_v9  ;;  %783 = vrsqrt.f32 %v933_v46  ;;  %v416_v4 = vadd.f32 %v415_v55, %v414_v15  ;;  %v967_v1 = vmul.f32 0.5, %v388_v57 }
  0x4d   : > { %v474_v63 = vcombine.low %v466_v44, %v473_v3  ;;  %v496_v0 = vrot.slane %v489_v10, %v918_v52  ;;  %785 = vrsqrt.f32 %v939_v49  ;;  %v970_v2 = vmul.f32 0.5, %v395_v59 }
  0x4e   : > { %787 = vrsqrt.f32 %v946_v40  ;;  %v975_v5 = vmul.f32 0.5, %v402_v61  ;;  %v977_v6 = vmul.f32 0.5, %v409_v23  ;;  %v980_v11 = vmul.f32 0.5, %v416_v4 }
  0x4f   : > { %499 = vst [vmem:[%s148_s18] sm:$0xff] %v474_v63  ;;  %504 = vst.msk [vmem:[%s148_s18 + $0x8] sm:$0xf] %vm925_vm2, %v496_v0  ;;  %789 = vrsqrt.f32 %v950_v58  ;;  %vm507_vm3 = vcmp.eq.f32.partialorder %v929_v41, inf  ;;  %vm509_vm4 = vcmp.eq.f32.partialorder %v929_v41, 0.0  ;;  %v510_v12 = vand.u32 2147483648, %v929_v41 }
  0x50   : > { %791 = vrsqrt.f32 %v954_v60  ;;  %vm514_vm5 = vcmp.eq.f32.partialorder %v933_v46, inf  ;;  %vm516_vm6 = vcmp.eq.f32.partialorder %v933_v46, 0.0  ;;  %v517_v13 = vand.u32 2147483648, %v933_v46 }
  0x51   : > { %793 = vrsqrt.f32 %v962_v62  ;;  %vm521_vm7 = vcmp.eq.f32.partialorder %v939_v49, inf  ;;  %vm523_vm8 = vcmp.eq.f32.partialorder %v939_v49, 0.0  ;;  %v524_v16 = vand.u32 2147483648, %v939_v49 }
  0x52   : > { %795 = vrsqrt.f32 %v967_v1  ;;  %vm528_vm9 = vcmp.eq.f32.partialorder %v946_v40, inf  ;;  %vm530_vm10 = vcmp.eq.f32.partialorder %v946_v40, 0.0  ;;  %v531_v17 = vand.u32 2147483648, %v946_v40 }
  0x53   : > { %797 = vrsqrt.f32 %v970_v2  ;;  %vm535_vm11 = vcmp.eq.f32.partialorder %v950_v58, inf  ;;  %v538_v18 = vand.u32 2147483648, %v950_v58  ;;  %v545_v20 = vand.u32 2147483648, %v954_v60 }
  0x54   : > { %799 = vrsqrt.f32 %v975_v5  ;;  %vm551_vm0 = vcmp.eq.f32.partialorder %v962_v62, 0.0  ;;  %v552_v21 = vand.u32 2147483648, %v962_v62  ;;  %vm556_vm1 = vcmp.eq.f32.partialorder %v967_v1, inf }
  0x55   : > { %801 = vrsqrt.f32 %v977_v6  ;;  %v559_v24 = vand.u32 2147483648, %v967_v1  ;;  %vm563_vm14 = vcmp.eq.f32.partialorder %v970_v2, inf  ;;  %v566_v26 = vand.u32 2147483648, %v970_v2 }
  0x56   : > { %803 = vrsqrt.f32 %v980_v11  ;;  %vm572_vm12 = vcmp.eq.f32.partialorder %v975_v5, 0.0  ;;  %v573_v30 = vand.u32 2147483648, %v975_v5  ;;  %vm577_vm13 = vcmp.eq.f32.partialorder %v977_v6, inf }
  0x57   : > { %v782_v19 = vpop.eup %781  ;;  %vm579_vm15 = vcmp.eq.f32.partialorder %v977_v6, 0.0  ;;  %v580_v35 = vand.u32 2147483648, %v977_v6 }
  0x58   : > { %v506_v22 = vmul.f32 %v782_v19, %v929_v41 }
  0x59   : > { %v784_v25 = vpop.eup %783 }
  0x5a   : > { %v786_v27 = vpop.eup %785  ;;  %v508_v28 = vsel %vm507_vm3, %v929_v41, %v506_v22  ;;  %v513_v29 = vmul.f32 %v784_v25, %v933_v46  ;;  %vm584_vm3 = vcmp.eq.f32.partialorder %v980_v11, inf }
  0x5b   : > { %v788_v14 = vpop.eup %787  ;;  %v511_v31 = vsel %vm509_vm4, %v510_v12, %v508_v28  ;;  %v520_v7 = vmul.f32 %v786_v27, %v939_v49  ;;  %vm586_vm4 = vcmp.eq.f32.partialorder %v980_v11, 0.0 }
  0x5c   : > { %v790_v32 = vpop.eup %789  ;;  %v515_v33 = vsel %vm514_vm5, %v933_v46, %v513_v29  ;;  %v527_v34 = vmul.f32 %v788_v14, %v946_v40  ;;  %vm1120_vm5 = vcmp.eq.f32.partialorder %v950_v58, 0.0 }
  0x5d   : > { %v792_v36 = vpop.eup %791  ;;  %v518_v38 = vsel %vm516_vm6, %v517_v13, %v515_v33  ;;  %v522_v15 = vsel %vm521_vm7, %v939_v49, %v520_v7  ;;  %v534_v41 = vmul.f32 %v790_v32, %v950_v58  ;;  %v587_v49 = vand.u32 2147483648, %v980_v11 }
  0x5e   : > { %v794_v42 = vpop.eup %793  ;;  %v525_v45 = vsel %vm523_vm8, %v524_v16, %v522_v15  ;;  %v529_v47 = vsel %vm528_vm9, %v946_v40, %v527_v34  ;;  %v541_v48 = vmul.f32 %v792_v36, %v954_v60  ;;  %v601_v46 = vcombine.low %v511_v31, %v518_v38 }
  0x5f   : > { %v796_v9 = vpop.eup %795  ;;  %v532_v8 = vsel %vm530_vm10, %v531_v17, %v529_v47  ;;  %v536_v50 = vsel %vm535_vm11, %v950_v58, %v534_v41  ;;  %v548_v51 = vmul.f32 %v794_v42, %v962_v62  ;;  %vm1121_vm6 = vcmp.eq.f32.partialorder %v954_v60, inf }
  0x60   : > { %v798_v39 = vpop.eup %797  ;;  %v539_v53 = vsel %vm1120_vm5, %v538_v18, %v536_v50  ;;  %v543_v54 = vsel %vm1121_vm6, %v954_v60, %v541_v48  ;;  %v555_v55 = vmul.f32 %v796_v9, %v967_v1  ;;  %v602_v40 = vcombine.low %v525_v45, %v532_v8 }
  0x61   : > { %v800_v56 = vpop.eup %799  ;;  %vm1122_vm7 = vcmp.eq.f32.partialorder %v954_v60, 0.0  ;;  %vm1123_vm8 = vcmp.eq.f32.partialorder %v962_v62, inf  ;;  %v562_v44 = vmul.f32 %v798_v39, %v970_v2  ;;  %v611_v58 = vrot.slane %v601_v46, %v918_v52 }
  0x62   : > { %v546_v43 = vsel %vm1122_vm7, %v545_v20, %v543_v54  ;;  %v550_v57 = vsel %vm1123_vm8, %v962_v62, %v548_v51  ;;  %v802_v59 = vpop.eup %801  ;;  %v557_v10 = vsel %vm556_vm1, %v967_v1, %v555_v55  ;;  %v569_v61 = vmul.f32 %v800_v56, %v975_v5 }
  0x63   : > { %v553_v3 = vsel %vm551_vm0, %v552_v21, %v550_v57  ;;  %v603_v60 = vcombine.low %v539_v53, %v546_v43  ;;  %v804_v23 = vpop.eup %803  ;;  %vm1124_vm9 = vcmp.eq.f32.partialorder %v967_v1, 0.0  ;;  %v564_v63 = vsel %vm563_vm14, %v970_v2, %v562_v44 }
  0x64   : > { %v560_v4 = vsel %vm1124_vm9, %v559_v24, %v557_v10  ;;  %v576_v0 = vmul.f32 %v802_v59, %v977_v6  ;;  %v618_v62 = vrot.slane %v602_v40, %v918_v52  ;;  %vm1125_vm10 = vcmp.eq.f32.partialorder %v970_v2, 0.0 }
  0x65   : > { %v567_v12 = vsel %vm1125_vm10, %v566_v26, %v564_v63  ;;  %vm1126_vm11 = vcmp.eq.f32.partialorder %v975_v5, inf  ;;  %v583_v16 = vmul.f32 %v804_v23, %v980_v11  ;;  %v604_v17 = vcombine.low %v553_v3, %v560_v4 }
  0x66   : > { %v571_v13 = vsel %vm1126_vm11, %v975_v5, %v569_v61  ;;  %v578_v18 = vsel %vm577_vm13, %v977_v6, %v576_v0  ;;  %v625_v19 = vrot.slane %v603_v60, %v918_v52  ;;  %v633_v20 = vcombine.low %v611_v58, %v618_v62 }
  0x67   : > { %v574_v1 = vsel %vm572_vm12, %v573_v30, %v571_v13  ;;  %v581_v2 = vsel %vm579_vm15, %v580_v35, %v578_v18  ;;  %v585_v21 = vsel %vm584_vm3, %v980_v11, %v583_v16  ;;  %v632_v22 = vrot.slane %v604_v17, %v918_v52 }
  0x68   : > { %v650_v24 = vcombine.low %v567_v12, %v574_v1  ;;  %v588_v5 = vsel %vm586_vm4, %v587_v49, %v585_v21  ;;  %v641_v26 = vrot.slane %v633_v20, %v918_v52 }
  0x69   : > { %v634_v25 = vcombine.low %v625_v19, %v632_v22  ;;  %v651_v27 = vcombine.low %v581_v2, %v588_v5 }
  0x6a   : > { %v658_v28 = vrot.slane %v650_v24, %v918_v52 }
  0x6b   : > { %v648_v29 = vrot.slane %v634_v25, %v918_v52  ;;  %v665_v6 = vrot.slane %v651_v27, %v918_v52 }
  0x6d   : > { %v649_v30 = vcombine.low %v641_v26, %v648_v29  ;;  %v666_v14 = vcombine.low %v658_v28, %v665_v6 }
  0x6f   : > { %v673_v11 = vrot.slane %v666_v14, %v918_v52  ;;  %676 = vst [vmem:[%s152_s21] sm:$0xff] %v649_v30 }
  0x71   : > { %677 = vst.msk [vmem:[%s152_s21 + $0x8] sm:$0xf] %vm925_vm2, %v673_v11 }
  0x72 PF: > { %s13_s9 = sadd.s32 1, %s811_s9  }
  0x73   : > { %p10_p4 = scmp.ge.s32.totalorder %s13_s9, 4  }
  0x75   :  { %12 = sbr.rel (!%p10_p4) target bundleno = 1 (0x1), region = 66 }

// kernel: forward.11
= control target key start
LH: loop header
LB: loop body
LE: loop exit
PB: predicated region body
PF: predicated region fallthrough
CT: control target
= control target key end

     0   :  { %s2453_s12 = smov 0   ;;  %s2455_s13 = smov 0   ;;  %s2985_s0 = inlined_call_operand.vmem [shape: bf16[16,1024], index: 0, kind: input, shape index: {}]   ;;  %s2986_s1 = inlined_call_operand.vmem [shape: bf16[1024,1536], index: 1, kind: input, shape index: {}]   ;;  %s2987_s2 = inlined_call_operand.vmem [shape: f32[1,1536], index: 2, kind: input, shape index: {}]   ;;  %s2988_s3 = inlined_call_operand.vmem [shape: bf16[16,1536], index: 3, kind: output, shape index: {}]  }
   0x1   :  { %s2457_s14 = smov 0   ;;  %s2459_s15 = smov 0  }
   0x2   :  { %s2461_s16 = smov 0  }
   0x3 LB: > { %s28_s17 = sadd.s32 1, %s2427_s15  ;;  %s2002_s18 = sadd.s32 4294967295, %s2431_s16   ;;  %s2431_s16 = sphi %s2461_s16, %s13_s16   ;;  %s2427_s15 = sphi %s2459_s15, %s2993_s15   ;;  %s2423_s14 = sphi %s2457_s14, %s2992_s14   ;;  %s2419_s13 = sphi %s2455_s13, %s2991_s13   ;;  %s2415_s12 = sphi %s2453_s12, %s2990_s12  }
   0x4   : > { %p30_p0 = scmp.ge.s32.totalorder %s28_s17, 6  ;;  %p76_p1 = scmp.ne.s32.totalorder %s2419_s13, %s2415_s12 }
   0x5   : > { %p77_p2 = scmp.eq.s32.totalorder %s2431_s16, 0  ;;  %p134_p4 = scmp.eq.s32.totalorder %s2002_s18, 5 }
   0x6   : > { %s2995_s17 = smov (%p30_p0, %s28_s17), 0  ;;  %s69_s20 = sadd.s32 1, %s2419_s13 }
   0x7   : > { %p78_p3 = por %p77_p2, %p76_p1  ;;  %s65_s19 = ssub.s32 %s2427_s15, %s2995_s17 }
   0x8   : > { %p67_p5 = scmp.eq.s32.totalorder %s65_s19, 0  ;;  %p2488_p6 = por %p134_p4, %p76_p1 }
   0x9   : > { %p2006_p7 = scmp.ge.s32.totalorder %s2431_s16, 6 }
   0xa   : > { %s2493_s22 = scalar_select %p67_p5, %s2419_s13, %s69_s20  }
   0xb   : > { %171 = sbr.rel (%p2006_p7) target bundleno = 84 (0x54), region = 20 }
  0x10   : > { %174 = sbr.rel (!%p78_p3) target bundleno = 84 (0x54), region = 24  ;;  %s176_s23 = sand.u32 (%p78_p3), 1, %s2419_s13  }
  0x11   : > { %s2157_s24 = sshll.u32 (%p78_p3), %s2427_s15, 3  ;;  %s2007_s25 = sshll.u32 (%p78_p3), %s176_s23, 10 }
  0x12   : > { %s2501_s28 = scalar_lea.vmem (%p78_p3), %s2986_s1, %s2157_s24  ;;  %s2506_s29 = scalar_lea.vmem (%p78_p3), [#allocation3], %s2007_s25 }
  0x13   : > { %v467_v0 = vld [vmem:[%s2501_s28] sm:$0xff] (%p78_p3)  ;;  %v469_v1 = vld [vmem:[%s2501_s28 + $0x30] sm:$0xff] (%p78_p3) }
  0x14   : > { %v471_v2 = vld [vmem:[%s2501_s28 + $0x60] sm:$0xff] (%p78_p3)  ;;  %468 = vst [vmem:[%s2506_s29] sm:$0xff] (%p78_p3), %v467_v0  ;;  %470 = vst [vmem:[%s2506_s29 + $0x8] sm:$0xff] (%p78_p3), %v469_v1  ;;  %v473_v3 = vld [vmem:[%s2501_s28 + $0x90] sm:$0xff] (%p78_p3) }
  0x15   : > { %472 = vst [vmem:[%s2506_s29 + $0x10] sm:$0xff] %v471_v2  ;;  %v475_v4 = vld [vmem:[%s2501_s28 + $0xc0] sm:$0xff]  ;;  %v477_v5 = vld [vmem:[%s2501_s28 + $0xf0] sm:$0xff]  ;;  %474 = vst [vmem:[%s2506_s29 + $0x18] sm:$0xff] %v473_v3 }
  0x16   : > { %476 = vst [vmem:[%s2506_s29 + $0x20] sm:$0xff] %v475_v4  ;;  %478 = vst [vmem:[%s2506_s29 + $0x28] sm:$0xff] %v477_v5  ;;  %v479_v6 = vld [vmem:[%s2501_s28 + $0x120] sm:$0xff]  ;;  %v481_v7 = vld [vmem:[%s2501_s28 + $0x150] sm:$0xff] }
  0x17   : > { %v483_v8 = vld [vmem:[%s2501_s28 + $0x180] sm:$0xff]  ;;  %480 = vst [vmem:[%s2506_s29 + $0x30] sm:$0xff] %v479_v6  ;;  %482 = vst [vmem:[%s2506_s29 + $0x38] sm:$0xff] %v481_v7  ;;  %v485_v9 = vld [vmem:[%s2501_s28 + $0x1b0] sm:$0xff] }
  0x18   : > { %484 = vst [vmem:[%s2506_s29 + $0x40] sm:$0xff] %v483_v8  ;;  %v487_v10 = vld [vmem:[%s2501_s28 + $0x1e0] sm:$0xff]  ;;  %v489_v11 = vld [vmem:[%s2501_s28 + $0x210] sm:$0xff]  ;;  %486 = vst [vmem:[%s2506_s29 + $0x48] sm:$0xff] %v485_v9 }
  0x19   : > { %488 = vst [vmem:[%s2506_s29 + $0x50] sm:$0xff] %v487_v10  ;;  %490 = vst [vmem:[%s2506_s29 + $0x58] sm:$0xff] %v489_v11  ;;  %v491_v12 = vld [vmem:[%s2501_s28 + $0x240] sm:$0xff]  ;;  %v493_v13 = vld [vmem:[%s2501_s28 + $0x270] sm:$0xff] }
  0x1a   : > { %v495_v14 = vld [vmem:[%s2501_s28 + $0x2a0] sm:$0xff]  ;;  %492 = vst [vmem:[%s2506_s29 + $0x60] sm:$0xff] %v491_v12  ;;  %494 = vst [vmem:[%s2506_s29 + $0x68] sm:$0xff] %v493_v13  ;;  %v497_v15 = vld [vmem:[%s2501_s28 + $0x2d0] sm:$0xff] }
  0x1b   : > { %496 = vst [vmem:[%s2506_s29 + $0x70] sm:$0xff] %v495_v14  ;;  %v499_v16 = vld [vmem:[%s2501_s28 + $0x300] sm:$0xff]  ;;  %v501_v17 = vld [vmem:[%s2501_s28 + $0x330] sm:$0xff]  ;;  %498 = vst [vmem:[%s2506_s29 + $0x78] sm:$0xff] %v497_v15 }
  0x1c   : > { %500 = vst [vmem:[%s2506_s29 + $0x80] sm:$0xff] %v499_v16  ;;  %502 = vst [vmem:[%s2506_s29 + $0x88] sm:$0xff] %v501_v17  ;;  %v503_v18 = vld [vmem:[%s2501_s28 + $0x360] sm:$0xff]  ;;  %v505_v19 = vld [vmem:[%s2501_s28 + $0x390] sm:$0xff] }
  0x1d   : > { %v507_v20 = vld [vmem:[%s2501_s28 + $0x3c0] sm:$0xff]  ;;  %504 = vst [vmem:[%s2506_s29 + $0x90] sm:$0xff] %v503_v18  ;;  %506 = vst [vmem:[%s2506_s29 + $0x98] sm:$0xff] %v505_v19  ;;  %v509_v21 = vld [vmem:[%s2501_s28 + $0x3f0] sm:$0xff] }
  0x1e   : > { %508 = vst [vmem:[%s2506_s29 + $0xa0] sm:$0xff] %v507_v20  ;;  %v511_v22 = vld [vmem:[%s2501_s28 + $0x420] sm:$0xff]  ;;  %v513_v23 = vld [vmem:[%s2501_s28 + $0x450] sm:$0xff]  ;;  %510 = vst [vmem:[%s2506_s29 + $0xa8] sm:$0xff] %v509_v21 }
  0x1f   : > { %512 = vst [vmem:[%s2506_s29 + $0xb0] sm:$0xff] %v511_v22  ;;  %514 = vst [vmem:[%s2506_s29 + $0xb8] sm:$0xff] %v513_v23  ;;  %v515_v24 = vld [vmem:[%s2501_s28 + $0x480] sm:$0xff]  ;;  %v517_v25 = vld [vmem:[%s2501_s28 + $0x4b0] sm:$0xff] }
  0x20   : > { %v519_v26 = vld [vmem:[%s2501_s28 + $0x4e0] sm:$0xff]  ;;  %516 = vst [vmem:[%s2506_s29 + $0xc0] sm:$0xff] %v515_v24  ;;  %518 = vst [vmem:[%s2506_s29 + $0xc8] sm:$0xff] %v517_v25  ;;  %v521_v27 = vld [vmem:[%s2501_s28 + $0x510] sm:$0xff] }
  0x21   : > { %520 = vst [vmem:[%s2506_s29 + $0xd0] sm:$0xff] %v519_v26  ;;  %v523_v28 = vld [vmem:[%s2501_s28 + $0x540] sm:$0xff]  ;;  %v525_v29 = vld [vmem:[%s2501_s28 + $0x570] sm:$0xff]  ;;  %522 = vst [vmem:[%s2506_s29 + $0xd8] sm:$0xff] %v521_v27 }
  0x22   : > { %524 = vst [vmem:[%s2506_s29 + $0xe0] sm:$0xff] %v523_v28  ;;  %526 = vst [vmem:[%s2506_s29 + $0xe8] sm:$0xff] %v525_v29  ;;  %v527_v30 = vld [vmem:[%s2501_s28 + $0x5a0] sm:$0xff]  ;;  %v529_v31 = vld [vmem:[%s2501_s28 + $0x5d0] sm:$0xff] }
  0x23   : > { %v531_v32 = vld [vmem:[%s2501_s28 + $0x600] sm:$0xff]  ;;  %528 = vst [vmem:[%s2506_s29 + $0xf0] sm:$0xff] %v527_v30  ;;  %530 = vst [vmem:[%s2506_s29 + $0xf8] sm:$0xff] %v529_v31  ;;  %v533_v33 = vld [vmem:[%s2501_s28 + $0x630] sm:$0xff] }
  0x24   : > { %532 = vst [vmem:[%s2506_s29 + $0x100] sm:$0xff] %v531_v32  ;;  %v535_v34 = vld [vmem:[%s2501_s28 + $0x660] sm:$0xff]  ;;  %v537_v35 = vld [vmem:[%s2501_s28 + $0x690] sm:$0xff]  ;;  %534 = vst [vmem:[%s2506_s29 + $0x108] sm:$0xff] %v533_v33 }
  0x25   : > { %536 = vst [vmem:[%s2506_s29 + $0x110] sm:$0xff] %v535_v34  ;;  %538 = vst [vmem:[%s2506_s29 + $0x118] sm:$0xff] %v537_v35  ;;  %v539_v36 = vld [vmem:[%s2501_s28 + $0x6c0] sm:$0xff]  ;;  %v541_v37 = vld [vmem:[%s2501_s28 + $0x6f0] sm:$0xff] }
  0x26   : > { %v543_v38 = vld [vmem:[%s2501_s28 + $0x720] sm:$0xff]  ;;  %540 = vst [vmem:[%s2506_s29 + $0x120] sm:$0xff] %v539_v36  ;;  %542 = vst [vmem:[%s2506_s29 + $0x128] sm:$0xff] %v541_v37  ;;  %v545_v39 = vld [vmem:[%s2501_s28 + $0x750] sm:$0xff] }
  0x27   : > { %544 = vst [vmem:[%s2506_s29 + $0x130] sm:$0xff] %v543_v38  ;;  %v547_v40 = vld [vmem:[%s2501_s28 + $0x780] sm:$0xff]  ;;  %v549_v41 = vld [vmem:[%s2501_s28 + $0x7b0] sm:$0xff]  ;;  %546 = vst [vmem:[%s2506_s29 + $0x138] sm:$0xff] %v545_v39 }
  0x28   : > { %548 = vst [vmem:[%s2506_s29 + $0x140] sm:$0xff] %v547_v40  ;;  %550 = vst [vmem:[%s2506_s29 + $0x148] sm:$0xff] %v549_v41  ;;  %v551_v42 = vld [vmem:[%s2501_s28 + $0x7e0] sm:$0xff]  ;;  %v553_v43 = vld [vmem:[%s2501_s28 + $0x810] sm:$0xff] }
  0x29   : > { %v555_v44 = vld [vmem:[%s2501_s28 + $0x840] sm:$0xff]  ;;  %552 = vst [vmem:[%s2506_s29 + $0x150] sm:$0xff] %v551_v42  ;;  %554 = vst [vmem:[%s2506_s29 + $0x158] sm:$0xff] %v553_v43  ;;  %v557_v45 = vld [vmem:[%s2501_s28 + $0x870] sm:$0xff] }
  0x2a   : > { %556 = vst [vmem:[%s2506_s29 + $0x160] sm:$0xff] %v555_v44  ;;  %v559_v46 = vld [vmem:[%s2501_s28 + $0x8a0] sm:$0xff]  ;;  %v561_v47 = vld [vmem:[%s2501_s28 + $0x8d0] sm:$0xff]  ;;  %558 = vst [vmem:[%s2506_s29 + $0x168] sm:$0xff] %v557_v45 }
  0x2b   : > { %560 = vst [vmem:[%s2506_s29 + $0x170] sm:$0xff] %v559_v46  ;;  %562 = vst [vmem:[%s2506_s29 + $0x178] sm:$0xff] %v561_v47  ;;  %v563_v48 = vld [vmem:[%s2501_s28 + $0x900] sm:$0xff]  ;;  %v565_v49 = vld [vmem:[%s2501_s28 + $0x930] sm:$0xff] }
  0x2c   : > { %v567_v50 = vld [vmem:[%s2501_s28 + $0x960] sm:$0xff]  ;;  %564 = vst [vmem:[%s2506_s29 + $0x180] sm:$0xff] %v563_v48  ;;  %566 = vst [vmem:[%s2506_s29 + $0x188] sm:$0xff] %v565_v49  ;;  %v569_v51 = vld [vmem:[%s2501_s28 + $0x990] sm:$0xff] }
  0x2d   : > { %568 = vst [vmem:[%s2506_s29 + $0x190] sm:$0xff] %v567_v50  ;;  %v571_v52 = vld [vmem:[%s2501_s28 + $0x9c0] sm:$0xff]  ;;  %v573_v53 = vld [vmem:[%s2501_s28 + $0x9f0] sm:$0xff]  ;;  %570 = vst [vmem:[%s2506_s29 + $0x198] sm:$0xff] %v569_v51 }
  0x2e   : > { %572 = vst [vmem:[%s2506_s29 + $0x1a0] sm:$0xff] %v571_v52  ;;  %574 = vst [vmem:[%s2506_s29 + $0x1a8] sm:$0xff] %v573_v53  ;;  %v575_v54 = vld [vmem:[%s2501_s28 + $0xa20] sm:$0xff]  ;;  %v577_v55 = vld [vmem:[%s2501_s28 + $0xa50] sm:$0xff] }
  0x2f   : > { %v579_v56 = vld [vmem:[%s2501_s28 + $0xa80] sm:$0xff]  ;;  %576 = vst [vmem:[%s2506_s29 + $0x1b0] sm:$0xff] %v575_v54  ;;  %578 = vst [vmem:[%s2506_s29 + $0x1b8] sm:$0xff] %v577_v55  ;;  %v581_v57 = vld [vmem:[%s2501_s28 + $0xab0] sm:$0xff] }
  0x30   : > { %580 = vst [vmem:[%s2506_s29 + $0x1c0] sm:$0xff] %v579_v56  ;;  %v583_v58 = vld [vmem:[%s2501_s28 + $0xae0] sm:$0xff]  ;;  %v585_v59 = vld [vmem:[%s2501_s28 + $0xb10] sm:$0xff]  ;;  %582 = vst [vmem:[%s2506_s29 + $0x1c8] sm:$0xff] %v581_v57 }
  0x31   : > { %584 = vst [vmem:[%s2506_s29 + $0x1d0] sm:$0xff] %v583_v58  ;;  %586 = vst [vmem:[%s2506_s29 + $0x1d8] sm:$0xff] %v585_v59  ;;  %v587_v60 = vld [vmem:[%s2501_s28 + $0xb40] sm:$0xff]  ;;  %v589_v61 = vld [vmem:[%s2501_s28 + $0xb70] sm:$0xff] }
  0x32   : > { %v591_v62 = vld [vmem:[%s2501_s28 + $0xba0] sm:$0xff]  ;;  %588 = vst [vmem:[%s2506_s29 + $0x1e0] sm:$0xff] %v587_v60  ;;  %590 = vst [vmem:[%s2506_s29 + $0x1e8] sm:$0xff] %v589_v61  ;;  %v593_v63 = vld [vmem:[%s2501_s28 + $0xbd0] sm:$0xff] }
  0x33   : > { %592 = vst [vmem:[%s2506_s29 + $0x1f0] sm:$0xff] %v591_v62  ;;  %v595_v0 = vld [vmem:[%s2501_s28 + $0xc00] sm:$0xff]  ;;  %v597_v1 = vld [vmem:[%s2501_s28 + $0xc30] sm:$0xff]  ;;  %594 = vst [vmem:[%s2506_s29 + $0x1f8] sm:$0xff] %v593_v63 }
  0x34   : > { %596 = vst [vmem:[%s2506_s29 + $0x200] sm:$0xff] %v595_v0  ;;  %598 = vst [vmem:[%s2506_s29 + $0x208] sm:$0xff] %v597_v1  ;;  %v599_v2 = vld [vmem:[%s2501_s28 + $0xc60] sm:$0xff]  ;;  %v601_v3 = vld [vmem:[%s2501_s28 + $0xc90] sm:$0xff] }
  0x35   : > { %v603_v4 = vld [vmem:[%s2501_s28 + $0xcc0] sm:$0xff]  ;;  %600 = vst [vmem:[%s2506_s29 + $0x210] sm:$0xff] %v599_v2  ;;  %602 = vst [vmem:[%s2506_s29 + $0x218] sm:$0xff] %v601_v3  ;;  %v605_v5 = vld [vmem:[%s2501_s28 + $0xcf0] sm:$0xff] }
  0x36   : > { %604 = vst [vmem:[%s2506_s29 + $0x220] sm:$0xff] %v603_v4  ;;  %v607_v6 = vld [vmem:[%s2501_s28 + $0xd20] sm:$0xff]  ;;  %v609_v7 = vld [vmem:[%s2501_s28 + $0xd50] sm:$0xff]  ;;  %606 = vst [vmem:[%s2506_s29 + $0x228] sm:$0xff] %v605_v5 }
  0x37   : > { %608 = vst [vmem:[%s2506_s29 + $0x230] sm:$0xff] %v607_v6  ;;  %610 = vst [vmem:[%s2506_s29 + $0x238] sm:$0xff] %v609_v7  ;;  %v611_v8 = vld [vmem:[%s2501_s28 + $0xd80] sm:$0xff]  ;;  %v613_v9 = vld [vmem:[%s2501_s28 + $0xdb0] sm:$0xff] }
  0x38   : > { %v615_v10 = vld [vmem:[%s2501_s28 + $0xde0] sm:$0xff]  ;;  %612 = vst [vmem:[%s2506_s29 + $0x240] sm:$0xff] %v611_v8  ;;  %614 = vst [vmem:[%s2506_s29 + $0x248] sm:$0xff] %v613_v9  ;;  %v617_v11 = vld [vmem:[%s2501_s28 + $0xe10] sm:$0xff] }
  0x39   : > { %616 = vst [vmem:[%s2506_s29 + $0x250] sm:$0xff] %v615_v10  ;;  %v619_v12 = vld [vmem:[%s2501_s28 + $0xe40] sm:$0xff]  ;;  %v621_v13 = vld [vmem:[%s2501_s28 + $0xe70] sm:$0xff]  ;;  %618 = vst [vmem:[%s2506_s29 + $0x258] sm:$0xff] %v617_v11 }
  0x3a   : > { %620 = vst [vmem:[%s2506_s29 + $0x260] sm:$0xff] %v619_v12  ;;  %622 = vst [vmem:[%s2506_s29 + $0x268] sm:$0xff] %v621_v13  ;;  %v623_v14 = vld [vmem:[%s2501_s28 + $0xea0] sm:$0xff]  ;;  %v625_v15 = vld [vmem:[%s2501_s28 + $0xed0] sm:$0xff] }
  0x3b   : > { %v627_v16 = vld [vmem:[%s2501_s28 + $0xf00] sm:$0xff]  ;;  %624 = vst [vmem:[%s2506_s29 + $0x270] sm:$0xff] %v623_v14  ;;  %626 = vst [vmem:[%s2506_s29 + $0x278] sm:$0xff] %v625_v15  ;;  %v629_v17 = vld [vmem:[%s2501_s28 + $0xf30] sm:$0xff] }
  0x3c   : > { %628 = vst [vmem:[%s2506_s29 + $0x280] sm:$0xff] %v627_v16  ;;  %v631_v18 = vld [vmem:[%s2501_s28 + $0xf60] sm:$0xff]  ;;  %v633_v19 = vld [vmem:[%s2501_s28 + $0xf90] sm:$0xff]  ;;  %630 = vst [vmem:[%s2506_s29 + $0x288] sm:$0xff] %v629_v17 }
  0x3d   : > { %632 = vst [vmem:[%s2506_s29 + $0x290] sm:$0xff] %v631_v18  ;;  %634 = vst [vmem:[%s2506_s29 + $0x298] sm:$0xff] %v633_v19  ;;  %v635_v20 = vld [vmem:[%s2501_s28 + $0xfc0] sm:$0xff]  ;;  %v637_v21 = vld [vmem:[%s2501_s28 + $0xff0] sm:$0xff] }
  0x3e   : > { %v639_v22 = vld [vmem:[%s2501_s28 + $0x1020] sm:$0xff]  ;;  %636 = vst [vmem:[%s2506_s29 + $0x2a0] sm:$0xff] %v635_v20  ;;  %638 = vst [vmem:[%s2506_s29 + $0x2a8] sm:$0xff] %v637_v21  ;;  %v641_v23 = vld [vmem:[%s2501_s28 + $0x1050] sm:$0xff] }
  0x3f   : > { %640 = vst [vmem:[%s2506_s29 + $0x2b0] sm:$0xff] %v639_v22  ;;  %v643_v24 = vld [vmem:[%s2501_s28 + $0x1080] sm:$0xff]  ;;  %v645_v25 = vld [vmem:[%s2501_s28 + $0x10b0] sm:$0xff]  ;;  %642 = vst [vmem:[%s2506_s29 + $0x2b8] sm:$0xff] %v641_v23 }
  0x40   : > { %644 = vst [vmem:[%s2506_s29 + $0x2c0] sm:$0xff] %v643_v24  ;;  %646 = vst [vmem:[%s2506_s29 + $0x2c8] sm:$0xff] %v645_v25  ;;  %v647_v26 = vld [vmem:[%s2501_s28 + $0x10e0] sm:$0xff]  ;;  %v649_v27 = vld [vmem:[%s2501_s28 + $0x1110] sm:$0xff] }
  0x41   : > { %v651_v28 = vld [vmem:[%s2501_s28 + $0x1140] sm:$0xff]  ;;  %648 = vst [vmem:[%s2506_s29 + $0x2d0] sm:$0xff] %v647_v26  ;;  %650 = vst [vmem:[%s2506_s29 + $0x2d8] sm:$0xff] %v649_v27  ;;  %v653_v29 = vld [vmem:[%s2501_s28 + $0x1170] sm:$0xff] }
  0x42   : > { %652 = vst [vmem:[%s2506_s29 + $0x2e0] sm:$0xff] %v651_v28  ;;  %v655_v30 = vld [vmem:[%s2501_s28 + $0x11a0] sm:$0xff]  ;;  %v657_v31 = vld [vmem:[%s2501_s28 + $0x11d0] sm:$0xff]  ;;  %654 = vst [vmem:[%s2506_s29 + $0x2e8] sm:$0xff] %v653_v29 }
  0x43   : > { %656 = vst [vmem:[%s2506_s29 + $0x2f0] sm:$0xff] %v655_v30  ;;  %658 = vst [vmem:[%s2506_s29 + $0x2f8] sm:$0xff] %v657_v31  ;;  %v659_v32 = vld [vmem:[%s2501_s28 + $0x1200] sm:$0xff]  ;;  %v661_v33 = vld [vmem:[%s2501_s28 + $0x1230] sm:$0xff] }
  0x44   : > { %v663_v34 = vld [vmem:[%s2501_s28 + $0x1260] sm:$0xff]  ;;  %660 = vst [vmem:[%s2506_s29 + $0x300] sm:$0xff] %v659_v32  ;;  %662 = vst [vmem:[%s2506_s29 + $0x308] sm:$0xff] %v661_v33  ;;  %v665_v35 = vld [vmem:[%s2501_s28 + $0x1290] sm:$0xff] }
  0x45   : > { %664 = vst [vmem:[%s2506_s29 + $0x310] sm:$0xff] %v663_v34  ;;  %v667_v36 = vld [vmem:[%s2501_s28 + $0x12c0] sm:$0xff]  ;;  %v669_v37 = vld [vmem:[%s2501_s28 + $0x12f0] sm:$0xff]  ;;  %666 = vst [vmem:[%s2506_s29 + $0x318] sm:$0xff] %v665_v35 }
  0x46   : > { %668 = vst [vmem:[%s2506_s29 + $0x320] sm:$0xff] %v667_v36  ;;  %670 = vst [vmem:[%s2506_s29 + $0x328] sm:$0xff] %v669_v37  ;;  %v671_v38 = vld [vmem:[%s2501_s28 + $0x1320] sm:$0xff]  ;;  %v673_v39 = vld [vmem:[%s2501_s28 + $0x1350] sm:$0xff] }
  0x47   : > { %v675_v40 = vld [vmem:[%s2501_s28 + $0x1380] sm:$0xff]  ;;  %672 = vst [vmem:[%s2506_s29 + $0x330] sm:$0xff] %v671_v38  ;;  %674 = vst [vmem:[%s2506_s29 + $0x338] sm:$0xff] %v673_v39  ;;  %v677_v41 = vld [vmem:[%s2501_s28 + $0x13b0] sm:$0xff] }
  0x48   : > { %676 = vst [vmem:[%s2506_s29 + $0x340] sm:$0xff] %v675_v40  ;;  %v679_v42 = vld [vmem:[%s2501_s28 + $0x13e0] sm:$0xff]  ;;  %v681_v43 = vld [vmem:[%s2501_s28 + $0x1410] sm:$0xff]  ;;  %678 = vst [vmem:[%s2506_s29 + $0x348] sm:$0xff] %v677_v41 }
  0x49   : > { %680 = vst [vmem:[%s2506_s29 + $0x350] sm:$0xff] %v679_v42  ;;  %682 = vst [vmem:[%s2506_s29 + $0x358] sm:$0xff] %v681_v43  ;;  %v683_v44 = vld [vmem:[%s2501_s28 + $0x1440] sm:$0xff]  ;;  %v685_v45 = vld [vmem:[%s2501_s28 + $0x1470] sm:$0xff] }
  0x4a   : > { %v687_v46 = vld [vmem:[%s2501_s28 + $0x14a0] sm:$0xff]  ;;  %684 = vst [vmem:[%s2506_s29 + $0x360] sm:$0xff] %v683_v44  ;;  %686 = vst [vmem:[%s2506_s29 + $0x368] sm:$0xff] %v685_v45  ;;  %v689_v47 = vld [vmem:[%s2501_s28 + $0x14d0] sm:$0xff] }
  0x4b   : > { %688 = vst [vmem:[%s2506_s29 + $0x370] sm:$0xff] %v687_v46  ;;  %v691_v48 = vld [vmem:[%s2501_s28 + $0x1500] sm:$0xff]  ;;  %v693_v49 = vld [vmem:[%s2501_s28 + $0x1530] sm:$0xff]  ;;  %690 = vst [vmem:[%s2506_s29 + $0x378] sm:$0xff] %v689_v47 }
  0x4c   : > { %692 = vst [vmem:[%s2506_s29 + $0x380] sm:$0xff] %v691_v48  ;;  %694 = vst [vmem:[%s2506_s29 + $0x388] sm:$0xff] %v693_v49  ;;  %v695_v50 = vld [vmem:[%s2501_s28 + $0x1560] sm:$0xff]  ;;  %v697_v51 = vld [vmem:[%s2501_s28 + $0x1590] sm:$0xff] }
  0x4d   : > { %v699_v52 = vld [vmem:[%s2501_s28 + $0x15c0] sm:$0xff]  ;;  %696 = vst [vmem:[%s2506_s29 + $0x390] sm:$0xff] %v695_v50  ;;  %698 = vst [vmem:[%s2506_s29 + $0x398] sm:$0xff] %v697_v51  ;;  %v701_v53 = vld [vmem:[%s2501_s28 + $0x15f0] sm:$0xff] }
  0x4e   : > { %700 = vst [vmem:[%s2506_s29 + $0x3a0] sm:$0xff] %v699_v52  ;;  %v703_v54 = vld [vmem:[%s2501_s28 + $0x1620] sm:$0xff]  ;;  %v705_v55 = vld [vmem:[%s2501_s28 + $0x1650] sm:$0xff]  ;;  %702 = vst [vmem:[%s2506_s29 + $0x3a8] sm:$0xff] %v701_v53 }
  0x4f   : > { %704 = vst [vmem:[%s2506_s29 + $0x3b0] sm:$0xff] %v703_v54  ;;  %706 = vst [vmem:[%s2506_s29 + $0x3b8] sm:$0xff] %v705_v55  ;;  %v707_v56 = vld [vmem:[%s2501_s28 + $0x1680] sm:$0xff]  ;;  %v709_v57 = vld [vmem:[%s2501_s28 + $0x16b0] sm:$0xff] }
  0x50   : > { %v711_v58 = vld [vmem:[%s2501_s28 + $0x16e0] sm:$0xff]  ;;  %708 = vst [vmem:[%s2506_s29 + $0x3c0] sm:$0xff] %v707_v56  ;;  %710 = vst [vmem:[%s2506_s29 + $0x3c8] sm:$0xff] %v709_v57  ;;  %v713_v59 = vld [vmem:[%s2501_s28 + $0x1710] sm:$0xff] }
  0x51   : > { %712 = vst [vmem:[%s2506_s29 + $0x3d0] sm:$0xff] %v711_v58  ;;  %v715_v60 = vld [vmem:[%s2501_s28 + $0x1740] sm:$0xff]  ;;  %v717_v61 = vld [vmem:[%s2501_s28 + $0x1770] sm:$0xff]  ;;  %714 = vst [vmem:[%s2506_s29 + $0x3d8] sm:$0xff] %v713_v59 }
  0x52   : > { %716 = vst [vmem:[%s2506_s29 + $0x3e0] sm:$0xff] %v715_v60  ;;  %718 = vst [vmem:[%s2506_s29 + $0x3e8] sm:$0xff] %v717_v61  ;;  %v719_v62 = vld [vmem:[%s2501_s28 + $0x17a0] sm:$0xff]  ;;  %v721_v63 = vld [vmem:[%s2501_s28 + $0x17d0] sm:$0xff] }
  0x53   : > { %720 = vst [vmem:[%s2506_s29 + $0x3f0] sm:$0xff] %v719_v62  ;;  %722 = vst [vmem:[%s2506_s29 + $0x3f8] sm:$0xff] %v721_v63 }
  0x54 PF: > { %p2010_p8 = scmp.ge.s32.totalorder %s2431_s16, 1  ;;  %p735_p9 = scmp.lt.s32.totalorder %s2431_s16, 7 }
  0x56   : > { %p736_p10 = pnand %p2010_p8, %p735_p9 }
  0x57   : > { %s742_s30 = sand.u32 (!%p736_p10), 1, %s2415_s12   ;;  %s2013_s4 = sshll.u32 (!%p736_p10), %s2423_s14, 1 }
  0x58   : > { %739 = sbr.rel (%p736_p10) target bundleno = 441 (0x1b9), region = 66  ;;  %s2011_s10 = sshll.u32 (!%p736_p10), %s742_s30, 10 }
  0x59   : > { %s2794_s19 = scalar_lea.vmem (!%p736_p10), [#allocation3], %s2011_s10  ;;  %p793_p11 = scmp.lt.s32.totalorder (!%p736_p10), %s2013_s4, 11 }
  0x5a   : > { %s2012_s8 = sshll.u32 (!%p736_p10), %s742_s30, 4 }
  0x5b   : > { %s777_s9 = scalar_lea.vmem (!%p736_p10), [#allocation4], %s2012_s8 }
  0x5d   : > { %v2767_v0 = vld [vmem:[%s2985_s0] sm:$0xff]  ;;  %v2777_v2 = vld [vmem:[%s2985_s0 + $0x8] sm:$0xff]  ;;  %v2201_v8 = vld [vmem:[%s2794_s19 + $0x74] ss:$8 sps:$4 sm:$0xff]   ;;  %s2997_s4 = smov (!%p793_p11, %s2013_s4), 11  ;;  %s2160_s12 = sshll.u32 (%p2488_p6), %s2423_s14, 3 }
  0x5e   : > { %v2772_v1 = vld [vmem:[%s2985_s0 + $0x20] sm:$0xff]  ;;  %v2788_v5 = vld [vmem:[%s2985_s0 + $0x28] sm:$0xff]  ;;  %v2203_v9 = vld [vmem:[%s2794_s19 + $0x174] ss:$8 sps:$4 sm:$0xff]   ;;  %1627 = vmatprep.subr.bf16.mxu0 %v2201_v8  ;;  %s795_s7 = scalar_lea.vmem %s2987_s2, %s2997_s4  ;;  %s1860_s11 = scalar_lea.vmem (%p2488_p6), %s2988_s3, %s2160_s12 }
  0x5f   : > { %v2014_v3 = vcombine.low %v2767_v0, %v2772_v1  ;;  %v2015_v4 = vcombine.high %v2767_v0, %v2772_v1  ;;  %v2016_v6 = vcombine.low %v2777_v2, %v2788_v5  ;;  %v2017_v7 = vcombine.high %v2777_v2, %v2788_v5  ;;  %v2205_v10 = vld [vmem:[%s2794_s19 + $0x70] ss:$8 sps:$4 sm:$0xff]   ;;  %1670 = vmatprep.subr.bf16.mxu1 %v2203_v9  ;;  %v2207_v12 = vld [vmem:[%s2794_s19 + $0x64] ss:$8 sps:$4 sm:$0xff]   ;;  %v2211_v14 = vld [vmem:[%s2794_s19 + $0x60] ss:$8 sps:$4 sm:$0xff]  }
  0x60   : > { %v2206_v11 = vld [vmem:[%s2794_s19 + $0x170] ss:$8 sps:$4 sm:$0xff]   ;;  %1628 = vmatpush1.bf16.msra.mxu0 %v2205_v10  ;;  %v2209_v13 = vld [vmem:[%s2794_s19 + $0x164] ss:$8 sps:$4 sm:$0xff]   ;;  %v2212_v15 = vld [vmem:[%s2794_s19 + $0x160] ss:$8 sps:$4 sm:$0xff]  }
  0x61   : > { %1659 = vmatprep.mubr.bf16.mxu0 %v2015_v4  ;;  %1702 = vmatprep.mubr.bf16.mxu1 %v2017_v7  ;;  %v2213_v16 = vld [vmem:[%s2794_s19 + $0x54] ss:$8 sps:$4 sm:$0xff]   ;;  %v2217_v18 = vld [vmem:[%s2794_s19 + $0x50] ss:$8 sps:$4 sm:$0xff]   ;;  %v2219_v20 = vld [vmem:[%s2794_s19 + $0x44] ss:$8 sps:$4 sm:$0xff]  }
  0x62   : > { %1671 = vmatpush1.bf16.msra.mxu1 %v2206_v11  ;;  %1629 = vmatprep.subr.bf16.mxu0 %v2207_v12  ;;  %v2215_v17 = vld [vmem:[%s2794_s19 + $0x154] ss:$8 sps:$4 sm:$0xff]   ;;  %v2218_v19 = vld [vmem:[%s2794_s19 + $0x150] ss:$8 sps:$4 sm:$0xff]   ;;  %v2221_v21 = vld [vmem:[%s2794_s19 + $0x144] ss:$8 sps:$4 sm:$0xff]  }
  0x63   : > { %1672 = vmatprep.subr.bf16.mxu1 %v2209_v13  ;;  %v2223_v22 = vld [vmem:[%s2794_s19 + $0x40] ss:$8 sps:$4 sm:$0xff]   ;;  %v2225_v24 = vld [vmem:[%s2794_s19 + $0x34] ss:$8 sps:$4 sm:$0xff]   ;;  %v2229_v26 = vld [vmem:[%s2794_s19 + $0x30] ss:$8 sps:$4 sm:$0xff]  }
  0x64   : > { %1630 = vmatpush1.bf16.msra.mxu0 %v2211_v14  ;;  %v2224_v23 = vld [vmem:[%s2794_s19 + $0x140] ss:$8 sps:$4 sm:$0xff]   ;;  %v2227_v25 = vld [vmem:[%s2794_s19 + $0x134] ss:$8 sps:$4 sm:$0xff]   ;;  %v2230_v27 = vld [vmem:[%s2794_s19 + $0x130] ss:$8 sps:$4 sm:$0xff]  }
  0x65   : > { %1631 = vmatprep.subr.bf16.mxu0 %v2213_v16  ;;  %v2231_v28 = vld [vmem:[%s2794_s19 + $0x24] ss:$8 sps:$4 sm:$0xff]   ;;  %v2235_v30 = vld [vmem:[%s2794_s19 + $0x20] ss:$8 sps:$4 sm:$0xff]   ;;  %v2237_v32 = vld [vmem:[%s2794_s19 + $0x14] ss:$8 sps:$4 sm:$0xff]  }
  0x66   : > { %1673 = vmatpush1.bf16.msra.mxu1 %v2212_v15  ;;  %v2233_v29 = vld [vmem:[%s2794_s19 + $0x124] ss:$8 sps:$4 sm:$0xff]   ;;  %v2236_v31 = vld [vmem:[%s2794_s19 + $0x120] ss:$8 sps:$4 sm:$0xff]   ;;  %v2239_v33 = vld [vmem:[%s2794_s19 + $0x114] ss:$8 sps:$4 sm:$0xff]  }
  0x67   : > { %1674 = vmatprep.subr.bf16.mxu1 %v2215_v17  ;;  %v2241_v34 = vld [vmem:[%s2794_s19 + $0x10] ss:$8 sps:$4 sm:$0xff]   ;;  %v2243_v36 = vld [vmem:[%s2794_s19 + $0x4] ss:$8 sps:$4 sm:$0xff]   ;;  %v2247_v38 = vld [vmem:[%s2794_s19] ss:$8 sps:$4 sm:$0xff]  }
  0x68   : > { %1632 = vmatpush1.bf16.msra.mxu0 %v2217_v18  ;;  %v2242_v35 = vld [vmem:[%s2794_s19 + $0x110] ss:$8 sps:$4 sm:$0xff]   ;;  %v2245_v37 = vld [vmem:[%s2794_s19 + $0x104] ss:$8 sps:$4 sm:$0xff]   ;;  %v2248_v39 = vld [vmem:[%s2794_s19 + $0x100] ss:$8 sps:$4 sm:$0xff]  }
  0x69   : > { %1633 = vmatprep.subr.bf16.mxu0 %v2219_v20  ;;  %v2249_v40 = vld [vmem:[%s2794_s19 + $0xf4] ss:$8 sps:$4 sm:$0xff]   ;;  %v2253_v42 = vld [vmem:[%s2794_s19 + $0xf0] ss:$8 sps:$4 sm:$0xff]   ;;  %v2255_v44 = vld [vmem:[%s2794_s19 + $0xe4] ss:$8 sps:$4 sm:$0xff]  }
  0x6a   : > { %1675 = vmatpush1.bf16.msra.mxu1 %v2218_v19  ;;  %v2251_v41 = vld [vmem:[%s2794_s19 + $0x1f4] ss:$8 sps:$4 sm:$0xff]   ;;  %v2254_v43 = vld [vmem:[%s2794_s19 + $0x1f0] ss:$8 sps:$4 sm:$0xff]   ;;  %v2257_v45 = vld [vmem:[%s2794_s19 + $0x1e4] ss:$8 sps:$4 sm:$0xff]  }
  0x6b   : > { %1676 = vmatprep.subr.bf16.mxu1 %v2221_v21  ;;  %v2259_v46 = vld [vmem:[%s2794_s19 + $0xe0] ss:$8 sps:$4 sm:$0xff]   ;;  %v2261_v48 = vld [vmem:[%s2794_s19 + $0xd4] ss:$8 sps:$4 sm:$0xff]   ;;  %v2265_v50 = vld [vmem:[%s2794_s19 + $0xd0] ss:$8 sps:$4 sm:$0xff]  }
  0x6c   : > { %1634 = vmatpush1.bf16.msra.mxu0 %v2223_v22  ;;  %v2260_v47 = vld [vmem:[%s2794_s19 + $0x1e0] ss:$8 sps:$4 sm:$0xff]   ;;  %v2263_v49 = vld [vmem:[%s2794_s19 + $0x1d4] ss:$8 sps:$4 sm:$0xff]   ;;  %v2266_v51 = vld [vmem:[%s2794_s19 + $0x1d0] ss:$8 sps:$4 sm:$0xff]  }
  0x6d   : > { %1635 = vmatprep.subr.bf16.mxu0 %v2225_v24  ;;  %v2267_v52 = vld [vmem:[%s2794_s19 + $0xc4] ss:$8 sps:$4 sm:$0xff]   ;;  %v2271_v54 = vld [vmem:[%s2794_s19 + $0xc0] ss:$8 sps:$4 sm:$0xff]   ;;  %v2273_v56 = vld [vmem:[%s2794_s19 + $0xb4] ss:$8 sps:$4 sm:$0xff]  }
  0x6e   : > { %1677 = vmatpush1.bf16.msra.mxu1 %v2224_v23  ;;  %v2269_v53 = vld [vmem:[%s2794_s19 + $0x1c4] ss:$8 sps:$4 sm:$0xff]   ;;  %v2272_v55 = vld [vmem:[%s2794_s19 + $0x1c0] ss:$8 sps:$4 sm:$0xff]   ;;  %v2275_v57 = vld [vmem:[%s2794_s19 + $0x1b4] ss:$8 sps:$4 sm:$0xff]  }
  0x6f   : > { %1678 = vmatprep.subr.bf16.mxu1 %v2227_v25  ;;  %v2277_v58 = vld [vmem:[%s2794_s19 + $0xb0] ss:$8 sps:$4 sm:$0xff]   ;;  %v2279_v60 = vld [vmem:[%s2794_s19 + $0xa4] ss:$8 sps:$4 sm:$0xff]   ;;  %v2283_v62 = vld [vmem:[%s2794_s19 + $0xa0] ss:$8 sps:$4 sm:$0xff]  }
  0x70   : > { %1636 = vmatpush1.bf16.msra.mxu0 %v2229_v26  ;;  %v2278_v59 = vld [vmem:[%s2794_s19 + $0x1b0] ss:$8 sps:$4 sm:$0xff]   ;;  %v2281_v61 = vld [vmem:[%s2794_s19 + $0x1a4] ss:$8 sps:$4 sm:$0xff]   ;;  %v2284_v63 = vld [vmem:[%s2794_s19 + $0x1a0] ss:$8 sps:$4 sm:$0xff]  }
  0x71   : > { %1637 = vmatprep.subr.bf16.mxu0 %v2231_v28  ;;  %v2285_v4 = vld [vmem:[%s2794_s19 + $0x94] ss:$8 sps:$4 sm:$0xff]   ;;  %v2289_v8 = vld [vmem:[%s2794_s19 + $0x90] ss:$8 sps:$4 sm:$0xff]   ;;  %v2291_v10 = vld [vmem:[%s2794_s19 + $0x84] ss:$8 sps:$4 sm:$0xff]  }
  0x72   : > { %1679 = vmatpush1.bf16.msra.mxu1 %v2230_v27  ;;  %v2287_v7 = vld [vmem:[%s2794_s19 + $0x194] ss:$8 sps:$4 sm:$0xff]   ;;  %v2290_v9 = vld [vmem:[%s2794_s19 + $0x190] ss:$8 sps:$4 sm:$0xff]   ;;  %v2293_v11 = vld [vmem:[%s2794_s19 + $0x184] ss:$8 sps:$4 sm:$0xff]  }
  0x73   : > { %1680 = vmatprep.subr.bf16.mxu1 %v2233_v29  ;;  %v2295_v12 = vld [vmem:[%s2794_s19 + $0x80] ss:$8 sps:$4 sm:$0xff]   ;;  %v2299_v14 = vld [vmem:[%s2794_s19 + $0x274] ss:$8 sps:$4 sm:$0xff]   ;;  %v2297_v18 = vld [vmem:[%s2794_s19 + $0x270] ss:$8 sps:$4 sm:$0xff]  }
  0x74   : > { %1638 = vmatpush1.bf16.msra.mxu0 %v2235_v30  ;;  %v2296_v13 = vld [vmem:[%s2794_s19 + $0x180] ss:$8 sps:$4 sm:$0xff]   ;;  %v2302_v15 = vld [vmem:[%s2794_s19 + $0x374] ss:$8 sps:$4 sm:$0xff]   ;;  %v2300_v19 = vld [vmem:[%s2794_s19 + $0x370] ss:$8 sps:$4 sm:$0xff]  }
  0x75   : > { %1639 = vmatprep.subr.bf16.mxu0 %v2237_v32  ;;  %v2865_v16 = vld [vmem:[%s2985_s0 + $0x10] sm:$0xff]  ;;  %v2305_v20 = vld [vmem:[%s2794_s19 + $0x264] ss:$8 sps:$4 sm:$0xff]   ;;  %v2303_v23 = vld [vmem:[%s2794_s19 + $0x260] ss:$8 sps:$4 sm:$0xff]  }
  0x76   : > { %1681 = vmatpush1.bf16.msra.mxu1 %v2236_v31  ;;  %v2870_v17 = vld [vmem:[%s2985_s0 + $0x30] sm:$0xff]  ;;  %v2308_v21 = vld [vmem:[%s2794_s19 + $0x364] ss:$8 sps:$4 sm:$0xff]   ;;  %v2306_v24 = vld [vmem:[%s2794_s19 + $0x360] ss:$8 sps:$4 sm:$0xff]  }
  0x77   : > { %1682 = vmatprep.subr.bf16.mxu1 %v2239_v33  ;;  %v2019_v22 = vcombine.high %v2865_v16, %v2870_v17  ;;  %v2311_v25 = vld [vmem:[%s2794_s19 + $0x254] ss:$8 sps:$4 sm:$0xff]   ;;  %v2309_v0 = vld [vmem:[%s2794_s19 + $0x250] ss:$8 sps:$4 sm:$0xff]   ;;  %v2317_v2 = vld [vmem:[%s2794_s19 + $0x244] ss:$8 sps:$4 sm:$0xff]  }
  0x78   : > { %1640 = vmatpush1.bf16.msra.mxu0 %v2241_v34  ;;  %v2314_v26 = vld [vmem:[%s2794_s19 + $0x354] ss:$8 sps:$4 sm:$0xff]   ;;  %v2312_v1 = vld [vmem:[%s2794_s19 + $0x350] ss:$8 sps:$4 sm:$0xff]   ;;  %v2315_v5 = vld [vmem:[%s2794_s19 + $0x240] ss:$8 sps:$4 sm:$0xff]  }
  0x79   : > { %1641 = vmatprep.subr.bf16.mxu0 %v2243_v36  ;;  %v2323_v27 = vld [vmem:[%s2794_s19 + $0x234] ss:$8 sps:$4 sm:$0xff]   ;;  %v2321_v29 = vld [vmem:[%s2794_s19 + $0x230] ss:$8 sps:$4 sm:$0xff]   ;;  %v2329_v31 = vld [vmem:[%s2794_s19 + $0x224] ss:$8 sps:$4 sm:$0xff]  }
  0x7a   : > { %1683 = vmatpush1.bf16.msra.mxu1 %v2242_v35  ;;  %v2326_v28 = vld [vmem:[%s2794_s19 + $0x334] ss:$8 sps:$4 sm:$0xff]   ;;  %v2324_v30 = vld [vmem:[%s2794_s19 + $0x330] ss:$8 sps:$4 sm:$0xff]   ;;  %v2332_v32 = vld [vmem:[%s2794_s19 + $0x324] ss:$8 sps:$4 sm:$0xff]  }
  0x7b   : > { %1684 = vmatprep.subr.bf16.mxu1 %v2245_v37  ;;  %v2327_v33 = vld [vmem:[%s2794_s19 + $0x220] ss:$8 sps:$4 sm:$0xff]   ;;  %v2904_v34 = vld [vmem:[%s2985_s0 + $0x18] sm:$0xff] }
  0x7c   : > { %1642 = vmatpush1.bf16.msra.mxu0 %v2247_v38  ;;  %v2330_v35 = vld [vmem:[%s2794_s19 + $0x320] ss:$8 sps:$4 sm:$0xff]   ;;  %v2335_v36 = vld [vmem:[%s2794_s19 + $0x214] ss:$8 sps:$4 sm:$0xff]  }
  0x7d   : > { %1643 = vmatprep.subr.bf16.mxu0 %v2249_v40  ;;  %v2338_v37 = vld [vmem:[%s2794_s19 + $0x314] ss:$8 sps:$4 sm:$0xff]   ;;  %v2333_v40 = vld [vmem:[%s2794_s19 + $0x210] ss:$8 sps:$4 sm:$0xff]  }
  0x7e   : > { %1685 = vmatpush1.bf16.msra.mxu1 %v2248_v39  ;;  %v2912_v38 = vld [vmem:[%s2985_s0 + $0x38] sm:$0xff] }
  0x7f   : > { %1686 = vmatprep.subr.bf16.mxu1 %v2251_v41  ;;  %v2021_v39 = vcombine.high %v2904_v34, %v2912_v38  ;;  %v2336_v41 = vld [vmem:[%s2794_s19 + $0x310] ss:$8 sps:$4 sm:$0xff]  }
  0x80   : > { %1644 = vmatpush2.bf16.msra.mxu0 %v2253_v42  ;;  %v2341_v42 = vld [vmem:[%s2794_s19 + $0x204] ss:$8 sps:$4 sm:$0xff]  }
  0x81   : > { %1645 = vmatprep.subr.bf16.mxu0 %v2255_v44  ;;  %v2339_v44 = vld [vmem:[%s2794_s19 + $0x200] ss:$8 sps:$4 sm:$0xff]  }
  0x82   : > { %1687 = vmatpush2.bf16.msra.mxu1 %v2254_v43  ;;  %v2344_v43 = vld [vmem:[%s2794_s19 + $0x304] ss:$8 sps:$4 sm:$0xff]  }
  0x83   : > { %1688 = vmatprep.subr.bf16.mxu1 %v2257_v45  ;;  %v2342_v45 = vld [vmem:[%s2794_s19 + $0x300] ss:$8 sps:$4 sm:$0xff]  }
  0x84   : > { %1646 = vmatpush2.bf16.msra.mxu0 %v2259_v46  ;;  %v2347_v46 = vld [vmem:[%s2794_s19 + $0x2f4] ss:$8 sps:$4 sm:$0xff]  }
  0x85   : > { %1647 = vmatprep.subr.bf16.mxu0 %v2261_v48  ;;  %v2345_v48 = vld [vmem:[%s2794_s19 + $0x2f0] ss:$8 sps:$4 sm:$0xff]  }
  0x86   : > { %1689 = vmatpush2.bf16.msra.mxu1 %v2260_v47  ;;  %v2350_v47 = vld [vmem:[%s2794_s19 + $0x3f4] ss:$8 sps:$4 sm:$0xff]  }
  0x87   : > { %1690 = vmatprep.subr.bf16.mxu1 %v2263_v49  ;;  %v2348_v49 = vld [vmem:[%s2794_s19 + $0x3f0] ss:$8 sps:$4 sm:$0xff]  }
  0x88   : > { %1648 = vmatpush2.bf16.msra.mxu0 %v2265_v50  ;;  %v2353_v50 = vld [vmem:[%s2794_s19 + $0x2e4] ss:$8 sps:$4 sm:$0xff]  }
  0x89   : > { %1649 = vmatprep.subr.bf16.mxu0 %v2267_v52  ;;  %v2351_v52 = vld [vmem:[%s2794_s19 + $0x2e0] ss:$8 sps:$4 sm:$0xff]  }
  0x8a   : > { %1691 = vmatpush2.bf16.msra.mxu1 %v2266_v51  ;;  %v2356_v51 = vld [vmem:[%s2794_s19 + $0x3e4] ss:$8 sps:$4 sm:$0xff]  }
  0x8b   : > { %1692 = vmatprep.subr.bf16.mxu1 %v2269_v53  ;;  %v2354_v53 = vld [vmem:[%s2794_s19 + $0x3e0] ss:$8 sps:$4 sm:$0xff]  }
  0x8c   : > { %1650 = vmatpush2.bf16.msra.mxu0 %v2271_v54  ;;  %v2359_v54 = vld [vmem:[%s2794_s19 + $0x2d4] ss:$8 sps:$4 sm:$0xff]  }
  0x8d   : > { %1651 = vmatprep.subr.bf16.mxu0 %v2273_v56  ;;  %v2357_v56 = vld [vmem:[%s2794_s19 + $0x2d0] ss:$8 sps:$4 sm:$0xff]  }
  0x8e   : > { %1693 = vmatpush2.bf16.msra.mxu1 %v2272_v55  ;;  %v2362_v55 = vld [vmem:[%s2794_s19 + $0x3d4] ss:$8 sps:$4 sm:$0xff]  }
  0x8f   : > { %1694 = vmatprep.subr.bf16.mxu1 %v2275_v57  ;;  %v2360_v57 = vld [vmem:[%s2794_s19 + $0x3d0] ss:$8 sps:$4 sm:$0xff]  }
  0x90   : > { %1652 = vmatpush2.bf16.msra.mxu0 %v2277_v58  ;;  %v2365_v58 = vld [vmem:[%s2794_s19 + $0x2c4] ss:$8 sps:$4 sm:$0xff]  }
  0x91   : > { %1653 = vmatprep.subr.bf16.mxu0 %v2279_v60  ;;  %v2363_v60 = vld [vmem:[%s2794_s19 + $0x2c0] ss:$8 sps:$4 sm:$0xff]  }
  0x92   : > { %1695 = vmatpush2.bf16.msra.mxu1 %v2278_v59  ;;  %v2368_v59 = vld [vmem:[%s2794_s19 + $0x3c4] ss:$8 sps:$4 sm:$0xff]  }
  0x93   : > { %1696 = vmatprep.subr.bf16.mxu1 %v2281_v61  ;;  %v2366_v61 = vld [vmem:[%s2794_s19 + $0x3c0] ss:$8 sps:$4 sm:$0xff]  }
  0x94   : > { %1654 = vmatpush2.bf16.msra.mxu0 %v2283_v62  ;;  %v2371_v62 = vld [vmem:[%s2794_s19 + $0x2b4] ss:$8 sps:$4 sm:$0xff]  }
  0x95   : > { %1655 = vmatprep.subr.bf16.mxu0 %v2285_v4  ;;  %v2369_v4 = vld [vmem:[%s2794_s19 + $0x2b0] ss:$8 sps:$4 sm:$0xff]  }
  0x96   : > { %1697 = vmatpush2.bf16.msra.mxu1 %v2284_v63  ;;  %v2374_v63 = vld [vmem:[%s2794_s19 + $0x3b4] ss:$8 sps:$4 sm:$0xff]  }
  0x97   : > { %1698 = vmatprep.subr.bf16.mxu1 %v2287_v7  ;;  %v2372_v7 = vld [vmem:[%s2794_s19 + $0x3b0] ss:$8 sps:$4 sm:$0xff]  }
  0x98   : > { %1656 = vmatpush2.bf16.msra.mxu0 %v2289_v8  ;;  %v2377_v8 = vld [vmem:[%s2794_s19 + $0x2a4] ss:$8 sps:$4 sm:$0xff]  }
  0x99   : > { %1657 = vmatprep.subr.bf16.mxu0 %v2291_v10  ;;  %v2375_v10 = vld [vmem:[%s2794_s19 + $0x2a0] ss:$8 sps:$4 sm:$0xff]  }
  0x9a   : > { %1699 = vmatpush2.bf16.msra.mxu1 %v2290_v9  ;;  %v2380_v9 = vld [vmem:[%s2794_s19 + $0x3a4] ss:$8 sps:$4 sm:$0xff]  }
  0x9b   : > { %1700 = vmatprep.subr.bf16.mxu1 %v2293_v11  ;;  %v2378_v11 = vld [vmem:[%s2794_s19 + $0x3a0] ss:$8 sps:$4 sm:$0xff]  }
  0x9c   : > { %1658 = vmatpush2.bf16.msra.mxu0 %v2295_v12  ;;  %v2383_v12 = vld [vmem:[%s2794_s19 + $0x294] ss:$8 sps:$4 sm:$0xff]  }
  0x9d   : > { %1713 = vmatprep.subr.bf16.mxu0 %v2299_v14  ;;  %v2381_v14 = vld [vmem:[%s2794_s19 + $0x290] ss:$8 sps:$4 sm:$0xff]  }
  0x9e   : > { %1701 = vmatpush2.bf16.msra.mxu1 %v2296_v13  ;;  %v2386_v13 = vld [vmem:[%s2794_s19 + $0x394] ss:$8 sps:$4 sm:$0xff]  }
  0x9f   : > { %1756 = vmatprep.subr.bf16.mxu1 %v2302_v15  ;;  %1660 = vmatmul.mubr.bf16.vlgmr.msra.gmra.mxu0 %v2014_v3  ;;  %v2320_v3 = vld [vmem:[%s2794_s19 + $0x344] ss:$8 sps:$4 sm:$0xff]   ;;  %v2384_v15 = vld [vmem:[%s2794_s19 + $0x390] ss:$8 sps:$4 sm:$0xff]  }
  0xa0   : > { %1714 = vmatpush1.bf16.msra.mxu0 %v2297_v18  ;;  %1745 = vmatprep.mubr.bf16.mxu0 %v2019_v22  ;;  %v2389_v18 = vld [vmem:[%s2794_s19 + $0x284] ss:$8 sps:$4 sm:$0xff]   ;;  %v2018_v22 = vcombine.low %v2865_v16, %v2870_v17 }
  0xa1   : > { %1703 = vmatmul.mubr.bf16.vlgmr.msra.gmra.mxu1 %v2016_v6  ;;  %1715 = vmatprep.subr.bf16.mxu0 %v2305_v20  ;;  %v2318_v6 = vld [vmem:[%s2794_s19 + $0x340] ss:$8 sps:$4 sm:$0xff]  }
  0xa2   : > { %1757 = vmatpush1.bf16.msra.mxu1 %v2300_v19  ;;  %1788 = vmatprep.mubr.bf16.mxu1 %v2021_v39  ;;  %v2392_v19 = vld [vmem:[%s2794_s19 + $0x384] ss:$8 sps:$4 sm:$0xff]   ;;  %v2387_v20 = vld [vmem:[%s2794_s19 + $0x280] ss:$8 sps:$4 sm:$0xff]  }
  0xa3   : > { %1758 = vmatprep.subr.bf16.mxu1 %v2308_v21  ;;  %v2390_v21 = vld [vmem:[%s2794_s19 + $0x380] ss:$8 sps:$4 sm:$0xff]  }
  0xa4   : > { %1716 = vmatpush1.bf16.msra.mxu0 %v2303_v23  ;;  %v2020_v23 = vcombine.low %v2904_v34, %v2912_v38 }
  0xa5   : > { %1717 = vmatprep.subr.bf16.mxu0 %v2311_v25 }
  0xa6   : > { %1759 = vmatpush1.bf16.msra.mxu1 %v2306_v24 }
  0xa7   : > { %1760 = vmatprep.subr.bf16.mxu1 %v2314_v26  ;;  %v1816_v26 = vlaneseq }
  0xa8   : > { %1718 = vmatpush1.bf16.msra.mxu0 %v2309_v0 }
  0xa9   : > { %1719 = vmatprep.subr.bf16.mxu0 %v2317_v2  ;;  %v1817_v2 = vshrl.u32 %v1816_v26, 7 }
  0xaa   : > { %1761 = vmatpush1.bf16.msra.mxu1 %v2312_v1 }
  0xab   : > { %1762 = vmatprep.subr.bf16.mxu1 %v2320_v3  ;;  %v1818_v16 = vsub.s32 0, %v1817_v2 }
  0xac   : > { %1720 = vmatpush1.bf16.msra.mxu0 %v2315_v5 }
  0xad   : > { %1721 = vmatprep.subr.bf16.mxu0 %v2323_v27  ;;  %v1814_v27 = vld [vmem:[%s795_s7] sm:$0x3] }
  0xae   : > { %1763 = vmatpush1.bf16.msra.mxu1 %v2318_v6  ;;  %v1819_v34 = vrot.slane %v1814_v27, %v1818_v16 }
  0xaf   : > { %1764 = vmatprep.subr.bf16.mxu1 %v2326_v28 }
  0xb0   : > { %1722 = vmatpush1.bf16.msra.mxu0 %v2321_v29  ;;  %v1822_v29 = vsub.s32 1, %v1817_v2 }
  0xb1   : > { %1723 = vmatprep.subr.bf16.mxu0 %v2329_v31 }
  0xb2   : > { %1765 = vmatpush1.bf16.msra.mxu1 %v2324_v30 }
  0xb3   : > { %1766 = vmatprep.subr.bf16.mxu1 %v2332_v32 }
  0xb4   : > { %1724 = vmatpush1.bf16.msra.mxu0 %v2327_v33 }
  0xb5   : > { %1725 = vmatprep.subr.bf16.mxu0 %v2335_v36 }
  0xb6   : > { %1767 = vmatpush1.bf16.msra.mxu1 %v2330_v35 }
  0xb7   : > { %1768 = vmatprep.subr.bf16.mxu1 %v2338_v37 }
  0xb8   : > { %1726 = vmatpush1.bf16.msra.mxu0 %v2333_v40  ;;  %v1823_v40 = vrot.slane %v1814_v27, %v1822_v29 }
  0xb9   : > { %1727 = vmatprep.subr.bf16.mxu0 %v2341_v42 }
  0xba   : > { %1769 = vmatpush1.bf16.msra.mxu1 %v2336_v41 }
  0xbb   : > { %1770 = vmatprep.subr.bf16.mxu1 %v2344_v43 }
  0xbc   : > { %1728 = vmatpush1.bf16.msra.mxu0 %v2339_v44 }
  0xbd   : > { %1729 = vmatprep.subr.bf16.mxu0 %v2347_v46 }
  0xbe   : > { %1771 = vmatpush1.bf16.msra.mxu1 %v2342_v45 }
  0xbf   : > { %1772 = vmatprep.subr.bf16.mxu1 %v2350_v47 }
  0xc0   : > { %1730 = vmatpush2.bf16.msra.mxu0 %v2345_v48 }
  0xc1   : > { %1731 = vmatprep.subr.bf16.mxu0 %v2353_v50 }
  0xc2   : > { %1773 = vmatpush2.bf16.msra.mxu1 %v2348_v49 }
  0xc3   : > { %1774 = vmatprep.subr.bf16.mxu1 %v2356_v51 }
  0xc4   : > { %1732 = vmatpush2.bf16.msra.mxu0 %v2351_v52 }
  0xc5   : > { %1733 = vmatprep.subr.bf16.mxu0 %v2359_v54 }
  0xc6   : > { %1775 = vmatpush2.bf16.msra.mxu1 %v2354_v53 }
  0xc7   : > { %1776 = vmatprep.subr.bf16.mxu1 %v2362_v55 }
  0xc8   : > { %1734 = vmatpush2.bf16.msra.mxu0 %v2357_v56 }
  0xc9   : > { %1735 = vmatprep.subr.bf16.mxu0 %v2365_v58 }
  0xca   : > { %1777 = vmatpush2.bf16.msra.mxu1 %v2360_v57 }
  0xcb   : > { %1778 = vmatprep.subr.bf16.mxu1 %v2368_v59 }
  0xcc   : > { %1736 = vmatpush2.bf16.msra.mxu0 %v2363_v60 }
  0xcd   : > { %1737 = vmatprep.subr.bf16.mxu0 %v2371_v62 }
  0xce   : > { %1779 = vmatpush2.bf16.msra.mxu1 %v2366_v61 }
  0xcf   : > { %1780 = vmatprep.subr.bf16.mxu1 %v2374_v63 }
  0xd0   : > { %1738 = vmatpush2.bf16.msra.mxu0 %v2369_v4 }
  0xd1   : > { %1739 = vmatprep.subr.bf16.mxu0 %v2377_v8 }
  0xd2   : > { %1781 = vmatpush2.bf16.msra.mxu1 %v2372_v7 }
  0xd3   : > { %1782 = vmatprep.subr.bf16.mxu1 %v2380_v9 }
  0xd4   : > { %1740 = vmatpush2.bf16.msra.mxu0 %v2375_v10 }
  0xd5   : > { %1741 = vmatprep.subr.bf16.mxu0 %v2383_v12 }
  0xd6   : > { %1783 = vmatpush2.bf16.msra.mxu1 %v2378_v11 }
  0xd7   : > { %1784 = vmatprep.subr.bf16.mxu1 %v2386_v13 }
  0xd8   : > { %1742 = vmatpush2.bf16.msra.mxu0 %v2381_v14 }
  0xd9   : > { %1743 = vmatprep.subr.bf16.mxu0 %v2389_v18 }
  0xda   : > { %1785 = vmatpush2.bf16.msra.mxu1 %v2384_v15 }
  0xdb   : > { %1786 = vmatprep.subr.bf16.mxu1 %v2392_v19 }
  0xdc   : > { %1744 = vmatpush2.bf16.msra.mxu0 %v2387_v20 }
  0xde   : > { %1787 = vmatpush2.bf16.msra.mxu1 %v2390_v21 }
  0xdf   : > { %1746 = vmatmul.mubr.bf16.vlgmr.msra.gmra.mxu0 %v2018_v22 }
  0xe1   : > { %1789 = vmatmul.mubr.bf16.vlgmr.msra.gmra.mxu1 %v2020_v23 }
 0x15f   : > { %v1661_v24 = vpop.f32.mrf.mxu0 }
 0x161   : > { %v1704_v25 = vpop.f32.mrf.mxu1  ;;  %v1663_v0 = vpop.f32.mrf.mxu0 }
 0x162   : > { %v1705_v28 = vadd.f32 %v1704_v25, %v1661_v24 }
 0x163   : > { %v1706_v1 = vpop.f32.mrf.mxu1  ;;  %v1665_v3 = vpop.f32.mrf.mxu0 }
 0x164   : > { %v1707_v32 = vadd.f32 %v1706_v1, %v1663_v0 }
 0x165   : > { %v1708_v5 = vpop.f32.mrf.mxu1  ;;  %v1667_v17 = vpop.f32.mrf.mxu0 }
 0x166   : > { %v1709_v37 = vadd.f32 %v1708_v5, %v1665_v3 }
 0x167   : > { %v1710_v6 = vpop.f32.mrf.mxu1 }
 0x168   : > { %v1711_v43 = vadd.f32 %v1710_v6, %v1667_v17 }
 0x19f   : > { %v1747_v30 = vpop.f32.mrf.mxu0 }
 0x1a0   : > { %v1748_v33 = vadd.f32 %v1747_v30, %v1705_v28 }
 0x1a1   : > { %v1790_v31 = vpop.f32.mrf.mxu1  ;;  %v1749_v35 = vpop.f32.mrf.mxu0 }
 0x1a2   : > { %v1791_v38 = vadd.f32 %v1790_v31, %v1748_v33  ;;  %v1750_v39 = vadd.f32 %v1749_v35, %v1707_v32 }
 0x1a3   : > { %v1792_v36 = vpop.f32.mrf.mxu1  ;;  %v1751_v41 = vpop.f32.mrf.mxu0 }
 0x1a4   : > { %v1826_v44 = vadd.f32 %v1819_v34, %v1791_v38  ;;  %v1793_v45 = vadd.f32 %v1792_v36, %v1750_v39  ;;  %v1752_v46 = vadd.f32 %v1751_v41, %v1709_v37 }
 0x1a5   : > { %v1794_v42 = vpop.f32.mrf.mxu1  ;;  %v1753_v47 = vpop.f32.mrf.mxu0 }
 0x1a6   : > { %v1827_v48 = vadd.f32 %v1823_v40, %v1793_v45  ;;  %v1795_v49 = vadd.f32 %v1794_v42, %v1752_v46  ;;  %v1754_v50 = vadd.f32 %v1753_v47, %v1711_v43  ;;  %v1830_v52 = vmax.f32 %v1826_v44, 0.0 }
 0x1a7   : > { %v1796_v51 = vpop.f32.mrf.mxu1 }
 0x1a8   : > { %v1831_v53 = vmax.f32 %v1827_v48, 0.0  ;;  %v1828_v54 = vadd.f32 %v1819_v34, %v1795_v49  ;;  %v1797_v55 = vadd.f32 %v1796_v51, %v1754_v50 }
 0x1aa   : > { %v2158_v56 = vpack.c.bf16 %v1831_v53, %v1830_v52  ;;  %v1829_v57 = vadd.f32 %v1823_v40, %v1797_v55  ;;  %v1832_v58 = vmax.f32 %v1828_v54, 0.0 }
 0x1ac   : > { %1846 = vst [vmem:[%s777_s9] sm:$0xff] %v2158_v56  ;;  %v1833_v59 = vmax.f32 %v1829_v57, 0.0  ;;  %1854 = sbr.rel (!%p2488_p6) target bundleno = 441 (0x1b9), region = 82 }
 0x1ae   : > { %v2159_v60 = vpack.c.bf16 %v1833_v59, %v1832_v58 }
 0x1b0   : > { %1847 = vst [vmem:[%s777_s9 + $0x8] sm:$0xff] %v2159_v60 }
 0x1b3   : > { %v1891_v61 = vld [vmem:[%s777_s9] sm:$0xff] }
 0x1b4   : > { %1892 = vst [vmem:[%s1860_s11] sm:$0xff] %v1891_v61 }
 0x1b7   : > { %v1893_v62 = vld [vmem:[%s777_s9 + $0x8] sm:$0xff] }
 0x1b8   : > { %1894 = vst [vmem:[%s1860_s11 + $0x30] sm:$0xff] %v1893_v62 }
 0x1b9 PF: > { %s13_s16 = sadd.s32 1, %s2431_s16   ;;  %s2990_s12 = smov %s2419_s13 }
 0x1ba   : > { %p10_p12 = scmp.ge.s32.totalorder %s13_s16, 8   ;;  %s2991_s13 = smov %s2493_s22 }
 0x1bb   : > { %s2992_s14 = smov %s2427_s15  ;;  %s2993_s15 = smov %s2995_s17 }
 0x1bc   :  { %12 = sbr.rel (!%p10_p12) target bundleno = 3 (0x3), region = 157 }

// kernel: forward.13
= control target key start
LH: loop header
LB: loop body
LE: loop exit
PB: predicated region body
PF: predicated region fallthrough
CT: control target
= control target key end

     0   :  { %s3173_s0 = inlined_call_operand.vmem [shape: bf16[16,3072], index: 0, kind: input, shape index: {}]   ;;  %s3174_s1 = inlined_call_operand.vmem [shape: bf16[3072,1536], index: 1, kind: input, shape index: {}]   ;;  %s3175_s2 = inlined_call_operand.vmem [shape: f32[1,1536], index: 2, kind: input, shape index: {}]   ;;  %s3176_s3 = inlined_call_operand.vmem [shape: bf16[16,1536], index: 3, kind: output, shape index: {}]  }
   0x1   :  { %3178 = sst [smem:[#allocation7_spill]] %s3173_s0 }
   0x2   :  { %3179 = sst [smem:[#allocation8_spill]] %s3174_s1 }
   0x3   :  { %s2579_s12 = smov 0   ;;  %s2581_s13 = smov 0  }
   0x4   :  { %s2583_s14 = smov 0   ;;  %s2585_s15 = smov 0  }
   0x5   :  { %s2587_s16 = smov 0   ;;  %s2589_s17 = smov 0  }
   0x6   :  { %s2591_s18 = smov 0   ;;  %s2593_s19 = smov 0  }
   0x7   :  { %s2595_s20 = smov 0   ;;  %s2597_s21 = smov 0  }
   0x8   :  { %s2599_s22 = smov 0  }
   0x9 LB: > { %s2022_s23 = sadd.s32 4294967295, %s2556_s22   ;;  %s25_s24 = sadd.s32 1, %s2548_s20  ;;  %s2556_s22 = sphi %s2599_s22, %s13_s22   ;;  %s2552_s21 = sphi %s2597_s21, %s3196_s21   ;;  %s2548_s20 = sphi %s2595_s20, %s3195_s20   ;;  %s2544_s19 = sphi %s2593_s19, %s3194_s19   ;;  %s2540_s18 = sphi %s2591_s18, %s3193_s18   ;;  %s2536_s17 = sphi %s2589_s17, %s3192_s17   ;;  %s2532_s16 = sphi %s2587_s16, %s3191_s16   ;;  %s2528_s15 = sphi %s2585_s15, %s3190_s15   ;;  %s2524_s14 = sphi %s2583_s14, %s3189_s14   ;;  %s2520_s13 = sphi %s2581_s13, %s3188_s13   ;;  %s2516_s12 = sphi %s2579_s12, %s3187_s12  }
   0xa   : > { %p26_p0 = scmp.ge.s32.totalorder %s25_s24, 3  ;;  %s28_s25 = sadd.s32 1, %s2552_s21 }
   0xb   : > { %s41_s26 = sadd.s32 1, %s2536_s17  ;;  %p48_p1 = scmp.ne.s32.totalorder %s2536_s17, %s2532_s16 }
   0xc   : > { %s3198_s24 = smov (%p26_p0, %s25_s24), 0  ;;  %s3200_s25 = smov (!%p26_p0, %s28_s25), %s2552_s21 }
   0xd   : > { %s37_s27 = ssub.s32 %s2548_s20, %s3198_s24  ;;  %p49_p2 = scmp.eq.s32.totalorder %s2556_s22, 0 }
   0xe   : > { %p30_p3 = scmp.ge.s32.totalorder %s3200_s25, 6  ;;  %p39_p4 = scmp.eq.s32.totalorder %s37_s27, 0 }
   0xf   : > { %p2646_p5 = por %p49_p2, %p48_p1  ;;  %s69_s29 = sadd.s32 1, %s2528_s15 }
  0x10   : > { %s3202_s25 = smov (%p30_p3, %s3200_s25), 0  ;;  %p76_p6 = scmp.ne.s32.totalorder %s2528_s15, %s2524_s14 }
  0x11   : > { %3181 = sst [smem:[#allocation6_spill]] %s3202_s25  ;;  %s65_s4 = ssub.s32 %s2552_s21, %s3202_s25 }
  0x12   : > { %s2654_s30 = scalar_select %p39_p4, %s2536_s17, %s41_s26  }
  0x13   : > { %s66_s5 = sor.u32 %s65_s4, %s37_s27  ;;  %p121_p7 = scmp.eq.s32.totalorder %s65_s4, 0 }
  0x14   : > { %p67_p8 = scmp.eq.s32.totalorder %s66_s5, 0  ;;  %p2660_p9 = por %p76_p6, %p49_p2 }
  0x15   : > { %s123_s7 = sadd.s32 1, %s2520_s13  ;;  %p133_p10 = scmp.ne.s32.totalorder %s2520_s13, %s2516_s12 }
  0x16   : > { %s2668_s8 = scalar_select %p67_p8, %s2528_s15, %s69_s29  }
  0x17   : > { %s2671_s9 = scalar_select %p121_p7, %s2520_s13, %s123_s7  }
  0x18   : > { %p134_p11 = scmp.eq.s32.totalorder %s2022_s23, 17  ;;  %p2025_p13 = scmp.ge.s32.totalorder %s2556_s22, 18 }
  0x1a   : > { %p2673_p12 = por %p134_p11, %p133_p10  ;;  %156 = sbr.rel (%p2025_p13) target bundleno = 119 (0x77), region = 16 }
  0x1f   : > { %159 = sbr.rel (!%p2646_p5) target bundleno = 45 (0x2d), region = 20  ;;  %s161_s11 = sand.u32 (%p2646_p5), 1, %s2536_s17  }
  0x20   : > { %s2184_s26 = sshll.u32 (%p2646_p5), %s2548_s20, 5  ;;  %s2026_s27 = sshll.u32 (%p2646_p5), %s161_s11, 6 }
  0x21   : > { %s3184_s0 = sld [smem:[#allocation7_spill]] (%p2646_p5)  ;;  %s163_s23 = scalar_lea.vmem (%p2646_p5), [#allocation3], %s2026_s27 }
  0x27   : > { %s169_s5 = scalar_lea.vmem %s3184_s0, %s2184_s26 }
  0x28   : > { %v182_v0 = vld [vmem:[%s169_s5] sm:$0xff]  ;;  %v184_v1 = vld [vmem:[%s169_s5 + $0x8] sm:$0xff]  ;;  %v186_v2 = vld [vmem:[%s169_s5 + $0x10] sm:$0xff] }
  0x29   : > { %183 = vst [vmem:[%s163_s23] sm:$0xff] %v182_v0  ;;  %185 = vst [vmem:[%s163_s23 + $0x8] sm:$0xff] %v184_v1  ;;  %v188_v3 = vld [vmem:[%s169_s5 + $0x18] sm:$0xff]  ;;  %v190_v4 = vld [vmem:[%s169_s5 + $0x60] sm:$0xff] }
  0x2a   : > { %187 = vst [vmem:[%s163_s23 + $0x10] sm:$0xff] %v186_v2  ;;  %v192_v5 = vld [vmem:[%s169_s5 + $0x68] sm:$0xff]  ;;  %189 = vst [vmem:[%s163_s23 + $0x18] sm:$0xff] %v188_v3  ;;  %v194_v6 = vld [vmem:[%s169_s5 + $0x70] sm:$0xff] }
  0x2b   : > { %191 = vst [vmem:[%s163_s23 + $0x20] sm:$0xff] %v190_v4  ;;  %193 = vst [vmem:[%s163_s23 + $0x28] sm:$0xff] %v192_v5  ;;  %v196_v7 = vld [vmem:[%s169_s5 + $0x78] sm:$0xff] }
  0x2c   : > { %195 = vst [vmem:[%s163_s23 + $0x30] sm:$0xff] %v194_v6  ;;  %197 = vst [vmem:[%s163_s23 + $0x38] sm:$0xff] %v196_v7 }
  0x2d PF: > { %203 = sbr.rel (!%p2660_p9) target bundleno = 119 (0x77), region = 43  ;;  %s205_s28 = sand.u32 (%p2660_p9), 1, %s2528_s15  }
  0x2e   : > { %s2031_s7 = sshll.u32 (%p2660_p9), %s2552_s21, 1  ;;  %s2029_s11 = sshll.u32 (%p2660_p9), %s205_s28, 10 }
  0x2f   : > { %s2188_s26 = smul.u32 (%p2660_p9), 1536, %s2548_s20  ;;  %s3185_s1 = sld [smem:[#allocation8_spill]] (%p2660_p9) }
  0x30   : > { %s2698_s6 = scalar_lea.vmem (%p2660_p9), [#allocation4], %s2029_s11 }
  0x31   : > { %s211_s27 = sadd.s32 (%p2660_p9), %s2188_s26, %s2031_s7 }
  0x32   : > { %s2033_s29 = sshll.u32 %s211_s27, 2 }
  0x35   : > { %s2693_s25 = scalar_lea.vmem %s3185_s1, %s2033_s29 }
  0x36   : > { %v496_v8 = vld [vmem:[%s2693_s25] sm:$0xff]  ;;  %v498_v9 = vld [vmem:[%s2693_s25 + $0x30] sm:$0xff] }
  0x37   : > { %v500_v10 = vld [vmem:[%s2693_s25 + $0x60] sm:$0xff]  ;;  %497 = vst [vmem:[%s2698_s6] sm:$0xff] %v496_v8  ;;  %499 = vst [vmem:[%s2698_s6 + $0x8] sm:$0xff] %v498_v9  ;;  %v502_v11 = vld [vmem:[%s2693_s25 + $0x90] sm:$0xff] }
  0x38   : > { %501 = vst [vmem:[%s2698_s6 + $0x10] sm:$0xff] %v500_v10  ;;  %v504_v12 = vld [vmem:[%s2693_s25 + $0xc0] sm:$0xff]  ;;  %v506_v13 = vld [vmem:[%s2693_s25 + $0xf0] sm:$0xff]  ;;  %503 = vst [vmem:[%s2698_s6 + $0x18] sm:$0xff] %v502_v11 }
  0x39   : > { %505 = vst [vmem:[%s2698_s6 + $0x20] sm:$0xff] %v504_v12  ;;  %507 = vst [vmem:[%s2698_s6 + $0x28] sm:$0xff] %v506_v13  ;;  %v508_v14 = vld [vmem:[%s2693_s25 + $0x120] sm:$0xff]  ;;  %v510_v15 = vld [vmem:[%s2693_s25 + $0x150] sm:$0xff] }
  0x3a   : > { %v512_v16 = vld [vmem:[%s2693_s25 + $0x180] sm:$0xff]  ;;  %509 = vst [vmem:[%s2698_s6 + $0x30] sm:$0xff] %v508_v14  ;;  %511 = vst [vmem:[%s2698_s6 + $0x38] sm:$0xff] %v510_v15  ;;  %v514_v17 = vld [vmem:[%s2693_s25 + $0x1b0] sm:$0xff] }
  0x3b   : > { %513 = vst [vmem:[%s2698_s6 + $0x40] sm:$0xff] %v512_v16  ;;  %v516_v18 = vld [vmem:[%s2693_s25 + $0x1e0] sm:$0xff]  ;;  %v518_v19 = vld [vmem:[%s2693_s25 + $0x210] sm:$0xff]  ;;  %515 = vst [vmem:[%s2698_s6 + $0x48] sm:$0xff] %v514_v17 }
  0x3c   : > { %517 = vst [vmem:[%s2698_s6 + $0x50] sm:$0xff] %v516_v18  ;;  %519 = vst [vmem:[%s2698_s6 + $0x58] sm:$0xff] %v518_v19  ;;  %v520_v20 = vld [vmem:[%s2693_s25 + $0x240] sm:$0xff]  ;;  %v522_v21 = vld [vmem:[%s2693_s25 + $0x270] sm:$0xff] }
  0x3d   : > { %v524_v22 = vld [vmem:[%s2693_s25 + $0x2a0] sm:$0xff]  ;;  %521 = vst [vmem:[%s2698_s6 + $0x60] sm:$0xff] %v520_v20  ;;  %523 = vst [vmem:[%s2698_s6 + $0x68] sm:$0xff] %v522_v21  ;;  %v526_v23 = vld [vmem:[%s2693_s25 + $0x2d0] sm:$0xff] }
  0x3e   : > { %525 = vst [vmem:[%s2698_s6 + $0x70] sm:$0xff] %v524_v22  ;;  %v528_v24 = vld [vmem:[%s2693_s25 + $0x300] sm:$0xff]  ;;  %v530_v25 = vld [vmem:[%s2693_s25 + $0x330] sm:$0xff]  ;;  %527 = vst [vmem:[%s2698_s6 + $0x78] sm:$0xff] %v526_v23 }
  0x3f   : > { %529 = vst [vmem:[%s2698_s6 + $0x80] sm:$0xff] %v528_v24  ;;  %531 = vst [vmem:[%s2698_s6 + $0x88] sm:$0xff] %v530_v25  ;;  %v532_v26 = vld [vmem:[%s2693_s25 + $0x360] sm:$0xff]  ;;  %v534_v27 = vld [vmem:[%s2693_s25 + $0x390] sm:$0xff] }
  0x40   : > { %v536_v28 = vld [vmem:[%s2693_s25 + $0x3c0] sm:$0xff]  ;;  %533 = vst [vmem:[%s2698_s6 + $0x90] sm:$0xff] %v532_v26  ;;  %535 = vst [vmem:[%s2698_s6 + $0x98] sm:$0xff] %v534_v27  ;;  %v538_v29 = vld [vmem:[%s2693_s25 + $0x3f0] sm:$0xff] }
  0x41   : > { %537 = vst [vmem:[%s2698_s6 + $0xa0] sm:$0xff] %v536_v28  ;;  %v540_v30 = vld [vmem:[%s2693_s25 + $0x420] sm:$0xff]  ;;  %v542_v31 = vld [vmem:[%s2693_s25 + $0x450] sm:$0xff]  ;;  %539 = vst [vmem:[%s2698_s6 + $0xa8] sm:$0xff] %v538_v29 }
  0x42   : > { %541 = vst [vmem:[%s2698_s6 + $0xb0] sm:$0xff] %v540_v30  ;;  %543 = vst [vmem:[%s2698_s6 + $0xb8] sm:$0xff] %v542_v31  ;;  %v544_v32 = vld [vmem:[%s2693_s25 + $0x480] sm:$0xff]  ;;  %v546_v33 = vld [vmem:[%s2693_s25 + $0x4b0] sm:$0xff] }
  0x43   : > { %v548_v34 = vld [vmem:[%s2693_s25 + $0x4e0] sm:$0xff]  ;;  %545 = vst [vmem:[%s2698_s6 + $0xc0] sm:$0xff] %v544_v32  ;;  %547 = vst [vmem:[%s2698_s6 + $0xc8] sm:$0xff] %v546_v33  ;;  %v550_v35 = vld [vmem:[%s2693_s25 + $0x510] sm:$0xff] }
  0x44   : > { %549 = vst [vmem:[%s2698_s6 + $0xd0] sm:$0xff] %v548_v34  ;;  %v552_v36 = vld [vmem:[%s2693_s25 + $0x540] sm:$0xff]  ;;  %v554_v37 = vld [vmem:[%s2693_s25 + $0x570] sm:$0xff]  ;;  %551 = vst [vmem:[%s2698_s6 + $0xd8] sm:$0xff] %v550_v35 }
  0x45   : > { %553 = vst [vmem:[%s2698_s6 + $0xe0] sm:$0xff] %v552_v36  ;;  %555 = vst [vmem:[%s2698_s6 + $0xe8] sm:$0xff] %v554_v37  ;;  %v556_v38 = vld [vmem:[%s2693_s25 + $0x5a0] sm:$0xff]  ;;  %v558_v39 = vld [vmem:[%s2693_s25 + $0x5d0] sm:$0xff] }
  0x46   : > { %v560_v40 = vld [vmem:[%s2693_s25 + $0x600] sm:$0xff]  ;;  %557 = vst [vmem:[%s2698_s6 + $0xf0] sm:$0xff] %v556_v38  ;;  %559 = vst [vmem:[%s2698_s6 + $0xf8] sm:$0xff] %v558_v39  ;;  %v562_v41 = vld [vmem:[%s2693_s25 + $0x630] sm:$0xff] }
  0x47   : > { %561 = vst [vmem:[%s2698_s6 + $0x100] sm:$0xff] %v560_v40  ;;  %v564_v42 = vld [vmem:[%s2693_s25 + $0x660] sm:$0xff]  ;;  %v566_v43 = vld [vmem:[%s2693_s25 + $0x690] sm:$0xff]  ;;  %563 = vst [vmem:[%s2698_s6 + $0x108] sm:$0xff] %v562_v41 }
  0x48   : > { %565 = vst [vmem:[%s2698_s6 + $0x110] sm:$0xff] %v564_v42  ;;  %567 = vst [vmem:[%s2698_s6 + $0x118] sm:$0xff] %v566_v43  ;;  %v568_v44 = vld [vmem:[%s2693_s25 + $0x6c0] sm:$0xff]  ;;  %v570_v45 = vld [vmem:[%s2693_s25 + $0x6f0] sm:$0xff] }
  0x49   : > { %v572_v46 = vld [vmem:[%s2693_s25 + $0x720] sm:$0xff]  ;;  %569 = vst [vmem:[%s2698_s6 + $0x120] sm:$0xff] %v568_v44  ;;  %571 = vst [vmem:[%s2698_s6 + $0x128] sm:$0xff] %v570_v45  ;;  %v574_v47 = vld [vmem:[%s2693_s25 + $0x750] sm:$0xff] }
  0x4a   : > { %573 = vst [vmem:[%s2698_s6 + $0x130] sm:$0xff] %v572_v46  ;;  %v576_v48 = vld [vmem:[%s2693_s25 + $0x780] sm:$0xff]  ;;  %v578_v49 = vld [vmem:[%s2693_s25 + $0x7b0] sm:$0xff]  ;;  %575 = vst [vmem:[%s2698_s6 + $0x138] sm:$0xff] %v574_v47 }
  0x4b   : > { %577 = vst [vmem:[%s2698_s6 + $0x140] sm:$0xff] %v576_v48  ;;  %579 = vst [vmem:[%s2698_s6 + $0x148] sm:$0xff] %v578_v49  ;;  %v580_v50 = vld [vmem:[%s2693_s25 + $0x7e0] sm:$0xff]  ;;  %v582_v51 = vld [vmem:[%s2693_s25 + $0x810] sm:$0xff] }
  0x4c   : > { %v584_v52 = vld [vmem:[%s2693_s25 + $0x840] sm:$0xff]  ;;  %581 = vst [vmem:[%s2698_s6 + $0x150] sm:$0xff] %v580_v50  ;;  %583 = vst [vmem:[%s2698_s6 + $0x158] sm:$0xff] %v582_v51  ;;  %v586_v53 = vld [vmem:[%s2693_s25 + $0x870] sm:$0xff] }
  0x4d   : > { %585 = vst [vmem:[%s2698_s6 + $0x160] sm:$0xff] %v584_v52  ;;  %v588_v54 = vld [vmem:[%s2693_s25 + $0x8a0] sm:$0xff]  ;;  %v590_v55 = vld [vmem:[%s2693_s25 + $0x8d0] sm:$0xff]  ;;  %587 = vst [vmem:[%s2698_s6 + $0x168] sm:$0xff] %v586_v53 }
  0x4e   : > { %589 = vst [vmem:[%s2698_s6 + $0x170] sm:$0xff] %v588_v54  ;;  %591 = vst [vmem:[%s2698_s6 + $0x178] sm:$0xff] %v590_v55  ;;  %v592_v56 = vld [vmem:[%s2693_s25 + $0x900] sm:$0xff]  ;;  %v594_v57 = vld [vmem:[%s2693_s25 + $0x930] sm:$0xff] }
  0x4f   : > { %v596_v58 = vld [vmem:[%s2693_s25 + $0x960] sm:$0xff]  ;;  %593 = vst [vmem:[%s2698_s6 + $0x180] sm:$0xff] %v592_v56  ;;  %595 = vst [vmem:[%s2698_s6 + $0x188] sm:$0xff] %v594_v57  ;;  %v598_v59 = vld [vmem:[%s2693_s25 + $0x990] sm:$0xff] }
  0x50   : > { %597 = vst [vmem:[%s2698_s6 + $0x190] sm:$0xff] %v596_v58  ;;  %v600_v60 = vld [vmem:[%s2693_s25 + $0x9c0] sm:$0xff]  ;;  %v602_v61 = vld [vmem:[%s2693_s25 + $0x9f0] sm:$0xff]  ;;  %599 = vst [vmem:[%s2698_s6 + $0x198] sm:$0xff] %v598_v59 }
  0x51   : > { %601 = vst [vmem:[%s2698_s6 + $0x1a0] sm:$0xff] %v600_v60  ;;  %603 = vst [vmem:[%s2698_s6 + $0x1a8] sm:$0xff] %v602_v61  ;;  %v604_v62 = vld [vmem:[%s2693_s25 + $0xa20] sm:$0xff]  ;;  %v606_v63 = vld [vmem:[%s2693_s25 + $0xa50] sm:$0xff] }
  0x52   : > { %v608_v0 = vld [vmem:[%s2693_s25 + $0xa80] sm:$0xff]  ;;  %605 = vst [vmem:[%s2698_s6 + $0x1b0] sm:$0xff] %v604_v62  ;;  %607 = vst [vmem:[%s2698_s6 + $0x1b8] sm:$0xff] %v606_v63  ;;  %v610_v1 = vld [vmem:[%s2693_s25 + $0xab0] sm:$0xff] }
  0x53   : > { %609 = vst [vmem:[%s2698_s6 + $0x1c0] sm:$0xff] %v608_v0  ;;  %v612_v2 = vld [vmem:[%s2693_s25 + $0xae0] sm:$0xff]  ;;  %v614_v3 = vld [vmem:[%s2693_s25 + $0xb10] sm:$0xff]  ;;  %611 = vst [vmem:[%s2698_s6 + $0x1c8] sm:$0xff] %v610_v1 }
  0x54   : > { %613 = vst [vmem:[%s2698_s6 + $0x1d0] sm:$0xff] %v612_v2  ;;  %615 = vst [vmem:[%s2698_s6 + $0x1d8] sm:$0xff] %v614_v3  ;;  %v616_v4 = vld [vmem:[%s2693_s25 + $0xb40] sm:$0xff]  ;;  %v618_v5 = vld [vmem:[%s2693_s25 + $0xb70] sm:$0xff] }
  0x55   : > { %v620_v6 = vld [vmem:[%s2693_s25 + $0xba0] sm:$0xff]  ;;  %617 = vst [vmem:[%s2698_s6 + $0x1e0] sm:$0xff] %v616_v4  ;;  %619 = vst [vmem:[%s2698_s6 + $0x1e8] sm:$0xff] %v618_v5  ;;  %v622_v7 = vld [vmem:[%s2693_s25 + $0xbd0] sm:$0xff] }
  0x56   : > { %621 = vst [vmem:[%s2698_s6 + $0x1f0] sm:$0xff] %v620_v6  ;;  %v624_v8 = vld [vmem:[%s2693_s25 + $0xc00] sm:$0xff]  ;;  %v626_v9 = vld [vmem:[%s2693_s25 + $0xc30] sm:$0xff]  ;;  %623 = vst [vmem:[%s2698_s6 + $0x1f8] sm:$0xff] %v622_v7 }
  0x57   : > { %625 = vst [vmem:[%s2698_s6 + $0x200] sm:$0xff] %v624_v8  ;;  %627 = vst [vmem:[%s2698_s6 + $0x208] sm:$0xff] %v626_v9  ;;  %v628_v10 = vld [vmem:[%s2693_s25 + $0xc60] sm:$0xff]  ;;  %v630_v11 = vld [vmem:[%s2693_s25 + $0xc90] sm:$0xff] }
  0x58   : > { %v632_v12 = vld [vmem:[%s2693_s25 + $0xcc0] sm:$0xff]  ;;  %629 = vst [vmem:[%s2698_s6 + $0x210] sm:$0xff] %v628_v10  ;;  %631 = vst [vmem:[%s2698_s6 + $0x218] sm:$0xff] %v630_v11  ;;  %v634_v13 = vld [vmem:[%s2693_s25 + $0xcf0] sm:$0xff] }
  0x59   : > { %633 = vst [vmem:[%s2698_s6 + $0x220] sm:$0xff] %v632_v12  ;;  %v636_v14 = vld [vmem:[%s2693_s25 + $0xd20] sm:$0xff]  ;;  %v638_v15 = vld [vmem:[%s2693_s25 + $0xd50] sm:$0xff]  ;;  %635 = vst [vmem:[%s2698_s6 + $0x228] sm:$0xff] %v634_v13 }
  0x5a   : > { %637 = vst [vmem:[%s2698_s6 + $0x230] sm:$0xff] %v636_v14  ;;  %639 = vst [vmem:[%s2698_s6 + $0x238] sm:$0xff] %v638_v15  ;;  %v640_v16 = vld [vmem:[%s2693_s25 + $0xd80] sm:$0xff]  ;;  %v642_v17 = vld [vmem:[%s2693_s25 + $0xdb0] sm:$0xff] }
  0x5b   : > { %v644_v18 = vld [vmem:[%s2693_s25 + $0xde0] sm:$0xff]  ;;  %641 = vst [vmem:[%s2698_s6 + $0x240] sm:$0xff] %v640_v16  ;;  %643 = vst [vmem:[%s2698_s6 + $0x248] sm:$0xff] %v642_v17  ;;  %v646_v19 = vld [vmem:[%s2693_s25 + $0xe10] sm:$0xff] }
  0x5c   : > { %645 = vst [vmem:[%s2698_s6 + $0x250] sm:$0xff] %v644_v18  ;;  %v648_v20 = vld [vmem:[%s2693_s25 + $0xe40] sm:$0xff]  ;;  %v650_v21 = vld [vmem:[%s2693_s25 + $0xe70] sm:$0xff]  ;;  %647 = vst [vmem:[%s2698_s6 + $0x258] sm:$0xff] %v646_v19 }
  0x5d   : > { %649 = vst [vmem:[%s2698_s6 + $0x260] sm:$0xff] %v648_v20  ;;  %651 = vst [vmem:[%s2698_s6 + $0x268] sm:$0xff] %v650_v21  ;;  %v652_v22 = vld [vmem:[%s2693_s25 + $0xea0] sm:$0xff]  ;;  %v654_v23 = vld [vmem:[%s2693_s25 + $0xed0] sm:$0xff] }
  0x5e   : > { %v656_v24 = vld [vmem:[%s2693_s25 + $0xf00] sm:$0xff]  ;;  %653 = vst [vmem:[%s2698_s6 + $0x270] sm:$0xff] %v652_v22  ;;  %655 = vst [vmem:[%s2698_s6 + $0x278] sm:$0xff] %v654_v23  ;;  %v658_v25 = vld [vmem:[%s2693_s25 + $0xf30] sm:$0xff] }
  0x5f   : > { %657 = vst [vmem:[%s2698_s6 + $0x280] sm:$0xff] %v656_v24  ;;  %v660_v26 = vld [vmem:[%s2693_s25 + $0xf60] sm:$0xff]  ;;  %v662_v27 = vld [vmem:[%s2693_s25 + $0xf90] sm:$0xff]  ;;  %659 = vst [vmem:[%s2698_s6 + $0x288] sm:$0xff] %v658_v25 }
  0x60   : > { %661 = vst [vmem:[%s2698_s6 + $0x290] sm:$0xff] %v660_v26  ;;  %663 = vst [vmem:[%s2698_s6 + $0x298] sm:$0xff] %v662_v27  ;;  %v664_v28 = vld [vmem:[%s2693_s25 + $0xfc0] sm:$0xff]  ;;  %v666_v29 = vld [vmem:[%s2693_s25 + $0xff0] sm:$0xff] }
  0x61   : > { %v668_v30 = vld [vmem:[%s2693_s25 + $0x1020] sm:$0xff]  ;;  %665 = vst [vmem:[%s2698_s6 + $0x2a0] sm:$0xff] %v664_v28  ;;  %667 = vst [vmem:[%s2698_s6 + $0x2a8] sm:$0xff] %v666_v29  ;;  %v670_v31 = vld [vmem:[%s2693_s25 + $0x1050] sm:$0xff] }
  0x62   : > { %669 = vst [vmem:[%s2698_s6 + $0x2b0] sm:$0xff] %v668_v30  ;;  %v672_v32 = vld [vmem:[%s2693_s25 + $0x1080] sm:$0xff]  ;;  %v674_v33 = vld [vmem:[%s2693_s25 + $0x10b0] sm:$0xff]  ;;  %671 = vst [vmem:[%s2698_s6 + $0x2b8] sm:$0xff] %v670_v31 }
  0x63   : > { %673 = vst [vmem:[%s2698_s6 + $0x2c0] sm:$0xff] %v672_v32  ;;  %675 = vst [vmem:[%s2698_s6 + $0x2c8] sm:$0xff] %v674_v33  ;;  %v676_v34 = vld [vmem:[%s2693_s25 + $0x10e0] sm:$0xff]  ;;  %v678_v35 = vld [vmem:[%s2693_s25 + $0x1110] sm:$0xff] }
  0x64   : > { %v680_v36 = vld [vmem:[%s2693_s25 + $0x1140] sm:$0xff]  ;;  %677 = vst [vmem:[%s2698_s6 + $0x2d0] sm:$0xff] %v676_v34  ;;  %679 = vst [vmem:[%s2698_s6 + $0x2d8] sm:$0xff] %v678_v35  ;;  %v682_v37 = vld [vmem:[%s2693_s25 + $0x1170] sm:$0xff] }
  0x65   : > { %681 = vst [vmem:[%s2698_s6 + $0x2e0] sm:$0xff] %v680_v36  ;;  %v684_v38 = vld [vmem:[%s2693_s25 + $0x11a0] sm:$0xff]  ;;  %v686_v39 = vld [vmem:[%s2693_s25 + $0x11d0] sm:$0xff]  ;;  %683 = vst [vmem:[%s2698_s6 + $0x2e8] sm:$0xff] %v682_v37 }
  0x66   : > { %685 = vst [vmem:[%s2698_s6 + $0x2f0] sm:$0xff] %v684_v38  ;;  %687 = vst [vmem:[%s2698_s6 + $0x2f8] sm:$0xff] %v686_v39  ;;  %v688_v40 = vld [vmem:[%s2693_s25 + $0x1200] sm:$0xff]  ;;  %v690_v41 = vld [vmem:[%s2693_s25 + $0x1230] sm:$0xff] }
  0x67   : > { %v692_v42 = vld [vmem:[%s2693_s25 + $0x1260] sm:$0xff]  ;;  %689 = vst [vmem:[%s2698_s6 + $0x300] sm:$0xff] %v688_v40  ;;  %691 = vst [vmem:[%s2698_s6 + $0x308] sm:$0xff] %v690_v41  ;;  %v694_v43 = vld [vmem:[%s2693_s25 + $0x1290] sm:$0xff] }
  0x68   : > { %693 = vst [vmem:[%s2698_s6 + $0x310] sm:$0xff] %v692_v42  ;;  %v696_v44 = vld [vmem:[%s2693_s25 + $0x12c0] sm:$0xff]  ;;  %v698_v45 = vld [vmem:[%s2693_s25 + $0x12f0] sm:$0xff]  ;;  %695 = vst [vmem:[%s2698_s6 + $0x318] sm:$0xff] %v694_v43 }
  0x69   : > { %697 = vst [vmem:[%s2698_s6 + $0x320] sm:$0xff] %v696_v44  ;;  %699 = vst [vmem:[%s2698_s6 + $0x328] sm:$0xff] %v698_v45  ;;  %v700_v46 = vld [vmem:[%s2693_s25 + $0x1320] sm:$0xff]  ;;  %v702_v47 = vld [vmem:[%s2693_s25 + $0x1350] sm:$0xff] }
  0x6a   : > { %v704_v48 = vld [vmem:[%s2693_s25 + $0x1380] sm:$0xff]  ;;  %701 = vst [vmem:[%s2698_s6 + $0x330] sm:$0xff] %v700_v46  ;;  %703 = vst [vmem:[%s2698_s6 + $0x338] sm:$0xff] %v702_v47  ;;  %v706_v49 = vld [vmem:[%s2693_s25 + $0x13b0] sm:$0xff] }
  0x6b   : > { %705 = vst [vmem:[%s2698_s6 + $0x340] sm:$0xff] %v704_v48  ;;  %v708_v50 = vld [vmem:[%s2693_s25 + $0x13e0] sm:$0xff]  ;;  %v710_v51 = vld [vmem:[%s2693_s25 + $0x1410] sm:$0xff]  ;;  %707 = vst [vmem:[%s2698_s6 + $0x348] sm:$0xff] %v706_v49 }
  0x6c   : > { %709 = vst [vmem:[%s2698_s6 + $0x350] sm:$0xff] %v708_v50  ;;  %711 = vst [vmem:[%s2698_s6 + $0x358] sm:$0xff] %v710_v51  ;;  %v712_v52 = vld [vmem:[%s2693_s25 + $0x1440] sm:$0xff]  ;;  %v714_v53 = vld [vmem:[%s2693_s25 + $0x1470] sm:$0xff] }
  0x6d   : > { %v716_v54 = vld [vmem:[%s2693_s25 + $0x14a0] sm:$0xff]  ;;  %713 = vst [vmem:[%s2698_s6 + $0x360] sm:$0xff] %v712_v52  ;;  %715 = vst [vmem:[%s2698_s6 + $0x368] sm:$0xff] %v714_v53  ;;  %v718_v55 = vld [vmem:[%s2693_s25 + $0x14d0] sm:$0xff] }
  0x6e   : > { %717 = vst [vmem:[%s2698_s6 + $0x370] sm:$0xff] %v716_v54  ;;  %v720_v56 = vld [vmem:[%s2693_s25 + $0x1500] sm:$0xff]  ;;  %v722_v57 = vld [vmem:[%s2693_s25 + $0x1530] sm:$0xff]  ;;  %719 = vst [vmem:[%s2698_s6 + $0x378] sm:$0xff] %v718_v55 }
  0x6f   : > { %721 = vst [vmem:[%s2698_s6 + $0x380] sm:$0xff] %v720_v56  ;;  %723 = vst [vmem:[%s2698_s6 + $0x388] sm:$0xff] %v722_v57  ;;  %v724_v58 = vld [vmem:[%s2693_s25 + $0x1560] sm:$0xff]  ;;  %v726_v59 = vld [vmem:[%s2693_s25 + $0x1590] sm:$0xff] }
  0x70   : > { %v728_v60 = vld [vmem:[%s2693_s25 + $0x15c0] sm:$0xff]  ;;  %725 = vst [vmem:[%s2698_s6 + $0x390] sm:$0xff] %v724_v58  ;;  %727 = vst [vmem:[%s2698_s6 + $0x398] sm:$0xff] %v726_v59  ;;  %v730_v61 = vld [vmem:[%s2693_s25 + $0x15f0] sm:$0xff] }
  0x71   : > { %729 = vst [vmem:[%s2698_s6 + $0x3a0] sm:$0xff] %v728_v60  ;;  %v732_v62 = vld [vmem:[%s2693_s25 + $0x1620] sm:$0xff]  ;;  %v734_v63 = vld [vmem:[%s2693_s25 + $0x1650] sm:$0xff]  ;;  %731 = vst [vmem:[%s2698_s6 + $0x3a8] sm:$0xff] %v730_v61 }
  0x72   : > { %733 = vst [vmem:[%s2698_s6 + $0x3b0] sm:$0xff] %v732_v62  ;;  %735 = vst [vmem:[%s2698_s6 + $0x3b8] sm:$0xff] %v734_v63  ;;  %v736_v0 = vld [vmem:[%s2693_s25 + $0x1680] sm:$0xff]  ;;  %v738_v1 = vld [vmem:[%s2693_s25 + $0x16b0] sm:$0xff] }
  0x73   : > { %v740_v2 = vld [vmem:[%s2693_s25 + $0x16e0] sm:$0xff]  ;;  %737 = vst [vmem:[%s2698_s6 + $0x3c0] sm:$0xff] %v736_v0  ;;  %739 = vst [vmem:[%s2698_s6 + $0x3c8] sm:$0xff] %v738_v1  ;;  %v742_v3 = vld [vmem:[%s2693_s25 + $0x1710] sm:$0xff] }
  0x74   : > { %741 = vst [vmem:[%s2698_s6 + $0x3d0] sm:$0xff] %v740_v2  ;;  %v744_v4 = vld [vmem:[%s2693_s25 + $0x1740] sm:$0xff]  ;;  %v746_v5 = vld [vmem:[%s2693_s25 + $0x1770] sm:$0xff]  ;;  %743 = vst [vmem:[%s2698_s6 + $0x3d8] sm:$0xff] %v742_v3 }
  0x75   : > { %745 = vst [vmem:[%s2698_s6 + $0x3e0] sm:$0xff] %v744_v4  ;;  %747 = vst [vmem:[%s2698_s6 + $0x3e8] sm:$0xff] %v746_v5  ;;  %v748_v6 = vld [vmem:[%s2693_s25 + $0x17a0] sm:$0xff]  ;;  %v750_v7 = vld [vmem:[%s2693_s25 + $0x17d0] sm:$0xff] }
  0x76   : > { %749 = vst [vmem:[%s2698_s6 + $0x3f0] sm:$0xff] %v748_v6  ;;  %751 = vst [vmem:[%s2698_s6 + $0x3f8] sm:$0xff] %v750_v7 }
  0x77 PF: > { %p2034_p0 = scmp.ge.s32.totalorder %s2556_s22, 1  ;;  %p764_p1 = scmp.lt.s32.totalorder %s2556_s22, 19 }
  0x79   : > { %p765_p2 = pnand %p2034_p0, %p764_p1 }
  0x7a   : > { %s771_s0 = sand.u32 (!%p765_p2), 1, %s2532_s16   ;;  %s778_s5 = sand.u32 (!%p765_p2), 1, %s2524_s14  }
  0x7b   : > { %768 = sbr.rel (%p765_p2) target bundleno = 494 (0x1ee), region = 85  ;;  %s2035_s23 = sshll.u32 (!%p765_p2), %s771_s0, 6 }
  0x7c   : > { %s2036_s28 = sshll.u32 (!%p765_p2), %s778_s5, 10  ;;  %s805_s7 = sand.u32 (!%p765_p2), 1, %s2516_s12  }
  0x7d   : > { %s2038_s25 = sshll.u32 (!%p765_p2), %s2544_s19, 1  ;;  %s2037_s11 = sshll.u32 (!%p765_p2), %s805_s7, 4 }
  0x7e   : > { %p813_p3 = scmp.lt.s32.totalorder (!%p765_p2), %s2038_s25, 11  ;;  %s2965_s4 = scalar_lea.vmem (!%p765_p2), [#allocation3], %s2035_s23 }
  0x7f   : > { %s2967_s6 = scalar_lea.vmem (!%p765_p2), [#allocation4], %s2036_s28  ;;  %s2969_s1 = scalar_lea.vmem (!%p765_p2), [#allocation5], %s2037_s11 }
  0x80   : > { %s3204_s25 = smov (!%p813_p3, %s2038_s25), 11  ;;  %p2039_p4 = scmp.ne.s32.totalorder %s2540_s18, 0 }
  0x81   : > { %s815_s29 = scalar_lea.vmem %s3175_s2, %s3204_s25 }
  0x82   : > { %822 = sbr.rel (%p2039_p4) target bundleno = 138 (0x8a), region = 97 }
  0x87   : > { %v2558_v8 = vmov 0.0  }
  0x88   : > { %823 = vst [vmem:[#allocation2 + $0x10] sm:$0xff] %v2558_v8  ;;  %824 = vst [vmem:[#allocation2] sm:$0xff] %v2558_v8 }
  0x89   : > { %825 = vst [vmem:[#allocation2 + $0x18] sm:$0xff] %v2558_v8  ;;  %826 = vst [vmem:[#allocation2 + $0x8] sm:$0xff] %v2558_v8 }
  0x8a PF: > { %v2278_v9 = vld [vmem:[%s2967_s6 + $0x74] ss:$8 sps:$4 sm:$0xff]   ;;  %v2282_v11 = vld [vmem:[%s2967_s6 + $0x70] ss:$8 sps:$4 sm:$0xff]   ;;  %v2284_v13 = vld [vmem:[%s2967_s6 + $0x64] ss:$8 sps:$4 sm:$0xff]  }
  0x8b   : > { %v2280_v10 = vld [vmem:[%s2967_s6 + $0x174] ss:$8 sps:$4 sm:$0xff]   ;;  %1647 = vmatprep.subr.bf16.mxu0 %v2278_v9  ;;  %v2283_v12 = vld [vmem:[%s2967_s6 + $0x170] ss:$8 sps:$4 sm:$0xff]   ;;  %v2286_v14 = vld [vmem:[%s2967_s6 + $0x164] ss:$8 sps:$4 sm:$0xff]  }
  0x8c   : > { %1690 = vmatprep.subr.bf16.mxu1 %v2280_v10  ;;  %1648 = vmatpush1.bf16.msra.mxu0 %v2282_v11  ;;  %v2288_v15 = vld [vmem:[%s2967_s6 + $0x60] ss:$8 sps:$4 sm:$0xff]   ;;  %v2290_v17 = vld [vmem:[%s2967_s6 + $0x54] ss:$8 sps:$4 sm:$0xff]   ;;  %v2294_v19 = vld [vmem:[%s2967_s6 + $0x50] ss:$8 sps:$4 sm:$0xff]  }
  0x8d   : > { %1691 = vmatpush1.bf16.msra.mxu1 %v2283_v12  ;;  %1649 = vmatprep.subr.bf16.mxu0 %v2284_v13  ;;  %v2289_v16 = vld [vmem:[%s2967_s6 + $0x160] ss:$8 sps:$4 sm:$0xff]   ;;  %v2292_v18 = vld [vmem:[%s2967_s6 + $0x154] ss:$8 sps:$4 sm:$0xff]   ;;  %v2295_v20 = vld [vmem:[%s2967_s6 + $0x150] ss:$8 sps:$4 sm:$0xff]  }
  0x8e   : > { %1692 = vmatprep.subr.bf16.mxu1 %v2286_v14  ;;  %v2296_v21 = vld [vmem:[%s2967_s6 + $0x44] ss:$8 sps:$4 sm:$0xff]   ;;  %v2300_v23 = vld [vmem:[%s2967_s6 + $0x40] ss:$8 sps:$4 sm:$0xff]   ;;  %v2302_v25 = vld [vmem:[%s2967_s6 + $0x34] ss:$8 sps:$4 sm:$0xff]  }
  0x8f   : > { %v2298_v22 = vld [vmem:[%s2967_s6 + $0x144] ss:$8 sps:$4 sm:$0xff]   ;;  %v2301_v24 = vld [vmem:[%s2967_s6 + $0x140] ss:$8 sps:$4 sm:$0xff]   ;;  %v2304_v26 = vld [vmem:[%s2967_s6 + $0x134] ss:$8 sps:$4 sm:$0xff]  }
  0x90   : > { %1650 = vmatpush1.bf16.msra.mxu0 %v2288_v15  ;;  %v2306_v27 = vld [vmem:[%s2967_s6 + $0x30] ss:$8 sps:$4 sm:$0xff]   ;;  %v2308_v29 = vld [vmem:[%s2967_s6 + $0x24] ss:$8 sps:$4 sm:$0xff]   ;;  %v2312_v31 = vld [vmem:[%s2967_s6 + $0x20] ss:$8 sps:$4 sm:$0xff]  }
  0x91   : > { %1693 = vmatpush1.bf16.msra.mxu1 %v2289_v16  ;;  %1651 = vmatprep.subr.bf16.mxu0 %v2290_v17  ;;  %v2307_v28 = vld [vmem:[%s2967_s6 + $0x130] ss:$8 sps:$4 sm:$0xff]   ;;  %v2310_v30 = vld [vmem:[%s2967_s6 + $0x124] ss:$8 sps:$4 sm:$0xff]   ;;  %v2313_v32 = vld [vmem:[%s2967_s6 + $0x120] ss:$8 sps:$4 sm:$0xff]  }
  0x92   : > { %1694 = vmatprep.subr.bf16.mxu1 %v2292_v18  ;;  %v2314_v33 = vld [vmem:[%s2967_s6 + $0x14] ss:$8 sps:$4 sm:$0xff]   ;;  %v2318_v35 = vld [vmem:[%s2967_s6 + $0x10] ss:$8 sps:$4 sm:$0xff]   ;;  %v2320_v37 = vld [vmem:[%s2967_s6 + $0x4] ss:$8 sps:$4 sm:$0xff]  }
  0x93   : > { %v2316_v34 = vld [vmem:[%s2967_s6 + $0x114] ss:$8 sps:$4 sm:$0xff]   ;;  %v2319_v36 = vld [vmem:[%s2967_s6 + $0x110] ss:$8 sps:$4 sm:$0xff]   ;;  %v2322_v38 = vld [vmem:[%s2967_s6 + $0x104] ss:$8 sps:$4 sm:$0xff]  }
  0x94   : > { %1652 = vmatpush1.bf16.msra.mxu0 %v2294_v19  ;;  %v2324_v39 = vld [vmem:[%s2967_s6] ss:$8 sps:$4 sm:$0xff]   ;;  %v2326_v41 = vld [vmem:[%s2967_s6 + $0xf4] ss:$8 sps:$4 sm:$0xff]   ;;  %v2330_v43 = vld [vmem:[%s2967_s6 + $0xf0] ss:$8 sps:$4 sm:$0xff]  }
  0x95   : > { %1695 = vmatpush1.bf16.msra.mxu1 %v2295_v20  ;;  %1653 = vmatprep.subr.bf16.mxu0 %v2296_v21  ;;  %v2325_v40 = vld [vmem:[%s2967_s6 + $0x100] ss:$8 sps:$4 sm:$0xff]   ;;  %v2328_v42 = vld [vmem:[%s2967_s6 + $0x1f4] ss:$8 sps:$4 sm:$0xff]   ;;  %v2331_v44 = vld [vmem:[%s2967_s6 + $0x1f0] ss:$8 sps:$4 sm:$0xff]  }
  0x96   : > { %1696 = vmatprep.subr.bf16.mxu1 %v2298_v22  ;;  %v2332_v45 = vld [vmem:[%s2967_s6 + $0xe4] ss:$8 sps:$4 sm:$0xff]   ;;  %v2336_v47 = vld [vmem:[%s2967_s6 + $0xe0] ss:$8 sps:$4 sm:$0xff]   ;;  %v2338_v49 = vld [vmem:[%s2967_s6 + $0xd4] ss:$8 sps:$4 sm:$0xff]  }
  0x97   : > { %v2334_v46 = vld [vmem:[%s2967_s6 + $0x1e4] ss:$8 sps:$4 sm:$0xff]   ;;  %v2337_v48 = vld [vmem:[%s2967_s6 + $0x1e0] ss:$8 sps:$4 sm:$0xff]   ;;  %v2340_v50 = vld [vmem:[%s2967_s6 + $0x1d4] ss:$8 sps:$4 sm:$0xff]  }
  0x98   : > { %1654 = vmatpush1.bf16.msra.mxu0 %v2300_v23  ;;  %v2342_v51 = vld [vmem:[%s2967_s6 + $0xd0] ss:$8 sps:$4 sm:$0xff]   ;;  %v2344_v53 = vld [vmem:[%s2967_s6 + $0xc4] ss:$8 sps:$4 sm:$0xff]   ;;  %v2348_v55 = vld [vmem:[%s2967_s6 + $0xc0] ss:$8 sps:$4 sm:$0xff]  }
  0x99   : > { %1697 = vmatpush1.bf16.msra.mxu1 %v2301_v24  ;;  %1655 = vmatprep.subr.bf16.mxu0 %v2302_v25  ;;  %v2343_v52 = vld [vmem:[%s2967_s6 + $0x1d0] ss:$8 sps:$4 sm:$0xff]   ;;  %v2346_v54 = vld [vmem:[%s2967_s6 + $0x1c4] ss:$8 sps:$4 sm:$0xff]   ;;  %v2349_v56 = vld [vmem:[%s2967_s6 + $0x1c0] ss:$8 sps:$4 sm:$0xff]  }
  0x9a   : > { %1698 = vmatprep.subr.bf16.mxu1 %v2304_v26  ;;  %v831_v57 = vld [vmem:[%s2965_s4] sm:$0xff]  ;;  %v832_v59 = vld [vmem:[%s2965_s4 + $0x8] sm:$0xff]  ;;  %v2350_v61 = vld [vmem:[%s2967_s6 + $0xb4] ss:$8 sps:$4 sm:$0xff]   ;;  %p2176_p5 = scmp.ne.s32.totalorder %s2540_s18, 2 }
  0x9b   : > { %v835_v58 = vld [vmem:[%s2965_s4 + $0x20] sm:$0xff]  ;;  %v836_v60 = vld [vmem:[%s2965_s4 + $0x28] sm:$0xff]  ;;  %v2352_v63 = vld [vmem:[%s2967_s6 + $0x1b4] ss:$8 sps:$4 sm:$0xff]  }
  0x9c   : > { %1656 = vmatpush1.bf16.msra.mxu0 %v2306_v27  ;;  %v2041_v62 = vcombine.high %v831_v57, %v835_v58  ;;  %v2043_v0 = vcombine.high %v832_v59, %v836_v60  ;;  %v2354_v1 = vld [vmem:[%s2967_s6 + $0xb0] ss:$8 sps:$4 sm:$0xff]   ;;  %v2356_v3 = vld [vmem:[%s2967_s6 + $0xa4] ss:$8 sps:$4 sm:$0xff]   ;;  %v2360_v5 = vld [vmem:[%s2967_s6 + $0xa0] ss:$8 sps:$4 sm:$0xff]   ;;  %v2040_v17 = vcombine.low %v831_v57, %v835_v58  ;;  %v2042_v18 = vcombine.low %v832_v59, %v836_v60 }
  0x9d   : > { %1699 = vmatpush1.bf16.msra.mxu1 %v2307_v28  ;;  %1657 = vmatprep.subr.bf16.mxu0 %v2308_v29  ;;  %v2355_v2 = vld [vmem:[%s2967_s6 + $0x1b0] ss:$8 sps:$4 sm:$0xff]   ;;  %v2358_v4 = vld [vmem:[%s2967_s6 + $0x1a4] ss:$8 sps:$4 sm:$0xff]   ;;  %v2361_v6 = vld [vmem:[%s2967_s6 + $0x1a0] ss:$8 sps:$4 sm:$0xff]  }
  0x9e   : > { %1700 = vmatprep.subr.bf16.mxu1 %v2310_v30  ;;  %1679 = vmatprep.mubr.bf16.mxu0 %v2041_v62  ;;  %v2362_v7 = vld [vmem:[%s2967_s6 + $0x94] ss:$8 sps:$4 sm:$0xff]   ;;  %v2366_v9 = vld [vmem:[%s2967_s6 + $0x90] ss:$8 sps:$4 sm:$0xff]   ;;  %v2368_v11 = vld [vmem:[%s2967_s6 + $0x84] ss:$8 sps:$4 sm:$0xff]  }
  0x9f   : > { %1722 = vmatprep.mubr.bf16.mxu1 %v2043_v0  ;;  %v2364_v8 = vld [vmem:[%s2967_s6 + $0x194] ss:$8 sps:$4 sm:$0xff]   ;;  %v2367_v10 = vld [vmem:[%s2967_s6 + $0x190] ss:$8 sps:$4 sm:$0xff]   ;;  %v2370_v12 = vld [vmem:[%s2967_s6 + $0x184] ss:$8 sps:$4 sm:$0xff]  }
  0xa0   : > { %1658 = vmatpush1.bf16.msra.mxu0 %v2312_v31  ;;  %v2372_v13 = vld [vmem:[%s2967_s6 + $0x80] ss:$8 sps:$4 sm:$0xff]   ;;  %v2376_v15 = vld [vmem:[%s2967_s6 + $0x274] ss:$8 sps:$4 sm:$0xff]   ;;  %v2374_v19 = vld [vmem:[%s2967_s6 + $0x270] ss:$8 sps:$4 sm:$0xff]  }
  0xa1   : > { %1701 = vmatpush1.bf16.msra.mxu1 %v2313_v32  ;;  %1659 = vmatprep.subr.bf16.mxu0 %v2314_v33  ;;  %v2373_v14 = vld [vmem:[%s2967_s6 + $0x180] ss:$8 sps:$4 sm:$0xff]   ;;  %v2379_v16 = vld [vmem:[%s2967_s6 + $0x374] ss:$8 sps:$4 sm:$0xff]   ;;  %v2377_v20 = vld [vmem:[%s2967_s6 + $0x370] ss:$8 sps:$4 sm:$0xff]  }
  0xa2   : > { %1702 = vmatprep.subr.bf16.mxu1 %v2316_v34  ;;  %v2382_v21 = vld [vmem:[%s2967_s6 + $0x264] ss:$8 sps:$4 sm:$0xff]   ;;  %v2380_v23 = vld [vmem:[%s2967_s6 + $0x260] ss:$8 sps:$4 sm:$0xff]   ;;  %v2388_v25 = vld [vmem:[%s2967_s6 + $0x254] ss:$8 sps:$4 sm:$0xff]  }
  0xa3   : > { %v2385_v22 = vld [vmem:[%s2967_s6 + $0x364] ss:$8 sps:$4 sm:$0xff]   ;;  %v2383_v24 = vld [vmem:[%s2967_s6 + $0x360] ss:$8 sps:$4 sm:$0xff]   ;;  %v2391_v26 = vld [vmem:[%s2967_s6 + $0x354] ss:$8 sps:$4 sm:$0xff]  }
  0xa4   : > { %1660 = vmatpush1.bf16.msra.mxu0 %v2318_v35  ;;  %v2386_v27 = vld [vmem:[%s2967_s6 + $0x250] ss:$8 sps:$4 sm:$0xff]   ;;  %v2394_v29 = vld [vmem:[%s2967_s6 + $0x244] ss:$8 sps:$4 sm:$0xff]   ;;  %v2392_v31 = vld [vmem:[%s2967_s6 + $0x240] ss:$8 sps:$4 sm:$0xff]  }
  0xa5   : > { %1703 = vmatpush1.bf16.msra.mxu1 %v2319_v36  ;;  %1661 = vmatprep.subr.bf16.mxu0 %v2320_v37  ;;  %v2389_v28 = vld [vmem:[%s2967_s6 + $0x350] ss:$8 sps:$4 sm:$0xff]   ;;  %v2397_v30 = vld [vmem:[%s2967_s6 + $0x344] ss:$8 sps:$4 sm:$0xff]   ;;  %v2395_v32 = vld [vmem:[%s2967_s6 + $0x340] ss:$8 sps:$4 sm:$0xff]  }
  0xa6   : > { %1704 = vmatprep.subr.bf16.mxu1 %v2322_v38  ;;  %v2400_v33 = vld [vmem:[%s2967_s6 + $0x234] ss:$8 sps:$4 sm:$0xff]   ;;  %v2398_v35 = vld [vmem:[%s2967_s6 + $0x230] ss:$8 sps:$4 sm:$0xff]   ;;  %v2406_v37 = vld [vmem:[%s2967_s6 + $0x224] ss:$8 sps:$4 sm:$0xff]  }
  0xa7   : > { %v2403_v34 = vld [vmem:[%s2967_s6 + $0x334] ss:$8 sps:$4 sm:$0xff]   ;;  %v2401_v36 = vld [vmem:[%s2967_s6 + $0x330] ss:$8 sps:$4 sm:$0xff]   ;;  %v2409_v38 = vld [vmem:[%s2967_s6 + $0x324] ss:$8 sps:$4 sm:$0xff]  }
  0xa8   : > { %1662 = vmatpush1.bf16.msra.mxu0 %v2324_v39  ;;  %v2404_v39 = vld [vmem:[%s2967_s6 + $0x220] ss:$8 sps:$4 sm:$0xff]   ;;  %v2422_v57 = vld [vmem:[%s2967_s6 + $0x2f0] ss:$8 sps:$4 sm:$0xff]   ;;  %v2430_v59 = vld [vmem:[%s2967_s6 + $0x2e4] ss:$8 sps:$4 sm:$0xff]  }
  0xa9   : > { %1705 = vmatpush1.bf16.msra.mxu1 %v2325_v40  ;;  %1663 = vmatprep.subr.bf16.mxu0 %v2326_v41  ;;  %v2407_v40 = vld [vmem:[%s2967_s6 + $0x320] ss:$8 sps:$4 sm:$0xff]   ;;  %v2412_v41 = vld [vmem:[%s2967_s6 + $0x214] ss:$8 sps:$4 sm:$0xff]   ;;  %v2425_v58 = vld [vmem:[%s2967_s6 + $0x3f0] ss:$8 sps:$4 sm:$0xff]  }
  0xaa   : > { %1706 = vmatprep.subr.bf16.mxu1 %v2328_v42  ;;  %v2415_v42 = vld [vmem:[%s2967_s6 + $0x314] ss:$8 sps:$4 sm:$0xff]   ;;  %v2433_v60 = vld [vmem:[%s2967_s6 + $0x3e4] ss:$8 sps:$4 sm:$0xff]   ;;  %v2431_v62 = vld [vmem:[%s2967_s6 + $0x3e0] ss:$8 sps:$4 sm:$0xff]  }
  0xab   : > { %v2439_v0 = vld [vmem:[%s2967_s6 + $0x3d4] ss:$8 sps:$4 sm:$0xff]  }
  0xac   : > { %1664 = vmatpush2.bf16.msra.mxu0 %v2330_v43  ;;  %v3067_v43 = vld [vmem:[%s2965_s4 + $0x10] sm:$0xff] }
  0xad   : > { %1707 = vmatpush2.bf16.msra.mxu1 %v2331_v44  ;;  %1665 = vmatprep.subr.bf16.mxu0 %v2332_v45  ;;  %v3070_v44 = vld [vmem:[%s2965_s4 + $0x30] sm:$0xff]  ;;  %v3073_v45 = vld [vmem:[%s2965_s4 + $0x18] sm:$0xff] }
  0xae   : > { %1708 = vmatprep.subr.bf16.mxu1 %v2334_v46  ;;  %v3076_v46 = vld [vmem:[%s2965_s4 + $0x38] sm:$0xff] }
  0xb0   : > { %1666 = vmatpush2.bf16.msra.mxu0 %v2336_v47  ;;  %v2410_v47 = vld [vmem:[%s2967_s6 + $0x210] ss:$8 sps:$4 sm:$0xff]  }
  0xb1   : > { %1709 = vmatpush2.bf16.msra.mxu1 %v2337_v48  ;;  %1667 = vmatprep.subr.bf16.mxu0 %v2338_v49  ;;  %v2413_v48 = vld [vmem:[%s2967_s6 + $0x310] ss:$8 sps:$4 sm:$0xff]   ;;  %v2045_v49 = vcombine.high %v3067_v43, %v3070_v44 }
  0xb2   : > { %1710 = vmatprep.subr.bf16.mxu1 %v2340_v50  ;;  %v2418_v50 = vld [vmem:[%s2967_s6 + $0x204] ss:$8 sps:$4 sm:$0xff]  }
  0xb4   : > { %1668 = vmatpush2.bf16.msra.mxu0 %v2342_v51  ;;  %v2421_v51 = vld [vmem:[%s2967_s6 + $0x304] ss:$8 sps:$4 sm:$0xff]  }
  0xb5   : > { %1711 = vmatpush2.bf16.msra.mxu1 %v2343_v52  ;;  %1669 = vmatprep.subr.bf16.mxu0 %v2344_v53  ;;  %v2047_v52 = vcombine.high %v3073_v45, %v3076_v46  ;;  %v2416_v53 = vld [vmem:[%s2967_s6 + $0x200] ss:$8 sps:$4 sm:$0xff]  }
  0xb6   : > { %1712 = vmatprep.subr.bf16.mxu1 %v2346_v54  ;;  %v2419_v54 = vld [vmem:[%s2967_s6 + $0x300] ss:$8 sps:$4 sm:$0xff]  }
  0xb8   : > { %1670 = vmatpush2.bf16.msra.mxu0 %v2348_v55  ;;  %v2424_v55 = vld [vmem:[%s2967_s6 + $0x2f4] ss:$8 sps:$4 sm:$0xff]  }
  0xb9   : > { %1713 = vmatpush2.bf16.msra.mxu1 %v2349_v56  ;;  %1671 = vmatprep.subr.bf16.mxu0 %v2350_v61  ;;  %v2427_v56 = vld [vmem:[%s2967_s6 + $0x3f4] ss:$8 sps:$4 sm:$0xff]   ;;  %v2428_v61 = vld [vmem:[%s2967_s6 + $0x2e0] ss:$8 sps:$4 sm:$0xff]  }
  0xba   : > { %1714 = vmatprep.subr.bf16.mxu1 %v2352_v63  ;;  %v2436_v63 = vld [vmem:[%s2967_s6 + $0x2d4] ss:$8 sps:$4 sm:$0xff]  }
  0xbc   : > { %1672 = vmatpush2.bf16.msra.mxu0 %v2354_v1  ;;  %v2434_v1 = vld [vmem:[%s2967_s6 + $0x2d0] ss:$8 sps:$4 sm:$0xff]  }
  0xbd   : > { %1715 = vmatpush2.bf16.msra.mxu1 %v2355_v2  ;;  %1673 = vmatprep.subr.bf16.mxu0 %v2356_v3  ;;  %v2437_v2 = vld [vmem:[%s2967_s6 + $0x3d0] ss:$8 sps:$4 sm:$0xff]   ;;  %v2442_v3 = vld [vmem:[%s2967_s6 + $0x2c4] ss:$8 sps:$4 sm:$0xff]  }
  0xbe   : > { %1716 = vmatprep.subr.bf16.mxu1 %v2358_v4  ;;  %v2445_v4 = vld [vmem:[%s2967_s6 + $0x3c4] ss:$8 sps:$4 sm:$0xff]  }
  0xc0   : > { %1674 = vmatpush2.bf16.msra.mxu0 %v2360_v5  ;;  %v2440_v5 = vld [vmem:[%s2967_s6 + $0x2c0] ss:$8 sps:$4 sm:$0xff]  }
  0xc1   : > { %1717 = vmatpush2.bf16.msra.mxu1 %v2361_v6  ;;  %1675 = vmatprep.subr.bf16.mxu0 %v2362_v7  ;;  %v2443_v6 = vld [vmem:[%s2967_s6 + $0x3c0] ss:$8 sps:$4 sm:$0xff]   ;;  %v2448_v7 = vld [vmem:[%s2967_s6 + $0x2b4] ss:$8 sps:$4 sm:$0xff]  }
  0xc2   : > { %1718 = vmatprep.subr.bf16.mxu1 %v2364_v8  ;;  %v2451_v8 = vld [vmem:[%s2967_s6 + $0x3b4] ss:$8 sps:$4 sm:$0xff]  }
  0xc4   : > { %1676 = vmatpush2.bf16.msra.mxu0 %v2366_v9  ;;  %v2446_v9 = vld [vmem:[%s2967_s6 + $0x2b0] ss:$8 sps:$4 sm:$0xff]  }
  0xc5   : > { %1719 = vmatpush2.bf16.msra.mxu1 %v2367_v10  ;;  %1677 = vmatprep.subr.bf16.mxu0 %v2368_v11  ;;  %v2449_v10 = vld [vmem:[%s2967_s6 + $0x3b0] ss:$8 sps:$4 sm:$0xff]   ;;  %v2454_v11 = vld [vmem:[%s2967_s6 + $0x2a4] ss:$8 sps:$4 sm:$0xff]  }
  0xc6   : > { %1720 = vmatprep.subr.bf16.mxu1 %v2370_v12  ;;  %v2457_v12 = vld [vmem:[%s2967_s6 + $0x3a4] ss:$8 sps:$4 sm:$0xff]  }
  0xc8   : > { %1678 = vmatpush2.bf16.msra.mxu0 %v2372_v13  ;;  %v2452_v13 = vld [vmem:[%s2967_s6 + $0x2a0] ss:$8 sps:$4 sm:$0xff]  }
  0xc9   : > { %1721 = vmatpush2.bf16.msra.mxu1 %v2373_v14  ;;  %1733 = vmatprep.subr.bf16.mxu0 %v2376_v15  ;;  %v2455_v14 = vld [vmem:[%s2967_s6 + $0x3a0] ss:$8 sps:$4 sm:$0xff]   ;;  %v2460_v15 = vld [vmem:[%s2967_s6 + $0x294] ss:$8 sps:$4 sm:$0xff]  }
  0xca   : > { %1776 = vmatprep.subr.bf16.mxu1 %v2379_v16  ;;  %v2463_v16 = vld [vmem:[%s2967_s6 + $0x394] ss:$8 sps:$4 sm:$0xff]  }
  0xcb   : > { %1680 = vmatmul.mubr.bf16.vlgmr.msra.gmra.mxu0 %v2040_v17  ;;  %v2458_v17 = vld [vmem:[%s2967_s6 + $0x290] ss:$8 sps:$4 sm:$0xff]  }
  0xcc   : > { %1723 = vmatmul.mubr.bf16.vlgmr.msra.gmra.mxu1 %v2042_v18  ;;  %1734 = vmatpush1.bf16.msra.mxu0 %v2374_v19  ;;  %v2461_v18 = vld [vmem:[%s2967_s6 + $0x390] ss:$8 sps:$4 sm:$0xff]   ;;  %v2466_v19 = vld [vmem:[%s2967_s6 + $0x284] ss:$8 sps:$4 sm:$0xff]  }
  0xcd   : > { %1777 = vmatpush1.bf16.msra.mxu1 %v2377_v20  ;;  %1735 = vmatprep.subr.bf16.mxu0 %v2382_v21  ;;  %v2469_v20 = vld [vmem:[%s2967_s6 + $0x384] ss:$8 sps:$4 sm:$0xff]   ;;  %v2464_v21 = vld [vmem:[%s2967_s6 + $0x280] ss:$8 sps:$4 sm:$0xff]  }
  0xce   : > { %1778 = vmatprep.subr.bf16.mxu1 %v2385_v22  ;;  %1765 = vmatprep.mubr.bf16.mxu0 %v2045_v49  ;;  %v2467_v22 = vld [vmem:[%s2967_s6 + $0x380] ss:$8 sps:$4 sm:$0xff]  }
  0xcf   : > { %1808 = vmatprep.mubr.bf16.mxu1 %v2047_v52 }
  0xd0   : > { %1736 = vmatpush1.bf16.msra.mxu0 %v2380_v23  ;;  %v2044_v23 = vcombine.low %v3067_v43, %v3070_v44  ;;  %v828_v44 = vld [vmem:[#allocation2] sm:$0xff] }
  0xd1   : > { %1779 = vmatpush1.bf16.msra.mxu1 %v2383_v24  ;;  %1737 = vmatprep.subr.bf16.mxu0 %v2388_v25  ;;  %v2046_v24 = vcombine.low %v3073_v45, %v3076_v46 }
  0xd2   : > { %1780 = vmatprep.subr.bf16.mxu1 %v2391_v26 }
  0xd4   : > { %1738 = vmatpush1.bf16.msra.mxu0 %v2386_v27 }
  0xd5   : > { %1781 = vmatpush1.bf16.msra.mxu1 %v2389_v28  ;;  %1739 = vmatprep.subr.bf16.mxu0 %v2394_v29 }
  0xd6   : > { %1782 = vmatprep.subr.bf16.mxu1 %v2397_v30 }
  0xd8   : > { %1740 = vmatpush1.bf16.msra.mxu0 %v2392_v31 }
  0xd9   : > { %1783 = vmatpush1.bf16.msra.mxu1 %v2395_v32  ;;  %1741 = vmatprep.subr.bf16.mxu0 %v2400_v33 }
  0xda   : > { %1784 = vmatprep.subr.bf16.mxu1 %v2403_v34 }
  0xdc   : > { %1742 = vmatpush1.bf16.msra.mxu0 %v2398_v35 }
  0xdd   : > { %1785 = vmatpush1.bf16.msra.mxu1 %v2401_v36  ;;  %1743 = vmatprep.subr.bf16.mxu0 %v2406_v37 }
  0xde   : > { %1786 = vmatprep.subr.bf16.mxu1 %v2409_v38  ;;  %v827_v38 = vld [vmem:[#allocation2 + $0x10] sm:$0xff] }
  0xe0   : > { %1744 = vmatpush1.bf16.msra.mxu0 %v2404_v39 }
  0xe1   : > { %1787 = vmatpush1.bf16.msra.mxu1 %v2407_v40  ;;  %1745 = vmatprep.subr.bf16.mxu0 %v2412_v41 }
  0xe2   : > { %1788 = vmatprep.subr.bf16.mxu1 %v2415_v42 }
  0xe4   : > { %1746 = vmatpush1.bf16.msra.mxu0 %v2410_v47 }
  0xe5   : > { %1789 = vmatpush1.bf16.msra.mxu1 %v2413_v48  ;;  %1747 = vmatprep.subr.bf16.mxu0 %v2418_v50 }
  0xe6   : > { %1790 = vmatprep.subr.bf16.mxu1 %v2421_v51  ;;  %v829_v51 = vld [vmem:[#allocation2 + $0x18] sm:$0xff] }
  0xe8   : > { %1748 = vmatpush1.bf16.msra.mxu0 %v2416_v53 }
  0xe9   : > { %1791 = vmatpush1.bf16.msra.mxu1 %v2419_v54  ;;  %1749 = vmatprep.subr.bf16.mxu0 %v2424_v55 }
  0xea   : > { %1792 = vmatprep.subr.bf16.mxu1 %v2427_v56  ;;  %v830_v56 = vld [vmem:[#allocation2 + $0x8] sm:$0xff] }
  0xec   : > { %1750 = vmatpush2.bf16.msra.mxu0 %v2422_v57 }
  0xed   : > { %1793 = vmatpush2.bf16.msra.mxu1 %v2425_v58  ;;  %1751 = vmatprep.subr.bf16.mxu0 %v2430_v59 }
  0xee   : > { %1794 = vmatprep.subr.bf16.mxu1 %v2433_v60 }
  0xf0   : > { %1752 = vmatpush2.bf16.msra.mxu0 %v2428_v61 }
  0xf1   : > { %1795 = vmatpush2.bf16.msra.mxu1 %v2431_v62  ;;  %1753 = vmatprep.subr.bf16.mxu0 %v2436_v63 }
  0xf2   : > { %1796 = vmatprep.subr.bf16.mxu1 %v2439_v0 }
  0xf4   : > { %1754 = vmatpush2.bf16.msra.mxu0 %v2434_v1 }
  0xf5   : > { %1797 = vmatpush2.bf16.msra.mxu1 %v2437_v2  ;;  %1755 = vmatprep.subr.bf16.mxu0 %v2442_v3 }
  0xf6   : > { %1798 = vmatprep.subr.bf16.mxu1 %v2445_v4 }
  0xf8   : > { %1756 = vmatpush2.bf16.msra.mxu0 %v2440_v5 }
  0xf9   : > { %1799 = vmatpush2.bf16.msra.mxu1 %v2443_v6  ;;  %1757 = vmatprep.subr.bf16.mxu0 %v2448_v7 }
  0xfa   : > { %1800 = vmatprep.subr.bf16.mxu1 %v2451_v8 }
  0xfc   : > { %1758 = vmatpush2.bf16.msra.mxu0 %v2446_v9 }
  0xfd   : > { %1801 = vmatpush2.bf16.msra.mxu1 %v2449_v10  ;;  %1759 = vmatprep.subr.bf16.mxu0 %v2454_v11 }
  0xfe   : > { %1802 = vmatprep.subr.bf16.mxu1 %v2457_v12 }
 0x100   : > { %1760 = vmatpush2.bf16.msra.mxu0 %v2452_v13 }
 0x101   : > { %1803 = vmatpush2.bf16.msra.mxu1 %v2455_v14  ;;  %1761 = vmatprep.subr.bf16.mxu0 %v2460_v15 }
 0x102   : > { %1804 = vmatprep.subr.bf16.mxu1 %v2463_v16 }
 0x104   : > { %1762 = vmatpush2.bf16.msra.mxu0 %v2458_v17 }
 0x105   : > { %1805 = vmatpush2.bf16.msra.mxu1 %v2461_v18  ;;  %1763 = vmatprep.subr.bf16.mxu0 %v2466_v19 }
 0x106   : > { %1806 = vmatprep.subr.bf16.mxu1 %v2469_v20 }
 0x108   : > { %1764 = vmatpush2.bf16.msra.mxu0 %v2464_v21 }
 0x109   : > { %1807 = vmatpush2.bf16.msra.mxu1 %v2467_v22 }
 0x10b   : > { %1766 = vmatmul.mubr.bf16.vlgmr.msra.gmra.mxu0 %v2044_v23 }
 0x10c   : > { %1809 = vmatmul.mubr.bf16.vlgmr.msra.gmra.mxu1 %v2046_v24 }
 0x18b   : > { %v1681_v25 = vpop.f32.mrf.mxu0 }
 0x18c   : > { %v1724_v26 = vpop.f32.mrf.mxu1 }
 0x18d   : > { %v1683_v27 = vpop.f32.mrf.mxu0  ;;  %v1725_v33 = vadd.f32 %v1724_v26, %v1681_v25 }
 0x18e   : > { %v1726_v28 = vpop.f32.mrf.mxu1 }
 0x18f   : > { %v1685_v29 = vpop.f32.mrf.mxu0  ;;  %v1727_v36 = vadd.f32 %v1726_v28, %v1683_v27 }
 0x190   : > { %v1728_v30 = vpop.f32.mrf.mxu1 }
 0x191   : > { %v1687_v31 = vpop.f32.mrf.mxu0  ;;  %v1729_v41 = vadd.f32 %v1728_v30, %v1685_v29 }
 0x192   : > { %v1730_v32 = vpop.f32.mrf.mxu1 }
 0x193   : > { %v1731_v47 = vadd.f32 %v1730_v32, %v1687_v31 }
 0x1cb   : > { %v1767_v34 = vpop.f32.mrf.mxu0 }
 0x1cc   : > { %v1810_v35 = vpop.f32.mrf.mxu1  ;;  %v1768_v37 = vadd.f32 %v1767_v34, %v1725_v33 }
 0x1cd   : > { %v1769_v39 = vpop.f32.mrf.mxu0 }
 0x1ce   : > { %v1812_v40 = vpop.f32.mrf.mxu1  ;;  %v1811_v42 = vadd.f32 %v1810_v35, %v1768_v37  ;;  %v1770_v43 = vadd.f32 %v1769_v39, %v1727_v36 }
 0x1cf   : > { %v1771_v45 = vpop.f32.mrf.mxu0 }
 0x1d0   : > { %v1814_v46 = vpop.f32.mrf.mxu1  ;;  %v1819_v48 = vadd.f32 %v1811_v42, %v827_v38  ;;  %v1813_v49 = vadd.f32 %v1812_v40, %v1770_v43  ;;  %v1772_v50 = vadd.f32 %v1771_v45, %v1729_v41 }
 0x1d1   : > { %v1773_v52 = vpop.f32.mrf.mxu0 }
 0x1d2   : > { %1823 = vst [vmem:[#allocation2 + $0x10] sm:$0xff] %v1819_v48  ;;  %v1820_v53 = vadd.f32 %v1813_v49, %v828_v44  ;;  %v1815_v54 = vadd.f32 %v1814_v46, %v1772_v50  ;;  %v1774_v55 = vadd.f32 %v1773_v52, %v1731_v47  ;;  %v1816_v57 = vpop.f32.mrf.mxu1 }
 0x1d4   : > { %1824 = vst [vmem:[#allocation2] sm:$0xff] %v1820_v53  ;;  %v1821_v58 = vadd.f32 %v1815_v54, %v829_v51  ;;  %v1817_v59 = vadd.f32 %v1816_v57, %v1774_v55  ;;  %1830 = sbr.rel (%p2176_p5) target bundleno = 486 (0x1e6), region = 101 }
 0x1d6   : > { %1825 = vst [vmem:[#allocation2 + $0x18] sm:$0xff] %v1821_v58  ;;  %v1822_v60 = vadd.f32 %v1817_v59, %v830_v56 }
 0x1d8   : > { %1826 = vst [vmem:[#allocation2 + $0x8] sm:$0xff] %v1822_v60 }
 0x1d9   : > { %v1837_v61 = vlaneseq  ;;  %v1835_v63 = vld [vmem:[%s815_s29] sm:$0x3]  ;;  %v1831_v0 = vld [vmem:[#allocation2 + $0x10] sm:$0xff] }
 0x1db   : > { %v1838_v62 = vshrl.u32 %v1837_v61, 7  ;;  %v1832_v3 = vld [vmem:[#allocation2] sm:$0xff] }
 0x1dd   : > { %v1839_v1 = vsub.s32 0, %v1838_v62  ;;  %v1843_v2 = vsub.s32 1, %v1838_v62  ;;  %v1833_v4 = vld [vmem:[#allocation2 + $0x18] sm:$0xff] }
 0x1df   : > { %v1834_v5 = vld [vmem:[#allocation2 + $0x8] sm:$0xff]  ;;  %v1840_v6 = vrot.slane %v1835_v63, %v1839_v1  ;;  %v1844_v7 = vrot.slane %v1835_v63, %v1843_v2 }
 0x1e1   : > { %v1847_v8 = vadd.f32 %v1840_v6, %v1831_v0  ;;  %v1848_v9 = vadd.f32 %v1844_v7, %v1832_v3  ;;  %v1849_v10 = vadd.f32 %v1840_v6, %v1833_v4  ;;  %v1850_v11 = vadd.f32 %v1844_v7, %v1834_v5 }
 0x1e3   : > { %v2185_v12 = vpack.c.bf16 %v1848_v9, %v1847_v8  ;;  %v2186_v13 = vpack.c.bf16 %v1850_v11, %v1849_v10 }
 0x1e5   : > { %1863 = vst [vmem:[%s2969_s1] sm:$0xff] %v2185_v12  ;;  %1864 = vst [vmem:[%s2969_s1 + $0x8] sm:$0xff] %v2186_v13 }
 0x1e6 PF: > { %1871 = sbr.rel (!%p2673_p12) target bundleno = 494 (0x1ee), region = 105  ;;  %s2187_s16 = sshll.u32 (%p2673_p12), %s2544_s19, 3 }
 0x1e7   : > { %s1877_s5 = scalar_lea.vmem (%p2673_p12), %s3176_s3, %s2187_s16 }
 0x1ec   : > { %v1908_v14 = vld [vmem:[%s2969_s1] sm:$0xff]  ;;  %v1910_v15 = vld [vmem:[%s2969_s1 + $0x8] sm:$0xff] }
 0x1ed   : > { %1909 = vst [vmem:[%s1877_s5] sm:$0xff] %v1908_v14  ;;  %1911 = vst [vmem:[%s1877_s5 + $0x30] sm:$0xff] %v1910_v15 }
 0x1ee PF: > { %s13_s22 = sadd.s32 1, %s2556_s22   ;;  %s3186_s1 = sld [smem:[#allocation6_spill]] }
 0x1ef   : > { %p10_p6 = scmp.ge.s32.totalorder %s13_s22, 20   ;;  %s3187_s12 = smov %s2520_s13 }
 0x1f0   : > { %s3188_s13 = smov %s2671_s9  ;;  %s3189_s14 = smov %s2528_s15 }
 0x1f1   : > { %s3190_s15 = smov %s2668_s8  ;;  %s3191_s16 = smov %s2536_s17 }
 0x1f2   : > { %s3192_s17 = smov %s2654_s30  ;;  %s3193_s18 = smov %s2548_s20 }
 0x1f3   : > { %s3194_s19 = smov %s2552_s21  ;;  %s3195_s20 = smov %s3198_s24 }
 0x1f4   : > { %s3196_s21 = smov %s3186_s1  ;;  %12 = sbr.rel (!%p10_p6) target bundleno = 9 (0x9), region = 185 }

// kernel: forward.14
= control target key start
LH: loop header
LB: loop body
LE: loop exit
PB: predicated region body
PF: predicated region fallthrough
CT: control target
= control target key end

     0   :  { %s2270_s0 = inlined_call_operand.vmem [shape: bf16[16,1536], index: 0, kind: input, shape index: {}]   ;;  %s2271_s1 = inlined_call_operand.vmem [shape: bf16[1536,640], index: 1, kind: input, shape index: {}]   ;;  %s2272_s2 = inlined_call_operand.vmem [shape: f32[1,640], index: 2, kind: input, shape index: {}]   ;;  %s2273_s3 = inlined_call_operand.vmem [shape: bf16[16,640], index: 3, kind: output, shape index: {}]  }
   0x1   :  { %2275 = sst [smem:[#allocation7_spill]] %s2270_s0 }
   0x2   :  { %2276 = sst [smem:[#allocation8_spill]] %s2271_s1 }
   0x3   :  { %s1838_s12 = smov 0   ;;  %s1840_s13 = smov 0  }
   0x4   :  { %s1842_s14 = smov 0   ;;  %s1844_s15 = smov 0  }
   0x5   :  { %s1846_s16 = smov 0   ;;  %s1848_s17 = smov 0  }
   0x6   :  { %s1850_s18 = smov 0   ;;  %s1852_s19 = smov 0  }
   0x7   :  { %s1854_s20 = smov 0   ;;  %s1856_s21 = smov 0  }
   0x8   :  { %s1858_s22 = smov 0  }
   0x9 LB: > { %s1432_s23 = sadd.s32 4294967295, %s1815_s22   ;;  %s25_s24 = sadd.s32 1, %s1807_s20  ;;  %s1815_s22 = sphi %s1858_s22, %s13_s22   ;;  %s1811_s21 = sphi %s1856_s21, %s2293_s21   ;;  %s1807_s20 = sphi %s1854_s20, %s2292_s20   ;;  %s1803_s19 = sphi %s1852_s19, %s2291_s19   ;;  %s1799_s18 = sphi %s1850_s18, %s2290_s18   ;;  %s1795_s17 = sphi %s1848_s17, %s2289_s17   ;;  %s1791_s16 = sphi %s1846_s16, %s2288_s16   ;;  %s1787_s15 = sphi %s1844_s15, %s2287_s15   ;;  %s1783_s14 = sphi %s1842_s14, %s2286_s14   ;;  %s1779_s13 = sphi %s1840_s13, %s2285_s13   ;;  %s1775_s12 = sphi %s1838_s12, %s2284_s12  }
   0xa   : > { %p26_p0 = scmp.ge.s32.totalorder %s25_s24, 2  ;;  %s28_s25 = sadd.s32 1, %s1811_s21 }
   0xb   : > { %s41_s26 = sadd.s32 1, %s1795_s17  ;;  %p48_p1 = scmp.ne.s32.totalorder %s1795_s17, %s1791_s16 }
   0xc   : > { %s2295_s24 = smov (%p26_p0, %s25_s24), 0  ;;  %s2297_s25 = smov (!%p26_p0, %s28_s25), %s1811_s21 }
   0xd   : > { %s37_s27 = ssub.s32 %s1807_s20, %s2295_s24  ;;  %p49_p2 = scmp.eq.s32.totalorder %s1815_s22, 0 }
   0xe   : > { %p30_p3 = scmp.ge.s32.totalorder %s2297_s25, 5  ;;  %p39_p4 = scmp.eq.s32.totalorder %s37_s27, 0 }
   0xf   : > { %p1905_p5 = por %p49_p2, %p48_p1  ;;  %s69_s29 = sadd.s32 1, %s1787_s15 }
  0x10   : > { %s2299_s25 = smov (%p30_p3, %s2297_s25), 0  ;;  %p76_p6 = scmp.ne.s32.totalorder %s1787_s15, %s1783_s14 }
  0x11   : > { %2278 = sst [smem:[#allocation6_spill]] %s2299_s25  ;;  %s65_s4 = ssub.s32 %s1811_s21, %s2299_s25 }
  0x12   : > { %s1913_s30 = scalar_select %p39_p4, %s1795_s17, %s41_s26  }
  0x13   : > { %s66_s5 = sor.u32 %s65_s4, %s37_s27  ;;  %p121_p7 = scmp.eq.s32.totalorder %s65_s4, 0 }
  0x14   : > { %p67_p8 = scmp.eq.s32.totalorder %s66_s5, 0  ;;  %p1919_p9 = por %p76_p6, %p49_p2 }
  0x15   : > { %s123_s7 = sadd.s32 1, %s1779_s13  ;;  %p133_p10 = scmp.ne.s32.totalorder %s1779_s13, %s1775_s12 }
  0x16   : > { %s1927_s8 = scalar_select %p67_p8, %s1787_s15, %s69_s29  }
  0x17   : > { %s1930_s9 = scalar_select %p121_p7, %s1779_s13, %s123_s7  }
  0x18   : > { %p134_p11 = scmp.eq.s32.totalorder %s1432_s23, 9  ;;  %p1435_p13 = scmp.ge.s32.totalorder %s1815_s22, 10 }
  0x1a   : > { %p1932_p12 = por %p134_p11, %p133_p10  ;;  %156 = sbr.rel (%p1435_p13) target bundleno = 116 (0x74), region = 16 }
  0x1f   : > { %159 = sbr.rel (!%p1905_p5) target bundleno = 43 (0x2b), region = 20  ;;  %s161_s11 = sand.u32 (%p1905_p5), 1, %s1795_s17  }
  0x20   : > { %s1503_s26 = smul.u32 (%p1905_p5), 24, %s1807_s20  ;;  %s2281_s0 = sld [smem:[#allocation7_spill]] (%p1905_p5) }
  0x21   : > { %s1577_s27 = smul.u32 (%p1905_p5), 48, %s161_s11 }
  0x23   : > { %s163_s23 = scalar_lea.vmem (%p1905_p5), [#allocation3], %s1577_s27 }
  0x26   : > { %s169_s5 = scalar_lea.vmem %s2281_s0, %s1503_s26 }
  0x27   : > { %v182_v0 = vld [vmem:[%s169_s5] sm:$0xff]  ;;  %v184_v1 = vld [vmem:[%s169_s5 + $0x8] sm:$0xff]  ;;  %v186_v2 = vld [vmem:[%s169_s5 + $0x10] sm:$0xff] }
  0x28   : > { %183 = vst [vmem:[%s163_s23] sm:$0xff] %v182_v0  ;;  %185 = vst [vmem:[%s163_s23 + $0x8] sm:$0xff] %v184_v1  ;;  %v188_v3 = vld [vmem:[%s169_s5 + $0x30] sm:$0xff]  ;;  %v190_v4 = vld [vmem:[%s169_s5 + $0x38] sm:$0xff] }
  0x29   : > { %187 = vst [vmem:[%s163_s23 + $0x10] sm:$0xff] %v186_v2  ;;  %v192_v5 = vld [vmem:[%s169_s5 + $0x40] sm:$0xff]  ;;  %189 = vst [vmem:[%s163_s23 + $0x18] sm:$0xff] %v188_v3 }
  0x2a   : > { %191 = vst [vmem:[%s163_s23 + $0x20] sm:$0xff] %v190_v4  ;;  %193 = vst [vmem:[%s163_s23 + $0x28] sm:$0xff] %v192_v5 }
  0x2b PF: > { %199 = sbr.rel (!%p1919_p9) target bundleno = 116 (0x74), region = 43  ;;  %s201_s28 = sand.u32 (%p1919_p9), 1, %s1787_s15  }
  0x2c   : > { %s1578_s7 = smul.u32 (%p1919_p9), 384, %s201_s28  ;;  %s2282_s1 = sld [smem:[#allocation8_spill]] (%p1919_p9) }
  0x2d   : > { %s1582_s11 = smul.u32 (%p1919_p9), 480, %s1807_s20 }
  0x2e   : > { %s1957_s6 = scalar_lea.vmem (%p1919_p9), [#allocation4], %s1578_s7 }
  0x2f   : > { %s206_s26 = sadd.s32 (%p1919_p9), %s1811_s21, %s1582_s11 }
  0x30   : > { %s1437_s27 = sshll.u32 %s206_s26, 2 }
  0x32   : > { %s1952_s0 = scalar_lea.vmem %s2282_s1, %s1437_s27 }
  0x33   : > { %v225_v6 = vld [vmem:[%s1952_s0] sm:$0xf]  ;;  %v227_v7 = vld [vmem:[%s1952_s0 + $0x14] sm:$0xf]  ;;  %v229_v8 = vld [vmem:[%s1952_s0 + $0x28] sm:$0xf] }
  0x34   : > { %226 = vst [vmem:[%s1957_s6] sm:$0xf] %v225_v6  ;;  %228 = vst [vmem:[%s1957_s6 + $0x4] sm:$0xf] %v227_v7  ;;  %v231_v9 = vld [vmem:[%s1952_s0 + $0x3c] sm:$0xf] }
  0x35   : > { %230 = vst [vmem:[%s1957_s6 + $0x8] sm:$0xf] %v229_v8  ;;  %v233_v10 = vld [vmem:[%s1952_s0 + $0x50] sm:$0xf]  ;;  %v235_v11 = vld [vmem:[%s1952_s0 + $0x64] sm:$0xf] }
  0x36   : > { %232 = vst [vmem:[%s1957_s6 + $0xc] sm:$0xf] %v231_v9  ;;  %234 = vst [vmem:[%s1957_s6 + $0x10] sm:$0xf] %v233_v10  ;;  %v237_v12 = vld [vmem:[%s1952_s0 + $0x78] sm:$0xf] }
  0x37   : > { %236 = vst [vmem:[%s1957_s6 + $0x14] sm:$0xf] %v235_v11  ;;  %v239_v13 = vld [vmem:[%s1952_s0 + $0x8c] sm:$0xf]  ;;  %v241_v14 = vld [vmem:[%s1952_s0 + $0xa0] sm:$0xf] }
  0x38   : > { %238 = vst [vmem:[%s1957_s6 + $0x18] sm:$0xf] %v237_v12  ;;  %240 = vst [vmem:[%s1957_s6 + $0x1c] sm:$0xf] %v239_v13  ;;  %v243_v15 = vld [vmem:[%s1952_s0 + $0xb4] sm:$0xf] }
  0x39   : > { %242 = vst [vmem:[%s1957_s6 + $0x20] sm:$0xf] %v241_v14  ;;  %v245_v16 = vld [vmem:[%s1952_s0 + $0xc8] sm:$0xf]  ;;  %v247_v17 = vld [vmem:[%s1952_s0 + $0xdc] sm:$0xf] }
  0x3a   : > { %244 = vst [vmem:[%s1957_s6 + $0x24] sm:$0xf] %v243_v15  ;;  %246 = vst [vmem:[%s1957_s6 + $0x28] sm:$0xf] %v245_v16  ;;  %v249_v18 = vld [vmem:[%s1952_s0 + $0xf0] sm:$0xf] }
  0x3b   : > { %248 = vst [vmem:[%s1957_s6 + $0x2c] sm:$0xf] %v247_v17  ;;  %v251_v19 = vld [vmem:[%s1952_s0 + $0x104] sm:$0xf]  ;;  %v253_v20 = vld [vmem:[%s1952_s0 + $0x118] sm:$0xf] }
  0x3c   : > { %250 = vst [vmem:[%s1957_s6 + $0x30] sm:$0xf] %v249_v18  ;;  %252 = vst [vmem:[%s1957_s6 + $0x34] sm:$0xf] %v251_v19  ;;  %v255_v21 = vld [vmem:[%s1952_s0 + $0x12c] sm:$0xf] }
  0x3d   : > { %254 = vst [vmem:[%s1957_s6 + $0x38] sm:$0xf] %v253_v20  ;;  %v257_v22 = vld [vmem:[%s1952_s0 + $0x140] sm:$0xf]  ;;  %v259_v23 = vld [vmem:[%s1952_s0 + $0x154] sm:$0xf] }
  0x3e   : > { %256 = vst [vmem:[%s1957_s6 + $0x3c] sm:$0xf] %v255_v21  ;;  %258 = vst [vmem:[%s1957_s6 + $0x40] sm:$0xf] %v257_v22  ;;  %v261_v24 = vld [vmem:[%s1952_s0 + $0x168] sm:$0xf] }
  0x3f   : > { %260 = vst [vmem:[%s1957_s6 + $0x44] sm:$0xf] %v259_v23  ;;  %v263_v25 = vld [vmem:[%s1952_s0 + $0x17c] sm:$0xf]  ;;  %v265_v26 = vld [vmem:[%s1952_s0 + $0x190] sm:$0xf] }
  0x40   : > { %262 = vst [vmem:[%s1957_s6 + $0x48] sm:$0xf] %v261_v24  ;;  %264 = vst [vmem:[%s1957_s6 + $0x4c] sm:$0xf] %v263_v25  ;;  %v267_v27 = vld [vmem:[%s1952_s0 + $0x1a4] sm:$0xf] }
  0x41   : > { %266 = vst [vmem:[%s1957_s6 + $0x50] sm:$0xf] %v265_v26  ;;  %v269_v28 = vld [vmem:[%s1952_s0 + $0x1b8] sm:$0xf]  ;;  %v271_v29 = vld [vmem:[%s1952_s0 + $0x1cc] sm:$0xf] }
  0x42   : > { %268 = vst [vmem:[%s1957_s6 + $0x54] sm:$0xf] %v267_v27  ;;  %270 = vst [vmem:[%s1957_s6 + $0x58] sm:$0xf] %v269_v28  ;;  %v273_v30 = vld [vmem:[%s1952_s0 + $0x1e0] sm:$0xf] }
  0x43   : > { %272 = vst [vmem:[%s1957_s6 + $0x5c] sm:$0xf] %v271_v29  ;;  %v275_v31 = vld [vmem:[%s1952_s0 + $0x1f4] sm:$0xf]  ;;  %v277_v32 = vld [vmem:[%s1952_s0 + $0x208] sm:$0xf] }
  0x44   : > { %274 = vst [vmem:[%s1957_s6 + $0x60] sm:$0xf] %v273_v30  ;;  %276 = vst [vmem:[%s1957_s6 + $0x64] sm:$0xf] %v275_v31  ;;  %v279_v33 = vld [vmem:[%s1952_s0 + $0x21c] sm:$0xf] }
  0x45   : > { %278 = vst [vmem:[%s1957_s6 + $0x68] sm:$0xf] %v277_v32  ;;  %v281_v34 = vld [vmem:[%s1952_s0 + $0x230] sm:$0xf]  ;;  %v283_v35 = vld [vmem:[%s1952_s0 + $0x244] sm:$0xf] }
  0x46   : > { %280 = vst [vmem:[%s1957_s6 + $0x6c] sm:$0xf] %v279_v33  ;;  %282 = vst [vmem:[%s1957_s6 + $0x70] sm:$0xf] %v281_v34  ;;  %v285_v36 = vld [vmem:[%s1952_s0 + $0x258] sm:$0xf] }
  0x47   : > { %284 = vst [vmem:[%s1957_s6 + $0x74] sm:$0xf] %v283_v35  ;;  %v287_v37 = vld [vmem:[%s1952_s0 + $0x26c] sm:$0xf]  ;;  %v289_v38 = vld [vmem:[%s1952_s0 + $0x280] sm:$0xf] }
  0x48   : > { %286 = vst [vmem:[%s1957_s6 + $0x78] sm:$0xf] %v285_v36  ;;  %288 = vst [vmem:[%s1957_s6 + $0x7c] sm:$0xf] %v287_v37  ;;  %v291_v39 = vld [vmem:[%s1952_s0 + $0x294] sm:$0xf] }
  0x49   : > { %290 = vst [vmem:[%s1957_s6 + $0x80] sm:$0xf] %v289_v38  ;;  %v293_v40 = vld [vmem:[%s1952_s0 + $0x2a8] sm:$0xf]  ;;  %v295_v41 = vld [vmem:[%s1952_s0 + $0x2bc] sm:$0xf] }
  0x4a   : > { %292 = vst [vmem:[%s1957_s6 + $0x84] sm:$0xf] %v291_v39  ;;  %294 = vst [vmem:[%s1957_s6 + $0x88] sm:$0xf] %v293_v40  ;;  %v297_v42 = vld [vmem:[%s1952_s0 + $0x2d0] sm:$0xf] }
  0x4b   : > { %296 = vst [vmem:[%s1957_s6 + $0x8c] sm:$0xf] %v295_v41  ;;  %v299_v43 = vld [vmem:[%s1952_s0 + $0x2e4] sm:$0xf]  ;;  %v301_v44 = vld [vmem:[%s1952_s0 + $0x2f8] sm:$0xf] }
  0x4c   : > { %298 = vst [vmem:[%s1957_s6 + $0x90] sm:$0xf] %v297_v42  ;;  %300 = vst [vmem:[%s1957_s6 + $0x94] sm:$0xf] %v299_v43  ;;  %v303_v45 = vld [vmem:[%s1952_s0 + $0x30c] sm:$0xf] }
  0x4d   : > { %302 = vst [vmem:[%s1957_s6 + $0x98] sm:$0xf] %v301_v44  ;;  %v305_v46 = vld [vmem:[%s1952_s0 + $0x320] sm:$0xf]  ;;  %v307_v47 = vld [vmem:[%s1952_s0 + $0x334] sm:$0xf] }
  0x4e   : > { %304 = vst [vmem:[%s1957_s6 + $0x9c] sm:$0xf] %v303_v45  ;;  %306 = vst [vmem:[%s1957_s6 + $0xa0] sm:$0xf] %v305_v46  ;;  %v309_v48 = vld [vmem:[%s1952_s0 + $0x348] sm:$0xf] }
  0x4f   : > { %308 = vst [vmem:[%s1957_s6 + $0xa4] sm:$0xf] %v307_v47  ;;  %v311_v49 = vld [vmem:[%s1952_s0 + $0x35c] sm:$0xf]  ;;  %v313_v50 = vld [vmem:[%s1952_s0 + $0x370] sm:$0xf] }
  0x50   : > { %310 = vst [vmem:[%s1957_s6 + $0xa8] sm:$0xf] %v309_v48  ;;  %312 = vst [vmem:[%s1957_s6 + $0xac] sm:$0xf] %v311_v49  ;;  %v315_v51 = vld [vmem:[%s1952_s0 + $0x384] sm:$0xf] }
  0x51   : > { %314 = vst [vmem:[%s1957_s6 + $0xb0] sm:$0xf] %v313_v50  ;;  %v317_v52 = vld [vmem:[%s1952_s0 + $0x398] sm:$0xf]  ;;  %v319_v53 = vld [vmem:[%s1952_s0 + $0x3ac] sm:$0xf] }
  0x52   : > { %316 = vst [vmem:[%s1957_s6 + $0xb4] sm:$0xf] %v315_v51  ;;  %318 = vst [vmem:[%s1957_s6 + $0xb8] sm:$0xf] %v317_v52  ;;  %v321_v54 = vld [vmem:[%s1952_s0 + $0x3c0] sm:$0xf] }
  0x53   : > { %320 = vst [vmem:[%s1957_s6 + $0xbc] sm:$0xf] %v319_v53  ;;  %v323_v55 = vld [vmem:[%s1952_s0 + $0x3d4] sm:$0xf]  ;;  %v325_v56 = vld [vmem:[%s1952_s0 + $0x3e8] sm:$0xf] }
  0x54   : > { %322 = vst [vmem:[%s1957_s6 + $0xc0] sm:$0xf] %v321_v54  ;;  %324 = vst [vmem:[%s1957_s6 + $0xc4] sm:$0xf] %v323_v55  ;;  %v327_v57 = vld [vmem:[%s1952_s0 + $0x3fc] sm:$0xf] }
  0x55   : > { %326 = vst [vmem:[%s1957_s6 + $0xc8] sm:$0xf] %v325_v56  ;;  %v329_v58 = vld [vmem:[%s1952_s0 + $0x410] sm:$0xf]  ;;  %v331_v59 = vld [vmem:[%s1952_s0 + $0x424] sm:$0xf] }
  0x56   : > { %328 = vst [vmem:[%s1957_s6 + $0xcc] sm:$0xf] %v327_v57  ;;  %330 = vst [vmem:[%s1957_s6 + $0xd0] sm:$0xf] %v329_v58  ;;  %v333_v60 = vld [vmem:[%s1952_s0 + $0x438] sm:$0xf] }
  0x57   : > { %332 = vst [vmem:[%s1957_s6 + $0xd4] sm:$0xf] %v331_v59  ;;  %v335_v61 = vld [vmem:[%s1952_s0 + $0x44c] sm:$0xf]  ;;  %v337_v62 = vld [vmem:[%s1952_s0 + $0x460] sm:$0xf] }
  0x58   : > { %334 = vst [vmem:[%s1957_s6 + $0xd8] sm:$0xf] %v333_v60  ;;  %336 = vst [vmem:[%s1957_s6 + $0xdc] sm:$0xf] %v335_v61  ;;  %v339_v63 = vld [vmem:[%s1952_s0 + $0x474] sm:$0xf] }
  0x59   : > { %338 = vst [vmem:[%s1957_s6 + $0xe0] sm:$0xf] %v337_v62  ;;  %v341_v0 = vld [vmem:[%s1952_s0 + $0x488] sm:$0xf]  ;;  %v343_v1 = vld [vmem:[%s1952_s0 + $0x49c] sm:$0xf] }
  0x5a   : > { %340 = vst [vmem:[%s1957_s6 + $0xe4] sm:$0xf] %v339_v63  ;;  %342 = vst [vmem:[%s1957_s6 + $0xe8] sm:$0xf] %v341_v0  ;;  %v345_v2 = vld [vmem:[%s1952_s0 + $0x4b0] sm:$0xf] }
  0x5b   : > { %344 = vst [vmem:[%s1957_s6 + $0xec] sm:$0xf] %v343_v1  ;;  %v347_v3 = vld [vmem:[%s1952_s0 + $0x4c4] sm:$0xf]  ;;  %v349_v4 = vld [vmem:[%s1952_s0 + $0x4d8] sm:$0xf] }
  0x5c   : > { %346 = vst [vmem:[%s1957_s6 + $0xf0] sm:$0xf] %v345_v2  ;;  %348 = vst [vmem:[%s1957_s6 + $0xf4] sm:$0xf] %v347_v3  ;;  %v351_v5 = vld [vmem:[%s1952_s0 + $0x4ec] sm:$0xf] }
  0x5d   : > { %350 = vst [vmem:[%s1957_s6 + $0xf8] sm:$0xf] %v349_v4  ;;  %v353_v6 = vld [vmem:[%s1952_s0 + $0x500] sm:$0xf]  ;;  %v355_v7 = vld [vmem:[%s1952_s0 + $0x514] sm:$0xf] }
  0x5e   : > { %352 = vst [vmem:[%s1957_s6 + $0xfc] sm:$0xf] %v351_v5  ;;  %354 = vst [vmem:[%s1957_s6 + $0x100] sm:$0xf] %v353_v6  ;;  %v357_v8 = vld [vmem:[%s1952_s0 + $0x528] sm:$0xf] }
  0x5f   : > { %356 = vst [vmem:[%s1957_s6 + $0x104] sm:$0xf] %v355_v7  ;;  %v359_v9 = vld [vmem:[%s1952_s0 + $0x53c] sm:$0xf]  ;;  %v361_v10 = vld [vmem:[%s1952_s0 + $0x550] sm:$0xf] }
  0x60   : > { %358 = vst [vmem:[%s1957_s6 + $0x108] sm:$0xf] %v357_v8  ;;  %360 = vst [vmem:[%s1957_s6 + $0x10c] sm:$0xf] %v359_v9  ;;  %v363_v11 = vld [vmem:[%s1952_s0 + $0x564] sm:$0xf] }
  0x61   : > { %362 = vst [vmem:[%s1957_s6 + $0x110] sm:$0xf] %v361_v10  ;;  %v365_v12 = vld [vmem:[%s1952_s0 + $0x578] sm:$0xf]  ;;  %v367_v13 = vld [vmem:[%s1952_s0 + $0x58c] sm:$0xf] }
  0x62   : > { %364 = vst [vmem:[%s1957_s6 + $0x114] sm:$0xf] %v363_v11  ;;  %366 = vst [vmem:[%s1957_s6 + $0x118] sm:$0xf] %v365_v12  ;;  %v369_v14 = vld [vmem:[%s1952_s0 + $0x5a0] sm:$0xf] }
  0x63   : > { %368 = vst [vmem:[%s1957_s6 + $0x11c] sm:$0xf] %v367_v13  ;;  %v371_v15 = vld [vmem:[%s1952_s0 + $0x5b4] sm:$0xf]  ;;  %v373_v16 = vld [vmem:[%s1952_s0 + $0x5c8] sm:$0xf] }
  0x64   : > { %370 = vst [vmem:[%s1957_s6 + $0x120] sm:$0xf] %v369_v14  ;;  %372 = vst [vmem:[%s1957_s6 + $0x124] sm:$0xf] %v371_v15  ;;  %v375_v17 = vld [vmem:[%s1952_s0 + $0x5dc] sm:$0xf] }
  0x65   : > { %374 = vst [vmem:[%s1957_s6 + $0x128] sm:$0xf] %v373_v16  ;;  %v377_v18 = vld [vmem:[%s1952_s0 + $0x5f0] sm:$0xf]  ;;  %v379_v19 = vld [vmem:[%s1952_s0 + $0x604] sm:$0xf] }
  0x66   : > { %376 = vst [vmem:[%s1957_s6 + $0x12c] sm:$0xf] %v375_v17  ;;  %378 = vst [vmem:[%s1957_s6 + $0x130] sm:$0xf] %v377_v18  ;;  %v381_v20 = vld [vmem:[%s1952_s0 + $0x618] sm:$0xf] }
  0x67   : > { %380 = vst [vmem:[%s1957_s6 + $0x134] sm:$0xf] %v379_v19  ;;  %v383_v21 = vld [vmem:[%s1952_s0 + $0x62c] sm:$0xf]  ;;  %v385_v22 = vld [vmem:[%s1952_s0 + $0x640] sm:$0xf] }
  0x68   : > { %382 = vst [vmem:[%s1957_s6 + $0x138] sm:$0xf] %v381_v20  ;;  %384 = vst [vmem:[%s1957_s6 + $0x13c] sm:$0xf] %v383_v21  ;;  %v387_v23 = vld [vmem:[%s1952_s0 + $0x654] sm:$0xf] }
  0x69   : > { %386 = vst [vmem:[%s1957_s6 + $0x140] sm:$0xf] %v385_v22  ;;  %v389_v24 = vld [vmem:[%s1952_s0 + $0x668] sm:$0xf]  ;;  %v391_v25 = vld [vmem:[%s1952_s0 + $0x67c] sm:$0xf] }
  0x6a   : > { %388 = vst [vmem:[%s1957_s6 + $0x144] sm:$0xf] %v387_v23  ;;  %390 = vst [vmem:[%s1957_s6 + $0x148] sm:$0xf] %v389_v24  ;;  %v393_v26 = vld [vmem:[%s1952_s0 + $0x690] sm:$0xf] }
  0x6b   : > { %392 = vst [vmem:[%s1957_s6 + $0x14c] sm:$0xf] %v391_v25  ;;  %v395_v27 = vld [vmem:[%s1952_s0 + $0x6a4] sm:$0xf]  ;;  %v397_v28 = vld [vmem:[%s1952_s0 + $0x6b8] sm:$0xf] }
  0x6c   : > { %394 = vst [vmem:[%s1957_s6 + $0x150] sm:$0xf] %v393_v26  ;;  %396 = vst [vmem:[%s1957_s6 + $0x154] sm:$0xf] %v395_v27  ;;  %v399_v29 = vld [vmem:[%s1952_s0 + $0x6cc] sm:$0xf] }
  0x6d   : > { %398 = vst [vmem:[%s1957_s6 + $0x158] sm:$0xf] %v397_v28  ;;  %v401_v30 = vld [vmem:[%s1952_s0 + $0x6e0] sm:$0xf]  ;;  %v403_v31 = vld [vmem:[%s1952_s0 + $0x6f4] sm:$0xf] }
  0x6e   : > { %400 = vst [vmem:[%s1957_s6 + $0x15c] sm:$0xf] %v399_v29  ;;  %402 = vst [vmem:[%s1957_s6 + $0x160] sm:$0xf] %v401_v30  ;;  %v405_v32 = vld [vmem:[%s1952_s0 + $0x708] sm:$0xf] }
  0x6f   : > { %404 = vst [vmem:[%s1957_s6 + $0x164] sm:$0xf] %v403_v31  ;;  %v407_v33 = vld [vmem:[%s1952_s0 + $0x71c] sm:$0xf]  ;;  %v409_v34 = vld [vmem:[%s1952_s0 + $0x730] sm:$0xf] }
  0x70   : > { %406 = vst [vmem:[%s1957_s6 + $0x168] sm:$0xf] %v405_v32  ;;  %408 = vst [vmem:[%s1957_s6 + $0x16c] sm:$0xf] %v407_v33  ;;  %v411_v35 = vld [vmem:[%s1952_s0 + $0x744] sm:$0xf] }
  0x71   : > { %410 = vst [vmem:[%s1957_s6 + $0x170] sm:$0xf] %v409_v34  ;;  %v413_v36 = vld [vmem:[%s1952_s0 + $0x758] sm:$0xf]  ;;  %v415_v37 = vld [vmem:[%s1952_s0 + $0x76c] sm:$0xf] }
  0x72   : > { %412 = vst [vmem:[%s1957_s6 + $0x174] sm:$0xf] %v411_v35  ;;  %414 = vst [vmem:[%s1957_s6 + $0x178] sm:$0xf] %v413_v36 }
  0x73   : > { %416 = vst [vmem:[%s1957_s6 + $0x17c] sm:$0xf] %v415_v37 }
  0x74 PF: > { %p1438_p0 = scmp.ge.s32.totalorder %s1815_s22, 1  ;;  %p637_p1 = scmp.lt.s32.totalorder %s1815_s22, 11 }
  0x76   : > { %p638_p2 = pnand %p1438_p0, %p637_p1 }
  0x77   : > { %s644_s5 = sand.u32 (!%p638_p2), 1, %s1791_s16   ;;  %s651_s23 = sand.u32 (!%p638_p2), 1, %s1783_s14  }
  0x78   : > { %641 = sbr.rel (%p638_p2) target bundleno = 427 (0x1ab), region = 88  ;;  %s677_s0 = sand.u32 (!%p638_p2), 1, %s1775_s12  }
  0x79   : > { %s1580_s28 = smul.u32 (!%p638_p2), 48, %s644_s5  ;;  %s1439_s11 = sshll.u32 (!%p638_p2), %s677_s0, 3 }
  0x7a   : > { %s1581_s7 = smul.u32 (!%p638_p2), 384, %s651_s23  ;;  %p683_p3 = scmp.lt.s32.totalorder (!%p638_p2), %s1803_s19, 4 }
  0x7b   : > { %s2161_s6 = scalar_lea.vmem (!%p638_p2), [#allocation3], %s1580_s28  ;;  %s2165_s25 = scalar_lea.vmem (!%p638_p2), [#allocation5], %s1439_s11 }
  0x7c   : > { %s2163_s1 = scalar_lea.vmem (!%p638_p2), [#allocation4], %s1581_s7  ;;  %p1440_p4 = scmp.ne.s32.totalorder (!%p638_p2), %s1799_s18, 0 }
  0x7d   : > { %s2155_s26 = scalar_select %p683_p3, %s1803_s19, 4 }
  0x7e   : > { %691 = sbr.rel (%p1440_p4) target bundleno = 133 (0x85), region = 100 }
  0x7f   : > { %s685_s4 = scalar_lea.vmem %s2272_s2, %s2155_s26 }
  0x83   : > { %v1817_v38 = vmov 0.0  }
  0x84   : > { %692 = vst [vmem:[#allocation2] sm:$0xff] %v1817_v38  ;;  %693 = vst [vmem:[#allocation2 + $0x8] sm:$0xff] %v1817_v38 }
  0x85 PF: > { %v1672_v39 = vld [vmem:[%s2163_s1 + $0x78] sm:$0xff]   ;;  %v1676_v43 = vld [vmem:[%s2163_s1 + $0x70] sm:$0xff]   ;;  %v1680_v47 = vld [vmem:[%s2163_s1 + $0x68] sm:$0xff]   ;;  %p1495_p5 = scmp.ne.s32.totalorder %s1799_s18, 1 }
  0x86   : > { %v1673_v40 = vld [vmem:[%s2163_s1 + $0xf8] sm:$0xff]   ;;  %1511 = vmatprep.subr.bf16.mxu0 %v1672_v39  ;;  %v1677_v44 = vld [vmem:[%s2163_s1 + $0xf0] sm:$0xff]   ;;  %v1681_v48 = vld [vmem:[%s2163_s1 + $0xe8] sm:$0xff]  }
  0x87   : > { %v1674_v41 = vld [vmem:[%s2163_s1 + $0x38] sm:$0xff]   ;;  %1533 = vmatprep.subr.bf16.mxu1 %v1673_v40  ;;  %v1678_v45 = vld [vmem:[%s2163_s1 + $0x30] sm:$0xff]   ;;  %v1682_v49 = vld [vmem:[%s2163_s1 + $0x28] sm:$0xff]  }
  0x88   : > { %v1675_v42 = vld [vmem:[%s2163_s1 + $0xb8] sm:$0xff]   ;;  %1512 = vmatpush3.bf16.msra.mxu0 %v1674_v41  ;;  %v1679_v46 = vld [vmem:[%s2163_s1 + $0xb0] sm:$0xff]   ;;  %v1683_v50 = vld [vmem:[%s2163_s1 + $0xa8] sm:$0xff]  }
  0x89   : > { %1534 = vmatpush3.bf16.msra.mxu1 %v1675_v42  ;;  %1513 = vmatprep.subr.bf16.mxu0 %v1676_v43  ;;  %v1684_v51 = vld [vmem:[%s2163_s1 + $0x60] sm:$0xff]   ;;  %v1688_v55 = vld [vmem:[%s2163_s1 + $0x58] sm:$0xff]   ;;  %v1692_v59 = vld [vmem:[%s2163_s1 + $0x50] sm:$0xff]  }
  0x8a   : > { %1535 = vmatprep.subr.bf16.mxu1 %v1677_v44  ;;  %v1685_v52 = vld [vmem:[%s2163_s1 + $0xe0] sm:$0xff]   ;;  %v1689_v56 = vld [vmem:[%s2163_s1 + $0xd8] sm:$0xff]   ;;  %v1693_v60 = vld [vmem:[%s2163_s1 + $0xd0] sm:$0xff]  }
  0x8b   : > { %v1686_v53 = vld [vmem:[%s2163_s1 + $0x20] sm:$0xff]   ;;  %v1690_v57 = vld [vmem:[%s2163_s1 + $0x18] sm:$0xff]   ;;  %v1694_v61 = vld [vmem:[%s2163_s1 + $0x10] sm:$0xff]  }
  0x8c   : > { %1514 = vmatpush3.bf16.msra.mxu0 %v1678_v45  ;;  %v1687_v54 = vld [vmem:[%s2163_s1 + $0xa0] sm:$0xff]   ;;  %v1691_v58 = vld [vmem:[%s2163_s1 + $0x98] sm:$0xff]   ;;  %v1695_v62 = vld [vmem:[%s2163_s1 + $0x90] sm:$0xff]  }
  0x8d   : > { %1536 = vmatpush3.bf16.msra.mxu1 %v1679_v46  ;;  %1515 = vmatprep.subr.bf16.mxu0 %v1680_v47  ;;  %v1696_v63 = vld [vmem:[%s2163_s1 + $0x48] sm:$0xff]   ;;  %v1700_v3 = vld [vmem:[%s2163_s1 + $0x40] sm:$0xff]   ;;  %v1710_v11 = vld [vmem:[%s2163_s1 + $0x178] sm:$0xff]  }
  0x8e   : > { %1537 = vmatprep.subr.bf16.mxu1 %v1681_v48  ;;  %v1697_v0 = vld [vmem:[%s2163_s1 + $0xc8] sm:$0xff]   ;;  %v1701_v4 = vld [vmem:[%s2163_s1 + $0xc0] sm:$0xff]   ;;  %v1711_v12 = vld [vmem:[%s2163_s1 + $0x138] sm:$0xff]  }
  0x8f   : > { %v1698_v1 = vld [vmem:[%s2163_s1 + $0x8] sm:$0xff]   ;;  %v1702_v5 = vld [vmem:[%s2163_s1] sm:$0xff]   ;;  %v1712_v13 = vld [vmem:[%s2163_s1 + $0x170] sm:$0xff]  }
  0x90   : > { %1516 = vmatpush3.bf16.msra.mxu0 %v1682_v49  ;;  %v1699_v2 = vld [vmem:[%s2163_s1 + $0x88] sm:$0xff]   ;;  %v1703_v6 = vld [vmem:[%s2163_s1 + $0x80] sm:$0xff]   ;;  %v1713_v14 = vld [vmem:[%s2163_s1 + $0x130] sm:$0xff]  }
  0x91   : > { %1538 = vmatpush3.bf16.msra.mxu1 %v1683_v50  ;;  %1517 = vmatprep.subr.bf16.mxu0 %v1684_v51  ;;  %v1704_v7 = vld [vmem:[%s2161_s6] ss:$24 sps:$4 sm:$0xff]   ;;  %v1706_v8 = vld [vmem:[%s2161_s6 + $0x4] ss:$24 sps:$4 sm:$0xff]   ;;  %v1728_v22 = vld [vmem:[%s2161_s6 + $0x14] ss:$24 sps:$4 sm:$0xff]  }
  0x92   : > { %1539 = vmatprep.subr.bf16.mxu1 %v1685_v52  ;;  %v1707_v9 = vld [vmem:[%s2161_s6 + $0x8] ss:$24 sps:$4 sm:$0xff]   ;;  %v1709_v10 = vld [vmem:[%s2161_s6 + $0xc] ss:$24 sps:$4 sm:$0xff]   ;;  %1148 = vmatprep.mubr.bf16.mxu0 %v1706_v8 }
  0x93   : > { %1189 = vmatprep.mubr.bf16.mxu1 %v1709_v10  ;;  %v1714_v15 = vld [vmem:[%s2163_s1 + $0x168] sm:$0xff]   ;;  %v1716_v17 = vld [vmem:[%s2163_s1 + $0x160] sm:$0xff]   ;;  %v1718_v19 = vld [vmem:[%s2163_s1 + $0x158] sm:$0xff]  }
  0x94   : > { %1518 = vmatpush3.bf16.msra.mxu0 %v1686_v53  ;;  %v1715_v16 = vld [vmem:[%s2163_s1 + $0x128] sm:$0xff]   ;;  %v1717_v18 = vld [vmem:[%s2163_s1 + $0x120] sm:$0xff]   ;;  %v1719_v20 = vld [vmem:[%s2163_s1 + $0x118] sm:$0xff]  }
  0x95   : > { %1540 = vmatpush3.bf16.msra.mxu1 %v1687_v54  ;;  %1519 = vmatprep.subr.bf16.mxu0 %v1688_v55  ;;  %v1720_v21 = vld [vmem:[%s2163_s1 + $0x150] sm:$0xff]   ;;  %v1722_v24 = vld [vmem:[%s2163_s1 + $0x148] sm:$0xff]   ;;  %v1724_v26 = vld [vmem:[%s2163_s1 + $0x140] sm:$0xff]  }
  0x96   : > { %1541 = vmatprep.subr.bf16.mxu1 %v1689_v56  ;;  %v1721_v23 = vld [vmem:[%s2163_s1 + $0x110] sm:$0xff]   ;;  %v1723_v25 = vld [vmem:[%s2163_s1 + $0x108] sm:$0xff]   ;;  %v1725_v27 = vld [vmem:[%s2163_s1 + $0x100] sm:$0xff]  }
  0x97   : > { %v1726_v28 = vld [vmem:[%s2161_s6 + $0x10] ss:$24 sps:$4 sm:$0xff]  }
  0x98   : > { %1520 = vmatpush3.bf16.msra.mxu0 %v1690_v57  ;;  %v694_v45 = vld [vmem:[#allocation2] sm:$0xff]  ;;  %v695_v52 = vld [vmem:[#allocation2 + $0x8] sm:$0xff] }
  0x99   : > { %1542 = vmatpush3.bf16.msra.mxu1 %v1691_v58  ;;  %1521 = vmatprep.subr.bf16.mxu0 %v1692_v59 }
  0x9a   : > { %1543 = vmatprep.subr.bf16.mxu1 %v1693_v60 }
  0x9c   : > { %1522 = vmatpush3.bf16.msra.mxu0 %v1694_v61 }
  0x9d   : > { %1544 = vmatpush3.bf16.msra.mxu1 %v1695_v62  ;;  %1523 = vmatprep.subr.bf16.mxu0 %v1696_v63 }
  0x9e   : > { %1545 = vmatprep.subr.bf16.mxu1 %v1697_v0 }
  0xa0   : > { %1524 = vmatpush3.bf16.msra.mxu0 %v1698_v1 }
  0xa1   : > { %1546 = vmatpush3.bf16.msra.mxu1 %v1699_v2  ;;  %1525 = vmatprep.subr.bf16.mxu0 %v1700_v3 }
  0xa2   : > { %1547 = vmatprep.subr.bf16.mxu1 %v1701_v4 }
  0xa4   : > { %1526 = vmatpush3.bf16.msra.mxu0 %v1702_v5 }
  0xa5   : > { %1548 = vmatpush3.bf16.msra.mxu1 %v1703_v6  ;;  %1555 = vmatprep.subr.bf16.mxu0 %v1710_v11 }
  0xa7   : > { %1149 = vmatmul.mubr.bf16.vlgmr.msra.gmra.mxu0 %v1704_v7 }
  0xa8   : > { %1190 = vmatmul.mubr.bf16.vlgmr.msra.gmra.mxu1 %v1707_v9  ;;  %1556 = vmatpush3.bf16.msra.mxu0 %v1711_v12 }
  0xa9   : > { %1557 = vmatprep.subr.bf16.mxu0 %v1712_v13  ;;  %1230 = vmatprep.mubr.bf16.mxu0 %v1728_v22 }
  0xac   : > { %1558 = vmatpush3.bf16.msra.mxu0 %v1713_v14 }
  0xad   : > { %1559 = vmatprep.subr.bf16.mxu0 %v1714_v15 }
  0xb0   : > { %1560 = vmatpush3.bf16.msra.mxu0 %v1715_v16 }
  0xb1   : > { %1561 = vmatprep.subr.bf16.mxu0 %v1716_v17 }
  0xb4   : > { %1562 = vmatpush3.bf16.msra.mxu0 %v1717_v18 }
  0xb5   : > { %1563 = vmatprep.subr.bf16.mxu0 %v1718_v19 }
  0xb8   : > { %1564 = vmatpush3.bf16.msra.mxu0 %v1719_v20 }
  0xb9   : > { %1565 = vmatprep.subr.bf16.mxu0 %v1720_v21 }
  0xbc   : > { %1566 = vmatpush3.bf16.msra.mxu0 %v1721_v23 }
  0xbd   : > { %1567 = vmatprep.subr.bf16.mxu0 %v1722_v24 }
  0xc0   : > { %1568 = vmatpush3.bf16.msra.mxu0 %v1723_v25 }
  0xc1   : > { %1569 = vmatprep.subr.bf16.mxu0 %v1724_v26 }
  0xc4   : > { %1570 = vmatpush3.bf16.msra.mxu0 %v1725_v27 }
  0xc7   : > { %1231 = vmatmul.mubr.bf16.vlgmr.msra.gmra.mxu0 %v1726_v28 }
 0x167   : > { %v1527_v29 = vpop.f32.mrf.mxu0 }
 0x168   : > { %v1549_v30 = vpop.f32.mrf.mxu1 }
 0x169   : > { %v1528_v31 = vpop.f32.mrf.mxu0 }
 0x16a   : > { %v1550_v32 = vpop.f32.mrf.mxu1  ;;  %v1529_v36 = vadd.f32 %v1528_v31, %v1527_v29 }
 0x16b   : > { %v1530_v33 = vpop.f32.mrf.mxu0  ;;  %v1551_v37 = vadd.f32 %v1550_v32, %v1549_v30 }
 0x16c   : > { %v1552_v34 = vpop.f32.mrf.mxu1 }
 0x16d   : > { %v1531_v35 = vpop.f32.mrf.mxu0  ;;  %v1192_v41 = vadd.f32 %v1551_v37, %v1529_v36 }
 0x16e   : > { %v1553_v38 = vpop.f32.mrf.mxu1  ;;  %v1532_v42 = vadd.f32 %v1531_v35, %v1530_v33 }
 0x16f   : > { %v1554_v43 = vadd.f32 %v1553_v38, %v1552_v34 }
 0x171   : > { %v1195_v49 = vadd.f32 %v1554_v43, %v1532_v42 }
 0x187   : > { %v1571_v39 = vpop.f32.mrf.mxu0 }
 0x189   : > { %v1572_v40 = vpop.f32.mrf.mxu0 }
 0x18a   : > { %v1573_v44 = vadd.f32 %v1572_v40, %v1571_v39 }
 0x18b   : > { %v1574_v46 = vpop.f32.mrf.mxu0 }
 0x18c   : > { %v1233_v47 = vadd.f32 %v1573_v44, %v1192_v41 }
 0x18d   : > { %v1575_v48 = vpop.f32.mrf.mxu0 }
 0x18e   : > { %v1239_v50 = vadd.f32 %v1233_v47, %v694_v45  ;;  %v1576_v51 = vadd.f32 %v1575_v48, %v1574_v46 }
 0x190   : > { %1241 = vst [vmem:[#allocation2] sm:$0xff] %v1239_v50  ;;  %v1236_v53 = vadd.f32 %v1576_v51, %v1195_v49  ;;  %1246 = sbr.rel (%p1495_p5) target bundleno = 419 (0x1a3), region = 104 }
 0x192   : > { %v1240_v54 = vadd.f32 %v1236_v53, %v695_v52 }
 0x194   : > { %1242 = vst [vmem:[#allocation2 + $0x8] sm:$0xff] %v1240_v54 }
 0x195   : > { %v1496_v57 = vld [vmem:[%s685_s4] ss:$0 sm:$0xff] }
 0x197   : > { %v1247_v55 = vld [vmem:[#allocation2] sm:$0xff] }
 0x198   : > { %v1256_v58 = vadd.f32 %v1496_v57, %v1247_v55 }
 0x19a   : > { %v1258_v60 = vmax.f32 %v1256_v58, 0.0 }
 0x19b   : > { %v1248_v56 = vld [vmem:[#allocation2 + $0x8] sm:$0xff] }
 0x19c   : > { %v1257_v59 = vadd.f32 %v1496_v57, %v1248_v56 }
 0x19e   : > { %v1259_v61 = vmax.f32 %v1257_v59, 0.0 }
 0x1a0   : > { %v1509_v62 = vpack.c.bf16 %v1259_v61, %v1258_v60 }
 0x1a2   : > { %1510 = vst [vmem:[%s2165_s25] sm:$0xff] %v1509_v62  }
 0x1a3 PF: > { %1276 = sbr.rel (!%p1932_p12) target bundleno = 427 (0x1ab), region = 108  ;;  %s1500_s14 = sshll.u32 (%p1932_p12), %s1803_s19, 2 }
 0x1a4   : > { %s1281_s5 = scalar_lea.vmem (%p1932_p12), %s2273_s3, %s1500_s14 }
 0x1a9   : > { %v1298_v63 = vld [vmem:[%s2165_s25] sm:$0xf]  ;;  %v1300_v0 = vld [vmem:[%s2165_s25 + $0x4] sm:$0xf] }
 0x1aa   : > { %1299 = vst [vmem:[%s1281_s5] sm:$0xf] %v1298_v63  ;;  %1301 = vst [vmem:[%s1281_s5 + $0x14] sm:$0xf] %v1300_v0 }
 0x1ab PF: > { %s13_s22 = sadd.s32 1, %s1815_s22   ;;  %s2283_s25 = sld [smem:[#allocation6_spill]] }
 0x1ac   : > { %p10_p6 = scmp.ge.s32.totalorder %s13_s22, 12   ;;  %s2284_s12 = smov %s1779_s13 }
 0x1ad   : > { %s2285_s13 = smov %s1930_s9  ;;  %s2286_s14 = smov %s1787_s15 }
 0x1ae   : > { %s2287_s15 = smov %s1927_s8  ;;  %s2288_s16 = smov %s1795_s17 }
 0x1af   : > { %s2289_s17 = smov %s1913_s30  ;;  %s2290_s18 = smov %s1807_s20 }
 0x1b0   : > { %s2291_s19 = smov %s1811_s21  ;;  %s2292_s20 = smov %s2295_s24 }
 0x1b1   : > { %s2293_s21 = smov %s2283_s25  ;;  %12 = sbr.rel (!%p10_p6) target bundleno = 9 (0x9), region = 191 }

// kernel: forward.15
= control target key start
LH: loop header
LB: loop body
LE: loop exit
PB: predicated region body
PF: predicated region fallthrough
CT: control target
= control target key end

     0   :  { %v690_v34 = vmov 0.0   ;;  %vm691_vm0 = vmmov 0   ;;  %s856_s1 = inlined_call_operand.vmem [shape: bf16[640,128], index: 1, kind: input, shape index: {}]   ;;  %s857_s0 = inlined_call_operand.vmem [shape: bf16[16,640], index: 0, kind: input, shape index: {}]   ;;  %s858_s2 = inlined_call_operand.vmem [shape: f32[1,128], index: 2, kind: input, shape index: {}]   ;;  %s859_s3 = inlined_call_operand.vmem [shape: f32[16,128], index: 3, kind: output, shape index: {}]  }
   0x1   :  { %v643_v0 = vld [vmem:[%s856_s1 + $0x78] sm:$0xff]   ;;  %v647_v4 = vld [vmem:[%s856_s1 + $0x70] sm:$0xff]   ;;  %v651_v8 = vld [vmem:[%s856_s1 + $0x68] sm:$0xff]  }
   0x2   :  { %v644_v1 = vld [vmem:[%s856_s1 + $0xf8] sm:$0xff]   ;;  %568 = vmatprep.subr.bf16.mxu0 %v643_v0  ;;  %v648_v5 = vld [vmem:[%s856_s1 + $0xf0] sm:$0xff]   ;;  %v652_v9 = vld [vmem:[%s856_s1 + $0xe8] sm:$0xff]  }
   0x3   :  { %v645_v2 = vld [vmem:[%s856_s1 + $0x38] sm:$0xff]   ;;  %590 = vmatprep.subr.bf16.mxu1 %v644_v1  ;;  %v649_v6 = vld [vmem:[%s856_s1 + $0x30] sm:$0xff]   ;;  %v653_v10 = vld [vmem:[%s856_s1 + $0x28] sm:$0xff]  }
   0x4   :  { %v646_v3 = vld [vmem:[%s856_s1 + $0xb8] sm:$0xff]   ;;  %569 = vmatpush3.bf16.msra.mxu0 %v645_v2  ;;  %v650_v7 = vld [vmem:[%s856_s1 + $0xb0] sm:$0xff]   ;;  %v654_v11 = vld [vmem:[%s856_s1 + $0xa8] sm:$0xff]  }
   0x5   :  { %591 = vmatpush3.bf16.msra.mxu1 %v646_v3  ;;  %570 = vmatprep.subr.bf16.mxu0 %v647_v4  ;;  %v655_v12 = vld [vmem:[%s856_s1 + $0x60] sm:$0xff]   ;;  %v659_v16 = vld [vmem:[%s856_s1 + $0x58] sm:$0xff]   ;;  %v663_v20 = vld [vmem:[%s856_s1 + $0x50] sm:$0xff]  }
   0x6   :  { %592 = vmatprep.subr.bf16.mxu1 %v648_v5  ;;  %v656_v13 = vld [vmem:[%s856_s1 + $0xe0] sm:$0xff]   ;;  %v660_v17 = vld [vmem:[%s856_s1 + $0xd8] sm:$0xff]   ;;  %v664_v21 = vld [vmem:[%s856_s1 + $0xd0] sm:$0xff]  }
   0x7   :  { %v657_v14 = vld [vmem:[%s856_s1 + $0x20] sm:$0xff]   ;;  %v661_v18 = vld [vmem:[%s856_s1 + $0x18] sm:$0xff]   ;;  %v665_v22 = vld [vmem:[%s856_s1 + $0x10] sm:$0xff]  }
   0x8   :  { %571 = vmatpush3.bf16.msra.mxu0 %v649_v6  ;;  %v658_v15 = vld [vmem:[%s856_s1 + $0xa0] sm:$0xff]   ;;  %v662_v19 = vld [vmem:[%s856_s1 + $0x98] sm:$0xff]   ;;  %v666_v23 = vld [vmem:[%s856_s1 + $0x90] sm:$0xff]  }
   0x9   :  { %593 = vmatpush3.bf16.msra.mxu1 %v650_v7  ;;  %572 = vmatprep.subr.bf16.mxu0 %v651_v8  ;;  %v667_v24 = vld [vmem:[%s856_s1 + $0x48] sm:$0xff]   ;;  %v671_v28 = vld [vmem:[%s856_s1 + $0x40] sm:$0xff]   ;;  %v681_v37 = vld [vmem:[%s856_s1 + $0x138] sm:$0xff]  }
   0xa   :  { %594 = vmatprep.subr.bf16.mxu1 %v652_v9  ;;  %v668_v25 = vld [vmem:[%s856_s1 + $0xc8] sm:$0xff]   ;;  %v672_v29 = vld [vmem:[%s856_s1 + $0xc0] sm:$0xff]   ;;  %v682_v38 = vld [vmem:[%s856_s1 + $0x130] sm:$0xff]  }
   0xb   :  { %v669_v26 = vld [vmem:[%s856_s1 + $0x8] sm:$0xff]   ;;  %v673_v30 = vld [vmem:[%s856_s1] sm:$0xff]   ;;  %v685_v41 = vld [vmem:[%s856_s1 + $0x118] sm:$0xff]  }
   0xc   :  { %573 = vmatpush3.bf16.msra.mxu0 %v653_v10  ;;  %v670_v27 = vld [vmem:[%s856_s1 + $0x88] sm:$0xff]   ;;  %v674_v31 = vld [vmem:[%s856_s1 + $0x80] sm:$0xff]   ;;  %v686_v42 = vld [vmem:[%s856_s1 + $0x110] sm:$0xff]  }
   0xd   :  { %595 = vmatpush3.bf16.msra.mxu1 %v654_v11  ;;  %574 = vmatprep.subr.bf16.mxu0 %v655_v12  ;;  %v675_v32 = vld [vmem:[%s857_s0] ss:$20 sps:$4 sm:$0xff]   ;;  %v677_v33 = vld [vmem:[%s857_s0 + $0x4] ss:$20 sps:$4 sm:$0xff]   ;;  %v678_v35 = vld [vmem:[%s857_s0 + $0x8] ss:$20 sps:$4 sm:$0xff]  }
   0xe   :  { %596 = vmatprep.subr.bf16.mxu1 %v656_v13  ;;  %v680_v36 = vld [vmem:[%s857_s0 + $0xc] ss:$20 sps:$4 sm:$0xff]   ;;  %407 = vmatprep.mubr.bf16.mxu0 %v677_v33  ;;  %v689_v45 = vld [vmem:[%s857_s0 + $0x10] ss:$20 sps:$4 sm:$0xff]  }
   0xf   :  { %448 = vmatprep.mubr.bf16.mxu1 %v680_v36  ;;  %v683_v39 = vld [vmem:[%s856_s1 + $0x128] sm:$0xff]   ;;  %v684_v40 = vld [vmem:[%s856_s1 + $0x120] sm:$0xff]  }
  0x10   :  { %575 = vmatpush3.bf16.msra.mxu0 %v657_v14  ;;  %v687_v43 = vld [vmem:[%s856_s1 + $0x108] sm:$0xff]   ;;  %v688_v44 = vld [vmem:[%s856_s1 + $0x100] sm:$0xff]  }
  0x11   :  { %597 = vmatpush3.bf16.msra.mxu1 %v658_v15  ;;  %576 = vmatprep.subr.bf16.mxu0 %v659_v16  ;;  %v567_v60 = vld [vmem:[%s858_s2] ss:$0 sm:$0xff] }
  0x12   :  { %598 = vmatprep.subr.bf16.mxu1 %v660_v17 }
  0x14   :  { %577 = vmatpush3.bf16.msra.mxu0 %v661_v18 }
  0x15   :  { %599 = vmatpush3.bf16.msra.mxu1 %v662_v19  ;;  %578 = vmatprep.subr.bf16.mxu0 %v663_v20 }
  0x16   :  { %600 = vmatprep.subr.bf16.mxu1 %v664_v21 }
  0x18   :  { %579 = vmatpush3.bf16.msra.mxu0 %v665_v22 }
  0x19   :  { %601 = vmatpush3.bf16.msra.mxu1 %v666_v23  ;;  %580 = vmatprep.subr.bf16.mxu0 %v667_v24 }
  0x1a   :  { %602 = vmatprep.subr.bf16.mxu1 %v668_v25 }
  0x1c   :  { %581 = vmatpush3.bf16.msra.mxu0 %v669_v26 }
  0x1d   :  { %603 = vmatpush3.bf16.msra.mxu1 %v670_v27  ;;  %582 = vmatprep.subr.bf16.mxu0 %v671_v28 }
  0x1e   :  { %604 = vmatprep.subr.bf16.mxu1 %v672_v29 }
  0x20   :  { %583 = vmatpush3.bf16.msra.mxu0 %v673_v30 }
  0x21   :  { %605 = vmatpush3.bf16.msra.mxu1 %v674_v31  ;;  %621 = vmatprep.subr.bf16.mxu0 %v690_v34 }
  0x23   :  { %408 = vmatmul.mubr.bf16.vlgmr.msra.gmra.mxu0 %v675_v32 }
  0x24   :  { %449 = vmatmul.mubr.bf16.vlgmr.msra.gmra.mxu1 %v678_v35  ;;  %622 = vmatpush3.bf16.msra.mxu0 %v681_v37 }
  0x25   :  { %623 = vmatprep.subr.bf16.mxu0 %v690_v34  ;;  %637 = vmatprep.mubr.msk.bf16.mxu0 %vm691_vm0, %v690_v34 }
  0x28   :  { %624 = vmatpush3.bf16.msra.mxu0 %v682_v38 }
  0x29   :  { %625 = vmatprep.subr.bf16.mxu0 %v690_v34 }
  0x2c   :  { %626 = vmatpush3.bf16.msra.mxu0 %v683_v39 }
  0x2d   :  { %627 = vmatprep.subr.bf16.mxu0 %v690_v34 }
  0x30   :  { %628 = vmatpush3.bf16.msra.mxu0 %v684_v40 }
  0x31   :  { %629 = vmatprep.subr.bf16.mxu0 %v690_v34 }
  0x34   :  { %630 = vmatpush3.bf16.msra.mxu0 %v685_v41 }
  0x35   :  { %631 = vmatprep.subr.bf16.mxu0 %v690_v34 }
  0x38   :  { %632 = vmatpush3.bf16.msra.mxu0 %v686_v42 }
  0x39   :  { %633 = vmatprep.subr.bf16.mxu0 %v690_v34 }
  0x3c   :  { %634 = vmatpush3.bf16.msra.mxu0 %v687_v43 }
  0x3d   :  { %635 = vmatprep.subr.bf16.mxu0 %v690_v34 }
  0x40   :  { %636 = vmatpush3.bf16.msra.mxu0 %v688_v44 }
  0x43   :  { %638 = vmatmul.mubr.bf16.vlgmr.msra.gmra.mxu0 %v689_v45 }
  0xe3   :  { %v584_v46 = vpop.f32.mrf.mxu0 }
  0xe4   :  { %v606_v47 = vpop.f32.mrf.mxu1 }
  0xe5   :  { %v585_v48 = vpop.f32.mrf.mxu0 }
  0xe6   :  { %v607_v49 = vpop.f32.mrf.mxu1  ;;  %v586_v52 = vadd.f32 %v585_v48, %v584_v46 }
  0xe7   :  { %v587_v50 = vpop.f32.mrf.mxu0  ;;  %v608_v53 = vadd.f32 %v607_v49, %v606_v47 }
  0xe8   :  { %v609_v51 = vpop.f32.mrf.mxu1 }
  0xe9   :  { %v588_v54 = vpop.f32.mrf.mxu0  ;;  %v451_v58 = vadd.f32 %v608_v53, %v586_v52 }
  0xea   :  { %v610_v55 = vpop.f32.mrf.mxu1  ;;  %v589_v56 = vadd.f32 %v588_v54, %v587_v50 }
  0xeb   :  { %v611_v57 = vadd.f32 %v610_v55, %v609_v51 }
  0xed   :  { %v454_v0 = vadd.f32 %v611_v57, %v589_v56 }
 0x103   :  { %v491_v59 = vpop.f32.mrf.mxu0 }
 0x104   :  { %v492_v61 = vadd.f32 %v491_v59, %v451_v58 }
 0x105   :  { %v639_v62 = vpop.f32.mrf.mxu0 }
 0x106   :  { %v514_v63 = vadd.f32 %v567_v60, %v492_v61 }
 0x107   :  { %v494_v1 = vpop.f32.mrf.mxu0 }
 0x108   :  { %516 = vst [vmem:[%s859_s3] sm:$0xff] %v514_v63  ;;  %v495_v2 = vadd.f32 %v494_v1, %v454_v0 }
 0x109   :  { %v640_v3 = vpop.f32.mrf.mxu0 }
 0x10a   :  { %v515_v4 = vadd.f32 %v567_v60, %v495_v2 }
 0x10c   :  { %517 = vst [vmem:[%s859_s3 + $0x8] sm:$0xff] %v515_v4 }

</bundles_post_ra>
